<compile_context>
chip_gen: v7x
topology: tpu7x:2x2x1
jax: 0.10.0
libtpu: 0.0.40
codegen_flags: <defaults>
</compile_context>

<pallas_src>
import jax
import jax.numpy as jnp
from jax import lax
from jax.experimental import pallas as pl
from jax.experimental.pallas import tpu as pltpu

# ---- small, TPU-friendly shapes consistent with the module's forward --------
B = 8            # batch
T = 8            # sequence length
E = 128          # embedding_dim
H = 128          # hidden_dim
O = 8            # output_dim (number of classes)
NUM_LAYERS = 3
INIT_EXIT_WEIGHTS = (1.0, 0.5, 0.25)


# ----------------------------- fused Pallas kernel ---------------------------
def _fused_forward_kernel(
    x_ref,        # (T*B, E)  bf16, time-major, flattened
    inp_w_ref,    # (E, H)    bf16
    inp_b_ref,    # (1, H)    f32
    wih_ref,      # (L, H, 4H) bf16   gate cols packed [i, f, o, g]
    whh_ref,      # (L, H, 4H) bf16   gate cols packed [i, f, o, g]
    bg_ref,       # (L, 1, 4H) f32    = b_ih + b_hh, packed [i, f, o, g]
    ew_ref,       # (L, H, O)  f32
    eb_ref,       # (L, 1, O)  f32
    y1h_ref,      # (B, O)     f32    one-hot labels
    sw_ref,       # (L,)  SMEM f32    scale_weights[i].weight
    sb_ref,       # (L,)  SMEM f32    scale_weights[i].bias
    out_ref,      # (1, 128)   f32    [loss, ent_0, ent_1, ent_2, 0, ...]
    gx0_scr,      # VMEM (T*B, 4H) f32  layer-0 hoisted x @ W_ih (+ bias)
):
    tb = x_ref.shape[0]
    h_len = inp_w_ref.shape[1]
    n_layers = wih_ref.shape[0]
    b_len = y1h_ref.shape[0]
    t_len = tb // b_len
    f32 = jnp.float32
    bf16 = jnp.bfloat16

    # --- bulk prologue (off the recurrent critical path): input Linear, then
    #     layer-0 input-gate projections hoisted over all T timesteps.
    inp = (
        jnp.dot(x_ref[...], inp_w_ref[...], preferred_element_type=f32)
        + inp_b_ref[...]
    )
    gx0_scr[...] = (
        jnp.dot(inp.astype(bf16), wih_ref[0], preferred_element_type=f32)
        + bg_ref[0]
    )

    # --- one LSTM cell update (gate math in f32, MXU operands bf16) ---------
    def cell(layer, gx, h_prev, c_prev):
        gates = gx + jnp.dot(h_prev.astype(bf16), whh_ref[layer],
                             preferred_element_type=f32)
        # gate columns packed [i, f, o, g]: one wide sigmoid + one tanh.
        sig = jax.nn.sigmoid(gates[:, : 3 * h_len])
        i_g = sig[:, 0 * h_len:1 * h_len]
        f_g = sig[:, 1 * h_len:2 * h_len]
        o_g = sig[:, 2 * h_len:3 * h_len]
        g_g = jnp.tanh(gates[:, 3 * h_len:])
        c_new = f_g * c_prev + i_g * g_g
        h_new = o_g * jnp.tanh(c_new)
        return h_new, c_new

    # --- wavefront recurrence: at wavefront step w, layer l advances step
    #     t = w - l.  Cells of different layers within a wavefront step are
    #     independent, so their MXU / EUP work overlaps.
    h = [jnp.zeros((b_len, h_len), f32) for _ in range(n_layers)]
    c = [jnp.zeros((b_len, h_len), f32) for _ in range(n_layers)]
    gx_cache = {}                    # (layer, t) -> (B, 4H) f32, layers >= 1
    h_final = [None] * n_layers

    for w in range(t_len + n_layers - 1):
        for layer in range(n_layers):
            t = w - layer
            if not (0 <= t < t_len):
                continue
            if layer == 0:
                gx = gx0_scr[pl.ds(t * b_len, b_len), :]
            else:
                gx = gx_cache.pop((layer, t))
            h[layer], c[layer] = cell(layer, gx, h[layer], c[layer])
            # As soon as layer l produces h_t, project it for layer l+1 so
            # the next wavefront step can advance that layer immediately.
            if layer + 1 < n_layers:
                gx_cache[(layer + 1, t)] = (
                    jnp.dot(h[layer].astype(bf16), wih_ref[layer + 1],
                            preferred_element_type=f32)
                    + bg_ref[layer + 1]
                )
            if t == t_len - 1:
                h_final[layer] = h[layer]

    # --- epilogue (off the serial path): exit heads, log-softmax, CE,
    #     neg-entropy, scale_weights[i](ce) = w*ce + b, accumulate loss.
    loss = jnp.float32(0.0)
    neg_ents = []
    for layer in range(n_layers):
        logits = (
            jnp.dot(h_final[layer], ew_ref[layer], preferred_element_type=f32)
            + eb_ref[layer]
        )
        m = jnp.max(logits, axis=1, keepdims=True)
        z = logits - m
        lse = jnp.log(jnp.sum(jnp.exp(z), axis=1, keepdims=True))
        logp = z - lse            # log_softmax(logits, dim=1)
        p = jnp.exp(logp)         # softmax
        neg_ents.append(jnp.sum(p * logp) / b_len)
        ce = -jnp.sum(y1h_ref[...] * logp) / b_len
        loss = loss + sw_ref[layer] * ce + sb_ref[layer]

    # Pack [loss, neg_entropy_0..L-1] into a single lane-dense (1, 128) vector.
    lane = lax.broadcasted_iota(jnp.int32, out_ref.shape, 1)
    result = jnp.where(lane == 0, loss, jnp.float32(0.0))
    for i, e in enumerate(neg_ents):
        result = jnp.where(lane == i + 1, e, result)
    out_ref[...] = result


# ----------------------------- forward wrapper --------------------------------
def stacked_lstm_bn_forward(params, batch, labels):
    """batch: (B, T, E) f32, labels: (B,) i32 -> (loss (1,1), [neg_entropy]*L)."""
    b_len, t_len, e_len = batch.shape
    h_len = params["inp_w"].shape[1]
    o_len = params["exit_w"].shape[2]
    n_layers = params["lstm_w_ih"].shape[0]

    # time-major, flattened to (T*B, E) so per-timestep slices are aligned tiles.
    x2d = jnp.transpose(batch, (1, 0, 2)).reshape(t_len * b_len, e_len)
    labels_1h = jax.nn.one_hot(labels, o_len, dtype=jnp.float32)

    bf16 = jnp.bfloat16
    vmem = pl.BlockSpec(memory_space=pltpu.MemorySpace.VMEM)
    smem = pl.BlockSpec(memory_space=pltpu.MemorySpace.SMEM)

    out = pl.pallas_call(
        _fused_forward_kernel,
        out_shape=jax.ShapeDtypeStruct((1, 128), jnp.float32),
        # No grid: single invocation, whole arrays resident in VMEM/SMEM,
        # no pipeline machinery, no double-buffering of the weights.
        in_specs=[vmem] * 9 + [smem, smem],
        out_specs=vmem,
        scratch_shapes=[
            pltpu.VMEM((t_len * b_len, 4 * h_len), jnp.float32),  # layer-0 gx
        ],
    )(
        x2d.astype(bf16),
        params["inp_w"].astype(bf16), params["inp_b"],
        params["lstm_w_ih"].astype(bf16), params["lstm_w_hh"].astype(bf16),
        params["lstm_b"],
        params["exit_w"], params["exit_b"], labels_1h,
        params["scale_w"], params["scale_b"],
    )

    loss = out[0, 0].reshape(1, 1)
    neg_entropy = [out[0, 1 + i] for i in range(n_layers)]
    return loss, neg_entropy


# ----------------------------- pure-JAX f32 reference -------------------------
def reference_forward(params, batch, labels):
    b_len, t_len, _ = batch.shape
    h_len = params["inp_w"].shape[1]
    o_len = params["exit_w"].shape[2]
    n_layers = params["lstm_w_ih"].shape[0]
    y1h = jax.nn.one_hot(labels, o_len, dtype=jnp.float32)

    seq = batch @ params["inp_w"] + params["inp_b"]          # (B, T, H)
    loss = jnp.zeros((), jnp.float32)
    neg = []
    for l in range(n_layers):
        h = jnp.zeros((b_len, h_len), jnp.float32)
        c = jnp.zeros((b_len, h_len), jnp.float32)
        outs = []
        for t in range(t_len):
            gates = (seq[:, t, :] @ params["lstm_w_ih"][l]
                     + h @ params["lstm_w_hh"][l] + params["lstm_b"][l])
            i_g = jax.nn.sigmoid(gates[:, 0 * h_len:1 * h_len])
            f_g = jax.nn.sigmoid(gates[:, 1 * h_len:2 * h_len])
            o_g = jax.nn.sigmoid(gates[:, 2 * h_len:3 * h_len])
            g_g = jnp.tanh(gates[:, 3 * h_len:4 * h_len])
            c = f_g * c + i_g * g_g
            h = o_g * jnp.tanh(c)
            outs.append(h)
        seq = jnp.stack(outs, axis=1)
        logits = h @ params["exit_w"][l] + params["exit_b"][l]
        logp = jax.nn.log_softmax(logits, axis=1)
        p = jnp.exp(logp)
        neg.append(jnp.sum(p * logp) / b_len)
        ce = -jnp.sum(y1h * logp) / b_len
        loss = loss + params["scale_w"][l] * ce + params["scale_b"][l]
    return loss.reshape(1, 1), neg


# ----------------------------- parameter init --------------------------------
def init_params(key):
    n_keys = 2 + 4 * NUM_LAYERS + 2 * NUM_LAYERS
    keys = iter(jax.random.split(key, n_keys))
    params = {}

    # inp: Linear(E, H) with kaiming_normal_ weight (fan_in = E), default bias.
    params["inp_w"] = ((2.0 / E) ** 0.5) * jax.random.normal(next(keys), (E, H), jnp.float32)
    bi = 1.0 / (E ** 0.5)
    params["inp_b"] = jax.random.uniform(next(keys), (1, H), jnp.float32, -bi, bi)

    # LSTM layers: PyTorch default U(-1/sqrt(H), 1/sqrt(H)).
    # Gate columns are packed [i, f, o, g] (host-side repack of PyTorch's
    # [i, f, g, o]) so the kernel issues one wide sigmoid + one tanh per step.
    k = 1.0 / (H ** 0.5)
    w_ih, w_hh, bg = [], [], []
    for _ in range(NUM_LAYERS):
        w_ih.append(jax.random.uniform(next(keys), (H, 4 * H), jnp.float32, -k, k))
        w_hh.append(jax.random.uniform(next(keys), (H, 4 * H), jnp.float32, -k, k))
        b_ih = jax.random.uniform(next(keys), (1, 4 * H), jnp.float32, -k, k)
        b_hh = jax.random.uniform(next(keys), (1, 4 * H), jnp.float32, -k, k)
        bg.append(b_ih + b_hh)
    params["lstm_w_ih"] = jnp.stack(w_ih)   # (L, H, 4H), stored (in, out)
    params["lstm_w_hh"] = jnp.stack(w_hh)   # (L, H, 4H)
    params["lstm_b"] = jnp.stack(bg)        # (L, 1, 4H)

    # exits: Linear(H, O) with kaiming_normal_ weight (fan_in = H), default bias.
    be = 1.0 / (H ** 0.5)
    ew, eb = [], []
    for _ in range(NUM_LAYERS):
        ew.append(((2.0 / H) ** 0.5) * jax.random.normal(next(keys), (H, O), jnp.float32))
        eb.append(jax.random.uniform(next(keys), (1, O), jnp.float32, -be, be))
    params["exit_w"] = jnp.stack(ew)        # (L, H, O)
    params["exit_b"] = jnp.stack(eb)        # (L, 1, O)

    # scale_weights: Linear(1,1) with weight filled to init_exit_weights[i], bias 0.
    params["scale_w"] = jnp.asarray(INIT_EXIT_WEIGHTS, jnp.float32)   # (L,)
    params["scale_b"] = jnp.zeros((NUM_LAYERS,), jnp.float32)         # (L,)
    return params


# ----------------------------------- main -------------------------------------
if __name__ == "__main__":
    key = jax.random.PRNGKey(0)
    k_params, k_batch, k_labels = jax.random.split(key, 3)

    params = init_params(k_params)
    batch = jax.random.normal(k_batch, (B, T, E), jnp.float32)
    labels = jax.random.randint(k_labels, (B,), 0, O, dtype=jnp.int32)

    fwd = jax.jit(stacked_lstm_bn_forward)
    loss, neg_entropy = fwd(params, batch, labels)
    jax.block_until_ready((loss, neg_entropy))

    # Validate against the f32 pure-JAX reference (loose tolerance: the kernel
    # feeds the MXU bf16 operands, the reference is all-f32).
    ref_loss, ref_neg = reference_forward(params, batch, labels)
    assert jnp.allclose(loss, ref_loss, rtol=1e-1, atol=1e-1), (loss, ref_loss)
    for got, want in zip(neg_entropy, ref_neg):
        assert jnp.allclose(got, want, rtol=1e-1, atol=1e-1), (got, want)

    print("KERNEL_OK")
</pallas_src>

<mosaic_0001>
module attributes {stable_mosaic.version = 11 : i64} {
  func.func @_fused_forward_kernel(%arg0: memref<64x128xbf16, #tpu.memory_space<vmem>>, %arg1: memref<128x128xbf16, #tpu.memory_space<vmem>>, %arg2: memref<1x128xf32, #tpu.memory_space<vmem>>, %arg3: memref<3x128x512xbf16, #tpu.memory_space<vmem>>, %arg4: memref<3x128x512xbf16, #tpu.memory_space<vmem>>, %arg5: memref<3x1x512xf32, #tpu.memory_space<vmem>>, %arg6: memref<3x128x8xf32, #tpu.memory_space<vmem>>, %arg7: memref<3x1x8xf32, #tpu.memory_space<vmem>>, %arg8: memref<8x8xf32, #tpu.memory_space<vmem>>, %arg9: memref<3xf32, #tpu.memory_space<smem>>, %arg10: memref<3xf32, #tpu.memory_space<smem>>, %arg11: memref<1x128xf32, #tpu.memory_space<vmem>>, %arg12: memref<64x512xf32, #tpu.memory_space<vmem>>) attributes {dimension_semantics = [], scalar_prefetch = 0 : i64, scratch_operands = 1 : i64, tpu.core_type = #tpu.core_type<tc>} {
    %c0 = arith.constant 0 : index
    %c0_0 = arith.constant 0 : index
    %0 = vector.load %arg0[%c0, %c0_0] : memref<64x128xbf16, #tpu.memory_space<vmem>>, vector<64x128xbf16>
    %c0_1 = arith.constant 0 : index
    %c0_2 = arith.constant 0 : index
    %1 = vector.load %arg1[%c0_1, %c0_2] : memref<128x128xbf16, #tpu.memory_space<vmem>>, vector<128x128xbf16>
    %cst = arith.constant dense<0.000000e+00> : vector<64x128xf32>
    %2 = tpu.matmul %0, %1, %cst {dimension_numbers = #tpu.dot_dimension_numbers<[1], [0], [0], [1], [0, 0, 1, 1], [], []>} : vector<64x128xbf16>, vector<128x128xbf16>, vector<64x128xf32> -> vector<64x128xf32>
    %c0_3 = arith.constant 0 : index
    %c0_4 = arith.constant 0 : index
    %3 = vector.load %arg2[%c0_3, %c0_4] : memref<1x128xf32, #tpu.memory_space<vmem>>, vector<1x128xf32>
    %4 = vector.broadcast %3 : vector<1x128xf32> to vector<64x128xf32>
    %5 = arith.addf %2, %4 : vector<64x128xf32>
    %6 = arith.truncf %5 : vector<64x128xf32> to vector<64x128xbf16>
    %c0_5 = arith.constant 0 : index
    %c0_6 = arith.constant 0 : index
    %c0_7 = arith.constant 0 : index
    %7 = vector.load %arg3[%c0_5, %c0_6, %c0_7] : memref<3x128x512xbf16, #tpu.memory_space<vmem>>, vector<1x128x512xbf16>
    %8 = vector.shape_cast %7 : vector<1x128x512xbf16> to vector<128x512xbf16>
    %cst_8 = arith.constant dense<0.000000e+00> : vector<64x512xf32>
    %9 = tpu.matmul %6, %8, %cst_8 {dimension_numbers = #tpu.dot_dimension_numbers<[1], [0], [0], [1], [0, 0, 1, 1], [], []>} : vector<64x128xbf16>, vector<128x512xbf16>, vector<64x512xf32> -> vector<64x512xf32>
    %c0_9 = arith.constant 0 : index
    %c0_10 = arith.constant 0 : index
    %c0_11 = arith.constant 0 : index
    %10 = vector.load %arg5[%c0_9, %c0_10, %c0_11] : memref<3x1x512xf32, #tpu.memory_space<vmem>>, vector<1x1x512xf32>
    %11 = vector.shape_cast %10 : vector<1x1x512xf32> to vector<1x512xf32>
    %12 = vector.broadcast %11 : vector<1x512xf32> to vector<64x512xf32>
    %13 = arith.addf %9, %12 : vector<64x512xf32>
    %c0_12 = arith.constant 0 : index
    %c0_13 = arith.constant 0 : index
    %14 = vector.load %arg12[%c0_12, %c0_13] : memref<64x512xf32, #tpu.memory_space<vmem>>, vector<64x512xf32>
    tpu.vector_store %arg12[%c0_12, %c0_13], %13 {strides = array<i32>} : memref<64x512xf32, #tpu.memory_space<vmem>>, vector<64x512xf32>,
    %cst_14 = arith.constant 0.000000e+00 : f32
    %15 = vector.broadcast %cst_14 : f32 to vector<8x128xf32>
    %cst_15 = arith.constant 0.000000e+00 : f32
    %16 = vector.broadcast %cst_15 : f32 to vector<8x128xf32>
    %cst_16 = arith.constant 0.000000e+00 : f32
    %17 = vector.broadcast %cst_16 : f32 to vector<8x128xf32>
    %cst_17 = arith.constant 0.000000e+00 : f32
    %18 = vector.broadcast %cst_17 : f32 to vector<8x128xf32>
    %cst_18 = arith.constant 0.000000e+00 : f32
    %19 = vector.broadcast %cst_18 : f32 to vector<8x128xf32>
    %cst_19 = arith.constant 0.000000e+00 : f32
    %20 = vector.broadcast %cst_19 : f32 to vector<8x128xf32>
    %c0_20 = arith.constant 0 : index
    %c0_21 = arith.constant 0 : index
    %21 = vector.load %arg12[%c0_20, %c0_21] : memref<64x512xf32, #tpu.memory_space<vmem>>, vector<8x512xf32>
    %22 = arith.truncf %15 : vector<8x128xf32> to vector<8x128xbf16>
    %c0_22 = arith.constant 0 : index
    %c0_23 = arith.constant 0 : index
    %c0_24 = arith.constant 0 : index
    %23 = vector.load %arg4[%c0_22, %c0_23, %c0_24] : memref<3x128x512xbf16, #tpu.memory_space<vmem>>, vector<1x128x512xbf16>
    %24 = vector.shape_cast %23 : vector<1x128x512xbf16> to vector<128x512xbf16>
    %cst_25 = arith.constant dense<0.000000e+00> : vector<8x512xf32>
    %25 = tpu.matmul %22, %24, %cst_25 {dimension_numbers = #tpu.dot_dimension_numbers<[1], [0], [0], [1], [0, 0, 1, 1], [], []>} : vector<8x128xbf16>, vector<128x512xbf16>, vector<8x512xf32> -> vector<8x512xf32>
    %26 = arith.addf %21, %25 : vector<8x512xf32>
    %27 = vector.extract_strided_slice %26 {offsets = [0, 0], sizes = [8, 384], strides = [1, 1]} : vector<8x512xf32> to vector<8x384xf32>
    %28 = arith.negf %27 : vector<8x384xf32>
    %29 = math.exp %28 : vector<8x384xf32>
    %cst_26 = arith.constant 1.000000e+00 : f32
    %30 = vector.broadcast %cst_26 : f32 to vector<8x384xf32>
    %31 = arith.addf %30, %29 : vector<8x384xf32>
    %32 = arith.divf %30, %31 : vector<8x384xf32>
    %33 = vector.extract_strided_slice %32 {offsets = [0, 0], sizes = [8, 128], strides = [1, 1]} : vector<8x384xf32> to vector<8x128xf32>
    %34 = vector.extract_strided_slice %32 {offsets = [0, 128], sizes = [8, 128], strides = [1, 1]} : vector<8x384xf32> to vector<8x128xf32>
    %35 = vector.extract_strided_slice %32 {offsets = [0, 256], sizes = [8, 128], strides = [1, 1]} : vector<8x384xf32> to vector<8x128xf32>
    %36 = vector.extract_strided_slice %26 {offsets = [0, 384], sizes = [8, 128], strides = [1, 1]} : vector<8x512xf32> to vector<8x128xf32>
    %37 = math.tanh %36 : vector<8x128xf32>
    %38 = arith.mulf %34, %18 : vector<8x128xf32>
    %39 = arith.mulf %33, %37 : vector<8x128xf32>
    %40 = arith.addf %38, %39 : vector<8x128xf32>
    %41 = math.tanh %40 : vector<8x128xf32>
    %42 = arith.mulf %35, %41 : vector<8x128xf32>
    %43 = arith.truncf %42 : vector<8x128xf32> to vector<8x128xbf16>
    %c1 = arith.constant 1 : index
    %c0_27 = arith.constant 0 : index
    %c0_28 = arith.constant 0 : index
    %44 = vector.load %arg3[%c1, %c0_27, %c0_28] : memref<3x128x512xbf16, #tpu.memory_space<vmem>>, vector<1x128x512xbf16>
    %45 = vector.shape_cast %44 : vector<1x128x512xbf16> to vector<128x512xbf16>
    %cst_29 = arith.constant dense<0.000000e+00> : vector<8x512xf32>
    %46 = tpu.matmul %43, %45, %cst_29 {dimension_numbers = #tpu.dot_dimension_numbers<[1], [0], [0], [1], [0, 0, 1, 1], [], []>} : vector<8x128xbf16>, vector<128x512xbf16>, vector<8x512xf32> -> vector<8x512xf32>
    %c1_30 = arith.constant 1 : index
    %c0_31 = arith.constant 0 : index
    %c0_32 = arith.constant 0 : index
    %47 = vector.load %arg5[%c1_30, %c0_31, %c0_32] : memref<3x1x512xf32, #tpu.memory_space<vmem>>, vector<1x1x512xf32>
    %48 = vector.shape_cast %47 : vector<1x1x512xf32> to vector<1x512xf32>
    %49 = vector.broadcast %48 : vector<1x512xf32> to vector<8x512xf32>
    %50 = arith.addf %46, %49 : vector<8x512xf32>
    %c8 = arith.constant 8 : index
    %c0_33 = arith.constant 0 : index
    %51 = vector.load %arg12[%c8, %c0_33] : memref<64x512xf32, #tpu.memory_space<vmem>>, vector<8x512xf32>
    %52 = arith.truncf %42 : vector<8x128xf32> to vector<8x128xbf16>
    %c0_34 = arith.constant 0 : index
    %c0_35 = arith.constant 0 : index
    %c0_36 = arith.constant 0 : index
    %53 = vector.load %arg4[%c0_34, %c0_35, %c0_36] : memref<3x128x512xbf16, #tpu.memory_space<vmem>>, vector<1x128x512xbf16>
    %54 = vector.shape_cast %53 : vector<1x128x512xbf16> to vector<128x512xbf16>
    %cst_37 = arith.constant dense<0.000000e+00> : vector<8x512xf32>
    %55 = tpu.matmul %52, %54, %cst_37 {dimension_numbers = #tpu.dot_dimension_numbers<[1], [0], [0], [1], [0, 0, 1, 1], [], []>} : vector<8x128xbf16>, vector<128x512xbf16>, vector<8x512xf32> -> vector<8x512xf32>
    %56 = arith.addf %51, %55 : vector<8x512xf32>
    %57 = vector.extract_strided_slice %56 {offsets = [0, 0], sizes = [8, 384], strides = [1, 1]} : vector<8x512xf32> to vector<8x384xf32>
    %58 = arith.negf %57 : vector<8x384xf32>
    %59 = math.exp %58 : vector<8x384xf32>
    %cst_38 = arith.constant 1.000000e+00 : f32
    %60 = vector.broadcast %cst_38 : f32 to vector<8x384xf32>
    %61 = arith.addf %60, %59 : vector<8x384xf32>
    %62 = arith.divf %60, %61 : vector<8x384xf32>
    %63 = vector.extract_strided_slice %62 {offsets = [0, 0], sizes = [8, 128], strides = [1, 1]} : vector<8x384xf32> to vector<8x128xf32>
    %64 = vector.extract_strided_slice %62 {offsets = [0, 128], sizes = [8, 128], strides = [1, 1]} : vector<8x384xf32> to vector<8x128xf32>
    %65 = vector.extract_strided_slice %62 {offsets = [0, 256], sizes = [8, 128], strides = [1, 1]} : vector<8x384xf32> to vector<8x128xf32>
    %66 = vector.extract_strided_slice %56 {offsets = [0, 384], sizes = [8, 128], strides = [1, 1]} : vector<8x512xf32> to vector<8x128xf32>
    %67 = math.tanh %66 : vector<8x128xf32>
    %68 = arith.mulf %64, %40 : vector<8x128xf32>
    %69 = arith.mulf %63, %67 : vector<8x128xf32>
    %70 = arith.addf %68, %69 : vector<8x128xf32>
    %71 = math.tanh %70 : vector<8x128xf32>
    %72 = arith.mulf %65, %71 : vector<8x128xf32>
    %73 = arith.truncf %72 : vector<8x128xf32> to vector<8x128xbf16>
    %c1_39 = arith.constant 1 : index
    %c0_40 = arith.constant 0 : index
    %c0_41 = arith.constant 0 : index
    %74 = vector.load %arg3[%c1_39, %c0_40, %c0_41] : memref<3x128x512xbf16, #tpu.memory_space<vmem>>, vector<1x128x512xbf16>
    %75 = vector.shape_cast %74 : vector<1x128x512xbf16> to vector<128x512xbf16>
    %cst_42 = arith.constant dense<0.000000e+00> : vector<8x512xf32>
    %76 = tpu.matmul %73, %75, %cst_42 {dimension_numbers = #tpu.dot_dimension_numbers<[1], [0], [0], [1], [0, 0, 1, 1], [], []>} : vector<8x128xbf16>, vector<128x512xbf16>, vector<8x512xf32> -> vector<8x512xf32>
    %c1_43 = arith.constant 1 : index
    %c0_44 = arith.constant 0 : index
    %c0_45 = arith.constant 0 : index
    %77 = vector.load %arg5[%c1_43, %c0_44, %c0_45] : memref<3x1x512xf32, #tpu.memory_space<vmem>>, vector<1x1x512xf32>
    %78 = vector.shape_cast %77 : vector<1x1x512xf32> to vector<1x512xf32>
    %79 = vector.broadcast %78 : vector<1x512xf32> to vector<8x512xf32>
    %80 = arith.addf %76, %79 : vector<8x512xf32>
    %81 = arith.truncf %16 : vector<8x128xf32> to vector<8x128xbf16>
    %c1_46 = arith.constant 1 : index
    %c0_47 = arith.constant 0 : index
    %c0_48 = arith.constant 0 : index
    %82 = vector.load %arg4[%c1_46, %c0_47, %c0_48] : memref<3x128x512xbf16, #tpu.memory_space<vmem>>, vector<1x128x512xbf16>
    %83 = vector.shape_cast %82 : vector<1x128x512xbf16> to vector<128x512xbf16>
    %cst_49 = arith.constant dense<0.000000e+00> : vector<8x512xf32>
    %84 = tpu.matmul %81, %83, %cst_49 {dimension_numbers = #tpu.dot_dimension_numbers<[1], [0], [0], [1], [0, 0, 1, 1], [], []>} : vector<8x128xbf16>, vector<128x512xbf16>, vector<8x512xf32> -> vector<8x512xf32>
    %85 = arith.addf %50, %84 : vector<8x512xf32>
    %86 = vector.extract_strided_slice %85 {offsets = [0, 0], sizes = [8, 384], strides = [1, 1]} : vector<8x512xf32> to vector<8x384xf32>
    %87 = arith.negf %86 : vector<8x384xf32>
    %88 = math.exp %87 : vector<8x384xf32>
    %cst_50 = arith.constant 1.000000e+00 : f32
    %89 = vector.broadcast %cst_50 : f32 to vector<8x384xf32>
    %90 = arith.addf %89, %88 : vector<8x384xf32>
    %91 = arith.divf %89, %90 : vector<8x384xf32>
    %92 = vector.extract_strided_slice %91 {offsets = [0, 0], sizes = [8, 128], strides = [1, 1]} : vector<8x384xf32> to vector<8x128xf32>
    %93 = vector.extract_strided_slice %91 {offsets = [0, 128], sizes = [8, 128], strides = [1, 1]} : vector<8x384xf32> to vector<8x128xf32>
    %94 = vector.extract_strided_slice %91 {offsets = [0, 256], sizes = [8, 128], strides = [1, 1]} : vector<8x384xf32> to vector<8x128xf32>
    %95 = vector.extract_strided_slice %85 {offsets = [0, 384], sizes = [8, 128], strides = [1, 1]} : vector<8x512xf32> to vector<8x128xf32>
    %96 = math.tanh %95 : vector<8x128xf32>
    %97 = arith.mulf %93, %19 : vector<8x128xf32>
    %98 = arith.mulf %92, %96 : vector<8x128xf32>
    %99 = arith.addf %97, %98 : vector<8x128xf32>
    %100 = math.tanh %99 : vector<8x128xf32>
    %101 = arith.mulf %94, %100 : vector<8x128xf32>
    %102 = arith.truncf %101 : vector<8x128xf32> to vector<8x128xbf16>
    %c2 = arith.constant 2 : index
    %c0_51 = arith.constant 0 : index
    %c0_52 = arith.constant 0 : index
    %103 = vector.load %arg3[%c2, %c0_51, %c0_52] : memref<3x128x512xbf16, #tpu.memory_space<vmem>>, vector<1x128x512xbf16>
    %104 = vector.shape_cast %103 : vector<1x128x512xbf16> to vector<128x512xbf16>
    %cst_53 = arith.constant dense<0.000000e+00> : vector<8x512xf32>
    %105 = tpu.matmul %102, %104, %cst_53 {dimension_numbers = #tpu.dot_dimension_numbers<[1], [0], [0], [1], [0, 0, 1, 1], [], []>} : vector<8x128xbf16>, vector<128x512xbf16>, vector<8x512xf32> -> vector<8x512xf32>
    %c2_54 = arith.constant 2 : index
    %c0_55 = arith.constant 0 : index
    %c0_56 = arith.constant 0 : index
    %106 = vector.load %arg5[%c2_54, %c0_55, %c0_56] : memref<3x1x512xf32, #tpu.memory_space<vmem>>, vector<1x1x512xf32>
    %107 = vector.shape_cast %106 : vector<1x1x512xf32> to vector<1x512xf32>
    %108 = vector.broadcast %107 : vector<1x512xf32> to vector<8x512xf32>
    %109 = arith.addf %105, %108 : vector<8x512xf32>
    %c16 = arith.constant 16 : index
    %c0_57 = arith.constant 0 : index
    %110 = vector.load %arg12[%c16, %c0_57] : memref<64x512xf32, #tpu.memory_space<vmem>>, vector<8x512xf32>
    %111 = arith.truncf %72 : vector<8x128xf32> to vector<8x128xbf16>
    %c0_58 = arith.constant 0 : index
    %c0_59 = arith.constant 0 : index
    %c0_60 = arith.constant 0 : index
    %112 = vector.load %arg4[%c0_58, %c0_59, %c0_60] : memref<3x128x512xbf16, #tpu.memory_space<vmem>>, vector<1x128x512xbf16>
    %113 = vector.shape_cast %112 : vector<1x128x512xbf16> to vector<128x512xbf16>
    %cst_61 = arith.constant dense<0.000000e+00> : vector<8x512xf32>
    %114 = tpu.matmul %111, %113, %cst_61 {dimension_numbers = #tpu.dot_dimension_numbers<[1], [0], [0], [1], [0, 0, 1, 1], [], []>} : vector<8x128xbf16>, vector<128x512xbf16>, vector<8x512xf32> -> vector<8x512xf32>
    %115 = arith.addf %110, %114 : vector<8x512xf32>
    %116 = vector.extract_strided_slice %115 {offsets = [0, 0], sizes = [8, 384], strides = [1, 1]} : vector<8x512xf32> to vector<8x384xf32>
    %117 = arith.negf %116 : vector<8x384xf32>
    %118 = math.exp %117 : vector<8x384xf32>
    %cst_62 = arith.constant 1.000000e+00 : f32
    %119 = vector.broadcast %cst_62 : f32 to vector<8x384xf32>
    %120 = arith.addf %119, %118 : vector<8x384xf32>
    %121 = arith.divf %119, %120 : vector<8x384xf32>
    %122 = vector.extract_strided_slice %121 {offsets = [0, 0], sizes = [8, 128], strides = [1, 1]} : vector<8x384xf32> to vector<8x128xf32>
    %123 = vector.extract_strided_slice %121 {offsets = [0, 128], sizes = [8, 128], strides = [1, 1]} : vector<8x384xf32> to vector<8x128xf32>
    %124 = vector.extract_strided_slice %121 {offsets = [0, 256], sizes = [8, 128], strides = [1, 1]} : vector<8x384xf32> to vector<8x128xf32>
    %125 = vector.extract_strided_slice %115 {offsets = [0, 384], sizes = [8, 128], strides = [1, 1]} : vector<8x512xf32> to vector<8x128xf32>
    %126 = math.tanh %125 : vector<8x128xf32>
    %127 = arith.mulf %123, %70 : vector<8x128xf32>
    %128 = arith.mulf %122, %126 : vector<8x128xf32>
    %129 = arith.addf %127, %128 : vector<8x128xf32>
    %130 = math.tanh %129 : vector<8x128xf32>
    %131 = arith.mulf %124, %130 : vector<8x128xf32>
    %132 = arith.truncf %131 : vector<8x128xf32> to vector<8x128xbf16>
    %c1_63 = arith.constant 1 : index
    %c0_64 = arith.constant 0 : index
    %c0_65 = arith.constant 0 : index
    %133 = vector.load %arg3[%c1_63, %c0_64, %c0_65] : memref<3x128x512xbf16, #tpu.memory_space<vmem>>, vector<1x128x512xbf16>
    %134 = vector.shape_cast %133 : vector<1x128x512xbf16> to vector<128x512xbf16>
    %cst_66 = arith.constant dense<0.000000e+00> : vector<8x512xf32>
    %135 = tpu.matmul %132, %134, %cst_66 {dimension_numbers = #tpu.dot_dimension_numbers<[1], [0], [0], [1], [0, 0, 1, 1], [], []>} : vector<8x128xbf16>, vector<128x512xbf16>, vector<8x512xf32> -> vector<8x512xf32>
    %c1_67 = arith.constant 1 : index
    %c0_68 = arith.constant 0 : index
    %c0_69 = arith.constant 0 : index
    %136 = vector.load %arg5[%c1_67, %c0_68, %c0_69] : memref<3x1x512xf32, #tpu.memory_space<vmem>>, vector<1x1x512xf32>
    %137 = vector.shape_cast %136 : vector<1x1x512xf32> to vector<1x512xf32>
    %138 = vector.broadcast %137 : vector<1x512xf32> to vector<8x512xf32>
    %139 = arith.addf %135, %138 : vector<8x512xf32>
    %140 = arith.truncf %101 : vector<8x128xf32> to vector<8x128xbf16>
    %c1_70 = arith.constant 1 : index
    %c0_71 = arith.constant 0 : index
    %c0_72 = arith.constant 0 : index
    %141 = vector.load %arg4[%c1_70, %c0_71, %c0_72] : memref<3x128x512xbf16, #tpu.memory_space<vmem>>, vector<1x128x512xbf16>
    %142 = vector.shape_cast %141 : vector<1x128x512xbf16> to vector<128x512xbf16>
    %cst_73 = arith.constant dense<0.000000e+00> : vector<8x512xf32>
    %143 = tpu.matmul %140, %142, %cst_73 {dimension_numbers = #tpu.dot_dimension_numbers<[1], [0], [0], [1], [0, 0, 1, 1], [], []>} : vector<8x128xbf16>, vector<128x512xbf16>, vector<8x512xf32> -> vector<8x512xf32>
    %144 = arith.addf %80, %143 : vector<8x512xf32>
    %145 = vector.extract_strided_slice %144 {offsets = [0, 0], sizes = [8, 384], strides = [1, 1]} : vector<8x512xf32> to vector<8x384xf32>
    %146 = arith.negf %145 : vector<8x384xf32>
    %147 = math.exp %146 : vector<8x384xf32>
    %cst_74 = arith.constant 1.000000e+00 : f32
    %148 = vector.broadcast %cst_74 : f32 to vector<8x384xf32>
    %149 = arith.addf %148, %147 : vector<8x384xf32>
    %150 = arith.divf %148, %149 : vector<8x384xf32>
    %151 = vector.extract_strided_slice %150 {offsets = [0, 0], sizes = [8, 128], strides = [1, 1]} : vector<8x384xf32> to vector<8x128xf32>
    %152 = vector.extract_strided_slice %150 {offsets = [0, 128], sizes = [8, 128], strides = [1, 1]} : vector<8x384xf32> to vector<8x128xf32>
    %153 = vector.extract_strided_slice %150 {offsets = [0, 256], sizes = [8, 128], strides = [1, 1]} : vector<8x384xf32> to vector<8x128xf32>
    %154 = vector.extract_strided_slice %144 {offsets = [0, 384], sizes = [8, 128], strides = [1, 1]} : vector<8x512xf32> to vector<8x128xf32>
    %155 = math.tanh %154 : vector<8x128xf32>
    %156 = arith.mulf %152, %99 : vector<8x128xf32>
    %157 = arith.mulf %151, %155 : vector<8x128xf32>
    %158 = arith.addf %156, %157 : vector<8x128xf32>
    %159 = math.tanh %158 : vector<8x128xf32>
    %160 = arith.mulf %153, %159 : vector<8x128xf32>
    %161 = arith.truncf %160 : vector<8x128xf32> to vector<8x128xbf16>
    %c2_75 = arith.constant 2 : index
    %c0_76 = arith.constant 0 : index
    %c0_77 = arith.constant 0 : index
    %162 = vector.load %arg3[%c2_75, %c0_76, %c0_77] : memref<3x128x512xbf16, #tpu.memory_space<vmem>>, vector<1x128x512xbf16>
    %163 = vector.shape_cast %162 : vector<1x128x512xbf16> to vector<128x512xbf16>
    %cst_78 = arith.constant dense<0.000000e+00> : vector<8x512xf32>
    %164 = tpu.matmul %161, %163, %cst_78 {dimension_numbers = #tpu.dot_dimension_numbers<[1], [0], [0], [1], [0, 0, 1, 1], [], []>} : vector<8x128xbf16>, vector<128x512xbf16>, vector<8x512xf32> -> vector<8x512xf32>
    %c2_79 = arith.constant 2 : index
    %c0_80 = arith.constant 0 : index
    %c0_81 = arith.constant 0 : index
    %165 = vector.load %arg5[%c2_79, %c0_80, %c0_81] : memref<3x1x512xf32, #tpu.memory_space<vmem>>, vector<1x1x512xf32>
    %166 = vector.shape_cast %165 : vector<1x1x512xf32> to vector<1x512xf32>
    %167 = vector.broadcast %166 : vector<1x512xf32> to vector<8x512xf32>
    %168 = arith.addf %164, %167 : vector<8x512xf32>
    %169 = arith.truncf %17 : vector<8x128xf32> to vector<8x128xbf16>
    %c2_82 = arith.constant 2 : index
    %c0_83 = arith.constant 0 : index
    %c0_84 = arith.constant 0 : index
    %170 = vector.load %arg4[%c2_82, %c0_83, %c0_84] : memref<3x128x512xbf16, #tpu.memory_space<vmem>>, vector<1x128x512xbf16>
    %171 = vector.shape_cast %170 : vector<1x128x512xbf16> to vector<128x512xbf16>
    %cst_85 = arith.constant dense<0.000000e+00> : vector<8x512xf32>
    %172 = tpu.matmul %169, %171, %cst_85 {dimension_numbers = #tpu.dot_dimension_numbers<[1], [0], [0], [1], [0, 0, 1, 1], [], []>} : vector<8x128xbf16>, vector<128x512xbf16>, vector<8x512xf32> -> vector<8x512xf32>
    %173 = arith.addf %109, %172 : vector<8x512xf32>
    %174 = vector.extract_strided_slice %173 {offsets = [0, 0], sizes = [8, 384], strides = [1, 1]} : vector<8x512xf32> to vector<8x384xf32>
    %175 = arith.negf %174 : vector<8x384xf32>
    %176 = math.exp %175 : vector<8x384xf32>
    %cst_86 = arith.constant 1.000000e+00 : f32
    %177 = vector.broadcast %cst_86 : f32 to vector<8x384xf32>
    %178 = arith.addf %177, %176 : vector<8x384xf32>
    %179 = arith.divf %177, %178 : vector<8x384xf32>
    %180 = vector.extract_strided_slice %179 {offsets = [0, 0], sizes = [8, 128], strides = [1, 1]} : vector<8x384xf32> to vector<8x128xf32>
    %181 = vector.extract_strided_slice %179 {offsets = [0, 128], sizes = [8, 128], strides = [1, 1]} : vector<8x384xf32> to vector<8x128xf32>
    %182 = vector.extract_strided_slice %179 {offsets = [0, 256], sizes = [8, 128], strides = [1, 1]} : vector<8x384xf32> to vector<8x128xf32>
    %183 = vector.extract_strided_slice %173 {offsets = [0, 384], sizes = [8, 128], strides = [1, 1]} : vector<8x512xf32> to vector<8x128xf32>
    %184 = math.tanh %183 : vector<8x128xf32>
    %185 = arith.mulf %181, %20 : vector<8x128xf32>
    %186 = arith.mulf %180, %184 : vector<8x128xf32>
    %187 = arith.addf %185, %186 : vector<8x128xf32>
    %188 = math.tanh %187 : vector<8x128xf32>
    %189 = arith.mulf %182, %188 : vector<8x128xf32>
    %c24 = arith.constant 24 : index
    %c0_87 = arith.constant 0 : index
    %190 = vector.load %arg12[%c24, %c0_87] : memref<64x512xf32, #tpu.memory_space<vmem>>, vector<8x512xf32>
    %191 = arith.truncf %131 : vector<8x128xf32> to vector<8x128xbf16>
    %c0_88 = arith.constant 0 : index
    %c0_89 = arith.constant 0 : index
    %c0_90 = arith.constant 0 : index
    %192 = vector.load %arg4[%c0_88, %c0_89, %c0_90] : memref<3x128x512xbf16, #tpu.memory_space<vmem>>, vector<1x128x512xbf16>
    %193 = vector.shape_cast %192 : vector<1x128x512xbf16> to vector<128x512xbf16>
    %cst_91 = arith.constant dense<0.000000e+00> : vector<8x512xf32>
    %194 = tpu.matmul %191, %193, %cst_91 {dimension_numbers = #tpu.dot_dimension_numbers<[1], [0], [0], [1], [0, 0, 1, 1], [], []>} : vector<8x128xbf16>, vector<128x512xbf16>, vector<8x512xf32> -> vector<8x512xf32>
    %195 = arith.addf %190, %194 : vector<8x512xf32>
    %196 = vector.extract_strided_slice %195 {offsets = [0, 0], sizes = [8, 384], strides = [1, 1]} : vector<8x512xf32> to vector<8x384xf32>
    %197 = arith.negf %196 : vector<8x384xf32>
    %198 = math.exp %197 : vector<8x384xf32>
    %cst_92 = arith.constant 1.000000e+00 : f32
    %199 = vector.broadcast %cst_92 : f32 to vector<8x384xf32>
    %200 = arith.addf %199, %198 : vector<8x384xf32>
    %201 = arith.divf %199, %200 : vector<8x384xf32>
    %202 = vector.extract_strided_slice %201 {offsets = [0, 0], sizes = [8, 128], strides = [1, 1]} : vector<8x384xf32> to vector<8x128xf32>
    %203 = vector.extract_strided_slice %201 {offsets = [0, 128], sizes = [8, 128], strides = [1, 1]} : vector<8x384xf32> to vector<8x128xf32>
    %204 = vector.extract_strided_slice %201 {offsets = [0, 256], sizes = [8, 128], strides = [1, 1]} : vector<8x384xf32> to vector<8x128xf32>
    %205 = vector.extract_strided_slice %195 {offsets = [0, 384], sizes = [8, 128], strides = [1, 1]} : vector<8x512xf32> to vector<8x128xf32>
    %206 = math.tanh %205 : vector<8x128xf32>
    %207 = arith.mulf %203, %129 : vector<8x128xf32>
    %208 = arith.mulf %202, %206 : vector<8x128xf32>
    %209 = arith.addf %207, %208 : vector<8x128xf32>
    %210 = math.tanh %209 : vector<8x128xf32>
    %211 = arith.mulf %204, %210 : vector<8x128xf32>
    %212 = arith.truncf %211 : vector<8x128xf32> to vector<8x128xbf16>
    %c1_93 = arith.constant 1 : index
    %c0_94 = arith.constant 0 : index
    %c0_95 = arith.constant 0 : index
    %213 = vector.load %arg3[%c1_93, %c0_94, %c0_95] : memref<3x128x512xbf16, #tpu.memory_space<vmem>>, vector<1x128x512xbf16>
    %214 = vector.shape_cast %213 : vector<1x128x512xbf16> to vector<128x512xbf16>
    %cst_96 = arith.constant dense<0.000000e+00> : vector<8x512xf32>
    %215 = tpu.matmul %212, %214, %cst_96 {dimension_numbers = #tpu.dot_dimension_numbers<[1], [0], [0], [1], [0, 0, 1, 1], [], []>} : vector<8x128xbf16>, vector<128x512xbf16>, vector<8x512xf32> -> vector<8x512xf32>
    %c1_97 = arith.constant 1 : index
    %c0_98 = arith.constant 0 : index
    %c0_99 = arith.constant 0 : index
    %216 = vector.load %arg5[%c1_97, %c0_98, %c0_99] : memref<3x1x512xf32, #tpu.memory_space<vmem>>, vector<1x1x512xf32>
    %217 = vector.shape_cast %216 : vector<1x1x512xf32> to vector<1x512xf32>
    %218 = vector.broadcast %217 : vector<1x512xf32> to vector<8x512xf32>
    %219 = arith.addf %215, %218 : vector<8x512xf32>
    %220 = arith.truncf %160 : vector<8x128xf32> to vector<8x128xbf16>
    %c1_100 = arith.constant 1 : index
    %c0_101 = arith.constant 0 : index
    %c0_102 = arith.constant 0 : index
    %221 = vector.load %arg4[%c1_100, %c0_101, %c0_102] : memref<3x128x512xbf16, #tpu.memory_space<vmem>>, vector<1x128x512xbf16>
    %222 = vector.shape_cast %221 : vector<1x128x512xbf16> to vector<128x512xbf16>
    %cst_103 = arith.constant dense<0.000000e+00> : vector<8x512xf32>
    %223 = tpu.matmul %220, %222, %cst_103 {dimension_numbers = #tpu.dot_dimension_numbers<[1], [0], [0], [1], [0, 0, 1, 1], [], []>} : vector<8x128xbf16>, vector<128x512xbf16>, vector<8x512xf32> -> vector<8x512xf32>
    %224 = arith.addf %139, %223 : vector<8x512xf32>
    %225 = vector.extract_strided_slice %224 {offsets = [0, 0], sizes = [8, 384], strides = [1, 1]} : vector<8x512xf32> to vector<8x384xf32>
    %226 = arith.negf %225 : vector<8x384xf32>
    %227 = math.exp %226 : vector<8x384xf32>
    %cst_104 = arith.constant 1.000000e+00 : f32
    %228 = vector.broadcast %cst_104 : f32 to vector<8x384xf32>
    %229 = arith.addf %228, %227 : vector<8x384xf32>
    %230 = arith.divf %228, %229 : vector<8x384xf32>
    %231 = vector.extract_strided_slice %230 {offsets = [0, 0], sizes = [8, 128], strides = [1, 1]} : vector<8x384xf32> to vector<8x128xf32>
    %232 = vector.extract_strided_slice %230 {offsets = [0, 128], sizes = [8, 128], strides = [1, 1]} : vector<8x384xf32> to vector<8x128xf32>
    %233 = vector.extract_strided_slice %230 {offsets = [0, 256], sizes = [8, 128], strides = [1, 1]} : vector<8x384xf32> to vector<8x128xf32>
    %234 = vector.extract_strided_slice %224 {offsets = [0, 384], sizes = [8, 128], strides = [1, 1]} : vector<8x512xf32> to vector<8x128xf32>
    %235 = math.tanh %234 : vector<8x128xf32>
    %236 = arith.mulf %232, %158 : vector<8x128xf32>
    %237 = arith.mulf %231, %235 : vector<8x128xf32>
    %238 = arith.addf %236, %237 : vector<8x128xf32>
    %239 = math.tanh %238 : vector<8x128xf32>
    %240 = arith.mulf %233, %239 : vector<8x128xf32>
    %241 = arith.truncf %240 : vector<8x128xf32> to vector<8x128xbf16>
    %c2_105 = arith.constant 2 : index
    %c0_106 = arith.constant 0 : index
    %c0_107 = arith.constant 0 : index
    %242 = vector.load %arg3[%c2_105, %c0_106, %c0_107] : memref<3x128x512xbf16, #tpu.memory_space<vmem>>, vector<1x128x512xbf16>
    %243 = vector.shape_cast %242 : vector<1x128x512xbf16> to vector<128x512xbf16>
    %cst_108 = arith.constant dense<0.000000e+00> : vector<8x512xf32>
    %244 = tpu.matmul %241, %243, %cst_108 {dimension_numbers = #tpu.dot_dimension_numbers<[1], [0], [0], [1], [0, 0, 1, 1], [], []>} : vector<8x128xbf16>, vector<128x512xbf16>, vector<8x512xf32> -> vector<8x512xf32>
    %c2_109 = arith.constant 2 : index
    %c0_110 = arith.constant 0 : index
    %c0_111 = arith.constant 0 : index
    %245 = vector.load %arg5[%c2_109, %c0_110, %c0_111] : memref<3x1x512xf32, #tpu.memory_space<vmem>>, vector<1x1x512xf32>
    %246 = vector.shape_cast %245 : vector<1x1x512xf32> to vector<1x512xf32>
    %247 = vector.broadcast %246 : vector<1x512xf32> to vector<8x512xf32>
    %248 = arith.addf %244, %247 : vector<8x512xf32>
    %249 = arith.truncf %189 : vector<8x128xf32> to vector<8x128xbf16>
    %c2_112 = arith.constant 2 : index
    %c0_113 = arith.constant 0 : index
    %c0_114 = arith.constant 0 : index
    %250 = vector.load %arg4[%c2_112, %c0_113, %c0_114] : memref<3x128x512xbf16, #tpu.memory_space<vmem>>, vector<1x128x512xbf16>
    %251 = vector.shape_cast %250 : vector<1x128x512xbf16> to vector<128x512xbf16>
    %cst_115 = arith.constant dense<0.000000e+00> : vector<8x512xf32>
    %252 = tpu.matmul %249, %251, %cst_115 {dimension_numbers = #tpu.dot_dimension_numbers<[1], [0], [0], [1], [0, 0, 1, 1], [], []>} : vector<8x128xbf16>, vector<128x512xbf16>, vector<8x512xf32> -> vector<8x512xf32>
    %253 = arith.addf %168, %252 : vector<8x512xf32>
    %254 = vector.extract_strided_slice %253 {offsets = [0, 0], sizes = [8, 384], strides = [1, 1]} : vector<8x512xf32> to vector<8x384xf32>
    %255 = arith.negf %254 : vector<8x384xf32>
    %256 = math.exp %255 : vector<8x384xf32>
    %cst_116 = arith.constant 1.000000e+00 : f32
    %257 = vector.broadcast %cst_116 : f32 to vector<8x384xf32>
    %258 = arith.addf %257, %256 : vector<8x384xf32>
    %259 = arith.divf %257, %258 : vector<8x384xf32>
    %260 = vector.extract_strided_slice %259 {offsets = [0, 0], sizes = [8, 128], strides = [1, 1]} : vector<8x384xf32> to vector<8x128xf32>
    %261 = vector.extract_strided_slice %259 {offsets = [0, 128], sizes = [8, 128], strides = [1, 1]} : vector<8x384xf32> to vector<8x128xf32>
    %262 = vector.extract_strided_slice %259 {offsets = [0, 256], sizes = [8, 128], strides = [1, 1]} : vector<8x384xf32> to vector<8x128xf32>
    %263 = vector.extract_strided_slice %253 {offsets = [0, 384], sizes = [8, 128], strides = [1, 1]} : vector<8x512xf32> to vector<8x128xf32>
    %264 = math.tanh %263 : vector<8x128xf32>
    %265 = arith.mulf %261, %187 : vector<8x128xf32>
    %266 = arith.mulf %260, %264 : vector<8x128xf32>
    %267 = arith.addf %265, %266 : vector<8x128xf32>
    %268 = math.tanh %267 : vector<8x128xf32>
    %269 = arith.mulf %262, %268 : vector<8x128xf32>
    %c32 = arith.constant 32 : index
    %c0_117 = arith.constant 0 : index
    %270 = vector.load %arg12[%c32, %c0_117] : memref<64x512xf32, #tpu.memory_space<vmem>>, vector<8x512xf32>
    %271 = arith.truncf %211 : vector<8x128xf32> to vector<8x128xbf16>
    %c0_118 = arith.constant 0 : index
    %c0_119 = arith.constant 0 : index
    %c0_120 = arith.constant 0 : index
    %272 = vector.load %arg4[%c0_118, %c0_119, %c0_120] : memref<3x128x512xbf16, #tpu.memory_space<vmem>>, vector<1x128x512xbf16>
    %273 = vector.shape_cast %272 : vector<1x128x512xbf16> to vector<128x512xbf16>
    %cst_121 = arith.constant dense<0.000000e+00> : vector<8x512xf32>
    %274 = tpu.matmul %271, %273, %cst_121 {dimension_numbers = #tpu.dot_dimension_numbers<[1], [0], [0], [1], [0, 0, 1, 1], [], []>} : vector<8x128xbf16>, vector<128x512xbf16>, vector<8x512xf32> -> vector<8x512xf32>
    %275 = arith.addf %270, %274 : vector<8x512xf32>
    %276 = vector.extract_strided_slice %275 {offsets = [0, 0], sizes = [8, 384], strides = [1, 1]} : vector<8x512xf32> to vector<8x384xf32>
    %277 = arith.negf %276 : vector<8x384xf32>
    %278 = math.exp %277 : vector<8x384xf32>
    %cst_122 = arith.constant 1.000000e+00 : f32
    %279 = vector.broadcast %cst_122 : f32 to vector<8x384xf32>
    %280 = arith.addf %279, %278 : vector<8x384xf32>
    %281 = arith.divf %279, %280 : vector<8x384xf32>
    %282 = vector.extract_strided_slice %281 {offsets = [0, 0], sizes = [8, 128], strides = [1, 1]} : vector<8x384xf32> to vector<8x128xf32>
    %283 = vector.extract_strided_slice %281 {offsets = [0, 128], sizes = [8, 128], strides = [1, 1]} : vector<8x384xf32> to vector<8x128xf32>
    %284 = vector.extract_strided_slice %281 {offsets = [0, 256], sizes = [8, 128], strides = [1, 1]} : vector<8x384xf32> to vector<8x128xf32>
    %285 = vector.extract_strided_slice %275 {offsets = [0, 384], sizes = [8, 128], strides = [1, 1]} : vector<8x512xf32> to vector<8x128xf32>
    %286 = math.tanh %285 : vector<8x128xf32>
    %287 = arith.mulf %283, %209 : vector<8x128xf32>
    %288 = arith.mulf %282, %286 : vector<8x128xf32>
    %289 = arith.addf %287, %288 : vector<8x128xf32>
    %290 = math.tanh %289 : vector<8x128xf32>
    %291 = arith.mulf %284, %290 : vector<8x128xf32>
    %292 = arith.truncf %291 : vector<8x128xf32> to vector<8x128xbf16>
    %c1_123 = arith.constant 1 : index
    %c0_124 = arith.constant 0 : index
    %c0_125 = arith.constant 0 : index
    %293 = vector.load %arg3[%c1_123, %c0_124, %c0_125] : memref<3x128x512xbf16, #tpu.memory_space<vmem>>, vector<1x128x512xbf16>
    %294 = vector.shape_cast %293 : vector<1x128x512xbf16> to vector<128x512xbf16>
    %cst_126 = arith.constant dense<0.000000e+00> : vector<8x512xf32>
    %295 = tpu.matmul %292, %294, %cst_126 {dimension_numbers = #tpu.dot_dimension_numbers<[1], [0], [0], [1], [0, 0, 1, 1], [], []>} : vector<8x128xbf16>, vector<128x512xbf16>, vector<8x512xf32> -> vector<8x512xf32>
    %c1_127 = arith.constant 1 : index
    %c0_128 = arith.constant 0 : index
    %c0_129 = arith.constant 0 : index
    %296 = vector.load %arg5[%c1_127, %c0_128, %c0_129] : memref<3x1x512xf32, #tpu.memory_space<vmem>>, vector<1x1x512xf32>
    %297 = vector.shape_cast %296 : vector<1x1x512xf32> to vector<1x512xf32>
    %298 = vector.broadcast %297 : vector<1x512xf32> to vector<8x512xf32>
    %299 = arith.addf %295, %298 : vector<8x512xf32>
    %300 = arith.truncf %240 : vector<8x128xf32> to vector<8x128xbf16>
    %c1_130 = arith.constant 1 : index
    %c0_131 = arith.constant 0 : index
    %c0_132 = arith.constant 0 : index
    %301 = vector.load %arg4[%c1_130, %c0_131, %c0_132] : memref<3x128x512xbf16, #tpu.memory_space<vmem>>, vector<1x128x512xbf16>
    %302 = vector.shape_cast %301 : vector<1x128x512xbf16> to vector<128x512xbf16>
    %cst_133 = arith.constant dense<0.000000e+00> : vector<8x512xf32>
    %303 = tpu.matmul %300, %302, %cst_133 {dimension_numbers = #tpu.dot_dimension_numbers<[1], [0], [0], [1], [0, 0, 1, 1], [], []>} : vector<8x128xbf16>, vector<128x512xbf16>, vector<8x512xf32> -> vector<8x512xf32>
    %304 = arith.addf %219, %303 : vector<8x512xf32>
    %305 = vector.extract_strided_slice %304 {offsets = [0, 0], sizes = [8, 384], strides = [1, 1]} : vector<8x512xf32> to vector<8x384xf32>
    %306 = arith.negf %305 : vector<8x384xf32>
    %307 = math.exp %306 : vector<8x384xf32>
    %cst_134 = arith.constant 1.000000e+00 : f32
    %308 = vector.broadcast %cst_134 : f32 to vector<8x384xf32>
    %309 = arith.addf %308, %307 : vector<8x384xf32>
    %310 = arith.divf %308, %309 : vector<8x384xf32>
    %311 = vector.extract_strided_slice %310 {offsets = [0, 0], sizes = [8, 128], strides = [1, 1]} : vector<8x384xf32> to vector<8x128xf32>
    %312 = vector.extract_strided_slice %310 {offsets = [0, 128], sizes = [8, 128], strides = [1, 1]} : vector<8x384xf32> to vector<8x128xf32>
    %313 = vector.extract_strided_slice %310 {offsets = [0, 256], sizes = [8, 128], strides = [1, 1]} : vector<8x384xf32> to vector<8x128xf32>
    %314 = vector.extract_strided_slice %304 {offsets = [0, 384], sizes = [8, 128], strides = [1, 1]} : vector<8x512xf32> to vector<8x128xf32>
    %315 = math.tanh %314 : vector<8x128xf32>
    %316 = arith.mulf %312, %238 : vector<8x128xf32>
    %317 = arith.mulf %311, %315 : vector<8x128xf32>
    %318 = arith.addf %316, %317 : vector<8x128xf32>
    %319 = math.tanh %318 : vector<8x128xf32>
    %320 = arith.mulf %313, %319 : vector<8x128xf32>
    %321 = arith.truncf %320 : vector<8x128xf32> to vector<8x128xbf16>
    %c2_135 = arith.constant 2 : index
    %c0_136 = arith.constant 0 : index
    %c0_137 = arith.constant 0 : index
    %322 = vector.load %arg3[%c2_135, %c0_136, %c0_137] : memref<3x128x512xbf16, #tpu.memory_space<vmem>>, vector<1x128x512xbf16>
    %323 = vector.shape_cast %322 : vector<1x128x512xbf16> to vector<128x512xbf16>
    %cst_138 = arith.constant dense<0.000000e+00> : vector<8x512xf32>
    %324 = tpu.matmul %321, %323, %cst_138 {dimension_numbers = #tpu.dot_dimension_numbers<[1], [0], [0], [1], [0, 0, 1, 1], [], []>} : vector<8x128xbf16>, vector<128x512xbf16>, vector<8x512xf32> -> vector<8x512xf32>
    %c2_139 = arith.constant 2 : index
    %c0_140 = arith.constant 0 : index
    %c0_141 = arith.constant 0 : index
    %325 = vector.load %arg5[%c2_139, %c0_140, %c0_141] : memref<3x1x512xf32, #tpu.memory_space<vmem>>, vector<1x1x512xf32>
    %326 = vector.shape_cast %325 : vector<1x1x512xf32> to vector<1x512xf32>
    %327 = vector.broadcast %326 : vector<1x512xf32> to vector<8x512xf32>
    %328 = arith.addf %324, %327 : vector<8x512xf32>
    %329 = arith.truncf %269 : vector<8x128xf32> to vector<8x128xbf16>
    %c2_142 = arith.constant 2 : index
    %c0_143 = arith.constant 0 : index
    %c0_144 = arith.constant 0 : index
    %330 = vector.load %arg4[%c2_142, %c0_143, %c0_144] : memref<3x128x512xbf16, #tpu.memory_space<vmem>>, vector<1x128x512xbf16>
    %331 = vector.shape_cast %330 : vector<1x128x512xbf16> to vector<128x512xbf16>
    %cst_145 = arith.constant dense<0.000000e+00> : vector<8x512xf32>
    %332 = tpu.matmul %329, %331, %cst_145 {dimension_numbers = #tpu.dot_dimension_numbers<[1], [0], [0], [1], [0, 0, 1, 1], [], []>} : vector<8x128xbf16>, vector<128x512xbf16>, vector<8x512xf32> -> vector<8x512xf32>
    %333 = arith.addf %248, %332 : vector<8x512xf32>
    %334 = vector.extract_strided_slice %333 {offsets = [0, 0], sizes = [8, 384], strides = [1, 1]} : vector<8x512xf32> to vector<8x384xf32>
    %335 = arith.negf %334 : vector<8x384xf32>
    %336 = math.exp %335 : vector<8x384xf32>
    %cst_146 = arith.constant 1.000000e+00 : f32
    %337 = vector.broadcast %cst_146 : f32 to vector<8x384xf32>
    %338 = arith.addf %337, %336 : vector<8x384xf32>
    %339 = arith.divf %337, %338 : vector<8x384xf32>
    %340 = vector.extract_strided_slice %339 {offsets = [0, 0], sizes = [8, 128], strides = [1, 1]} : vector<8x384xf32> to vector<8x128xf32>
    %341 = vector.extract_strided_slice %339 {offsets = [0, 128], sizes = [8, 128], strides = [1, 1]} : vector<8x384xf32> to vector<8x128xf32>
    %342 = vector.extract_strided_slice %339 {offsets = [0, 256], sizes = [8, 128], strides = [1, 1]} : vector<8x384xf32> to vector<8x128xf32>
    %343 = vector.extract_strided_slice %333 {offsets = [0, 384], sizes = [8, 128], strides = [1, 1]} : vector<8x512xf32> to vector<8x128xf32>
    %344 = math.tanh %343 : vector<8x128xf32>
    %345 = arith.mulf %341, %267 : vector<8x128xf32>
    %346 = arith.mulf %340, %344 : vector<8x128xf32>
    %347 = arith.addf %345, %346 : vector<8x128xf32>
    %348 = math.tanh %347 : vector<8x128xf32>
    %349 = arith.mulf %342, %348 : vector<8x128xf32>
    %c40 = arith.constant 40 : index
    %c0_147 = arith.constant 0 : index
    %350 = vector.load %arg12[%c40, %c0_147] : memref<64x512xf32, #tpu.memory_space<vmem>>, vector<8x512xf32>
    %351 = arith.truncf %291 : vector<8x128xf32> to vector<8x128xbf16>
    %c0_148 = arith.constant 0 : index
    %c0_149 = arith.constant 0 : index
    %c0_150 = arith.constant 0 : index
    %352 = vector.load %arg4[%c0_148, %c0_149, %c0_150] : memref<3x128x512xbf16, #tpu.memory_space<vmem>>, vector<1x128x512xbf16>
    %353 = vector.shape_cast %352 : vector<1x128x512xbf16> to vector<128x512xbf16>
    %cst_151 = arith.constant dense<0.000000e+00> : vector<8x512xf32>
    %354 = tpu.matmul %351, %353, %cst_151 {dimension_numbers = #tpu.dot_dimension_numbers<[1], [0], [0], [1], [0, 0, 1, 1], [], []>} : vector<8x128xbf16>, vector<128x512xbf16>, vector<8x512xf32> -> vector<8x512xf32>
    %355 = arith.addf %350, %354 : vector<8x512xf32>
    %356 = vector.extract_strided_slice %355 {offsets = [0, 0], sizes = [8, 384], strides = [1, 1]} : vector<8x512xf32> to vector<8x384xf32>
    %357 = arith.negf %356 : vector<8x384xf32>
    %358 = math.exp %357 : vector<8x384xf32>
    %cst_152 = arith.constant 1.000000e+00 : f32
    %359 = vector.broadcast %cst_152 : f32 to vector<8x384xf32>
    %360 = arith.addf %359, %358 : vector<8x384xf32>
    %361 = arith.divf %359, %360 : vector<8x384xf32>
    %362 = vector.extract_strided_slice %361 {offsets = [0, 0], sizes = [8, 128], strides = [1, 1]} : vector<8x384xf32> to vector<8x128xf32>
    %363 = vector.extract_strided_slice %361 {offsets = [0, 128], sizes = [8, 128], strides = [1, 1]} : vector<8x384xf32> to vector<8x128xf32>
    %364 = vector.extract_strided_slice %361 {offsets = [0, 256], sizes = [8, 128], strides = [1, 1]} : vector<8x384xf32> to vector<8x128xf32>
    %365 = vector.extract_strided_slice %355 {offsets = [0, 384], sizes = [8, 128], strides = [1, 1]} : vector<8x512xf32> to vector<8x128xf32>
    %366 = math.tanh %365 : vector<8x128xf32>
    %367 = arith.mulf %363, %289 : vector<8x128xf32>
    %368 = arith.mulf %362, %366 : vector<8x128xf32>
    %369 = arith.addf %367, %368 : vector<8x128xf32>
    %370 = math.tanh %369 : vector<8x128xf32>
    %371 = arith.mulf %364, %370 : vector<8x128xf32>
    %372 = arith.truncf %371 : vector<8x128xf32> to vector<8x128xbf16>
    %c1_153 = arith.constant 1 : index
    %c0_154 = arith.constant 0 : index
    %c0_155 = arith.constant 0 : index
    %373 = vector.load %arg3[%c1_153, %c0_154, %c0_155] : memref<3x128x512xbf16, #tpu.memory_space<vmem>>, vector<1x128x512xbf16>
    %374 = vector.shape_cast %373 : vector<1x128x512xbf16> to vector<128x512xbf16>
    %cst_156 = arith.constant dense<0.000000e+00> : vector<8x512xf32>
    %375 = tpu.matmul %372, %374, %cst_156 {dimension_numbers = #tpu.dot_dimension_numbers<[1], [0], [0], [1], [0, 0, 1, 1], [], []>} : vector<8x128xbf16>, vector<128x512xbf16>, vector<8x512xf32> -> vector<8x512xf32>
    %c1_157 = arith.constant 1 : index
    %c0_158 = arith.constant 0 : index
    %c0_159 = arith.constant 0 : index
    %376 = vector.load %arg5[%c1_157, %c0_158, %c0_159] : memref<3x1x512xf32, #tpu.memory_space<vmem>>, vector<1x1x512xf32>
    %377 = vector.shape_cast %376 : vector<1x1x512xf32> to vector<1x512xf32>
    %378 = vector.broadcast %377 : vector<1x512xf32> to vector<8x512xf32>
    %379 = arith.addf %375, %378 : vector<8x512xf32>
    %380 = arith.truncf %320 : vector<8x128xf32> to vector<8x128xbf16>
    %c1_160 = arith.constant 1 : index
    %c0_161 = arith.constant 0 : index
    %c0_162 = arith.constant 0 : index
    %381 = vector.load %arg4[%c1_160, %c0_161, %c0_162] : memref<3x128x512xbf16, #tpu.memory_space<vmem>>, vector<1x128x512xbf16>
    %382 = vector.shape_cast %381 : vector<1x128x512xbf16> to vector<128x512xbf16>
    %cst_163 = arith.constant dense<0.000000e+00> : vector<8x512xf32>
    %383 = tpu.matmul %380, %382, %cst_163 {dimension_numbers = #tpu.dot_dimension_numbers<[1], [0], [0], [1], [0, 0, 1, 1], [], []>} : vector<8x128xbf16>, vector<128x512xbf16>, vector<8x512xf32> -> vector<8x512xf32>
    %384 = arith.addf %299, %383 : vector<8x512xf32>
    %385 = vector.extract_strided_slice %384 {offsets = [0, 0], sizes = [8, 384], strides = [1, 1]} : vector<8x512xf32> to vector<8x384xf32>
    %386 = arith.negf %385 : vector<8x384xf32>
    %387 = math.exp %386 : vector<8x384xf32>
    %cst_164 = arith.constant 1.000000e+00 : f32
    %388 = vector.broadcast %cst_164 : f32 to vector<8x384xf32>
    %389 = arith.addf %388, %387 : vector<8x384xf32>
    %390 = arith.divf %388, %389 : vector<8x384xf32>
    %391 = vector.extract_strided_slice %390 {offsets = [0, 0], sizes = [8, 128], strides = [1, 1]} : vector<8x384xf32> to vector<8x128xf32>
    %392 = vector.extract_strided_slice %390 {offsets = [0, 128], sizes = [8, 128], strides = [1, 1]} : vector<8x384xf32> to vector<8x128xf32>
    %393 = vector.extract_strided_slice %390 {offsets = [0, 256], sizes = [8, 128], strides = [1, 1]} : vector<8x384xf32> to vector<8x128xf32>
    %394 = vector.extract_strided_slice %384 {offsets = [0, 384], sizes = [8, 128], strides = [1, 1]} : vector<8x512xf32> to vector<8x128xf32>
    %395 = math.tanh %394 : vector<8x128xf32>
    %396 = arith.mulf %392, %318 : vector<8x128xf32>
    %397 = arith.mulf %391, %395 : vector<8x128xf32>
    %398 = arith.addf %396, %397 : vector<8x128xf32>
    %399 = math.tanh %398 : vector<8x128xf32>
    %400 = arith.mulf %393, %399 : vector<8x128xf32>
    %401 = arith.truncf %400 : vector<8x128xf32> to vector<8x128xbf16>
    %c2_165 = arith.constant 2 : index
    %c0_166 = arith.constant 0 : index
    %c0_167 = arith.constant 0 : index
    %402 = vector.load %arg3[%c2_165, %c0_166, %c0_167] : memref<3x128x512xbf16, #tpu.memory_space<vmem>>, vector<1x128x512xbf16>
    %403 = vector.shape_cast %402 : vector<1x128x512xbf16> to vector<128x512xbf16>
    %cst_168 = arith.constant dense<0.000000e+00> : vector<8x512xf32>
    %404 = tpu.matmul %401, %403, %cst_168 {dimension_numbers = #tpu.dot_dimension_numbers<[1], [0], [0], [1], [0, 0, 1, 1], [], []>} : vector<8x128xbf16>, vector<128x512xbf16>, vector<8x512xf32> -> vector<8x512xf32>
    %c2_169 = arith.constant 2 : index
    %c0_170 = arith.constant 0 : index
    %c0_171 = arith.constant 0 : index
    %405 = vector.load %arg5[%c2_169, %c0_170, %c0_171] : memref<3x1x512xf32, #tpu.memory_space<vmem>>, vector<1x1x512xf32>
    %406 = vector.shape_cast %405 : vector<1x1x512xf32> to vector<1x512xf32>
    %407 = vector.broadcast %406 : vector<1x512xf32> to vector<8x512xf32>
    %408 = arith.addf %404, %407 : vector<8x512xf32>
    %409 = arith.truncf %349 : vector<8x128xf32> to vector<8x128xbf16>
    %c2_172 = arith.constant 2 : index
    %c0_173 = arith.constant 0 : index
    %c0_174 = arith.constant 0 : index
    %410 = vector.load %arg4[%c2_172, %c0_173, %c0_174] : memref<3x128x512xbf16, #tpu.memory_space<vmem>>, vector<1x128x512xbf16>
    %411 = vector.shape_cast %410 : vector<1x128x512xbf16> to vector<128x512xbf16>
    %cst_175 = arith.constant dense<0.000000e+00> : vector<8x512xf32>
    %412 = tpu.matmul %409, %411, %cst_175 {dimension_numbers = #tpu.dot_dimension_numbers<[1], [0], [0], [1], [0, 0, 1, 1], [], []>} : vector<8x128xbf16>, vector<128x512xbf16>, vector<8x512xf32> -> vector<8x512xf32>
    %413 = arith.addf %328, %412 : vector<8x512xf32>
    %414 = vector.extract_strided_slice %413 {offsets = [0, 0], sizes = [8, 384], strides = [1, 1]} : vector<8x512xf32> to vector<8x384xf32>
    %415 = arith.negf %414 : vector<8x384xf32>
    %416 = math.exp %415 : vector<8x384xf32>
    %cst_176 = arith.constant 1.000000e+00 : f32
    %417 = vector.broadcast %cst_176 : f32 to vector<8x384xf32>
    %418 = arith.addf %417, %416 : vector<8x384xf32>
    %419 = arith.divf %417, %418 : vector<8x384xf32>
    %420 = vector.extract_strided_slice %419 {offsets = [0, 0], sizes = [8, 128], strides = [1, 1]} : vector<8x384xf32> to vector<8x128xf32>
    %421 = vector.extract_strided_slice %419 {offsets = [0, 128], sizes = [8, 128], strides = [1, 1]} : vector<8x384xf32> to vector<8x128xf32>
    %422 = vector.extract_strided_slice %419 {offsets = [0, 256], sizes = [8, 128], strides = [1, 1]} : vector<8x384xf32> to vector<8x128xf32>
    %423 = vector.extract_strided_slice %413 {offsets = [0, 384], sizes = [8, 128], strides = [1, 1]} : vector<8x512xf32> to vector<8x128xf32>
    %424 = math.tanh %423 : vector<8x128xf32>
    %425 = arith.mulf %421, %347 : vector<8x128xf32>
    %426 = arith.mulf %420, %424 : vector<8x128xf32>
    %427 = arith.addf %425, %426 : vector<8x128xf32>
    %428 = math.tanh %427 : vector<8x128xf32>
    %429 = arith.mulf %422, %428 : vector<8x128xf32>
    %c48 = arith.constant 48 : index
    %c0_177 = arith.constant 0 : index
    %430 = vector.load %arg12[%c48, %c0_177] : memref<64x512xf32, #tpu.memory_space<vmem>>, vector<8x512xf32>
    %431 = arith.truncf %371 : vector<8x128xf32> to vector<8x128xbf16>
    %c0_178 = arith.constant 0 : index
    %c0_179 = arith.constant 0 : index
    %c0_180 = arith.constant 0 : index
    %432 = vector.load %arg4[%c0_178, %c0_179, %c0_180] : memref<3x128x512xbf16, #tpu.memory_space<vmem>>, vector<1x128x512xbf16>
    %433 = vector.shape_cast %432 : vector<1x128x512xbf16> to vector<128x512xbf16>
    %cst_181 = arith.constant dense<0.000000e+00> : vector<8x512xf32>
    %434 = tpu.matmul %431, %433, %cst_181 {dimension_numbers = #tpu.dot_dimension_numbers<[1], [0], [0], [1], [0, 0, 1, 1], [], []>} : vector<8x128xbf16>, vector<128x512xbf16>, vector<8x512xf32> -> vector<8x512xf32>
    %435 = arith.addf %430, %434 : vector<8x512xf32>
    %436 = vector.extract_strided_slice %435 {offsets = [0, 0], sizes = [8, 384], strides = [1, 1]} : vector<8x512xf32> to vector<8x384xf32>
    %437 = arith.negf %436 : vector<8x384xf32>
    %438 = math.exp %437 : vector<8x384xf32>
    %cst_182 = arith.constant 1.000000e+00 : f32
    %439 = vector.broadcast %cst_182 : f32 to vector<8x384xf32>
    %440 = arith.addf %439, %438 : vector<8x384xf32>
    %441 = arith.divf %439, %440 : vector<8x384xf32>
    %442 = vector.extract_strided_slice %441 {offsets = [0, 0], sizes = [8, 128], strides = [1, 1]} : vector<8x384xf32> to vector<8x128xf32>
    %443 = vector.extract_strided_slice %441 {offsets = [0, 128], sizes = [8, 128], strides = [1, 1]} : vector<8x384xf32> to vector<8x128xf32>
    %444 = vector.extract_strided_slice %441 {offsets = [0, 256], sizes = [8, 128], strides = [1, 1]} : vector<8x384xf32> to vector<8x128xf32>
    %445 = vector.extract_strided_slice %435 {offsets = [0, 384], sizes = [8, 128], strides = [1, 1]} : vector<8x512xf32> to vector<8x128xf32>
    %446 = math.tanh %445 : vector<8x128xf32>
    %447 = arith.mulf %443, %369 : vector<8x128xf32>
    %448 = arith.mulf %442, %446 : vector<8x128xf32>
    %449 = arith.addf %447, %448 : vector<8x128xf32>
    %450 = math.tanh %449 : vector<8x128xf32>
    %451 = arith.mulf %444, %450 : vector<8x128xf32>
    %452 = arith.truncf %451 : vector<8x128xf32> to vector<8x128xbf16>
    %c1_183 = arith.constant 1 : index
    %c0_184 = arith.constant 0 : index
    %c0_185 = arith.constant 0 : index
    %453 = vector.load %arg3[%c1_183, %c0_184, %c0_185] : memref<3x128x512xbf16, #tpu.memory_space<vmem>>, vector<1x128x512xbf16>
    %454 = vector.shape_cast %453 : vector<1x128x512xbf16> to vector<128x512xbf16>
    %cst_186 = arith.constant dense<0.000000e+00> : vector<8x512xf32>
    %455 = tpu.matmul %452, %454, %cst_186 {dimension_numbers = #tpu.dot_dimension_numbers<[1], [0], [0], [1], [0, 0, 1, 1], [], []>} : vector<8x128xbf16>, vector<128x512xbf16>, vector<8x512xf32> -> vector<8x512xf32>
    %c1_187 = arith.constant 1 : index
    %c0_188 = arith.constant 0 : index
    %c0_189 = arith.constant 0 : index
    %456 = vector.load %arg5[%c1_187, %c0_188, %c0_189] : memref<3x1x512xf32, #tpu.memory_space<vmem>>, vector<1x1x512xf32>
    %457 = vector.shape_cast %456 : vector<1x1x512xf32> to vector<1x512xf32>
    %458 = vector.broadcast %457 : vector<1x512xf32> to vector<8x512xf32>
    %459 = arith.addf %455, %458 : vector<8x512xf32>
    %460 = arith.truncf %400 : vector<8x128xf32> to vector<8x128xbf16>
    %c1_190 = arith.constant 1 : index
    %c0_191 = arith.constant 0 : index
    %c0_192 = arith.constant 0 : index
    %461 = vector.load %arg4[%c1_190, %c0_191, %c0_192] : memref<3x128x512xbf16, #tpu.memory_space<vmem>>, vector<1x128x512xbf16>
    %462 = vector.shape_cast %461 : vector<1x128x512xbf16> to vector<128x512xbf16>
    %cst_193 = arith.constant dense<0.000000e+00> : vector<8x512xf32>
    %463 = tpu.matmul %460, %462, %cst_193 {dimension_numbers = #tpu.dot_dimension_numbers<[1], [0], [0], [1], [0, 0, 1, 1], [], []>} : vector<8x128xbf16>, vector<128x512xbf16>, vector<8x512xf32> -> vector<8x512xf32>
    %464 = arith.addf %379, %463 : vector<8x512xf32>
    %465 = vector.extract_strided_slice %464 {offsets = [0, 0], sizes = [8, 384], strides = [1, 1]} : vector<8x512xf32> to vector<8x384xf32>
    %466 = arith.negf %465 : vector<8x384xf32>
    %467 = math.exp %466 : vector<8x384xf32>
    %cst_194 = arith.constant 1.000000e+00 : f32
    %468 = vector.broadcast %cst_194 : f32 to vector<8x384xf32>
    %469 = arith.addf %468, %467 : vector<8x384xf32>
    %470 = arith.divf %468, %469 : vector<8x384xf32>
    %471 = vector.extract_strided_slice %470 {offsets = [0, 0], sizes = [8, 128], strides = [1, 1]} : vector<8x384xf32> to vector<8x128xf32>
    %472 = vector.extract_strided_slice %470 {offsets = [0, 128], sizes = [8, 128], strides = [1, 1]} : vector<8x384xf32> to vector<8x128xf32>
    %473 = vector.extract_strided_slice %470 {offsets = [0, 256], sizes = [8, 128], strides = [1, 1]} : vector<8x384xf32> to vector<8x128xf32>
    %474 = vector.extract_strided_slice %464 {offsets = [0, 384], sizes = [8, 128], strides = [1, 1]} : vector<8x512xf32> to vector<8x128xf32>
    %475 = math.tanh %474 : vector<8x128xf32>
    %476 = arith.mulf %472, %398 : vector<8x128xf32>
    %477 = arith.mulf %471, %475 : vector<8x128xf32>
    %478 = arith.addf %476, %477 : vector<8x128xf32>
    %479 = math.tanh %478 : vector<8x128xf32>
    %480 = arith.mulf %473, %479 : vector<8x128xf32>
    %481 = arith.truncf %480 : vector<8x128xf32> to vector<8x128xbf16>
    %c2_195 = arith.constant 2 : index
    %c0_196 = arith.constant 0 : index
    %c0_197 = arith.constant 0 : index
    %482 = vector.load %arg3[%c2_195, %c0_196, %c0_197] : memref<3x128x512xbf16, #tpu.memory_space<vmem>>, vector<1x128x512xbf16>
    %483 = vector.shape_cast %482 : vector<1x128x512xbf16> to vector<128x512xbf16>
    %cst_198 = arith.constant dense<0.000000e+00> : vector<8x512xf32>
    %484 = tpu.matmul %481, %483, %cst_198 {dimension_numbers = #tpu.dot_dimension_numbers<[1], [0], [0], [1], [0, 0, 1, 1], [], []>} : vector<8x128xbf16>, vector<128x512xbf16>, vector<8x512xf32> -> vector<8x512xf32>
    %c2_199 = arith.constant 2 : index
    %c0_200 = arith.constant 0 : index
    %c0_201 = arith.constant 0 : index
    %485 = vector.load %arg5[%c2_199, %c0_200, %c0_201] : memref<3x1x512xf32, #tpu.memory_space<vmem>>, vector<1x1x512xf32>
    %486 = vector.shape_cast %485 : vector<1x1x512xf32> to vector<1x512xf32>
    %487 = vector.broadcast %486 : vector<1x512xf32> to vector<8x512xf32>
    %488 = arith.addf %484, %487 : vector<8x512xf32>
    %489 = arith.truncf %429 : vector<8x128xf32> to vector<8x128xbf16>
    %c2_202 = arith.constant 2 : index
    %c0_203 = arith.constant 0 : index
    %c0_204 = arith.constant 0 : index
    %490 = vector.load %arg4[%c2_202, %c0_203, %c0_204] : memref<3x128x512xbf16, #tpu.memory_space<vmem>>, vector<1x128x512xbf16>
    %491 = vector.shape_cast %490 : vector<1x128x512xbf16> to vector<128x512xbf16>
    %cst_205 = arith.constant dense<0.000000e+00> : vector<8x512xf32>
    %492 = tpu.matmul %489, %491, %cst_205 {dimension_numbers = #tpu.dot_dimension_numbers<[1], [0], [0], [1], [0, 0, 1, 1], [], []>} : vector<8x128xbf16>, vector<128x512xbf16>, vector<8x512xf32> -> vector<8x512xf32>
    %493 = arith.addf %408, %492 : vector<8x512xf32>
    %494 = vector.extract_strided_slice %493 {offsets = [0, 0], sizes = [8, 384], strides = [1, 1]} : vector<8x512xf32> to vector<8x384xf32>
    %495 = arith.negf %494 : vector<8x384xf32>
    %496 = math.exp %495 : vector<8x384xf32>
    %cst_206 = arith.constant 1.000000e+00 : f32
    %497 = vector.broadcast %cst_206 : f32 to vector<8x384xf32>
    %498 = arith.addf %497, %496 : vector<8x384xf32>
    %499 = arith.divf %497, %498 : vector<8x384xf32>
    %500 = vector.extract_strided_slice %499 {offsets = [0, 0], sizes = [8, 128], strides = [1, 1]} : vector<8x384xf32> to vector<8x128xf32>
    %501 = vector.extract_strided_slice %499 {offsets = [0, 128], sizes = [8, 128], strides = [1, 1]} : vector<8x384xf32> to vector<8x128xf32>
    %502 = vector.extract_strided_slice %499 {offsets = [0, 256], sizes = [8, 128], strides = [1, 1]} : vector<8x384xf32> to vector<8x128xf32>
    %503 = vector.extract_strided_slice %493 {offsets = [0, 384], sizes = [8, 128], strides = [1, 1]} : vector<8x512xf32> to vector<8x128xf32>
    %504 = math.tanh %503 : vector<8x128xf32>
    %505 = arith.mulf %501, %427 : vector<8x128xf32>
    %506 = arith.mulf %500, %504 : vector<8x128xf32>
    %507 = arith.addf %505, %506 : vector<8x128xf32>
    %508 = math.tanh %507 : vector<8x128xf32>
    %509 = arith.mulf %502, %508 : vector<8x128xf32>
    %c56 = arith.constant 56 : index
    %c0_207 = arith.constant 0 : index
    %510 = vector.load %arg12[%c56, %c0_207] : memref<64x512xf32, #tpu.memory_space<vmem>>, vector<8x512xf32>
    %511 = arith.truncf %451 : vector<8x128xf32> to vector<8x128xbf16>
    %c0_208 = arith.constant 0 : index
    %c0_209 = arith.constant 0 : index
    %c0_210 = arith.constant 0 : index
    %512 = vector.load %arg4[%c0_208, %c0_209, %c0_210] : memref<3x128x512xbf16, #tpu.memory_space<vmem>>, vector<1x128x512xbf16>
    %513 = vector.shape_cast %512 : vector<1x128x512xbf16> to vector<128x512xbf16>
    %cst_211 = arith.constant dense<0.000000e+00> : vector<8x512xf32>
    %514 = tpu.matmul %511, %513, %cst_211 {dimension_numbers = #tpu.dot_dimension_numbers<[1], [0], [0], [1], [0, 0, 1, 1], [], []>} : vector<8x128xbf16>, vector<128x512xbf16>, vector<8x512xf32> -> vector<8x512xf32>
    %515 = arith.addf %510, %514 : vector<8x512xf32>
    %516 = vector.extract_strided_slice %515 {offsets = [0, 0], sizes = [8, 384], strides = [1, 1]} : vector<8x512xf32> to vector<8x384xf32>
    %517 = arith.negf %516 : vector<8x384xf32>
    %518 = math.exp %517 : vector<8x384xf32>
    %cst_212 = arith.constant 1.000000e+00 : f32
    %519 = vector.broadcast %cst_212 : f32 to vector<8x384xf32>
    %520 = arith.addf %519, %518 : vector<8x384xf32>
    %521 = arith.divf %519, %520 : vector<8x384xf32>
    %522 = vector.extract_strided_slice %521 {offsets = [0, 0], sizes = [8, 128], strides = [1, 1]} : vector<8x384xf32> to vector<8x128xf32>
    %523 = vector.extract_strided_slice %521 {offsets = [0, 128], sizes = [8, 128], strides = [1, 1]} : vector<8x384xf32> to vector<8x128xf32>
    %524 = vector.extract_strided_slice %521 {offsets = [0, 256], sizes = [8, 128], strides = [1, 1]} : vector<8x384xf32> to vector<8x128xf32>
    %525 = vector.extract_strided_slice %515 {offsets = [0, 384], sizes = [8, 128], strides = [1, 1]} : vector<8x512xf32> to vector<8x128xf32>
    %526 = math.tanh %525 : vector<8x128xf32>
    %527 = arith.mulf %523, %449 : vector<8x128xf32>
    %528 = arith.mulf %522, %526 : vector<8x128xf32>
    %529 = arith.addf %527, %528 : vector<8x128xf32>
    %530 = math.tanh %529 : vector<8x128xf32>
    %531 = arith.mulf %524, %530 : vector<8x128xf32>
    %532 = arith.truncf %531 : vector<8x128xf32> to vector<8x128xbf16>
    %c1_213 = arith.constant 1 : index
    %c0_214 = arith.constant 0 : index
    %c0_215 = arith.constant 0 : index
    %533 = vector.load %arg3[%c1_213, %c0_214, %c0_215] : memref<3x128x512xbf16, #tpu.memory_space<vmem>>, vector<1x128x512xbf16>
    %534 = vector.shape_cast %533 : vector<1x128x512xbf16> to vector<128x512xbf16>
    %cst_216 = arith.constant dense<0.000000e+00> : vector<8x512xf32>
    %535 = tpu.matmul %532, %534, %cst_216 {dimension_numbers = #tpu.dot_dimension_numbers<[1], [0], [0], [1], [0, 0, 1, 1], [], []>} : vector<8x128xbf16>, vector<128x512xbf16>, vector<8x512xf32> -> vector<8x512xf32>
    %c1_217 = arith.constant 1 : index
    %c0_218 = arith.constant 0 : index
    %c0_219 = arith.constant 0 : index
    %536 = vector.load %arg5[%c1_217, %c0_218, %c0_219] : memref<3x1x512xf32, #tpu.memory_space<vmem>>, vector<1x1x512xf32>
    %537 = vector.shape_cast %536 : vector<1x1x512xf32> to vector<1x512xf32>
    %538 = vector.broadcast %537 : vector<1x512xf32> to vector<8x512xf32>
    %539 = arith.addf %535, %538 : vector<8x512xf32>
    %540 = arith.truncf %480 : vector<8x128xf32> to vector<8x128xbf16>
    %c1_220 = arith.constant 1 : index
    %c0_221 = arith.constant 0 : index
    %c0_222 = arith.constant 0 : index
    %541 = vector.load %arg4[%c1_220, %c0_221, %c0_222] : memref<3x128x512xbf16, #tpu.memory_space<vmem>>, vector<1x128x512xbf16>
    %542 = vector.shape_cast %541 : vector<1x128x512xbf16> to vector<128x512xbf16>
    %cst_223 = arith.constant dense<0.000000e+00> : vector<8x512xf32>
    %543 = tpu.matmul %540, %542, %cst_223 {dimension_numbers = #tpu.dot_dimension_numbers<[1], [0], [0], [1], [0, 0, 1, 1], [], []>} : vector<8x128xbf16>, vector<128x512xbf16>, vector<8x512xf32> -> vector<8x512xf32>
    %544 = arith.addf %459, %543 : vector<8x512xf32>
    %545 = vector.extract_strided_slice %544 {offsets = [0, 0], sizes = [8, 384], strides = [1, 1]} : vector<8x512xf32> to vector<8x384xf32>
    %546 = arith.negf %545 : vector<8x384xf32>
    %547 = math.exp %546 : vector<8x384xf32>
    %cst_224 = arith.constant 1.000000e+00 : f32
    %548 = vector.broadcast %cst_224 : f32 to vector<8x384xf32>
    %549 = arith.addf %548, %547 : vector<8x384xf32>
    %550 = arith.divf %548, %549 : vector<8x384xf32>
    %551 = vector.extract_strided_slice %550 {offsets = [0, 0], sizes = [8, 128], strides = [1, 1]} : vector<8x384xf32> to vector<8x128xf32>
    %552 = vector.extract_strided_slice %550 {offsets = [0, 128], sizes = [8, 128], strides = [1, 1]} : vector<8x384xf32> to vector<8x128xf32>
    %553 = vector.extract_strided_slice %550 {offsets = [0, 256], sizes = [8, 128], strides = [1, 1]} : vector<8x384xf32> to vector<8x128xf32>
    %554 = vector.extract_strided_slice %544 {offsets = [0, 384], sizes = [8, 128], strides = [1, 1]} : vector<8x512xf32> to vector<8x128xf32>
    %555 = math.tanh %554 : vector<8x128xf32>
    %556 = arith.mulf %552, %478 : vector<8x128xf32>
    %557 = arith.mulf %551, %555 : vector<8x128xf32>
    %558 = arith.addf %556, %557 : vector<8x128xf32>
    %559 = math.tanh %558 : vector<8x128xf32>
    %560 = arith.mulf %553, %559 : vector<8x128xf32>
    %561 = arith.truncf %560 : vector<8x128xf32> to vector<8x128xbf16>
    %c2_225 = arith.constant 2 : index
    %c0_226 = arith.constant 0 : index
    %c0_227 = arith.constant 0 : index
    %562 = vector.load %arg3[%c2_225, %c0_226, %c0_227] : memref<3x128x512xbf16, #tpu.memory_space<vmem>>, vector<1x128x512xbf16>
    %563 = vector.shape_cast %562 : vector<1x128x512xbf16> to vector<128x512xbf16>
    %cst_228 = arith.constant dense<0.000000e+00> : vector<8x512xf32>
    %564 = tpu.matmul %561, %563, %cst_228 {dimension_numbers = #tpu.dot_dimension_numbers<[1], [0], [0], [1], [0, 0, 1, 1], [], []>} : vector<8x128xbf16>, vector<128x512xbf16>, vector<8x512xf32> -> vector<8x512xf32>
    %c2_229 = arith.constant 2 : index
    %c0_230 = arith.constant 0 : index
    %c0_231 = arith.constant 0 : index
    %565 = vector.load %arg5[%c2_229, %c0_230, %c0_231] : memref<3x1x512xf32, #tpu.memory_space<vmem>>, vector<1x1x512xf32>
    %566 = vector.shape_cast %565 : vector<1x1x512xf32> to vector<1x512xf32>
    %567 = vector.broadcast %566 : vector<1x512xf32> to vector<8x512xf32>
    %568 = arith.addf %564, %567 : vector<8x512xf32>
    %569 = arith.truncf %509 : vector<8x128xf32> to vector<8x128xbf16>
    %c2_232 = arith.constant 2 : index
    %c0_233 = arith.constant 0 : index
    %c0_234 = arith.constant 0 : index
    %570 = vector.load %arg4[%c2_232, %c0_233, %c0_234] : memref<3x128x512xbf16, #tpu.memory_space<vmem>>, vector<1x128x512xbf16>
    %571 = vector.shape_cast %570 : vector<1x128x512xbf16> to vector<128x512xbf16>
    %cst_235 = arith.constant dense<0.000000e+00> : vector<8x512xf32>
    %572 = tpu.matmul %569, %571, %cst_235 {dimension_numbers = #tpu.dot_dimension_numbers<[1], [0], [0], [1], [0, 0, 1, 1], [], []>} : vector<8x128xbf16>, vector<128x512xbf16>, vector<8x512xf32> -> vector<8x512xf32>
    %573 = arith.addf %488, %572 : vector<8x512xf32>
    %574 = vector.extract_strided_slice %573 {offsets = [0, 0], sizes = [8, 384], strides = [1, 1]} : vector<8x512xf32> to vector<8x384xf32>
    %575 = arith.negf %574 : vector<8x384xf32>
    %576 = math.exp %575 : vector<8x384xf32>
    %cst_236 = arith.constant 1.000000e+00 : f32
    %577 = vector.broadcast %cst_236 : f32 to vector<8x384xf32>
    %578 = arith.addf %577, %576 : vector<8x384xf32>
    %579 = arith.divf %577, %578 : vector<8x384xf32>
    %580 = vector.extract_strided_slice %579 {offsets = [0, 0], sizes = [8, 128], strides = [1, 1]} : vector<8x384xf32> to vector<8x128xf32>
    %581 = vector.extract_strided_slice %579 {offsets = [0, 128], sizes = [8, 128], strides = [1, 1]} : vector<8x384xf32> to vector<8x128xf32>
    %582 = vector.extract_strided_slice %579 {offsets = [0, 256], sizes = [8, 128], strides = [1, 1]} : vector<8x384xf32> to vector<8x128xf32>
    %583 = vector.extract_strided_slice %573 {offsets = [0, 384], sizes = [8, 128], strides = [1, 1]} : vector<8x512xf32> to vector<8x128xf32>
    %584 = math.tanh %583 : vector<8x128xf32>
    %585 = arith.mulf %581, %507 : vector<8x128xf32>
    %586 = arith.mulf %580, %584 : vector<8x128xf32>
    %587 = arith.addf %585, %586 : vector<8x128xf32>
    %588 = math.tanh %587 : vector<8x128xf32>
    %589 = arith.mulf %582, %588 : vector<8x128xf32>
    %590 = arith.truncf %560 : vector<8x128xf32> to vector<8x128xbf16>
    %c1_237 = arith.constant 1 : index
    %c0_238 = arith.constant 0 : index
    %c0_239 = arith.constant 0 : index
    %591 = vector.load %arg4[%c1_237, %c0_238, %c0_239] : memref<3x128x512xbf16, #tpu.memory_space<vmem>>, vector<1x128x512xbf16>
    %592 = vector.shape_cast %591 : vector<1x128x512xbf16> to vector<128x512xbf16>
    %cst_240 = arith.constant dense<0.000000e+00> : vector<8x512xf32>
    %593 = tpu.matmul %590, %592, %cst_240 {dimension_numbers = #tpu.dot_dimension_numbers<[1], [0], [0], [1], [0, 0, 1, 1], [], []>} : vector<8x128xbf16>, vector<128x512xbf16>, vector<8x512xf32> -> vector<8x512xf32>
    %594 = arith.addf %539, %593 : vector<8x512xf32>
    %595 = vector.extract_strided_slice %594 {offsets = [0, 0], sizes = [8, 384], strides = [1, 1]} : vector<8x512xf32> to vector<8x384xf32>
    %596 = arith.negf %595 : vector<8x384xf32>
    %597 = math.exp %596 : vector<8x384xf32>
    %cst_241 = arith.constant 1.000000e+00 : f32
    %598 = vector.broadcast %cst_241 : f32 to vector<8x384xf32>
    %599 = arith.addf %598, %597 : vector<8x384xf32>
    %600 = arith.divf %598, %599 : vector<8x384xf32>
    %601 = vector.extract_strided_slice %600 {offsets = [0, 0], sizes = [8, 128], strides = [1, 1]} : vector<8x384xf32> to vector<8x128xf32>
    %602 = vector.extract_strided_slice %600 {offsets = [0, 128], sizes = [8, 128], strides = [1, 1]} : vector<8x384xf32> to vector<8x128xf32>
    %603 = vector.extract_strided_slice %600 {offsets = [0, 256], sizes = [8, 128], strides = [1, 1]} : vector<8x384xf32> to vector<8x128xf32>
    %604 = vector.extract_strided_slice %594 {offsets = [0, 384], sizes = [8, 128], strides = [1, 1]} : vector<8x512xf32> to vector<8x128xf32>
    %605 = math.tanh %604 : vector<8x128xf32>
    %606 = arith.mulf %602, %558 : vector<8x128xf32>
    %607 = arith.mulf %601, %605 : vector<8x128xf32>
    %608 = arith.addf %606, %607 : vector<8x128xf32>
    %609 = math.tanh %608 : vector<8x128xf32>
    %610 = arith.mulf %603, %609 : vector<8x128xf32>
    %611 = arith.truncf %610 : vector<8x128xf32> to vector<8x128xbf16>
    %c2_242 = arith.constant 2 : index
    %c0_243 = arith.constant 0 : index
    %c0_244 = arith.constant 0 : index
    %612 = vector.load %arg3[%c2_242, %c0_243, %c0_244] : memref<3x128x512xbf16, #tpu.memory_space<vmem>>, vector<1x128x512xbf16>
    %613 = vector.shape_cast %612 : vector<1x128x512xbf16> to vector<128x512xbf16>
    %cst_245 = arith.constant dense<0.000000e+00> : vector<8x512xf32>
    %614 = tpu.matmul %611, %613, %cst_245 {dimension_numbers = #tpu.dot_dimension_numbers<[1], [0], [0], [1], [0, 0, 1, 1], [], []>} : vector<8x128xbf16>, vector<128x512xbf16>, vector<8x512xf32> -> vector<8x512xf32>
    %c2_246 = arith.constant 2 : index
    %c0_247 = arith.constant 0 : index
    %c0_248 = arith.constant 0 : index
    %615 = vector.load %arg5[%c2_246, %c0_247, %c0_248] : memref<3x1x512xf32, #tpu.memory_space<vmem>>, vector<1x1x512xf32>
    %616 = vector.shape_cast %615 : vector<1x1x512xf32> to vector<1x512xf32>
    %617 = vector.broadcast %616 : vector<1x512xf32> to vector<8x512xf32>
    %618 = arith.addf %614, %617 : vector<8x512xf32>
    %619 = arith.truncf %589 : vector<8x128xf32> to vector<8x128xbf16>
    %c2_249 = arith.constant 2 : index
    %c0_250 = arith.constant 0 : index
    %c0_251 = arith.constant 0 : index
    %620 = vector.load %arg4[%c2_249, %c0_250, %c0_251] : memref<3x128x512xbf16, #tpu.memory_space<vmem>>, vector<1x128x512xbf16>
    %621 = vector.shape_cast %620 : vector<1x128x512xbf16> to vector<128x512xbf16>
    %cst_252 = arith.constant dense<0.000000e+00> : vector<8x512xf32>
    %622 = tpu.matmul %619, %621, %cst_252 {dimension_numbers = #tpu.dot_dimension_numbers<[1], [0], [0], [1], [0, 0, 1, 1], [], []>} : vector<8x128xbf16>, vector<128x512xbf16>, vector<8x512xf32> -> vector<8x512xf32>
    %623 = arith.addf %568, %622 : vector<8x512xf32>
    %624 = vector.extract_strided_slice %623 {offsets = [0, 0], sizes = [8, 384], strides = [1, 1]} : vector<8x512xf32> to vector<8x384xf32>
    %625 = arith.negf %624 : vector<8x384xf32>
    %626 = math.exp %625 : vector<8x384xf32>
    %cst_253 = arith.constant 1.000000e+00 : f32
    %627 = vector.broadcast %cst_253 : f32 to vector<8x384xf32>
    %628 = arith.addf %627, %626 : vector<8x384xf32>
    %629 = arith.divf %627, %628 : vector<8x384xf32>
    %630 = vector.extract_strided_slice %629 {offsets = [0, 0], sizes = [8, 128], strides = [1, 1]} : vector<8x384xf32> to vector<8x128xf32>
    %631 = vector.extract_strided_slice %629 {offsets = [0, 128], sizes = [8, 128], strides = [1, 1]} : vector<8x384xf32> to vector<8x128xf32>
    %632 = vector.extract_strided_slice %629 {offsets = [0, 256], sizes = [8, 128], strides = [1, 1]} : vector<8x384xf32> to vector<8x128xf32>
    %633 = vector.extract_strided_slice %623 {offsets = [0, 384], sizes = [8, 128], strides = [1, 1]} : vector<8x512xf32> to vector<8x128xf32>
    %634 = math.tanh %633 : vector<8x128xf32>
    %635 = arith.mulf %631, %587 : vector<8x128xf32>
    %636 = arith.mulf %630, %634 : vector<8x128xf32>
    %637 = arith.addf %635, %636 : vector<8x128xf32>
    %638 = math.tanh %637 : vector<8x128xf32>
    %639 = arith.mulf %632, %638 : vector<8x128xf32>
    %640 = arith.truncf %639 : vector<8x128xf32> to vector<8x128xbf16>
    %c2_254 = arith.constant 2 : index
    %c0_255 = arith.constant 0 : index
    %c0_256 = arith.constant 0 : index
    %641 = vector.load %arg4[%c2_254, %c0_255, %c0_256] : memref<3x128x512xbf16, #tpu.memory_space<vmem>>, vector<1x128x512xbf16>
    %642 = vector.shape_cast %641 : vector<1x128x512xbf16> to vector<128x512xbf16>
    %cst_257 = arith.constant dense<0.000000e+00> : vector<8x512xf32>
    %643 = tpu.matmul %640, %642, %cst_257 {dimension_numbers = #tpu.dot_dimension_numbers<[1], [0], [0], [1], [0, 0, 1, 1], [], []>} : vector<8x128xbf16>, vector<128x512xbf16>, vector<8x512xf32> -> vector<8x512xf32>
    %644 = arith.addf %618, %643 : vector<8x512xf32>
    %645 = vector.extract_strided_slice %644 {offsets = [0, 0], sizes = [8, 384], strides = [1, 1]} : vector<8x512xf32> to vector<8x384xf32>
    %646 = arith.negf %645 : vector<8x384xf32>
    %647 = math.exp %646 : vector<8x384xf32>
    %cst_258 = arith.constant 1.000000e+00 : f32
    %648 = vector.broadcast %cst_258 : f32 to vector<8x384xf32>
    %649 = arith.addf %648, %647 : vector<8x384xf32>
    %650 = arith.divf %648, %649 : vector<8x384xf32>
    %651 = vector.extract_strided_slice %650 {offsets = [0, 0], sizes = [8, 128], strides = [1, 1]} : vector<8x384xf32> to vector<8x128xf32>
    %652 = vector.extract_strided_slice %650 {offsets = [0, 128], sizes = [8, 128], strides = [1, 1]} : vector<8x384xf32> to vector<8x128xf32>
    %653 = vector.extract_strided_slice %650 {offsets = [0, 256], sizes = [8, 128], strides = [1, 1]} : vector<8x384xf32> to vector<8x128xf32>
    %654 = vector.extract_strided_slice %644 {offsets = [0, 384], sizes = [8, 128], strides = [1, 1]} : vector<8x512xf32> to vector<8x128xf32>
    %655 = math.tanh %654 : vector<8x128xf32>
    %656 = arith.mulf %652, %637 : vector<8x128xf32>
    %657 = arith.mulf %651, %655 : vector<8x128xf32>
    %658 = arith.addf %656, %657 : vector<8x128xf32>
    %659 = math.tanh %658 : vector<8x128xf32>
    %660 = arith.mulf %653, %659 : vector<8x128xf32>
    %c0_259 = arith.constant 0 : index
    %c0_260 = arith.constant 0 : index
    %c0_261 = arith.constant 0 : index
    %661 = vector.load %arg6[%c0_259, %c0_260, %c0_261] : memref<3x128x8xf32, #tpu.memory_space<vmem>>, vector<1x128x8xf32>
    %662 = vector.shape_cast %661 : vector<1x128x8xf32> to vector<128x8xf32>
    %cst_262 = arith.constant dense<0.000000e+00> : vector<8x8xf32>
    %663 = tpu.matmul %531, %662, %cst_262 {dimension_numbers = #tpu.dot_dimension_numbers<[1], [0], [0], [1], [0, 0, 1, 1], [], []>} : vector<8x128xf32>, vector<128x8xf32>, vector<8x8xf32> -> vector<8x8xf32>
    %c0_263 = arith.constant 0 : index
    %c0_264 = arith.constant 0 : index
    %c0_265 = arith.constant 0 : index
    %664 = vector.load %arg7[%c0_263, %c0_264, %c0_265] : memref<3x1x8xf32, #tpu.memory_space<vmem>>, vector<1x1x8xf32>
    %665 = vector.shape_cast %664 : vector<1x1x8xf32> to vector<1x8xf32>
    %666 = vector.broadcast %665 : vector<1x8xf32> to vector<8x8xf32>
    %667 = arith.addf %663, %666 : vector<8x8xf32>
    %cst_266 = arith.constant dense<0xFF800000> : vector<8xf32>
    %668 = vector.multi_reduction <maximumf>, %667, %cst_266 [1] : vector<8x8xf32> to vector<8xf32>
    %669 = vector.shape_cast %668 : vector<8xf32> to vector<8x1xf32>
    %670 = vector.broadcast %669 : vector<8x1xf32> to vector<8x8xf32>
    %671 = arith.subf %667, %670 : vector<8x8xf32>
    %672 = math.exp %671 : vector<8x8xf32>
    %cst_267 = arith.constant dense<0.000000e+00> : vector<8xf32>
    %673 = vector.multi_reduction <add>, %672, %cst_267 [1] : vector<8x8xf32> to vector<8xf32>
    %674 = vector.shape_cast %673 : vector<8xf32> to vector<8x1xf32>
    %675 = math.log %674 : vector<8x1xf32>
    %676 = vector.broadcast %675 : vector<8x1xf32> to vector<8x8xf32>
    %677 = arith.subf %671, %676 : vector<8x8xf32>
    %678 = math.exp %677 : vector<8x8xf32>
    %679 = arith.mulf %678, %677 : vector<8x8xf32>
    %680 = vector.shape_cast %679 : vector<8x8xf32> to vector<1x8x8xf32>
    %cst_268 = arith.constant dense<0.000000e+00> : vector<1xf32>
    %681 = vector.multi_reduction <add>, %680, %cst_268 [1, 2] : vector<1x8x8xf32> to vector<1xf32>
    %682 = vector.shape_cast %681 : vector<1xf32> to vector<1x1x1xf32>
    %683 = vector.extract %682[0, 0, 0] : f32 from vector<1x1x1xf32>
    %cst_269 = arith.constant 8.000000e+00 : f32
    %684 = arith.divf %683, %cst_269 : f32
    %c0_270 = arith.constant 0 : index
    %c0_271 = arith.constant 0 : index
    %685 = vector.load %arg8[%c0_270, %c0_271] : memref<8x8xf32, #tpu.memory_space<vmem>>, vector<8x8xf32>
    %686 = arith.mulf %685, %677 : vector<8x8xf32>
    %687 = vector.shape_cast %686 : vector<8x8xf32> to vector<1x8x8xf32>
    %cst_272 = arith.constant dense<0.000000e+00> : vector<1xf32>
    %688 = vector.multi_reduction <add>, %687, %cst_272 [1, 2] : vector<1x8x8xf32> to vector<1xf32>
    %689 = vector.shape_cast %688 : vector<1xf32> to vector<1x1x1xf32>
    %690 = vector.extract %689[0, 0, 0] : f32 from vector<1x1x1xf32>
    %cst_273 = arith.constant 0.000000e+00 : f32
    %691 = arith.subf %cst_273, %690 : f32
    %cst_274 = arith.constant 8.000000e+00 : f32
    %692 = arith.divf %691, %cst_274 : f32
    %c0_275 = arith.constant 0 : index
    %693 = memref.load %arg9[%c0_275] : memref<3xf32, #tpu.memory_space<smem>>
    %694 = arith.mulf %693, %692 : f32
    %cst_276 = arith.constant 0.000000e+00 : f32
    %695 = arith.addf %cst_276, %694 : f32
    %c0_277 = arith.constant 0 : index
    %696 = memref.load %arg10[%c0_277] : memref<3xf32, #tpu.memory_space<smem>>
    %697 = arith.addf %695, %696 : f32
    %c1_278 = arith.constant 1 : index
    %c0_279 = arith.constant 0 : index
    %c0_280 = arith.constant 0 : index
    %698 = vector.load %arg6[%c1_278, %c0_279, %c0_280] : memref<3x128x8xf32, #tpu.memory_space<vmem>>, vector<1x128x8xf32>
    %699 = vector.shape_cast %698 : vector<1x128x8xf32> to vector<128x8xf32>
    %cst_281 = arith.constant dense<0.000000e+00> : vector<8x8xf32>
    %700 = tpu.matmul %610, %699, %cst_281 {dimension_numbers = #tpu.dot_dimension_numbers<[1], [0], [0], [1], [0, 0, 1, 1], [], []>} : vector<8x128xf32>, vector<128x8xf32>, vector<8x8xf32> -> vector<8x8xf32>
    %c1_282 = arith.constant 1 : index
    %c0_283 = arith.constant 0 : index
    %c0_284 = arith.constant 0 : index
    %701 = vector.load %arg7[%c1_282, %c0_283, %c0_284] : memref<3x1x8xf32, #tpu.memory_space<vmem>>, vector<1x1x8xf32>
    %702 = vector.shape_cast %701 : vector<1x1x8xf32> to vector<1x8xf32>
    %703 = vector.broadcast %702 : vector<1x8xf32> to vector<8x8xf32>
    %704 = arith.addf %700, %703 : vector<8x8xf32>
    %cst_285 = arith.constant dense<0xFF800000> : vector<8xf32>
    %705 = vector.multi_reduction <maximumf>, %704, %cst_285 [1] : vector<8x8xf32> to vector<8xf32>
    %706 = vector.shape_cast %705 : vector<8xf32> to vector<8x1xf32>
    %707 = vector.broadcast %706 : vector<8x1xf32> to vector<8x8xf32>
    %708 = arith.subf %704, %707 : vector<8x8xf32>
    %709 = math.exp %708 : vector<8x8xf32>
    %cst_286 = arith.constant dense<0.000000e+00> : vector<8xf32>
    %710 = vector.multi_reduction <add>, %709, %cst_286 [1] : vector<8x8xf32> to vector<8xf32>
    %711 = vector.shape_cast %710 : vector<8xf32> to vector<8x1xf32>
    %712 = math.log %711 : vector<8x1xf32>
    %713 = vector.broadcast %712 : vector<8x1xf32> to vector<8x8xf32>
    %714 = arith.subf %708, %713 : vector<8x8xf32>
    %715 = math.exp %714 : vector<8x8xf32>
    %716 = arith.mulf %715, %714 : vector<8x8xf32>
    %717 = vector.shape_cast %716 : vector<8x8xf32> to vector<1x8x8xf32>
    %cst_287 = arith.constant dense<0.000000e+00> : vector<1xf32>
    %718 = vector.multi_reduction <add>, %717, %cst_287 [1, 2] : vector<1x8x8xf32> to vector<1xf32>
    %719 = vector.shape_cast %718 : vector<1xf32> to vector<1x1x1xf32>
    %720 = vector.extract %719[0, 0, 0] : f32 from vector<1x1x1xf32>
    %cst_288 = arith.constant 8.000000e+00 : f32
    %721 = arith.divf %720, %cst_288 : f32
    %c0_289 = arith.constant 0 : index
    %c0_290 = arith.constant 0 : index
    %722 = vector.load %arg8[%c0_289, %c0_290] : memref<8x8xf32, #tpu.memory_space<vmem>>, vector<8x8xf32>
    %723 = arith.mulf %722, %714 : vector<8x8xf32>
    %724 = vector.shape_cast %723 : vector<8x8xf32> to vector<1x8x8xf32>
    %cst_291 = arith.constant dense<0.000000e+00> : vector<1xf32>
    %725 = vector.multi_reduction <add>, %724, %cst_291 [1, 2] : vector<1x8x8xf32> to vector<1xf32>
    %726 = vector.shape_cast %725 : vector<1xf32> to vector<1x1x1xf32>
    %727 = vector.extract %726[0, 0, 0] : f32 from vector<1x1x1xf32>
    %cst_292 = arith.constant 0.000000e+00 : f32
    %728 = arith.subf %cst_292, %727 : f32
    %cst_293 = arith.constant 8.000000e+00 : f32
    %729 = arith.divf %728, %cst_293 : f32
    %c1_294 = arith.constant 1 : index
    %730 = memref.load %arg9[%c1_294] : memref<3xf32, #tpu.memory_space<smem>>
    %731 = arith.mulf %730, %729 : f32
    %732 = arith.addf %697, %731 : f32
    %c1_295 = arith.constant 1 : index
    %733 = memref.load %arg10[%c1_295] : memref<3xf32, #tpu.memory_space<smem>>
    %734 = arith.addf %732, %733 : f32
    %c2_296 = arith.constant 2 : index
    %c0_297 = arith.constant 0 : index
    %c0_298 = arith.constant 0 : index
    %735 = vector.load %arg6[%c2_296, %c0_297, %c0_298] : memref<3x128x8xf32, #tpu.memory_space<vmem>>, vector<1x128x8xf32>
    %736 = vector.shape_cast %735 : vector<1x128x8xf32> to vector<128x8xf32>
    %cst_299 = arith.constant dense<0.000000e+00> : vector<8x8xf32>
    %737 = tpu.matmul %660, %736, %cst_299 {dimension_numbers = #tpu.dot_dimension_numbers<[1], [0], [0], [1], [0, 0, 1, 1], [], []>} : vector<8x128xf32>, vector<128x8xf32>, vector<8x8xf32> -> vector<8x8xf32>
    %c2_300 = arith.constant 2 : index
    %c0_301 = arith.constant 0 : index
    %c0_302 = arith.constant 0 : index
    %738 = vector.load %arg7[%c2_300, %c0_301, %c0_302] : memref<3x1x8xf32, #tpu.memory_space<vmem>>, vector<1x1x8xf32>
    %739 = vector.shape_cast %738 : vector<1x1x8xf32> to vector<1x8xf32>
    %740 = vector.broadcast %739 : vector<1x8xf32> to vector<8x8xf32>
    %741 = arith.addf %737, %740 : vector<8x8xf32>
    %cst_303 = arith.constant dense<0xFF800000> : vector<8xf32>
    %742 = vector.multi_reduction <maximumf>, %741, %cst_303 [1] : vector<8x8xf32> to vector<8xf32>
    %743 = vector.shape_cast %742 : vector<8xf32> to vector<8x1xf32>
    %744 = vector.broadcast %743 : vector<8x1xf32> to vector<8x8xf32>
    %745 = arith.subf %741, %744 : vector<8x8xf32>
    %746 = math.exp %745 : vector<8x8xf32>
    %cst_304 = arith.constant dense<0.000000e+00> : vector<8xf32>
    %747 = vector.multi_reduction <add>, %746, %cst_304 [1] : vector<8x8xf32> to vector<8xf32>
    %748 = vector.shape_cast %747 : vector<8xf32> to vector<8x1xf32>
    %749 = math.log %748 : vector<8x1xf32>
    %750 = vector.broadcast %749 : vector<8x1xf32> to vector<8x8xf32>
    %751 = arith.subf %745, %750 : vector<8x8xf32>
    %752 = math.exp %751 : vector<8x8xf32>
    %753 = arith.mulf %752, %751 : vector<8x8xf32>
    %754 = vector.shape_cast %753 : vector<8x8xf32> to vector<1x8x8xf32>
    %cst_305 = arith.constant dense<0.000000e+00> : vector<1xf32>
    %755 = vector.multi_reduction <add>, %754, %cst_305 [1, 2] : vector<1x8x8xf32> to vector<1xf32>
    %756 = vector.shape_cast %755 : vector<1xf32> to vector<1x1x1xf32>
    %757 = vector.extract %756[0, 0, 0] : f32 from vector<1x1x1xf32>
    %cst_306 = arith.constant 8.000000e+00 : f32
    %758 = arith.divf %757, %cst_306 : f32
    %c0_307 = arith.constant 0 : index
    %c0_308 = arith.constant 0 : index
    %759 = vector.load %arg8[%c0_307, %c0_308] : memref<8x8xf32, #tpu.memory_space<vmem>>, vector<8x8xf32>
    %760 = arith.mulf %759, %751 : vector<8x8xf32>
    %761 = vector.shape_cast %760 : vector<8x8xf32> to vector<1x8x8xf32>
    %cst_309 = arith.constant dense<0.000000e+00> : vector<1xf32>
    %762 = vector.multi_reduction <add>, %761, %cst_309 [1, 2] : vector<1x8x8xf32> to vector<1xf32>
    %763 = vector.shape_cast %762 : vector<1xf32> to vector<1x1x1xf32>
    %764 = vector.extract %763[0, 0, 0] : f32 from vector<1x1x1xf32>
    %cst_310 = arith.constant 0.000000e+00 : f32
    %765 = arith.subf %cst_310, %764 : f32
    %cst_311 = arith.constant 8.000000e+00 : f32
    %766 = arith.divf %765, %cst_311 : f32
    %c2_312 = arith.constant 2 : index
    %767 = memref.load %arg9[%c2_312] : memref<3xf32, #tpu.memory_space<smem>>
    %768 = arith.mulf %767, %766 : f32
    %769 = arith.addf %734, %768 : f32
    %c2_313 = arith.constant 2 : index
    %770 = memref.load %arg10[%c2_313] : memref<3xf32, #tpu.memory_space<smem>>
    %771 = arith.addf %769, %770 : f32
    %772 = tpu.iota {dimensions = array<i32: 1>} : vector<1x128xi32>
    %c0_i32 = arith.constant 0 : i32
    %773 = vector.broadcast %c0_i32 : i32 to vector<1x128xi32>
    %774 = arith.cmpi eq, %772, %773 : vector<1x128xi32>
    %cst_314 = arith.constant 0.000000e+00 : f32
    %775 = vector.broadcast %771 : f32 to vector<1x128xf32>
    %776 = vector.broadcast %cst_314 : f32 to vector<1x128xf32>
    %777 = arith.select %774, %775, %776 : vector<1x128xi1>, vector<1x128xf32>
    %c1_i32 = arith.constant 1 : i32
    %778 = vector.broadcast %c1_i32 : i32 to vector<1x128xi32>
    %779 = arith.cmpi eq, %772, %778 : vector<1x128xi32>
    %780 = vector.broadcast %684 : f32 to vector<1x128xf32>
    %781 = arith.select %779, %780, %777 : vector<1x128xi1>, vector<1x128xf32>
    %c2_i32 = arith.constant 2 : i32
    %782 = vector.broadcast %c2_i32 : i32 to vector<1x128xi32>
    %783 = arith.cmpi eq, %772, %782 : vector<1x128xi32>
    %784 = vector.broadcast %721 : f32 to vector<1x128xf32>
    %785 = arith.select %783, %784, %781 : vector<1x128xi1>, vector<1x128xf32>
    %c3_i32 = arith.constant 3 : i32
    %786 = vector.broadcast %c3_i32 : i32 to vector<1x128xi32>
    %787 = arith.cmpi eq, %772, %786 : vector<1x128xi32>
    %788 = vector.broadcast %758 : f32 to vector<1x128xf32>
    %789 = arith.select %787, %788, %785 : vector<1x128xi1>, vector<1x128xf32>
    %c0_315 = arith.constant 0 : index
    %c0_316 = arith.constant 0 : index
    %790 = vector.load %arg11[%c0_315, %c0_316] : memref<1x128xf32, #tpu.memory_space<vmem>>, vector<1x128xf32>
    tpu.vector_store %arg11[%c0_315, %c0_316], %789 {strides = array<i32>} : memref<1x128xf32, #tpu.memory_space<vmem>>, vector<1x128xf32>,
    return
  }
}

</mosaic_0001>

<bundles_post_ra>
// kernel: stacked_lstm_bn_forward.1
= control target key start
LH: loop header
LB: loop body
LE: loop exit
PB: predicated region body
PF: predicated region fallthrough
CT: control target
= control target key end

     0   :  { %16 = vsyncpa [#allocation4], 0  ;;  %s13417_s0 = inlined_call_operand.vmem [shape: bf16[64,128], index: 0, kind: input, shape index: {}]   ;;  %s13418_s1 = inlined_call_operand.vmem [shape: bf16[128,128], index: 1, kind: input, shape index: {}]   ;;  %s13419_s2 = inlined_call_operand.vmem [shape: f32[1,128], index: 2, kind: input, shape index: {}]   ;;  %s13420_s3 = inlined_call_operand.vmem [shape: bf16[3,128,512], index: 3, kind: input, shape index: {}]   ;;  %s13421_s4 = inlined_call_operand.vmem [shape: bf16[3,128,512], index: 4, kind: input, shape index: {}]   ;;  %s13422_s5 = inlined_call_operand.vmem [shape: f32[3,1,512], index: 5, kind: input, shape index: {}]   ;;  %s13423_s6 = inlined_call_operand.vmem [shape: f32[3,128,8], index: 6, kind: input, shape index: {}]   ;;  %s13424_s7 = inlined_call_operand.vmem [shape: f32[3,1,8], index: 7, kind: input, shape index: {}]   ;;  %s13425_s8 = inlined_call_operand.vmem [shape: f32[8,8], index: 8, kind: input, shape index: {}]   ;;  %s13426_s9 = inlined_call_operand.vmem [shape: f32[3], index: 9, kind: input, shape index: {}]   ;;  %s13427_s10 = inlined_call_operand.vmem [shape: f32[3], index: 10, kind: input, shape index: {}]   ;;  %s13428_s11 = inlined_call_operand.vmem [shape: f32[1,128], index: 11, kind: output, shape index: {}]  }
   0x1   :  { %s42_s19 = sshll.u32 %s13426_s9, 4  ;;  %s43_s19 = int_to_ptr.vmem [resolvable:$true] %s42_s19 }
   0x2   :  { %17 = vsyncpa [#allocation6], 0  ;;  %s52_s22 = sshll.u32 %s13427_s10, 4  ;;  %s8199_s23 = scalar_lea.vmem %s43_s19, 16  ;;  %s53_s22 = int_to_ptr.vmem [resolvable:$true] %s52_s22 }
   0x3   :  { %p8200_p0 = scmp.ne.s32.totalorder %s43_s19, %s8199_s23  ;;  %p8204_p1 = scmp.lt.s32.totalorder %s43_s19, %s43_s19 }
   0x4   :  { %p8205_p2 = scmp.lt.s32.totalorder %s8199_s23, %s8199_s23 }
   0x6   :  { %p8206_p3 = por %p8205_p2, %p8204_p1 }
   0x8   :  { %p8207_p4 = pnand %p8206_p3, %p8200_p0 }
   0xa   :  { %8210 = shalt.err (!%p8207_p4)
}
   0xb   :  { %s8227_s24 = smov [#allocation3]   ;;  %s8211_s25 = scalar_lea.vmem %s53_s22, 16 }
   0xc   :  { %45 = dma.vmem_to_smem %s43_s19, 16, %s8227_s24, [#allocation4]  }
   0xd   :  { %p8212_p5 = scmp.ne.s32.totalorder %s53_s22, %s8211_s25  ;;  %p8216_p6 = scmp.lt.s32.totalorder %s53_s22, %s53_s22 }
   0xe   :  { %p8217_p7 = scmp.lt.s32.totalorder %s8211_s25, %s8211_s25 }
  0x10   :  { %p8218_p8 = por %p8217_p7, %p8216_p6 }
  0x12   :  { %p8219_p9 = pnand %p8218_p8, %p8212_p5 }
  0x14   :  { %8222 = shalt.err (!%p8219_p9)
}
  0x15   :  { %s8228_s9 = smov [#allocation5]  }
  0x16   :  { %55 = dma.vmem_to_smem %s53_s22, 16, %s8228_s9, [#allocation6]  }
  0x17   :  { %8223 = dma.done.wait [#allocation4], 16  }
  0x18   :  { %8224 = vsyncadd [#allocation4], 4294967280 }
  0x19   :  { %8225 = dma.done.wait [#allocation6], 16  }
  0x1a   :  { %8226 = vsyncadd [#allocation6], 4294967280 }
  0x1b   :  { %62 = sfence }
  0x1c   :  { %v7017_v0 = vld [vmem:[%s13418_s1] sm:$0xff]   ;;  %v7018_v1 = vld [vmem:[%s13418_s1 + $0x8] sm:$0xff]   ;;  %v7019_v2 = vld [vmem:[%s13418_s1 + $0x10] sm:$0xff]   ;;  %v13429_v46 = vmov 0   ;;  %vm8231_vm0 = vmmov 0   ;;  %vm5738_vm1 = vcmask 64512  }
  0x1d   :  { %6606 = vmatprep.subr.bf16.mxu0 %v7017_v0  ;;  %v7020_v3 = vld [vmem:[%s13418_s1 + $0x18] sm:$0xff]   ;;  %v7025_v4 = vld [vmem:[%s13417_s0] sm:$0xff]   ;;  %v7022_v10 = vld [vmem:[%s13418_s1 + $0x28] sm:$0xff]   ;;  %482 = vmatprep.mubr.bf16.mxu1 %v13429_v46  ;;  %s5786_s28 = sld [smem:[#allocation5]]  ;;  %s6522_s13 = sld [smem:[#allocation5 + $0x1]] }
  0x1e   :  { %6607 = vmatpush3.bf16.msra.mxu0 %v7017_v0  ;;  %6622 = vmatprep.mubr.bf16.mxu0 %v7025_v4  ;;  %v7021_v5 = vld [vmem:[%s13418_s1 + $0x20] sm:$0xff]   ;;  %v7023_v12 = vld [vmem:[%s13418_s1 + $0x30] sm:$0xff]   ;;  %v7024_v15 = vld [vmem:[%s13418_s1 + $0x38] sm:$0xff]   ;;  %s6541_s14 = sld [smem:[#allocation3 + $0x2]] }
  0x1f   :  { %6608 = vmatprep.subr.bf16.mxu0 %v7018_v1  ;;  %v7029_v6 = vld [vmem:[%s13420_s3 + $0x4] ss:$16 sps:$4 sm:$0xff]   ;;  %v7031_v7 = vld [vmem:[%s13420_s3] ss:$16 sps:$4 sm:$0xff]   ;;  %v7034_v18 = vld [vmem:[%s13420_s3 + $0xc] ss:$16 sps:$4 sm:$0xff]  }
  0x20   :  { %450 = vmatprep.subr.bf16.mxu1 %v7029_v6  ;;  %v7035_v8 = vld [vmem:[%s13420_s3 + $0x24] ss:$16 sps:$4 sm:$0xff]   ;;  %v7037_v9 = vld [vmem:[%s13420_s3 + $0x20] ss:$16 sps:$4 sm:$0xff]   ;;  %v7026_v20 = vld [vmem:[%s13417_s0 + $0x8] sm:$0xff]   ;;  %s6542_s19 = sld [smem:[#allocation5 + $0x2]] }
  0x21   :  { %451 = vmatpush1.bf16.msra.mxu1 %v7031_v7  ;;  %v7041_v11 = vld [vmem:[%s13420_s3 + $0x44] ss:$16 sps:$4 sm:$0xff]   ;;  %v7043_v13 = vld [vmem:[%s13420_s3 + $0x40] ss:$16 sps:$4 sm:$0xff]   ;;  %v7032_v23 = vld [vmem:[%s13420_s3 + $0x8] ss:$16 sps:$4 sm:$0xff]  }
  0x22   :  { %6609 = vmatpush3.bf16.msra.mxu0 %v7018_v1  ;;  %452 = vmatprep.subr.bf16.mxu1 %v7035_v8  ;;  %v7047_v14 = vld [vmem:[%s13420_s3 + $0x64] ss:$16 sps:$4 sm:$0xff]   ;;  %v7049_v16 = vld [vmem:[%s13420_s3 + $0x60] ss:$16 sps:$4 sm:$0xff]   ;;  %v7040_v24 = vld [vmem:[%s13420_s3 + $0x2c] ss:$16 sps:$4 sm:$0xff]  }
  0x23   :  { %6610 = vmatprep.subr.bf16.mxu0 %v7019_v2  ;;  %v7053_v17 = vld [vmem:[%s13420_s3 + $0x84] ss:$16 sps:$4 sm:$0xff]   ;;  %v7055_v19 = vld [vmem:[%s13420_s3 + $0x80] ss:$16 sps:$4 sm:$0xff]   ;;  %v7038_v27 = vld [vmem:[%s13420_s3 + $0x28] ss:$16 sps:$4 sm:$0xff]  }
  0x24   :  { %v7059_v21 = vld [vmem:[%s13420_s3 + $0xa4] ss:$16 sps:$4 sm:$0xff]   ;;  %v7061_v25 = vld [vmem:[%s13420_s3 + $0xa0] ss:$16 sps:$4 sm:$0xff]   ;;  %v7046_v28 = vld [vmem:[%s13420_s3 + $0x4c] ss:$16 sps:$4 sm:$0xff]  }
  0x25   :  { %453 = vmatpush1.bf16.msra.mxu1 %v7037_v9  ;;  %v7027_v22 = vld [vmem:[%s13417_s0 + $0x10] sm:$0xff]   ;;  %v7028_v29 = vld [vmem:[%s13417_s0 + $0x18] sm:$0xff]   ;;  %v6095_v48 = vld [vmem:[%s13419_s2] ss:$0 sm:$0xff]  ;;  %s5783_s0 = sld [smem:[#allocation3]] }
  0x26   :  { %6611 = vmatpush3.bf16.msra.mxu0 %v7019_v2  ;;  %454 = vmatprep.subr.bf16.mxu1 %v7041_v11  ;;  %v7065_v26 = vld [vmem:[%s13420_s3 + $0xc4] ss:$16 sps:$4 sm:$0xff]   ;;  %v7044_v30 = vld [vmem:[%s13420_s3 + $0x48] ss:$16 sps:$4 sm:$0xff]   ;;  %v7052_v31 = vld [vmem:[%s13420_s3 + $0x6c] ss:$16 sps:$4 sm:$0xff]  }
  0x27   :  { %6612 = vmatprep.subr.bf16.mxu0 %v7020_v3  ;;  %v7050_v32 = vld [vmem:[%s13420_s3 + $0x68] ss:$16 sps:$4 sm:$0xff]   ;;  %v7058_v33 = vld [vmem:[%s13420_s3 + $0x8c] ss:$16 sps:$4 sm:$0xff]   ;;  %v7067_v38 = vld [vmem:[%s13420_s3 + $0xc0] ss:$16 sps:$4 sm:$0xff]  }
  0x28   :  { %v7056_v34 = vld [vmem:[%s13420_s3 + $0x88] ss:$16 sps:$4 sm:$0xff]   ;;  %v7064_v35 = vld [vmem:[%s13420_s3 + $0xac] ss:$16 sps:$4 sm:$0xff]   ;;  %v7071_v40 = vld [vmem:[%s13420_s3 + $0xe4] ss:$16 sps:$4 sm:$0xff]  }
  0x29   :  { %455 = vmatpush1.bf16.msra.mxu1 %v7043_v13  ;;  %v7062_v36 = vld [vmem:[%s13420_s3 + $0xa8] ss:$16 sps:$4 sm:$0xff]   ;;  %v7070_v37 = vld [vmem:[%s13420_s3 + $0xcc] ss:$16 sps:$4 sm:$0xff]   ;;  %v7073_v42 = vld [vmem:[%s13420_s3 + $0xe0] ss:$16 sps:$4 sm:$0xff]  }
  0x2a   :  { %6613 = vmatpush3.bf16.msra.mxu0 %v7020_v3  ;;  %456 = vmatprep.subr.bf16.mxu1 %v7047_v14  ;;  %v7068_v39 = vld [vmem:[%s13420_s3 + $0xc8] ss:$16 sps:$4 sm:$0xff]   ;;  %v7076_v41 = vld [vmem:[%s13420_s3 + $0xec] ss:$16 sps:$4 sm:$0xff]   ;;  %v8434_v44 = vld [vmem:[%s13421_s4 + $0x4] ss:$16 sps:$4 sm:$0xff]  }
  0x2b   :  { %6614 = vmatprep.subr.bf16.mxu0 %v7021_v5  ;;  %v7074_v43 = vld [vmem:[%s13420_s3 + $0xe8] ss:$16 sps:$4 sm:$0xff]   ;;  %v8439_v45 = vld [vmem:[%s13421_s4 + $0xc] ss:$16 sps:$4 sm:$0xff]   ;;  %v8451_v57 = vld [vmem:[%s13421_s4] ss:$16 sps:$4 sm:$0xff]  }
  0x2c   :  { %v8456_v58 = vld [vmem:[%s13421_s4 + $0x8] ss:$16 sps:$4 sm:$0xff]   ;;  %v8461_v60 = vld [vmem:[%s13421_s4 + $0x24] ss:$16 sps:$4 sm:$0xff]   ;;  %v8466_v61 = vld [vmem:[%s13421_s4 + $0x2c] ss:$16 sps:$4 sm:$0xff]  }
  0x2d   :  { %457 = vmatpush1.bf16.msra.mxu1 %v7049_v16  ;;  %v8473_v63 = vld [vmem:[%s13421_s4 + $0x20] ss:$16 sps:$4 sm:$0xff]   ;;  %v8478_v1 = vld [vmem:[%s13421_s4 + $0x28] ss:$16 sps:$4 sm:$0xff]   ;;  %v8490_v6 = vld [vmem:[%s13421_s4 + $0x4c] ss:$16 sps:$4 sm:$0xff]  }
  0x2e   :  { %6615 = vmatpush3.bf16.msra.mxu0 %v7021_v5  ;;  %458 = vmatprep.subr.bf16.mxu1 %v7053_v17  ;;  %v8485_v5 = vld [vmem:[%s13421_s4 + $0x44] ss:$16 sps:$4 sm:$0xff]   ;;  %v8499_v11 = vld [vmem:[%s13421_s4 + $0x40] ss:$16 sps:$4 sm:$0xff]   ;;  %v8528_v17 = vld [vmem:[%s13421_s4 + $0x68] ss:$16 sps:$4 sm:$0xff]  }
  0x2f   :  { %6616 = vmatprep.subr.bf16.mxu0 %v7022_v10  ;;  %v8511_v14 = vld [vmem:[%s13421_s4 + $0x64] ss:$16 sps:$4 sm:$0xff]   ;;  %v8523_v16 = vld [vmem:[%s13421_s4 + $0x60] ss:$16 sps:$4 sm:$0xff]  }
  0x31   :  { %459 = vmatpush1.bf16.msra.mxu1 %v7055_v19  ;;  %v8540_v19 = vld [vmem:[%s13421_s4 + $0x8c] ss:$16 sps:$4 sm:$0xff]  }
  0x32   :  { %6617 = vmatpush3.bf16.msra.mxu0 %v7022_v10  ;;  %460 = vmatprep.subr.bf16.mxu1 %v7059_v21  ;;  %v8554_v21 = vld [vmem:[%s13421_s4 + $0x88] ss:$16 sps:$4 sm:$0xff]  }
  0x33   :  { %6618 = vmatprep.subr.bf16.mxu0 %v7023_v12 }
  0x35   :  { %461 = vmatpush1.bf16.msra.mxu1 %v7061_v25  ;;  %v8578_v25 = vld [vmem:[%s13421_s4 + $0xa8] ss:$16 sps:$4 sm:$0xff]  }
  0x36   :  { %6619 = vmatpush3.bf16.msra.mxu0 %v7023_v12  ;;  %462 = vmatprep.subr.bf16.mxu1 %v7065_v26  ;;  %v8504_v12 = vld [vmem:[%s13421_s4 + $0x48] ss:$16 sps:$4 sm:$0xff]   ;;  %v8585_v26 = vld [vmem:[%s13421_s4 + $0xc4] ss:$16 sps:$4 sm:$0xff]  }
  0x37   :  { %6620 = vmatprep.subr.bf16.mxu0 %v7024_v15 }
  0x39   :  { %463 = vmatpush1.bf16.msra.mxu1 %v7067_v38  ;;  %v8667_v38 = vld [vmem:[%s13420_s3 + $0x124] ss:$16 sps:$4 sm:$0xff]  }
  0x3a   :  { %6621 = vmatpush3.bf16.msra.mxu0 %v7024_v15  ;;  %464 = vmatprep.subr.bf16.mxu1 %v7071_v40  ;;  %v8516_v15 = vld [vmem:[%s13421_s4 + $0x6c] ss:$16 sps:$4 sm:$0xff]   ;;  %v8677_v40 = vld [vmem:[%s13420_s3 + $0x120] ss:$16 sps:$4 sm:$0xff]  }
  0x3b   :  { %523 = vmatprep.subr.bf16.mxu0 %v7034_v18  ;;  %v8535_v18 = vld [vmem:[%s13421_s4 + $0x84] ss:$16 sps:$4 sm:$0xff]  }
  0x3d   :  { %6623 = vmatmul.mubr.bf16.vlgmr.msra.gmra.mrb[0].mxu0 %v7026_v20  ;;  %465 = vmatpush1.bf16.msra.mxu1 %v7073_v42  ;;  %v8549_v20 = vld [vmem:[%s13421_s4 + $0x80] ss:$16 sps:$4 sm:$0xff]   ;;  %v8691_v42 = vld [vmem:[%s13420_s3 + $0x144] ss:$16 sps:$4 sm:$0xff]  }
  0x3e   :  { %6626 = vmatprep.mubr.bf16.mxu0 %v7027_v22  ;;  %524 = vmatpush1.bf16.msra.mxu0 %v7032_v23  ;;  %v8561_v22 = vld [vmem:[%s13421_s4 + $0xa4] ss:$16 sps:$4 sm:$0xff]   ;;  %v8566_v23 = vld [vmem:[%s13421_s4 + $0xac] ss:$16 sps:$4 sm:$0xff]   ;;  %13828 = vst [vmem:[#allocation9_spill] sm:$0xff] %v8691_v42 }
  0x3f   :  { %525 = vmatprep.subr.bf16.mxu0 %v7040_v24  ;;  %824 = vmatprep.subr.bf16.mxu1 %v8434_v44  ;;  %v8573_v24 = vld [vmem:[%s13421_s4 + $0xa0] ss:$16 sps:$4 sm:$0xff]  }
  0x42   :  { %526 = vmatpush1.bf16.msra.mxu0 %v7038_v27  ;;  %v8590_v27 = vld [vmem:[%s13421_s4 + $0xcc] ss:$16 sps:$4 sm:$0xff]  }
  0x43   :  { %527 = vmatprep.subr.bf16.mxu0 %v7046_v28  ;;  %v8599_v28 = vld [vmem:[%s13421_s4 + $0xc0] ss:$16 sps:$4 sm:$0xff]  }
  0x45   :  { %6627 = vmatmul.mubr.bf16.gmra.mrb[4].mxu0 %v7028_v29  ;;  %v8604_v29 = vld [vmem:[%s13421_s4 + $0xc8] ss:$16 sps:$4 sm:$0xff]  }
  0x46   :  { %528 = vmatpush1.bf16.msra.mxu0 %v7044_v30  ;;  %555 = vmatprep.mubr.bf16.mxu0 %v13429_v46  ;;  %v8611_v30 = vld [vmem:[%s13421_s4 + $0xe4] ss:$16 sps:$4 sm:$0xff]  }
  0x47   :  { %529 = vmatprep.subr.bf16.mxu0 %v7052_v31  ;;  %v8616_v31 = vld [vmem:[%s13421_s4 + $0xec] ss:$16 sps:$4 sm:$0xff]  }
  0x4a   :  { %530 = vmatpush1.bf16.msra.mxu0 %v7050_v32  ;;  %v8623_v32 = vld [vmem:[%s13421_s4 + $0xe0] ss:$16 sps:$4 sm:$0xff]  }
  0x4b   :  { %531 = vmatprep.subr.bf16.mxu0 %v7058_v33  ;;  %v8628_v33 = vld [vmem:[%s13421_s4 + $0xe8] ss:$16 sps:$4 sm:$0xff]  }
  0x4e   :  { %532 = vmatpush1.bf16.msra.mxu0 %v7056_v34  ;;  %v8643_v34 = vld [vmem:[%s13420_s3 + $0x104] ss:$16 sps:$4 sm:$0xff]  }
  0x4f   :  { %533 = vmatprep.subr.bf16.mxu0 %v7064_v35  ;;  %v8648_v35 = vld [vmem:[%s13420_s3 + $0x10c] ss:$16 sps:$4 sm:$0xff]  }
  0x52   :  { %534 = vmatpush1.bf16.msra.mxu0 %v7062_v36  ;;  %v8653_v36 = vld [vmem:[%s13420_s3 + $0x100] ss:$16 sps:$4 sm:$0xff]  }
  0x53   :  { %535 = vmatprep.subr.bf16.mxu0 %v7070_v37  ;;  %v8658_v37 = vld [vmem:[%s13420_s3 + $0x108] ss:$16 sps:$4 sm:$0xff]  }
  0x56   :  { %536 = vmatpush1.bf16.msra.mxu0 %v7068_v39  ;;  %v8672_v39 = vld [vmem:[%s13420_s3 + $0x12c] ss:$16 sps:$4 sm:$0xff]  }
  0x57   :  { %537 = vmatprep.subr.bf16.mxu0 %v7076_v41  ;;  %v8682_v41 = vld [vmem:[%s13420_s3 + $0x128] ss:$16 sps:$4 sm:$0xff]  }
  0x5a   :  { %538 = vmatpush1.bf16.msra.mxu0 %v7074_v43  ;;  %v8696_v43 = vld [vmem:[%s13420_s3 + $0x14c] ss:$16 sps:$4 sm:$0xff]  }
  0x5b   :  { %865 = vmatprep.subr.bf16.mxu0 %v8439_v45  ;;  %13829 = vst [vmem:[#allocation10_spill] sm:$0xff] %v8696_v43 }
 0x110   :  { %v6624_v47 = vpop.f32.mrb[0].mxu0 }
 0x111   :  { %v201_v49 = vpop.f32.mrb[1].mxu0  ;;  %v210_v51 = vadd.f32 %v6624_v47, %v6095_v48  ;;  %v8701_v47 = vld [vmem:[%s13420_s3 + $0x140] ss:$16 sps:$4 sm:$0xff]  }
 0x112   :  { %v6625_v50 = vpop.f32.mrb[2].mxu0  ;;  %v202_v54 = vadd.f32 %v6095_v48, %v201_v49  ;;  %13830 = vst [vmem:[#allocation11_spill] sm:$0xff] %v8701_v47  ;;  %v8715_v49 = vld [vmem:[%s13420_s3 + $0x164] ss:$16 sps:$4 sm:$0xff]  }
 0x113   :  { %v213_v52 = vadd.f32 %v6625_v50, %v6095_v48  ;;  %v204_v53 = vpop.f32.mrb[3].mxu0  ;;  %13832 = vst [vmem:[#allocation13_spill] sm:$0xff] %v8715_v49  ;;  %v8720_v50 = vld [vmem:[%s13420_s3 + $0x16c] ss:$16 sps:$4 sm:$0xff]  }
 0x114   :  { %v205_v55 = vadd.f32 %v6095_v48, %v204_v53  ;;  %13833 = vst [vmem:[#allocation14_spill] sm:$0xff] %v8720_v50  ;;  %v8739_v53 = vld [vmem:[%s13420_s3 + $0x184] ss:$16 sps:$4 sm:$0xff]  }
 0x115   :  { %v233_v56 = vpack.c.bf16 %v213_v52, %v210_v51  ;;  %v8725_v51 = vld [vmem:[%s13420_s3 + $0x160] ss:$16 sps:$4 sm:$0xff]   ;;  %v8730_v52 = vld [vmem:[%s13420_s3 + $0x168] ss:$16 sps:$4 sm:$0xff]   ;;  %13836 = vst [vmem:[#allocation17_spill] sm:$0xff] %v8739_v53 }
 0x116   :  { %v232_v59 = vpack.c.bf16 %v205_v55, %v202_v54  ;;  %13834 = vst [vmem:[#allocation15_spill] sm:$0xff] %v8725_v51  ;;  %13835 = vst [vmem:[#allocation16_spill] sm:$0xff] %v8730_v52  ;;  %v8744_v54 = vld [vmem:[%s13420_s3 + $0x18c] ss:$16 sps:$4 sm:$0xff]   ;;  %v8749_v55 = vld [vmem:[%s13420_s3 + $0x180] ss:$16 sps:$4 sm:$0xff]  }
 0x117   :  { %13837 = vst [vmem:[#allocation18_spill] sm:$0xff] %v8744_v54  ;;  %13838 = vst [vmem:[#allocation19_spill] sm:$0xff] %v8749_v55 }
 0x118   :  { %483 = vmatmul.mubr.bf16.vlgmr.msra.gmra.mrb[0].mxu1 %v232_v59  ;;  %556 = vmatmul.mubr.bf16.vlgmr.msra.gmra.mrb[8].mxu0 %v232_v59  ;;  %v6628_v62 = vpop.f32.mrb[4].mxu0  ;;  %v8763_v59 = vld [vmem:[%s13420_s3 + $0x1a4] ss:$16 sps:$4 sm:$0xff]  }
 0x119   :  { %825 = vmatpush1.bf16.msra.mxu1 %v8451_v57  ;;  %866 = vmatpush1.bf16.msra.mxu0 %v8456_v58  ;;  %v226_v0 = vadd.f32 %v6628_v62, %v6095_v48  ;;  %v217_v2 = vpop.f32.mrb[5].mxu0  ;;  %13840 = vst [vmem:[#allocation21_spill] sm:$0xff] %v8763_v59  ;;  %v8768_v62 = vld [vmem:[%s13420_s3 + $0x1ac] ss:$16 sps:$4 sm:$0xff]  }
 0x11a   :  { %826 = vmatprep.subr.bf16.mxu1 %v8461_v60  ;;  %867 = vmatprep.subr.bf16.mxu0 %v8466_v61  ;;  %v218_v3 = vadd.f32 %v6095_v48, %v217_v2  ;;  %v6629_v4 = vpop.f32.mrb[6].mxu0  ;;  %13841 = vst [vmem:[#allocation22_spill] sm:$0xff] %v8768_v62  ;;  %v8778_v2 = vld [vmem:[%s13420_s3 + $0x1a8] ss:$16 sps:$4 sm:$0xff]  }
 0x11b   :  { %v229_v7 = vadd.f32 %v6629_v4, %v6095_v48  ;;  %492 = vmatprep.mubr.bf16.mxu1 %v13429_v46  ;;  %565 = vmatprep.mubr.bf16.mxu0 %v13429_v46  ;;  %v220_v8 = vpop.f32.mrb[7].mxu0  ;;  %13843 = vst [vmem:[#allocation24_spill] sm:$0xff] %v8778_v2  ;;  %v8788_v4 = vld [vmem:[%s13420_s3 + $0x1cc] ss:$16 sps:$4 sm:$0xff]  }
 0x11c   :  { %v221_v9 = vadd.f32 %v6095_v48, %v220_v8  ;;  %v8706_v48 = vld [vmem:[%s13420_s3 + $0x148] ss:$16 sps:$4 sm:$0xff]   ;;  %13845 = vst [vmem:[#allocation26_spill] sm:$0xff] %v8788_v4 }
 0x11d   :  { %827 = vmatpush1.bf16.msra.mxu1 %v8473_v63  ;;  %868 = vmatpush1.bf16.msra.mxu0 %v8478_v1  ;;  %v235_v10 = vpack.c.bf16 %v229_v7, %v226_v0  ;;  %13831 = vst [vmem:[#allocation12_spill] sm:$0xff] %v8706_v48  ;;  %v8773_v0 = vld [vmem:[%s13420_s3 + $0x1a0] ss:$16 sps:$4 sm:$0xff]   ;;  %v8802_v8 = vld [vmem:[%s13420_s3 + $0x1c8] ss:$16 sps:$4 sm:$0xff]  }
 0x11e   :  { %828 = vmatprep.subr.bf16.mxu1 %v8485_v5  ;;  %v234_v13 = vpack.c.bf16 %v221_v9, %v218_v3  ;;  %869 = vmatprep.subr.bf16.mxu0 %v8490_v6  ;;  %13842 = vst [vmem:[#allocation23_spill] sm:$0xff] %v8773_v0  ;;  %v8783_v3 = vld [vmem:[%s13420_s3 + $0x1c4] ss:$16 sps:$4 sm:$0xff]   ;;  %v8797_v7 = vld [vmem:[%s13420_s3 + $0x1c0] ss:$16 sps:$4 sm:$0xff]   ;;  %13847 = vst [vmem:[#allocation28_spill] sm:$0xff] %v8802_v8 }
 0x11f   :  { %13844 = vst [vmem:[#allocation25_spill] sm:$0xff] %v8783_v3  ;;  %13846 = vst [vmem:[#allocation27_spill] sm:$0xff] %v8797_v7  ;;  %v8809_v9 = vld [vmem:[%s13420_s3 + $0x1e4] ss:$16 sps:$4 sm:$0xff]  }
 0x120   :  { %493 = vmatmul.mubr.bf16.gmra.mrb[4].mxu1 %v233_v56  ;;  %566 = vmatmul.mubr.bf16.gmra.mrb[12].mxu0 %v233_v56  ;;  %v8754_v56 = vld [vmem:[%s13420_s3 + $0x188] ss:$16 sps:$4 sm:$0xff]   ;;  %13848 = vst [vmem:[#allocation29_spill] sm:$0xff] %v8809_v9 }
 0x121   :  { %829 = vmatpush1.bf16.msra.mxu1 %v8499_v11  ;;  %870 = vmatpush1.bf16.msra.mxu0 %v8504_v12  ;;  %13839 = vst [vmem:[#allocation20_spill] sm:$0xff] %v8754_v56 }
 0x122   :  { %830 = vmatprep.subr.bf16.mxu1 %v8511_v14  ;;  %871 = vmatprep.subr.bf16.mxu0 %v8516_v15 }
 0x123   :  { %502 = vmatprep.mubr.bf16.mxu1 %v13429_v46  ;;  %575 = vmatprep.mubr.bf16.mxu0 %v13429_v46 }
 0x125   :  { %831 = vmatpush1.bf16.msra.mxu1 %v8523_v16  ;;  %872 = vmatpush1.bf16.msra.mxu0 %v8528_v17 }
 0x126   :  { %832 = vmatprep.subr.bf16.mxu1 %v8535_v18  ;;  %873 = vmatprep.subr.bf16.mxu0 %v8540_v19 }
 0x128   :  { %503 = vmatmul.mubr.bf16.gmra.mrb[8].mxu1 %v234_v13  ;;  %576 = vmatmul.mubr.bf16.gmra.mrb[16].mxu0 %v234_v13  ;;  %v8821_v13 = vld [vmem:[%s13420_s3 + $0x1e0] ss:$16 sps:$4 sm:$0xff]  }
 0x129   :  { %833 = vmatpush1.bf16.msra.mxu1 %v8549_v20  ;;  %874 = vmatpush1.bf16.msra.mxu0 %v8554_v21  ;;  %13850 = vst [vmem:[#allocation31_spill] sm:$0xff] %v8821_v13 }
 0x12a   :  { %834 = vmatprep.subr.bf16.mxu1 %v8561_v22  ;;  %875 = vmatprep.subr.bf16.mxu0 %v8566_v23 }
 0x12b   :  { %512 = vmatprep.mubr.bf16.mxu1 %v13429_v46  ;;  %585 = vmatprep.mubr.bf16.mxu0 %v13429_v46 }
 0x12d   :  { %835 = vmatpush1.bf16.msra.mxu1 %v8573_v24  ;;  %876 = vmatpush1.bf16.msra.mxu0 %v8578_v25 }
 0x12e   :  { %836 = vmatprep.subr.bf16.mxu1 %v8585_v26  ;;  %877 = vmatprep.subr.bf16.mxu0 %v8590_v27 }
 0x130   :  { %513 = vmatmul.mubr.bf16.gmra.mrb[12].mxu1 %v235_v10  ;;  %586 = vmatmul.mubr.bf16.gmra.mrb[20].mxu0 %v235_v10  ;;  %v8814_v10 = vld [vmem:[%s13420_s3 + $0x1ec] ss:$16 sps:$4 sm:$0xff]  }
 0x131   :  { %837 = vmatpush1.bf16.msra.mxu1 %v8599_v28  ;;  %878 = vmatpush1.bf16.msra.mxu0 %v8604_v29  ;;  %13849 = vst [vmem:[#allocation30_spill] sm:$0xff] %v8814_v10 }
 0x132   :  { %838 = vmatprep.subr.bf16.mxu1 %v8611_v30  ;;  %879 = vmatprep.subr.bf16.mxu0 %v8616_v31 }
 0x133   :  { %856 = vmatprep.mubr.bf16.mxu1 %v13429_v46  ;;  %897 = vmatprep.mubr.bf16.mxu0 %v13429_v46 }
 0x135   :  { %839 = vmatpush1.bf16.msra.mxu1 %v8623_v32  ;;  %880 = vmatpush1.bf16.msra.mxu0 %v8628_v33 }
 0x136   :  { %1151 = vmatprep.subr.bf16.mxu1 %v8643_v34  ;;  %1192 = vmatprep.subr.bf16.mxu0 %v8648_v35 }
 0x138   :  { %857 = vmatmul.mubr.bf16.vlgmr.msra.gmra.mrb[16].mxu1 %v13429_v46  ;;  %898 = vmatmul.mubr.bf16.vlgmr.msra.gmra.mrb[24].mxu0 %v13429_v46 }
 0x139   :  { %1183 = vmatprep.mubr.bf16.mxu1 %v13429_v46  ;;  %1224 = vmatprep.mubr.bf16.mxu0 %v13429_v46  ;;  %v8826_v46 = vld [vmem:[%s13420_s3 + $0x1e8] ss:$16 sps:$4 sm:$0xff]  }
 0x13a   :  { %1152 = vmatpush1.bf16.msra.mxu1 %v8653_v36  ;;  %1193 = vmatpush1.bf16.msra.mxu0 %v8658_v37  ;;  %13851 = vst [vmem:[#allocation32_spill] sm:$0xff] %v8826_v46 }
 0x13b   :  { %1153 = vmatprep.subr.bf16.mxu1 %v8667_v38  ;;  %1194 = vmatprep.subr.bf16.mxu0 %v8672_v39 }
 0x13e   :  { %1154 = vmatpush1.bf16.msra.mxu1 %v8677_v40  ;;  %1195 = vmatpush1.bf16.msra.mxu0 %v8682_v41 }
 0x13f   :  { %1155 = vmatprep.subr.bf16.mxu1 %v8691_v42  ;;  %1196 = vmatprep.subr.bf16.mxu0 %v8696_v43 }
 0x142   :  { %1156 = vmatpush1.bf16.msra.mxu1 %v8701_v47  ;;  %1197 = vmatpush1.bf16.msra.mxu0 %v8706_v48 }
 0x143   :  { %1157 = vmatprep.subr.bf16.mxu1 %v8715_v49  ;;  %1198 = vmatprep.subr.bf16.mxu0 %v8720_v50 }
 0x146   :  { %1158 = vmatpush1.bf16.msra.mxu1 %v8725_v51  ;;  %1199 = vmatpush1.bf16.msra.mxu0 %v8730_v52 }
 0x147   :  { %1159 = vmatprep.subr.bf16.mxu1 %v8739_v53  ;;  %1200 = vmatprep.subr.bf16.mxu0 %v8744_v54 }
 0x14a   :  { %1160 = vmatpush1.bf16.msra.mxu1 %v8749_v55  ;;  %1201 = vmatpush1.bf16.msra.mxu0 %v8754_v56 }
 0x14b   :  { %1161 = vmatprep.subr.bf16.mxu1 %v8763_v59  ;;  %1202 = vmatprep.subr.bf16.mxu0 %v8768_v62 }
 0x14e   :  { %1162 = vmatpush1.bf16.msra.mxu1 %v8773_v0  ;;  %1203 = vmatpush1.bf16.msra.mxu0 %v8778_v2 }
 0x14f   :  { %1163 = vmatprep.subr.bf16.mxu1 %v8783_v3  ;;  %1204 = vmatprep.subr.bf16.mxu0 %v8788_v4 }
 0x152   :  { %1164 = vmatpush1.bf16.msra.mxu1 %v8797_v7  ;;  %1205 = vmatpush1.bf16.msra.mxu0 %v8802_v8  ;;  %v13447_v8 = vlaneseq }
 0x153   :  { %1165 = vmatprep.subr.bf16.mxu1 %v8809_v9  ;;  %1206 = vmatprep.subr.bf16.mxu0 %v8814_v10  ;;  %v268_v9 = vld [vmem:[%s13422_s5] sm:$0xf] }
 0x154   :  { %v271_v7 = vshrl.u32 %v13447_v8, 7 }
 0x156   :  { %1166 = vmatpush1.bf16.msra.mxu1 %v8821_v13  ;;  %1207 = vmatpush1.bf16.msra.mxu0 %v8826_v46  ;;  %v8835_v4 = vsub.s32 0, %v271_v7  ;;  %v8837_v3 = vsub.s32 2, %v271_v7  ;;  %v8842_v10 = vsub.s32 1, %v271_v7  ;;  %v8844_v13 = vsub.s32 3, %v271_v7 }
 0x157   :  { %1237 = vmatprep.subr.bf16.mxu1 %v8434_v44  ;;  %1278 = vmatprep.subr.bf16.mxu0 %v8439_v45 }
 0x158   :  { %13852 = vst [vmem:[#allocation33_spill] sm:$0xff] %v8835_v4  ;;  %13853 = vst [vmem:[#allocation34_spill] sm:$0xff] %v8837_v3  ;;  %v273_v45 = vrot.slane %v268_v9, %v8835_v4  ;;  %v281_v8 = vrot.slane %v268_v9, %v8837_v3  ;;  %v277_v62 = vrot.slane %v268_v9, %v8842_v10 }
 0x159   :  { %13854 = vst [vmem:[#allocation35_spill] sm:$0xff] %v8842_v10  ;;  %13855 = vst [vmem:[#allocation36_spill] sm:$0xff] %v8844_v13  ;;  %v285_v59 = vrot.slane %v268_v9, %v8844_v13 }
 0x1eb   :  { %v8846_v46 = vpop.f32.mrb[0].mxu1  ;;  %v8848_v44 = vpop.f32.mrb[8].mxu0 }
 0x1ec   :  { %v486_v2 = vpop.f32.mrb[1].mxu1  ;;  %v559_v0 = vpop.f32.mrb[9].mxu0 }
 0x1ed   :  { %v488_v56 = vpop.f32.mrb[2].mxu1  ;;  %v561_v55 = vpop.f32.mrb[10].mxu0 }
 0x1ee   :  { %v8854_v54 = vadd.f32 %v488_v56, %v273_v45  ;;  %v8856_v7 = vadd.f32 %v561_v55, %v281_v8  ;;  %v490_v53 = vpop.f32.mrb[3].mxu1  ;;  %v563_v52 = vpop.f32.mrb[11].mxu0 }
 0x1ef   :  { %v8858_v51 = vadd.f32 %v490_v53, %v277_v62  ;;  %v8860_v50 = vadd.f32 %v563_v52, %v285_v59 }
 0x1f0   :  { %13856 = vst [vmem:[#allocation37_spill] sm:$0xff] %v8854_v54  ;;  %13857 = vst [vmem:[#allocation38_spill] sm:$0xff] %v8856_v7 }
 0x1f1   :  { %13858 = vst [vmem:[#allocation39_spill] sm:$0xff] %v8858_v51  ;;  %13859 = vst [vmem:[#allocation40_spill] sm:$0xff] %v8860_v50 }
 0x1f3   :  { %v494_v4 = vpop.f32.mrb[4].mxu1  ;;  %v567_v3 = vpop.f32.mrb[12].mxu0 }
 0x1f4   :  { %v8862_v49 = vadd.f32 %v494_v4, %v273_v45  ;;  %v8864_v48 = vadd.f32 %v567_v3, %v281_v8  ;;  %v496_v10 = vpop.f32.mrb[5].mxu1  ;;  %v569_v9 = vpop.f32.mrb[13].mxu0 }
 0x1f5   :  { %v8866_v13 = vadd.f32 %v496_v10, %v277_v62  ;;  %v8868_v56 = vadd.f32 %v569_v9, %v285_v59  ;;  %v498_v55 = vpop.f32.mrb[6].mxu1  ;;  %v571_v7 = vpop.f32.mrb[14].mxu0 }
 0x1f6   :  { %13860 = vst [vmem:[#allocation41_spill] sm:$0xff] %v8862_v49  ;;  %13861 = vst [vmem:[#allocation42_spill] sm:$0xff] %v8864_v48  ;;  %v8870_v54 = vadd.f32 %v498_v55, %v273_v45  ;;  %v8872_v53 = vadd.f32 %v571_v7, %v281_v8  ;;  %v500_v52 = vpop.f32.mrb[7].mxu1  ;;  %v573_v50 = vpop.f32.mrb[15].mxu0 }
 0x1f7   :  { %13862 = vst [vmem:[#allocation43_spill] sm:$0xff] %v8866_v13  ;;  %13863 = vst [vmem:[#allocation44_spill] sm:$0xff] %v8868_v56  ;;  %v8874_v51 = vadd.f32 %v500_v52, %v277_v62  ;;  %v8876_v4 = vadd.f32 %v573_v50, %v285_v59 }
 0x1f8   :  { %13864 = vst [vmem:[#allocation45_spill] sm:$0xff] %v8870_v54  ;;  %13865 = vst [vmem:[#allocation46_spill] sm:$0xff] %v8872_v53 }
 0x1f9   :  { %13866 = vst [vmem:[#allocation47_spill] sm:$0xff] %v8874_v51  ;;  %13867 = vst [vmem:[#allocation48_spill] sm:$0xff] %v8876_v4 }
 0x1fb   :  { %v504_v3 = vpop.f32.mrb[8].mxu1  ;;  %v577_v48 = vpop.f32.mrb[16].mxu0 }
 0x1fc   :  { %v8878_v49 = vadd.f32 %v504_v3, %v273_v45  ;;  %v8880_v10 = vadd.f32 %v577_v48, %v281_v8  ;;  %v506_v9 = vpop.f32.mrb[9].mxu1  ;;  %v579_v56 = vpop.f32.mrb[17].mxu0 }
 0x1fd   :  { %v8882_v13 = vadd.f32 %v506_v9, %v277_v62  ;;  %v8884_v55 = vadd.f32 %v579_v56, %v285_v59  ;;  %v508_v7 = vpop.f32.mrb[10].mxu1  ;;  %v581_v53 = vpop.f32.mrb[18].mxu0 }
 0x1fe   :  { %13868 = vst [vmem:[#allocation49_spill] sm:$0xff] %v8878_v49  ;;  %13869 = vst [vmem:[#allocation50_spill] sm:$0xff] %v8880_v10  ;;  %v8886_v54 = vadd.f32 %v508_v7, %v273_v45  ;;  %v8888_v52 = vadd.f32 %v581_v53, %v281_v8  ;;  %v510_v50 = vpop.f32.mrb[11].mxu1  ;;  %v583_v4 = vpop.f32.mrb[19].mxu0 }
 0x1ff   :  { %13870 = vst [vmem:[#allocation51_spill] sm:$0xff] %v8882_v13  ;;  %13871 = vst [vmem:[#allocation52_spill] sm:$0xff] %v8884_v55  ;;  %v8890_v51 = vadd.f32 %v510_v50, %v277_v62  ;;  %v8892_v3 = vadd.f32 %v583_v4, %v285_v59 }
 0x200   :  { %13872 = vst [vmem:[#allocation53_spill] sm:$0xff] %v8886_v54  ;;  %13873 = vst [vmem:[#allocation54_spill] sm:$0xff] %v8888_v52 }
 0x201   :  { %13874 = vst [vmem:[#allocation55_spill] sm:$0xff] %v8890_v51  ;;  %13875 = vst [vmem:[#allocation56_spill] sm:$0xff] %v8892_v3 }
 0x203   :  { %v514_v48 = vpop.f32.mrb[12].mxu1  ;;  %v587_v10 = vpop.f32.mrb[20].mxu0 }
 0x204   :  { %v8894_v49 = vadd.f32 %v514_v48, %v273_v45  ;;  %v8896_v9 = vadd.f32 %v587_v10, %v281_v8  ;;  %v516_v56 = vpop.f32.mrb[13].mxu1  ;;  %v589_v55 = vpop.f32.mrb[21].mxu0  ;;  %v485_v10 = vadd.f32 %v8846_v46, %v273_v45 }
 0x205   :  { %v8898_v13 = vadd.f32 %v516_v56, %v277_v62  ;;  %v8900_v7 = vadd.f32 %v589_v55, %v285_v59  ;;  %v518_v53 = vpop.f32.mrb[14].mxu1  ;;  %v591_v52 = vpop.f32.mrb[22].mxu0  ;;  %v487_v56 = vadd.f32 %v486_v2, %v277_v62 }
 0x206   :  { %13876 = vst [vmem:[#allocation57_spill] sm:$0xff] %v8894_v49  ;;  %13877 = vst [vmem:[#allocation58_spill] sm:$0xff] %v8896_v9  ;;  %v8902_v54 = vadd.f32 %v518_v53, %v273_v45  ;;  %v8904_v50 = vadd.f32 %v591_v52, %v281_v8  ;;  %v520_v4 = vpop.f32.mrb[15].mxu1  ;;  %v593_v3 = vpop.f32.mrb[23].mxu0  ;;  %v558_v9 = vadd.f32 %v8848_v44, %v281_v8 }
 0x207   :  { %13878 = vst [vmem:[#allocation59_spill] sm:$0xff] %v8898_v13  ;;  %13879 = vst [vmem:[#allocation60_spill] sm:$0xff] %v8900_v7  ;;  %v8906_v51 = vadd.f32 %v520_v4, %v277_v62  ;;  %v8908_v48 = vadd.f32 %v593_v3, %v285_v59  ;;  %v560_v13 = vadd.f32 %v559_v0, %v285_v59 }
 0x208   :  { %13880 = vst [vmem:[#allocation61_spill] sm:$0xff] %v8902_v54  ;;  %13881 = vst [vmem:[#allocation62_spill] sm:$0xff] %v8904_v50 }
 0x209   :  { %13882 = vst [vmem:[#allocation63_spill] sm:$0xff] %v8906_v51  ;;  %13883 = vst [vmem:[#allocation64_spill] sm:$0xff] %v8908_v48 }
 0x20b   :  { %v858_v55 = vpop.f32.mrb[16].mxu1  ;;  %v899_v7 = vpop.f32.mrb[24].mxu0 }
 0x20c   :  { %v906_v49 = vadd.f32 %v858_v55, %v485_v10  ;;  %v908_v47 = vadd.f32 %v899_v7, %v558_v9  ;;  %v860_v53 = vpop.f32.mrb[17].mxu1  ;;  %v901_v54 = vpop.f32.mrb[25].mxu0 }
 0x20d   :  { %v907_v52 = vadd.f32 %v860_v53, %v487_v56  ;;  %v909_v50 = vadd.f32 %v901_v54, %v560_v13  ;;  %v862_v43 = vpop.f32.mrb[18].mxu1  ;;  %v903_v42 = vpop.f32.mrb[26].mxu0  ;;  %v13911_v53 = vld [vmem:[#allocation39_spill] sm:$0xff] }
 0x20e   :  { %v6172_v4 = vmul.f32 -1.442695, %v906_v49  ;;  %v863_v51 = vpop.f32.mrb[19].mxu1  ;;  %v904_v3 = vpop.f32.mrb[27].mxu0  ;;  %v6174_v46 = vmul.f32 -1.442695, %v908_v47 }
 0x20f   :  { %v6173_v48 = vmul.f32 -1.442695, %v907_v52 }
 0x210   :  { %7317 = vpow2.f32 %v6172_v4  ;;  %v13912_v4 = vld [vmem:[#allocation40_spill] sm:$0xff] }
 0x211   :  { %7319 = vpow2.f32 %v6173_v48  ;;  %v13910_v48 = vld [vmem:[#allocation38_spill] sm:$0xff] }
 0x212   :  { %7321 = vtanh.f32 %v909_v50  ;;  %v13884_v50 = vmov 0  }
 0x213   :  { %7323 = vpow2.f32 %v6174_v46 }
 0x21a   :  { %v7318_v8 = vpop.eup %7317 }
 0x21b   :  { %v919_v62 = vadd.f32 1.0, %v7318_v8  ;;  %v7320_v59 = vpop.eup %7319 }
 0x21c   :  { %v920_v0 = vadd.f32 1.0, %v7320_v59  ;;  %v7322_v2 = vpop.eup %7321 }
 0x21d   :  { %7325 = vrcp.f32 %v919_v62  ;;  %v7324_v44 = vpop.eup %7323 }
 0x21e   :  { %7327 = vrcp.f32 %v920_v0  ;;  %v921_v49 = vadd.f32 1.0, %v7324_v44 }
 0x220   :  { %7329 = vrcp.f32 %v921_v49 }
 0x227   :  { %v7326_v54 = vpop.eup %7325 }
 0x228   :  { %v930_v43 = vmul.f32 %v7326_v54, %v7322_v2  ;;  %v7328_v42 = vpop.eup %7327 }
 0x229   :  { %v929_v51 = vmul.f32 0.0, %v7328_v42 }
 0x22a   :  { %v7330_v47 = vpop.eup %7329 }
 0x22b   :  { %v8912_v13 = vadd.f32 %v930_v43, %v929_v51 }
 0x22d   :  { %7331 = vtanh.f32 %v8912_v13 }
 0x237   :  { %v7332_v45 = vpop.eup %7331 }
 0x238   :  { %v933_v9 = vmul.f32 %v7332_v45, %v7330_v47 }
 0x23a   :  { %v934_v7 = vpack.c.bf16 %v933_v9, %v933_v9 }
 0x23c   :  { %1184 = vmatmul.mubr.bf16.vlgmr.msra.gmra.mrb[20].mxu1 %v934_v7  ;;  %1225 = vmatmul.mubr.bf16.vlgmr.msra.gmra.mrb[28].mxu0 %v934_v7 }
 0x23d   :  { %1238 = vmatpush1.bf16.msra.mxu1 %v8451_v57  ;;  %1279 = vmatpush1.bf16.msra.mxu0 %v8456_v58  ;;  %v13885_v57 = vld [vmem:[#allocation9_spill] sm:$0xff]  ;;  %v13886_v58 = vld [vmem:[#allocation10_spill] sm:$0xff] }
 0x23e   :  { %1239 = vmatprep.subr.bf16.mxu1 %v8461_v60  ;;  %1280 = vmatprep.subr.bf16.mxu0 %v8466_v61  ;;  %v13887_v60 = vld [vmem:[#allocation11_spill] sm:$0xff]  ;;  %v13888_v61 = vld [vmem:[#allocation12_spill] sm:$0xff] }
 0x23f   :  { %1269 = vmatprep.mubr.bf16.mxu1 %v13884_v50  ;;  %1310 = vmatprep.mubr.bf16.mxu0 %v13884_v50 }
 0x241   :  { %1240 = vmatpush1.bf16.msra.mxu1 %v8473_v63  ;;  %1281 = vmatpush1.bf16.msra.mxu0 %v8478_v1  ;;  %v13889_v63 = vld [vmem:[#allocation13_spill] sm:$0xff]  ;;  %v13890_v1 = vld [vmem:[#allocation14_spill] sm:$0xff] }
 0x242   :  { %1241 = vmatprep.subr.bf16.mxu1 %v8485_v5  ;;  %1282 = vmatprep.subr.bf16.mxu0 %v8490_v6  ;;  %v13891_v5 = vld [vmem:[#allocation15_spill] sm:$0xff]  ;;  %v13892_v6 = vld [vmem:[#allocation16_spill] sm:$0xff] }
 0x245   :  { %1242 = vmatpush1.bf16.msra.mxu1 %v8499_v11  ;;  %1283 = vmatpush1.bf16.msra.mxu0 %v8504_v12  ;;  %v13893_v11 = vld [vmem:[#allocation17_spill] sm:$0xff]  ;;  %v13894_v12 = vld [vmem:[#allocation18_spill] sm:$0xff] }
 0x246   :  { %1243 = vmatprep.subr.bf16.mxu1 %v8511_v14  ;;  %1284 = vmatprep.subr.bf16.mxu0 %v8516_v15  ;;  %v13895_v14 = vld [vmem:[#allocation19_spill] sm:$0xff]  ;;  %v13896_v15 = vld [vmem:[#allocation20_spill] sm:$0xff] }
 0x249   :  { %1244 = vmatpush1.bf16.msra.mxu1 %v8523_v16  ;;  %1285 = vmatpush1.bf16.msra.mxu0 %v8528_v17  ;;  %v13897_v16 = vld [vmem:[#allocation21_spill] sm:$0xff]  ;;  %v13898_v17 = vld [vmem:[#allocation22_spill] sm:$0xff] }
 0x24a   :  { %1245 = vmatprep.subr.bf16.mxu1 %v8535_v18  ;;  %1286 = vmatprep.subr.bf16.mxu0 %v8540_v19  ;;  %v13899_v18 = vld [vmem:[#allocation23_spill] sm:$0xff]  ;;  %v13900_v19 = vld [vmem:[#allocation24_spill] sm:$0xff] }
 0x24d   :  { %1246 = vmatpush1.bf16.msra.mxu1 %v8549_v20  ;;  %1287 = vmatpush1.bf16.msra.mxu0 %v8554_v21  ;;  %v13901_v20 = vld [vmem:[#allocation25_spill] sm:$0xff]  ;;  %v13902_v21 = vld [vmem:[#allocation26_spill] sm:$0xff] }
 0x24e   :  { %1247 = vmatprep.subr.bf16.mxu1 %v8561_v22  ;;  %1288 = vmatprep.subr.bf16.mxu0 %v8566_v23  ;;  %v13903_v22 = vld [vmem:[#allocation27_spill] sm:$0xff]  ;;  %v13904_v23 = vld [vmem:[#allocation28_spill] sm:$0xff] }
 0x251   :  { %1248 = vmatpush1.bf16.msra.mxu1 %v8573_v24  ;;  %1289 = vmatpush1.bf16.msra.mxu0 %v8578_v25  ;;  %v13905_v24 = vld [vmem:[#allocation29_spill] sm:$0xff]  ;;  %v13906_v25 = vld [vmem:[#allocation30_spill] sm:$0xff] }
 0x252   :  { %1249 = vmatprep.subr.bf16.mxu1 %v8585_v26  ;;  %1290 = vmatprep.subr.bf16.mxu0 %v8590_v27  ;;  %v13907_v26 = vld [vmem:[#allocation31_spill] sm:$0xff]  ;;  %v13908_v27 = vld [vmem:[#allocation32_spill] sm:$0xff] }
 0x255   :  { %1250 = vmatpush1.bf16.msra.mxu1 %v8599_v28  ;;  %1291 = vmatpush1.bf16.msra.mxu0 %v8604_v29  ;;  %v8984_v28 = vld [vmem:[%s13421_s4 + $0x104] ss:$16 sps:$4 sm:$0xff]   ;;  %v8989_v29 = vld [vmem:[%s13421_s4 + $0x10c] ss:$16 sps:$4 sm:$0xff]  }
 0x256   :  { %1251 = vmatprep.subr.bf16.mxu1 %v8611_v30  ;;  %1292 = vmatprep.subr.bf16.mxu0 %v8616_v31 }
 0x259   :  { %1252 = vmatpush1.bf16.msra.mxu1 %v8623_v32  ;;  %1293 = vmatpush1.bf16.msra.mxu0 %v8628_v33  ;;  %v13909_v32 = vld [vmem:[#allocation37_spill] sm:$0xff] }
 0x25a   :  { %1348 = vmatprep.subr.bf16.mxu1 %v8643_v34  ;;  %1389 = vmatprep.subr.bf16.mxu0 %v8648_v35 }
 0x25c   :  { %1270 = vmatmul.mubr.bf16.vlgmr.msra.gmra.mrb[24].mxu1 %v934_v7  ;;  %1311 = vmatmul.mubr.bf16.vlgmr.msra.gmra.mrb[32].mxu0 %v934_v7 }
 0x25d   :  { %1349 = vmatpush1.bf16.msra.mxu1 %v8653_v36  ;;  %1390 = vmatpush1.bf16.msra.mxu0 %v8658_v37 }
 0x25e   :  { %1350 = vmatprep.subr.bf16.mxu1 %v8667_v38  ;;  %1391 = vmatprep.subr.bf16.mxu0 %v8672_v39 }
 0x25f   :  { %1380 = vmatprep.mubr.bf16.mxu1 %v13884_v50  ;;  %1421 = vmatprep.mubr.bf16.mxu0 %v13884_v50 }
 0x261   :  { %1351 = vmatpush1.bf16.msra.mxu1 %v8677_v40  ;;  %1392 = vmatpush1.bf16.msra.mxu0 %v8682_v41 }
 0x262   :  { %1352 = vmatprep.subr.bf16.mxu1 %v13885_v57  ;;  %1393 = vmatprep.subr.bf16.mxu0 %v13886_v58 }
 0x265   :  { %1353 = vmatpush1.bf16.msra.mxu1 %v13887_v60  ;;  %1394 = vmatpush1.bf16.msra.mxu0 %v13888_v61 }
 0x266   :  { %1354 = vmatprep.subr.bf16.mxu1 %v13889_v63  ;;  %1395 = vmatprep.subr.bf16.mxu0 %v13890_v1 }
 0x269   :  { %1355 = vmatpush1.bf16.msra.mxu1 %v13891_v5  ;;  %1396 = vmatpush1.bf16.msra.mxu0 %v13892_v6 }
 0x26a   :  { %1356 = vmatprep.subr.bf16.mxu1 %v13893_v11  ;;  %1397 = vmatprep.subr.bf16.mxu0 %v13894_v12 }
 0x26d   :  { %1357 = vmatpush1.bf16.msra.mxu1 %v13895_v14  ;;  %1398 = vmatpush1.bf16.msra.mxu0 %v13896_v15 }
 0x26e   :  { %1358 = vmatprep.subr.bf16.mxu1 %v13897_v16  ;;  %1399 = vmatprep.subr.bf16.mxu0 %v13898_v17 }
 0x271   :  { %1359 = vmatpush1.bf16.msra.mxu1 %v13899_v18  ;;  %1400 = vmatpush1.bf16.msra.mxu0 %v13900_v19 }
 0x272   :  { %1360 = vmatprep.subr.bf16.mxu1 %v13901_v20  ;;  %1401 = vmatprep.subr.bf16.mxu0 %v13902_v21 }
 0x275   :  { %1361 = vmatpush1.bf16.msra.mxu1 %v13903_v22  ;;  %1402 = vmatpush1.bf16.msra.mxu0 %v13904_v23 }
 0x276   :  { %1362 = vmatprep.subr.bf16.mxu1 %v13905_v24  ;;  %1403 = vmatprep.subr.bf16.mxu0 %v13906_v25 }
 0x279   :  { %1363 = vmatpush1.bf16.msra.mxu1 %v13907_v26  ;;  %1404 = vmatpush1.bf16.msra.mxu0 %v13908_v27 }
 0x27a   :  { %1623 = vmatprep.subr.bf16.mxu1 %v8984_v28  ;;  %1664 = vmatprep.subr.bf16.mxu0 %v8989_v29 }
 0x32f   :  { %v1271_v30 = vpop.f32.mrb[24].mxu1  ;;  %v1312_v31 = vpop.f32.mrb[32].mxu0 }
 0x330   :  { %v1319_v33 = vadd.f32 %v1271_v30, %v13909_v32  ;;  %v1321_v10 = vadd.f32 %v1312_v31, %v13910_v48  ;;  %v1273_v56 = vpop.f32.mrb[25].mxu1  ;;  %v1314_v55 = vpop.f32.mrb[33].mxu0 }
 0x331   :  { %v1320_v52 = vadd.f32 %v1273_v56, %v13911_v53  ;;  %v1322_v3 = vadd.f32 %v1314_v55, %v13912_v4  ;;  %v1275_v46 = vpop.f32.mrb[26].mxu1  ;;  %v1316_v8 = vpop.f32.mrb[34].mxu0  ;;  %v9004_v56 = vld [vmem:[%s13421_s4 + $0x100] ss:$16 sps:$4 sm:$0xff]   ;;  %v9009_v55 = vld [vmem:[%s13421_s4 + $0x108] ss:$16 sps:$4 sm:$0xff]  }
 0x332   :  { %v6240_v62 = vmul.f32 -1.442695, %v1319_v33  ;;  %v1276_v59 = vpop.f32.mrb[27].mxu1  ;;  %v1317_v0 = vpop.f32.mrb[35].mxu0  ;;  %v6242_v44 = vmul.f32 -1.442695, %v1321_v10 }
 0x333   :  { %v6241_v2 = vmul.f32 -1.442695, %v1320_v52  ;;  %v9021_v52 = vld [vmem:[%s13421_s4 + $0x12c] ss:$16 sps:$4 sm:$0xff]   ;;  %v9030_v4 = vld [vmem:[%s13421_s4 + $0x120] ss:$16 sps:$4 sm:$0xff]  }
 0x334   :  { %7333 = vpow2.f32 %v6240_v62  ;;  %v9042_v46 = vld [vmem:[%s13421_s4 + $0x144] ss:$16 sps:$4 sm:$0xff]   ;;  %v9047_v8 = vld [vmem:[%s13421_s4 + $0x14c] ss:$16 sps:$4 sm:$0xff]   ;;  %v9056_v62 = vld [vmem:[%s13421_s4 + $0x140] ss:$16 sps:$4 sm:$0xff]  }
 0x335   :  { %7335 = vpow2.f32 %v6241_v2  ;;  %13913 = vst [vmem:[#allocation9_spill] sm:$0xff] %v9047_v8  ;;  %13914 = vst [vmem:[#allocation10_spill] sm:$0xff] %v9056_v62  ;;  %v9061_v59 = vld [vmem:[%s13421_s4 + $0x148] ss:$16 sps:$4 sm:$0xff]   ;;  %v9068_v0 = vld [vmem:[%s13421_s4 + $0x164] ss:$16 sps:$4 sm:$0xff]  }
 0x336   :  { %7337 = vtanh.f32 %v1322_v3  ;;  %v9035_v3 = vld [vmem:[%s13421_s4 + $0x128] ss:$16 sps:$4 sm:$0xff]   ;;  %13915 = vst [vmem:[#allocation11_spill] sm:$0xff] %v9061_v59  ;;  %13916 = vst [vmem:[#allocation12_spill] sm:$0xff] %v9068_v0  ;;  %v9073_v2 = vld [vmem:[%s13421_s4 + $0x16c] ss:$16 sps:$4 sm:$0xff]  }
 0x337   :  { %7339 = vpow2.f32 %v6242_v44  ;;  %13917 = vst [vmem:[#allocation13_spill] sm:$0xff] %v9073_v2  ;;  %v9080_v44 = vld [vmem:[%s13421_s4 + $0x160] ss:$16 sps:$4 sm:$0xff]  }
 0x338   :  { %13918 = vst [vmem:[#allocation14_spill] sm:$0xff] %v9080_v44 }
 0x33e   :  { %v7334_v54 = vpop.eup %7333 }
 0x33f   :  { %v1332_v43 = vadd.f32 1.0, %v7334_v54  ;;  %v7336_v42 = vpop.eup %7335  ;;  %v9085_v54 = vld [vmem:[%s13421_s4 + $0x168] ss:$16 sps:$4 sm:$0xff]  }
 0x340   :  { %v1333_v49 = vadd.f32 1.0, %v7336_v42  ;;  %v7338_v51 = vpop.eup %7337  ;;  %13919 = vst [vmem:[#allocation15_spill] sm:$0xff] %v9085_v54  ;;  %v9097_v42 = vld [vmem:[%s13421_s4 + $0x18c] ss:$16 sps:$4 sm:$0xff]  }
 0x341   :  { %7341 = vrcp.f32 %v1332_v43  ;;  %v7340_v47 = vpop.eup %7339  ;;  %v9092_v43 = vld [vmem:[%s13421_s4 + $0x184] ss:$16 sps:$4 sm:$0xff]   ;;  %13921 = vst [vmem:[#allocation17_spill] sm:$0xff] %v9097_v42 }
 0x342   :  { %7343 = vrcp.f32 %v1333_v49  ;;  %v1334_v30 = vadd.f32 1.0, %v7340_v47  ;;  %13920 = vst [vmem:[#allocation16_spill] sm:$0xff] %v9092_v43  ;;  %v9104_v49 = vld [vmem:[%s13421_s4 + $0x180] ss:$16 sps:$4 sm:$0xff]   ;;  %v9116_v47 = vld [vmem:[%s13421_s4 + $0x1a4] ss:$16 sps:$4 sm:$0xff]  }
 0x343   :  { %13922 = vst [vmem:[#allocation18_spill] sm:$0xff] %v9104_v49  ;;  %13924 = vst [vmem:[#allocation20_spill] sm:$0xff] %v9116_v47 }
 0x344   :  { %7345 = vrcp.f32 %v1334_v30  ;;  %v9140_v30 = vld [vmem:[%s13421_s4 + $0x1c4] ss:$16 sps:$4 sm:$0xff]  }
 0x345   :  { %13928 = vst [vmem:[#allocation24_spill] sm:$0xff] %v9140_v30 }
 0x34b   :  { %v7342_v45 = vpop.eup %7341 }
 0x34c   :  { %v1343_v9 = vmul.f32 %v7342_v45, %v7338_v51  ;;  %v7344_v7 = vpop.eup %7343  ;;  %v9109_v51 = vld [vmem:[%s13421_s4 + $0x188] ss:$16 sps:$4 sm:$0xff]   ;;  %v9121_v45 = vld [vmem:[%s13421_s4 + $0x1ac] ss:$16 sps:$4 sm:$0xff]  }
 0x34d   :  { %v1342_v31 = vmul.f32 %v7344_v7, %v8912_v13  ;;  %v9016_v13 = vld [vmem:[%s13421_s4 + $0x124] ss:$16 sps:$4 sm:$0xff]   ;;  %13923 = vst [vmem:[#allocation19_spill] sm:$0xff] %v9109_v51  ;;  %13925 = vst [vmem:[#allocation21_spill] sm:$0xff] %v9121_v45  ;;  %v9133_v7 = vld [vmem:[%s13421_s4 + $0x1a8] ss:$16 sps:$4 sm:$0xff]  }
 0x34e   :  { %v7346_v33 = vpop.eup %7345  ;;  %13927 = vst [vmem:[#allocation23_spill] sm:$0xff] %v9133_v7 }
 0x34f   :  { %v8998_v32 = vadd.f32 %v1343_v9, %v1342_v31  ;;  %v9128_v9 = vld [vmem:[%s13421_s4 + $0x1a0] ss:$16 sps:$4 sm:$0xff]   ;;  %v9145_v31 = vld [vmem:[%s13421_s4 + $0x1cc] ss:$16 sps:$4 sm:$0xff]  }
 0x350   :  { %13926 = vst [vmem:[#allocation22_spill] sm:$0xff] %v9128_v9  ;;  %13929 = vst [vmem:[#allocation25_spill] sm:$0xff] %v9145_v31 }
 0x351   :  { %7347 = vtanh.f32 %v8998_v32 }
 0x35b   :  { %v7348_v48 = vpop.eup %7347 }
 0x35c   :  { %v1346_v10 = vmul.f32 %v7348_v48, %v7346_v33  ;;  %v9152_v33 = vld [vmem:[%s13421_s4 + $0x1c0] ss:$16 sps:$4 sm:$0xff]   ;;  %v9157_v48 = vld [vmem:[%s13421_s4 + $0x1c8] ss:$16 sps:$4 sm:$0xff]  }
 0x35d   :  { %13930 = vst [vmem:[#allocation26_spill] sm:$0xff] %v9152_v33  ;;  %13931 = vst [vmem:[#allocation27_spill] sm:$0xff] %v9157_v48 }
 0x35e   :  { %v9011_v53 = vpack.c.bf16 %v1346_v10, %v1346_v10  ;;  %v9164_v10 = vld [vmem:[%s13421_s4 + $0x1e4] ss:$16 sps:$4 sm:$0xff]  }
 0x35f   :  { %13932 = vst [vmem:[#allocation28_spill] sm:$0xff] %v9164_v10 }
 0x360   :  { %1381 = vmatmul.mubr.bf16.vlgmr.msra.gmra.mrb[28].mxu1 %v9011_v53  ;;  %1422 = vmatmul.mubr.bf16.vlgmr.msra.gmra.mrb[36].mxu0 %v9011_v53 }
 0x361   :  { %1624 = vmatpush1.bf16.msra.mxu1 %v9004_v56  ;;  %1665 = vmatpush1.bf16.msra.mxu0 %v9009_v55 }
 0x362   :  { %1625 = vmatprep.subr.bf16.mxu1 %v9016_v13  ;;  %1666 = vmatprep.subr.bf16.mxu0 %v9021_v52 }
 0x363   :  { %1655 = vmatprep.mubr.bf16.mxu1 %v13884_v50  ;;  %1696 = vmatprep.mubr.bf16.mxu0 %v13884_v50 }
 0x365   :  { %1626 = vmatpush1.bf16.msra.mxu1 %v9030_v4  ;;  %1667 = vmatpush1.bf16.msra.mxu0 %v9035_v3 }
 0x366   :  { %1627 = vmatprep.subr.bf16.mxu1 %v9042_v46  ;;  %1668 = vmatprep.subr.bf16.mxu0 %v9047_v8 }
 0x369   :  { %1628 = vmatpush1.bf16.msra.mxu1 %v9056_v62  ;;  %1669 = vmatpush1.bf16.msra.mxu0 %v9061_v59 }
 0x36a   :  { %1629 = vmatprep.subr.bf16.mxu1 %v9068_v0  ;;  %1670 = vmatprep.subr.bf16.mxu0 %v9073_v2 }
 0x36d   :  { %1630 = vmatpush1.bf16.msra.mxu1 %v9080_v44  ;;  %1671 = vmatpush1.bf16.msra.mxu0 %v9085_v54 }
 0x36e   :  { %1631 = vmatprep.subr.bf16.mxu1 %v9092_v43  ;;  %1672 = vmatprep.subr.bf16.mxu0 %v9097_v42 }
 0x371   :  { %1632 = vmatpush1.bf16.msra.mxu1 %v9104_v49  ;;  %1673 = vmatpush1.bf16.msra.mxu0 %v9109_v51 }
 0x372   :  { %1633 = vmatprep.subr.bf16.mxu1 %v9116_v47  ;;  %1674 = vmatprep.subr.bf16.mxu0 %v9121_v45  ;;  %v9353_v45 = vld [vmem:[%s13420_s3 + $0x2c8] ss:$16 sps:$4 sm:$0xff]  }
 0x373   :  { %13963 = vst [vmem:[#allocation87_spill] sm:$0xff] %v9353_v45 }
 0x375   :  { %1634 = vmatpush1.bf16.msra.mxu1 %v9128_v9  ;;  %1675 = vmatpush1.bf16.msra.mxu0 %v9133_v7  ;;  %v9169_v7 = vld [vmem:[%s13421_s4 + $0x1ec] ss:$16 sps:$4 sm:$0xff]   ;;  %v9348_v9 = vld [vmem:[%s13420_s3 + $0x2c0] ss:$16 sps:$4 sm:$0xff]  }
 0x376   :  { %1635 = vmatprep.subr.bf16.mxu1 %v9140_v30  ;;  %1676 = vmatprep.subr.bf16.mxu0 %v9145_v31  ;;  %13933 = vst [vmem:[#allocation29_spill] sm:$0xff] %v9169_v7  ;;  %v9176_v30 = vld [vmem:[%s13421_s4 + $0x1e0] ss:$16 sps:$4 sm:$0xff]   ;;  %v9181_v31 = vld [vmem:[%s13421_s4 + $0x1e8] ss:$16 sps:$4 sm:$0xff]   ;;  %13962 = vst [vmem:[#allocation86_spill] sm:$0xff] %v9348_v9 }
 0x377   :  { %13934 = vst [vmem:[#allocation30_spill] sm:$0xff] %v9176_v30  ;;  %13935 = vst [vmem:[#allocation31_spill] sm:$0xff] %v9181_v31 }
 0x379   :  { %1636 = vmatpush1.bf16.msra.mxu1 %v9152_v33  ;;  %1677 = vmatpush1.bf16.msra.mxu0 %v9157_v48  ;;  %v9194_v48 = vld [vmem:[%s13420_s3 + $0x204] ss:$16 sps:$4 sm:$0xff]   ;;  %v9223_v33 = vld [vmem:[%s13420_s3 + $0x22c] ss:$16 sps:$4 sm:$0xff]  }
 0x37a   :  { %1637 = vmatprep.subr.bf16.mxu1 %v9164_v10  ;;  %1678 = vmatprep.subr.bf16.mxu0 %v9169_v7  ;;  %13936 = vst [vmem:[#allocation32_spill] sm:$0xff] %v9194_v48  ;;  %v9199_v7 = vld [vmem:[%s13420_s3 + $0x20c] ss:$16 sps:$4 sm:$0xff]   ;;  %v9218_v10 = vld [vmem:[%s13420_s3 + $0x224] ss:$16 sps:$4 sm:$0xff]   ;;  %13941 = vst [vmem:[#allocation65_spill] sm:$0xff] %v9223_v33 }
 0x37b   :  { %13937 = vst [vmem:[#allocation37_spill] sm:$0xff] %v9199_v7  ;;  %13940 = vst [vmem:[#allocation40_spill] sm:$0xff] %v9218_v10 }
 0x37d   :  { %1638 = vmatpush1.bf16.msra.mxu1 %v9176_v30  ;;  %1679 = vmatpush1.bf16.msra.mxu0 %v9181_v31  ;;  %v9204_v31 = vld [vmem:[%s13420_s3 + $0x200] ss:$16 sps:$4 sm:$0xff]   ;;  %v9209_v30 = vld [vmem:[%s13420_s3 + $0x208] ss:$16 sps:$4 sm:$0xff]  }
 0x37e   :  { %13938 = vst [vmem:[#allocation38_spill] sm:$0xff] %v9204_v31  ;;  %13939 = vst [vmem:[#allocation39_spill] sm:$0xff] %v9209_v30  ;;  %1950 = vmatprep.subr.bf16.mxu1 %v9194_v48  ;;  %1991 = vmatprep.subr.bf16.mxu0 %v9199_v7  ;;  %v9228_v48 = vld [vmem:[%s13420_s3 + $0x220] ss:$16 sps:$4 sm:$0xff]   ;;  %v9247_v7 = vld [vmem:[%s13420_s3 + $0x24c] ss:$16 sps:$4 sm:$0xff]  }
 0x37f   :  { %13942 = vst [vmem:[#allocation66_spill] sm:$0xff] %v9228_v48  ;;  %13945 = vst [vmem:[#allocation69_spill] sm:$0xff] %v9247_v7 }
 0x380   :  { %1656 = vmatmul.mubr.bf16.vlgmr.msra.gmra.mrb[20].mxu1 %v13884_v50  ;;  %1697 = vmatmul.mubr.bf16.vlgmr.msra.gmra.mrb[28].mxu0 %v13884_v50 }
 0x381   :  { %1982 = vmatprep.mubr.bf16.mxu1 %v13884_v50  ;;  %2023 = vmatprep.mubr.bf16.mxu0 %v13884_v50 }
 0x382   :  { %1951 = vmatpush1.bf16.msra.mxu1 %v9204_v31  ;;  %1992 = vmatpush1.bf16.msra.mxu0 %v9209_v30  ;;  %v9233_v31 = vld [vmem:[%s13420_s3 + $0x228] ss:$16 sps:$4 sm:$0xff]   ;;  %v9242_v30 = vld [vmem:[%s13420_s3 + $0x244] ss:$16 sps:$4 sm:$0xff]  }
 0x383   :  { %13943 = vst [vmem:[#allocation67_spill] sm:$0xff] %v9233_v31  ;;  %1952 = vmatprep.subr.bf16.mxu1 %v9218_v10  ;;  %1993 = vmatprep.subr.bf16.mxu0 %v9223_v33  ;;  %13944 = vst [vmem:[#allocation68_spill] sm:$0xff] %v9242_v30  ;;  %v9252_v10 = vld [vmem:[%s13420_s3 + $0x240] ss:$16 sps:$4 sm:$0xff]   ;;  %v9271_v33 = vld [vmem:[%s13420_s3 + $0x26c] ss:$16 sps:$4 sm:$0xff]  }
 0x384   :  { %13946 = vst [vmem:[#allocation70_spill] sm:$0xff] %v9252_v10  ;;  %13949 = vst [vmem:[#allocation73_spill] sm:$0xff] %v9271_v33 }
 0x386   :  { %1953 = vmatpush1.bf16.msra.mxu1 %v9228_v48  ;;  %1994 = vmatpush1.bf16.msra.mxu0 %v9233_v31  ;;  %v9257_v48 = vld [vmem:[%s13420_s3 + $0x248] ss:$16 sps:$4 sm:$0xff]   ;;  %v9266_v31 = vld [vmem:[%s13420_s3 + $0x264] ss:$16 sps:$4 sm:$0xff]  }
 0x387   :  { %13947 = vst [vmem:[#allocation71_spill] sm:$0xff] %v9257_v48  ;;  %1954 = vmatprep.subr.bf16.mxu1 %v9242_v30  ;;  %1995 = vmatprep.subr.bf16.mxu0 %v9247_v7  ;;  %13948 = vst [vmem:[#allocation72_spill] sm:$0xff] %v9266_v31  ;;  %v9276_v30 = vld [vmem:[%s13420_s3 + $0x260] ss:$16 sps:$4 sm:$0xff]   ;;  %v9295_v7 = vld [vmem:[%s13420_s3 + $0x28c] ss:$16 sps:$4 sm:$0xff]  }
 0x388   :  { %13950 = vst [vmem:[#allocation74_spill] sm:$0xff] %v9276_v30  ;;  %13953 = vst [vmem:[#allocation77_spill] sm:$0xff] %v9295_v7 }
 0x38a   :  { %1955 = vmatpush1.bf16.msra.mxu1 %v9252_v10  ;;  %1996 = vmatpush1.bf16.msra.mxu0 %v9257_v48  ;;  %v9281_v10 = vld [vmem:[%s13420_s3 + $0x268] ss:$16 sps:$4 sm:$0xff]   ;;  %v9290_v48 = vld [vmem:[%s13420_s3 + $0x284] ss:$16 sps:$4 sm:$0xff]  }
 0x38b   :  { %13951 = vst [vmem:[#allocation75_spill] sm:$0xff] %v9281_v10  ;;  %1956 = vmatprep.subr.bf16.mxu1 %v9266_v31  ;;  %1997 = vmatprep.subr.bf16.mxu0 %v9271_v33  ;;  %13952 = vst [vmem:[#allocation76_spill] sm:$0xff] %v9290_v48  ;;  %v9300_v31 = vld [vmem:[%s13420_s3 + $0x280] ss:$16 sps:$4 sm:$0xff]   ;;  %v9319_v33 = vld [vmem:[%s13420_s3 + $0x2ac] ss:$16 sps:$4 sm:$0xff]  }
 0x38c   :  { %13954 = vst [vmem:[#allocation78_spill] sm:$0xff] %v9300_v31  ;;  %13957 = vst [vmem:[#allocation81_spill] sm:$0xff] %v9319_v33 }
 0x38e   :  { %1957 = vmatpush1.bf16.msra.mxu1 %v9276_v30  ;;  %1998 = vmatpush1.bf16.msra.mxu0 %v9281_v10  ;;  %v9305_v30 = vld [vmem:[%s13420_s3 + $0x288] ss:$16 sps:$4 sm:$0xff]   ;;  %v9314_v10 = vld [vmem:[%s13420_s3 + $0x2a4] ss:$16 sps:$4 sm:$0xff]  }
 0x38f   :  { %13955 = vst [vmem:[#allocation79_spill] sm:$0xff] %v9305_v30  ;;  %1958 = vmatprep.subr.bf16.mxu1 %v9290_v48  ;;  %1999 = vmatprep.subr.bf16.mxu0 %v9295_v7  ;;  %13956 = vst [vmem:[#allocation80_spill] sm:$0xff] %v9314_v10  ;;  %v9324_v48 = vld [vmem:[%s13420_s3 + $0x2a0] ss:$16 sps:$4 sm:$0xff]   ;;  %v9339_v7 = vld [vmem:[%s13420_s3 + $0x2cc] ss:$16 sps:$4 sm:$0xff]  }
 0x390   :  { %13958 = vst [vmem:[#allocation82_spill] sm:$0xff] %v9324_v48  ;;  %13961 = vst [vmem:[#allocation85_spill] sm:$0xff] %v9339_v7 }
 0x392   :  { %1959 = vmatpush1.bf16.msra.mxu1 %v9300_v31  ;;  %2000 = vmatpush1.bf16.msra.mxu0 %v9305_v30  ;;  %v9329_v31 = vld [vmem:[%s13420_s3 + $0x2a8] ss:$16 sps:$4 sm:$0xff]   ;;  %v9334_v30 = vld [vmem:[%s13420_s3 + $0x2c4] ss:$16 sps:$4 sm:$0xff]  }
 0x393   :  { %13959 = vst [vmem:[#allocation83_spill] sm:$0xff] %v9329_v31  ;;  %13960 = vst [vmem:[#allocation84_spill] sm:$0xff] %v9334_v30  ;;  %1960 = vmatprep.subr.bf16.mxu1 %v9314_v10  ;;  %2001 = vmatprep.subr.bf16.mxu0 %v9319_v33 }
 0x396   :  { %1961 = vmatpush1.bf16.msra.mxu1 %v9324_v48  ;;  %2002 = vmatpush1.bf16.msra.mxu0 %v9329_v31  ;;  %v9360_v48 = vld [vmem:[%s13420_s3 + $0x2e4] ss:$16 sps:$4 sm:$0xff]   ;;  %v9365_v31 = vld [vmem:[%s13420_s3 + $0x2ec] ss:$16 sps:$4 sm:$0xff]  }
 0x397   :  { %1962 = vmatprep.subr.bf16.mxu1 %v9334_v30  ;;  %2003 = vmatprep.subr.bf16.mxu0 %v9339_v7  ;;  %13964 = vst [vmem:[#allocation88_spill] sm:$0xff] %v9360_v48  ;;  %13965 = vst [vmem:[#allocation89_spill] sm:$0xff] %v9365_v31  ;;  %v9372_v30 = vld [vmem:[%s13420_s3 + $0x2e0] ss:$16 sps:$4 sm:$0xff]   ;;  %v9377_v7 = vld [vmem:[%s13420_s3 + $0x2e8] ss:$16 sps:$4 sm:$0xff]  }
 0x398   :  { %13966 = vst [vmem:[#allocation90_spill] sm:$0xff] %v9372_v30  ;;  %13967 = vst [vmem:[#allocation91_spill] sm:$0xff] %v9377_v7 }
 0x39a   :  { %1963 = vmatpush1.bf16.msra.mxu1 %v9348_v9  ;;  %2004 = vmatpush1.bf16.msra.mxu0 %v9353_v45  ;;  %v9386_v45 = vld [vmem:[%s13421_s4 + $0x4] ss:$16 sps:$4 sm:$0xff]   ;;  %v9392_v9 = vld [vmem:[%s13421_s4 + $0xc] ss:$16 sps:$4 sm:$0xff]  }
 0x39b   :  { %1964 = vmatprep.subr.bf16.mxu1 %v9360_v48  ;;  %2005 = vmatprep.subr.bf16.mxu0 %v9365_v31  ;;  %13968 = vst [vmem:[#allocation92_spill] sm:$0xff] %v9386_v45  ;;  %13969 = vst [vmem:[#allocation93_spill] sm:$0xff] %v9392_v9  ;;  %v13970_v31 = vld [vmem:[#allocation33_spill] sm:$0xff]  ;;  %v13972_v48 = vld [vmem:[#allocation35_spill] sm:$0xff] }
 0x39e   :  { %1965 = vmatpush1.bf16.msra.mxu1 %v9372_v30  ;;  %2006 = vmatpush1.bf16.msra.mxu0 %v9377_v7  ;;  %v6207_v30 = vld [vmem:[%s13422_s5 + $0x4] sm:$0xf] }
 0x39f   :  { %2036 = vmatprep.subr.bf16.mxu1 %v9386_v45  ;;  %2077 = vmatprep.subr.bf16.mxu0 %v9392_v9  ;;  %v9399_v7 = vrot.slane %v6207_v30, %v13970_v31  ;;  %v9402_v33 = vrot.slane %v6207_v30, %v13972_v48  ;;  %v13973_v31 = vld [vmem:[#allocation34_spill] sm:$0xff]  ;;  %v13974_v48 = vld [vmem:[#allocation36_spill] sm:$0xff] }
 0x3a0   :  { %v9407_v59 = vrot.slane %v6207_v30, %v13973_v31  ;;  %v9410_v62 = vrot.slane %v6207_v30, %v13974_v48 }
 0x3a1   :  { %13971 = vst [vmem:[#allocation94_spill] sm:$0xff] %v9399_v7 }
 0x453   :  { %v1657_v10 = vpop.f32.mrb[20].mxu1  ;;  %v1698_v47 = vpop.f32.mrb[28].mxu0 }
 0x454   :  { %v6807_v45 = vadd.f32 %v1657_v10, %v9399_v7  ;;  %v1659_v51 = vpop.f32.mrb[21].mxu1  ;;  %v1700_v49 = vpop.f32.mrb[29].mxu0  ;;  %v6809_v10 = vadd.f32 %v1698_v47, %v9407_v59 }
 0x455   :  { %v6808_v42 = vadd.f32 %v1659_v51, %v9402_v33  ;;  %v1661_v43 = vpop.f32.mrb[22].mxu1  ;;  %v1702_v9 = vpop.f32.mrb[30].mxu0  ;;  %v6810_v7 = vadd.f32 %v1700_v49, %v9410_v62 }
 0x456   :  { %v6307_v54 = vmul.f32 -1.442695, %v6807_v45  ;;  %v1662_v44 = vpop.f32.mrb[23].mxu1  ;;  %v1703_v2 = vpop.f32.mrb[31].mxu0  ;;  %v6309_v8 = vmul.f32 -1.442695, %v6809_v10 }
 0x457   :  { %v6308_v0 = vmul.f32 -1.442695, %v6808_v42 }
 0x458   :  { %7349 = vpow2.f32 %v6307_v54 }
 0x459   :  { %7351 = vpow2.f32 %v6308_v0 }
 0x45a   :  { %7353 = vtanh.f32 %v6810_v7 }
 0x45b   :  { %7355 = vpow2.f32 %v6309_v8  ;;  %v9424_v8 = vld [vmem:[%s13421_s4] ss:$16 sps:$4 sm:$0xff]  }
 0x462   :  { %v7350_v51 = vpop.eup %7349 }
 0x463   :  { %v1718_v43 = vadd.f32 1.0, %v7350_v51  ;;  %v7352_v45 = vpop.eup %7351  ;;  %v9436_v51 = vld [vmem:[%s13421_s4 + $0x24] ss:$16 sps:$4 sm:$0xff]  }
 0x464   :  { %v1719_v2 = vadd.f32 1.0, %v7352_v45  ;;  %v7354_v44 = vpop.eup %7353  ;;  %v9450_v45 = vld [vmem:[%s13421_s4 + $0x20] ss:$16 sps:$4 sm:$0xff]  }
 0x465   :  { %7357 = vrcp.f32 %v1718_v43  ;;  %v7356_v54 = vpop.eup %7355  ;;  %v9442_v43 = vld [vmem:[%s13421_s4 + $0x2c] ss:$16 sps:$4 sm:$0xff]  }
 0x466   :  { %7359 = vrcp.f32 %v1719_v2  ;;  %v1720_v30 = vadd.f32 1.0, %v7356_v54  ;;  %v9456_v2 = vld [vmem:[%s13421_s4 + $0x28] ss:$16 sps:$4 sm:$0xff]   ;;  %v9468_v54 = vld [vmem:[%s13421_s4 + $0x4c] ss:$16 sps:$4 sm:$0xff]  }
 0x468   :  { %7361 = vrcp.f32 %v1720_v30  ;;  %v9492_v30 = vld [vmem:[%s13421_s4 + $0x6c] ss:$16 sps:$4 sm:$0xff]  }
 0x469   :  { %13975 = vst [vmem:[#allocation95_spill] sm:$0xff] %v9492_v30 }
 0x46f   :  { %v7358_v42 = vpop.eup %7357 }
 0x470   :  { %v1729_v0 = vmul.f32 %v7358_v42, %v7354_v44  ;;  %v7360_v9 = vpop.eup %7359  ;;  %v9462_v44 = vld [vmem:[%s13421_s4 + $0x44] ss:$16 sps:$4 sm:$0xff]   ;;  %v9474_v42 = vld [vmem:[%s13421_s4 + $0x40] ss:$16 sps:$4 sm:$0xff]  }
 0x471   :  { %v1728_v31 = vmul.f32 0.0, %v7360_v9  ;;  %v9486_v9 = vld [vmem:[%s13421_s4 + $0x64] ss:$16 sps:$4 sm:$0xff]  }
 0x472   :  { %v7362_v49 = vpop.eup %7361 }
 0x473   :  { %v9414_v48 = vadd.f32 %v1729_v0, %v1728_v31  ;;  %v9430_v31 = vld [vmem:[%s13421_s4 + $0x8] ss:$16 sps:$4 sm:$0xff]  }
 0x474   :  { %v9480_v0 = vld [vmem:[%s13421_s4 + $0x48] ss:$16 sps:$4 sm:$0xff]  }
 0x475   :  { %7363 = vtanh.f32 %v9414_v48 }
 0x47f   :  { %v7364_v47 = vpop.eup %7363 }
 0x480   :  { %v1732_v7 = vmul.f32 %v7364_v47, %v7362_v49  ;;  %v9498_v49 = vld [vmem:[%s13421_s4 + $0x60] ss:$16 sps:$4 sm:$0xff]   ;;  %v9504_v47 = vld [vmem:[%s13421_s4 + $0x68] ss:$16 sps:$4 sm:$0xff]  }
 0x481   :  { %13976 = vst [vmem:[#allocation96_spill] sm:$0xff] %v9498_v49  ;;  %13977 = vst [vmem:[#allocation97_spill] sm:$0xff] %v9504_v47 }
 0x482   :  { %v9417_v10 = vpack.c.bf16 %v1732_v7, %v1732_v7  ;;  %v9510_v7 = vld [vmem:[%s13421_s4 + $0x84] ss:$16 sps:$4 sm:$0xff]  }
 0x483   :  { %13978 = vst [vmem:[#allocation98_spill] sm:$0xff] %v9510_v7 }
 0x484   :  { %1983 = vmatmul.mubr.bf16.vlgmr.msra.gmra.mrb[32].mxu1 %v9417_v10  ;;  %2024 = vmatmul.mubr.bf16.vlgmr.msra.gmra.mrb[40].mxu0 %v9417_v10 }
 0x485   :  { %2037 = vmatpush1.bf16.msra.mxu1 %v9424_v8  ;;  %2078 = vmatpush1.bf16.msra.mxu0 %v9430_v31 }
 0x486   :  { %2038 = vmatprep.subr.bf16.mxu1 %v9436_v51  ;;  %2079 = vmatprep.subr.bf16.mxu0 %v9442_v43 }
 0x487   :  { %2068 = vmatprep.mubr.bf16.mxu1 %v13884_v50  ;;  %2109 = vmatprep.mubr.bf16.mxu0 %v13884_v50 }
 0x489   :  { %2039 = vmatpush1.bf16.msra.mxu1 %v9450_v45  ;;  %2080 = vmatpush1.bf16.msra.mxu0 %v9456_v2 }
 0x48a   :  { %2040 = vmatprep.subr.bf16.mxu1 %v9462_v44  ;;  %2081 = vmatprep.subr.bf16.mxu0 %v9468_v54 }
 0x48d   :  { %2041 = vmatpush1.bf16.msra.mxu1 %v9474_v42  ;;  %2082 = vmatpush1.bf16.msra.mxu0 %v9480_v0 }
 0x48e   :  { %2042 = vmatprep.subr.bf16.mxu1 %v9486_v9  ;;  %2083 = vmatprep.subr.bf16.mxu0 %v9492_v30  ;;  %v9516_v30 = vld [vmem:[%s13421_s4 + $0x8c] ss:$16 sps:$4 sm:$0xff]  }
 0x48f   :  { %13979 = vst [vmem:[#allocation99_spill] sm:$0xff] %v9516_v30 }
 0x491   :  { %2043 = vmatpush1.bf16.msra.mxu1 %v9498_v49  ;;  %2084 = vmatpush1.bf16.msra.mxu0 %v9504_v47  ;;  %v9522_v49 = vld [vmem:[%s13421_s4 + $0x80] ss:$16 sps:$4 sm:$0xff]   ;;  %v9528_v47 = vld [vmem:[%s13421_s4 + $0x88] ss:$16 sps:$4 sm:$0xff]  }
 0x492   :  { %2044 = vmatprep.subr.bf16.mxu1 %v9510_v7  ;;  %2085 = vmatprep.subr.bf16.mxu0 %v9516_v30  ;;  %13980 = vst [vmem:[#allocation100_spill] sm:$0xff] %v9522_v49  ;;  %13981 = vst [vmem:[#allocation101_spill] sm:$0xff] %v9528_v47  ;;  %v9534_v7 = vld [vmem:[%s13421_s4 + $0xa4] ss:$16 sps:$4 sm:$0xff]   ;;  %v9540_v30 = vld [vmem:[%s13421_s4 + $0xac] ss:$16 sps:$4 sm:$0xff]  }
 0x493   :  { %13982 = vst [vmem:[#allocation102_spill] sm:$0xff] %v9534_v7  ;;  %13983 = vst [vmem:[#allocation103_spill] sm:$0xff] %v9540_v30 }
 0x495   :  { %2045 = vmatpush1.bf16.msra.mxu1 %v9522_v49  ;;  %2086 = vmatpush1.bf16.msra.mxu0 %v9528_v47  ;;  %v9546_v49 = vld [vmem:[%s13421_s4 + $0xa0] ss:$16 sps:$4 sm:$0xff]   ;;  %v9552_v47 = vld [vmem:[%s13421_s4 + $0xa8] ss:$16 sps:$4 sm:$0xff]  }
 0x496   :  { %2046 = vmatprep.subr.bf16.mxu1 %v9534_v7  ;;  %2087 = vmatprep.subr.bf16.mxu0 %v9540_v30  ;;  %13984 = vst [vmem:[#allocation104_spill] sm:$0xff] %v9546_v49  ;;  %13985 = vst [vmem:[#allocation105_spill] sm:$0xff] %v9552_v47  ;;  %v9558_v7 = vld [vmem:[%s13421_s4 + $0xc4] ss:$16 sps:$4 sm:$0xff]   ;;  %v9564_v30 = vld [vmem:[%s13421_s4 + $0xcc] ss:$16 sps:$4 sm:$0xff]  }
 0x497   :  { %13986 = vst [vmem:[#allocation106_spill] sm:$0xff] %v9558_v7  ;;  %13987 = vst [vmem:[#allocation107_spill] sm:$0xff] %v9564_v30 }
 0x499   :  { %2047 = vmatpush1.bf16.msra.mxu1 %v9546_v49  ;;  %2088 = vmatpush1.bf16.msra.mxu0 %v9552_v47  ;;  %v9570_v49 = vld [vmem:[%s13421_s4 + $0xc0] ss:$16 sps:$4 sm:$0xff]   ;;  %v9576_v47 = vld [vmem:[%s13421_s4 + $0xc8] ss:$16 sps:$4 sm:$0xff]  }
 0x49a   :  { %2048 = vmatprep.subr.bf16.mxu1 %v9558_v7  ;;  %2089 = vmatprep.subr.bf16.mxu0 %v9564_v30  ;;  %13988 = vst [vmem:[#allocation108_spill] sm:$0xff] %v9570_v49  ;;  %13989 = vst [vmem:[#allocation109_spill] sm:$0xff] %v9576_v47  ;;  %v9582_v7 = vld [vmem:[%s13421_s4 + $0xe4] ss:$16 sps:$4 sm:$0xff]   ;;  %v9588_v30 = vld [vmem:[%s13421_s4 + $0xec] ss:$16 sps:$4 sm:$0xff]  }
 0x49d   :  { %2049 = vmatpush1.bf16.msra.mxu1 %v9570_v49  ;;  %2090 = vmatpush1.bf16.msra.mxu0 %v9576_v47  ;;  %v9594_v49 = vld [vmem:[%s13421_s4 + $0xe0] ss:$16 sps:$4 sm:$0xff]   ;;  %v9600_v47 = vld [vmem:[%s13421_s4 + $0xe8] ss:$16 sps:$4 sm:$0xff]  }
 0x49e   :  { %2050 = vmatprep.subr.bf16.mxu1 %v9582_v7  ;;  %2091 = vmatprep.subr.bf16.mxu0 %v9588_v30 }
 0x4a1   :  { %2051 = vmatpush1.bf16.msra.mxu1 %v9594_v49  ;;  %2092 = vmatpush1.bf16.msra.mxu0 %v9600_v47 }
 0x4a2   :  { %2147 = vmatprep.subr.bf16.mxu1 %v8643_v34  ;;  %2188 = vmatprep.subr.bf16.mxu0 %v8648_v35 }
 0x4a4   :  { %2069 = vmatmul.mubr.bf16.vlgmr.msra.gmra.mrb[36].mxu1 %v9011_v53  ;;  %2110 = vmatmul.mubr.bf16.vlgmr.msra.gmra.mrb[44].mxu0 %v9011_v53 }
 0x4a5   :  { %2148 = vmatpush1.bf16.msra.mxu1 %v8653_v36  ;;  %2189 = vmatpush1.bf16.msra.mxu0 %v8658_v37  ;;  %v13990_v36 = vld [vmem:[#allocation41_spill] sm:$0xff] }
 0x4a6   :  { %2149 = vmatprep.subr.bf16.mxu1 %v8667_v38  ;;  %2190 = vmatprep.subr.bf16.mxu0 %v8672_v39  ;;  %v13991_v38 = vld [vmem:[#allocation42_spill] sm:$0xff] }
 0x4a7   :  { %2179 = vmatprep.mubr.bf16.mxu1 %v13884_v50  ;;  %2220 = vmatprep.mubr.bf16.mxu0 %v13884_v50 }
 0x4a9   :  { %2150 = vmatpush1.bf16.msra.mxu1 %v8677_v40  ;;  %2191 = vmatpush1.bf16.msra.mxu0 %v8682_v41 }
 0x4aa   :  { %2151 = vmatprep.subr.bf16.mxu1 %v13885_v57  ;;  %2192 = vmatprep.subr.bf16.mxu0 %v13886_v58  ;;  %v13992_v57 = vld [vmem:[#allocation43_spill] sm:$0xff] }
 0x4ad   :  { %2152 = vmatpush1.bf16.msra.mxu1 %v13887_v60  ;;  %2193 = vmatpush1.bf16.msra.mxu0 %v13888_v61  ;;  %v13993_v60 = vld [vmem:[#allocation44_spill] sm:$0xff] }
 0x4ae   :  { %2153 = vmatprep.subr.bf16.mxu1 %v13889_v63  ;;  %2194 = vmatprep.subr.bf16.mxu0 %v13890_v1 }
 0x4b1   :  { %2154 = vmatpush1.bf16.msra.mxu1 %v13891_v5  ;;  %2195 = vmatpush1.bf16.msra.mxu0 %v13892_v6 }
 0x4b2   :  { %2155 = vmatprep.subr.bf16.mxu1 %v13893_v11  ;;  %2196 = vmatprep.subr.bf16.mxu0 %v13894_v12 }
 0x4b5   :  { %2156 = vmatpush1.bf16.msra.mxu1 %v13895_v14  ;;  %2197 = vmatpush1.bf16.msra.mxu0 %v13896_v15 }
 0x4b6   :  { %2157 = vmatprep.subr.bf16.mxu1 %v13897_v16  ;;  %2198 = vmatprep.subr.bf16.mxu0 %v13898_v17 }
 0x4b9   :  { %2158 = vmatpush1.bf16.msra.mxu1 %v13899_v18  ;;  %2199 = vmatpush1.bf16.msra.mxu0 %v13900_v19 }
 0x4ba   :  { %2159 = vmatprep.subr.bf16.mxu1 %v13901_v20  ;;  %2200 = vmatprep.subr.bf16.mxu0 %v13902_v21 }
 0x4bd   :  { %2160 = vmatpush1.bf16.msra.mxu1 %v13903_v22  ;;  %2201 = vmatpush1.bf16.msra.mxu0 %v13904_v23 }
 0x4be   :  { %2161 = vmatprep.subr.bf16.mxu1 %v13905_v24  ;;  %2202 = vmatprep.subr.bf16.mxu0 %v13906_v25 }
 0x4c1   :  { %2162 = vmatpush1.bf16.msra.mxu1 %v13907_v26  ;;  %2203 = vmatpush1.bf16.msra.mxu0 %v13908_v27 }
 0x4c2   :  { %2229 = vmatprep.subr.bf16.mxu1 %v8984_v28  ;;  %2270 = vmatprep.subr.bf16.mxu0 %v8989_v29 }
 0x577   :  { %v2070_v34 = vpop.f32.mrb[36].mxu1  ;;  %v2111_v35 = vpop.f32.mrb[44].mxu0 }
 0x578   :  { %v2118_v37 = vadd.f32 %v2070_v34, %v13990_v36  ;;  %v2120_v39 = vadd.f32 %v2111_v35, %v13991_v38  ;;  %v2072_v40 = vpop.f32.mrb[37].mxu1  ;;  %v2113_v41 = vpop.f32.mrb[45].mxu0  ;;  %v13995_v34 = vld [vmem:[#allocation10_spill] sm:$0xff]  ;;  %v14000_v35 = vld [vmem:[#allocation15_spill] sm:$0xff]  ;;  %v14001_v36 = vld [vmem:[#allocation16_spill] sm:$0xff] }
 0x579   :  { %v2119_v58 = vadd.f32 %v2072_v40, %v13992_v57  ;;  %v2121_v61 = vadd.f32 %v2113_v41, %v13993_v60  ;;  %v2074_v63 = vpop.f32.mrb[38].mxu1  ;;  %v2115_v1 = vpop.f32.mrb[46].mxu0  ;;  %v14006_v38 = vld [vmem:[#allocation21_spill] sm:$0xff]  ;;  %v14008_v40 = vld [vmem:[#allocation23_spill] sm:$0xff]  ;;  %v14009_v41 = vld [vmem:[#allocation24_spill] sm:$0xff] }
 0x57a   :  { %v6375_v5 = vmul.f32 -1.442695, %v2118_v37  ;;  %v2075_v6 = vpop.f32.mrb[39].mxu1  ;;  %v2116_v11 = vpop.f32.mrb[47].mxu0  ;;  %v6377_v14 = vmul.f32 -1.442695, %v2120_v39 }
 0x57b   :  { %v6376_v12 = vmul.f32 -1.442695, %v2119_v58  ;;  %v14005_v37 = vld [vmem:[#allocation20_spill] sm:$0xff]  ;;  %v14007_v39 = vld [vmem:[#allocation22_spill] sm:$0xff]  ;;  %v14010_v57 = vld [vmem:[#allocation25_spill] sm:$0xff] }
 0x57c   :  { %7365 = vpow2.f32 %v6375_v5  ;;  %v14011_v58 = vld [vmem:[#allocation26_spill] sm:$0xff]  ;;  %v14012_v60 = vld [vmem:[#allocation27_spill] sm:$0xff]  ;;  %v14014_v63 = vld [vmem:[#allocation29_spill] sm:$0xff] }
 0x57d   :  { %7367 = vpow2.f32 %v6376_v12  ;;  %v14015_v1 = vld [vmem:[#allocation30_spill] sm:$0xff]  ;;  %v14016_v5 = vld [vmem:[#allocation31_spill] sm:$0xff]  ;;  %v14017_v6 = vld [vmem:[#allocation32_spill] sm:$0xff] }
 0x57e   :  { %7369 = vtanh.f32 %v2121_v61  ;;  %v14013_v61 = vld [vmem:[#allocation28_spill] sm:$0xff]  ;;  %v14018_v11 = vld [vmem:[#allocation37_spill] sm:$0xff]  ;;  %v14019_v12 = vld [vmem:[#allocation38_spill] sm:$0xff] }
 0x57f   :  { %7371 = vpow2.f32 %v6377_v14  ;;  %v14020_v14 = vld [vmem:[#allocation39_spill] sm:$0xff] }
 0x586   :  { %v7366_v15 = vpop.eup %7365 }
 0x587   :  { %v2131_v16 = vadd.f32 1.0, %v7366_v15  ;;  %v7368_v17 = vpop.eup %7367  ;;  %v14021_v15 = vld [vmem:[#allocation40_spill] sm:$0xff] }
 0x588   :  { %v2132_v18 = vadd.f32 1.0, %v7368_v17  ;;  %v7370_v19 = vpop.eup %7369  ;;  %v14023_v17 = vld [vmem:[#allocation66_spill] sm:$0xff] }
 0x589   :  { %7373 = vrcp.f32 %v2131_v16  ;;  %v7372_v20 = vpop.eup %7371  ;;  %v14022_v16 = vld [vmem:[#allocation65_spill] sm:$0xff] }
 0x58a   :  { %7375 = vrcp.f32 %v2132_v18  ;;  %v2133_v24 = vadd.f32 1.0, %v7372_v20  ;;  %v14024_v18 = vld [vmem:[#allocation67_spill] sm:$0xff]  ;;  %v14026_v20 = vld [vmem:[#allocation69_spill] sm:$0xff] }
 0x58c   :  { %7377 = vrcp.f32 %v2133_v24  ;;  %v14031_v24 = vld [vmem:[#allocation74_spill] sm:$0xff] }
 0x593   :  { %v7374_v21 = vpop.eup %7373 }
 0x594   :  { %v2142_v22 = vmul.f32 %v7374_v21, %v7370_v19  ;;  %v7376_v23 = vpop.eup %7375  ;;  %v14025_v19 = vld [vmem:[#allocation68_spill] sm:$0xff]  ;;  %v14028_v21 = vld [vmem:[#allocation71_spill] sm:$0xff] }
 0x595   :  { %v2141_v25 = vmul.f32 %v7376_v23, %v8998_v32  ;;  %v13994_v32 = vld [vmem:[#allocation9_spill] sm:$0xff] }
 0x596   :  { %v7378_v27 = vpop.eup %7377  ;;  %v14030_v23 = vld [vmem:[#allocation73_spill] sm:$0xff] }
 0x597   :  { %v9646_v26 = vadd.f32 %v2142_v22, %v2141_v25  ;;  %v14029_v22 = vld [vmem:[#allocation72_spill] sm:$0xff]  ;;  %v14032_v25 = vld [vmem:[#allocation75_spill] sm:$0xff] }
 0x599   :  { %7379 = vtanh.f32 %v9646_v26 }
 0x5a3   :  { %v7380_v28 = vpop.eup %7379 }
 0x5a4   :  { %v2145_v29 = vmul.f32 %v7380_v28, %v7378_v27  ;;  %v14033_v27 = vld [vmem:[#allocation76_spill] sm:$0xff]  ;;  %v14034_v28 = vld [vmem:[#allocation77_spill] sm:$0xff] }
 0x5a6   :  { %v9649_v53 = vpack.c.bf16 %v2145_v29, %v2145_v29  ;;  %v14035_v29 = vld [vmem:[#allocation78_spill] sm:$0xff] }
 0x5a8   :  { %2180 = vmatmul.mubr.bf16.vlgmr.msra.gmra.mrb[40].mxu1 %v9649_v53  ;;  %2221 = vmatmul.mubr.bf16.vlgmr.msra.gmra.mrb[48].mxu0 %v9649_v53 }
 0x5a9   :  { %2230 = vmatpush1.bf16.msra.mxu1 %v9004_v56  ;;  %2271 = vmatpush1.bf16.msra.mxu0 %v9009_v55  ;;  %v13996_v56 = vld [vmem:[#allocation11_spill] sm:$0xff]  ;;  %v13997_v55 = vld [vmem:[#allocation12_spill] sm:$0xff] }
 0x5aa   :  { %2231 = vmatprep.subr.bf16.mxu1 %v9016_v13  ;;  %2272 = vmatprep.subr.bf16.mxu0 %v9021_v52  ;;  %v13998_v13 = vld [vmem:[#allocation13_spill] sm:$0xff]  ;;  %v13999_v52 = vld [vmem:[#allocation14_spill] sm:$0xff] }
 0x5ab   :  { %2261 = vmatprep.mubr.bf16.mxu1 %v13884_v50  ;;  %2302 = vmatprep.mubr.bf16.mxu0 %v13884_v50 }
 0x5ad   :  { %2232 = vmatpush1.bf16.msra.mxu1 %v9030_v4  ;;  %2273 = vmatpush1.bf16.msra.mxu0 %v9035_v3  ;;  %v14002_v4 = vld [vmem:[#allocation17_spill] sm:$0xff]  ;;  %v14003_v3 = vld [vmem:[#allocation18_spill] sm:$0xff] }
 0x5ae   :  { %2233 = vmatprep.subr.bf16.mxu1 %v9042_v46  ;;  %2274 = vmatprep.subr.bf16.mxu0 %v13994_v32  ;;  %v14004_v46 = vld [vmem:[#allocation19_spill] sm:$0xff] }
 0x5af   :  { %v14036_v32 = vld [vmem:[#allocation79_spill] sm:$0xff] }
 0x5b1   :  { %2234 = vmatpush1.bf16.msra.mxu1 %v13995_v34  ;;  %2275 = vmatpush1.bf16.msra.mxu0 %v13996_v56  ;;  %v14037_v34 = vld [vmem:[#allocation80_spill] sm:$0xff]  ;;  %v14038_v56 = vld [vmem:[#allocation81_spill] sm:$0xff] }
 0x5b2   :  { %2235 = vmatprep.subr.bf16.mxu1 %v13997_v55  ;;  %2276 = vmatprep.subr.bf16.mxu0 %v13998_v13  ;;  %v14039_v55 = vld [vmem:[#allocation82_spill] sm:$0xff]  ;;  %v14040_v13 = vld [vmem:[#allocation83_spill] sm:$0xff] }
 0x5b5   :  { %2236 = vmatpush1.bf16.msra.mxu1 %v13999_v52  ;;  %2277 = vmatpush1.bf16.msra.mxu0 %v14000_v35  ;;  %v14041_v52 = vld [vmem:[#allocation84_spill] sm:$0xff]  ;;  %v14042_v35 = vld [vmem:[#allocation85_spill] sm:$0xff] }
 0x5b6   :  { %2237 = vmatprep.subr.bf16.mxu1 %v14001_v36  ;;  %2278 = vmatprep.subr.bf16.mxu0 %v14002_v4  ;;  %v14043_v36 = vld [vmem:[#allocation86_spill] sm:$0xff]  ;;  %v14044_v4 = vld [vmem:[#allocation87_spill] sm:$0xff] }
 0x5b9   :  { %2238 = vmatpush1.bf16.msra.mxu1 %v14003_v3  ;;  %2279 = vmatpush1.bf16.msra.mxu0 %v14004_v46  ;;  %v14045_v3 = vld [vmem:[#allocation88_spill] sm:$0xff]  ;;  %v14046_v46 = vld [vmem:[#allocation89_spill] sm:$0xff] }
 0x5ba   :  { %2239 = vmatprep.subr.bf16.mxu1 %v14005_v37  ;;  %2280 = vmatprep.subr.bf16.mxu0 %v14006_v38  ;;  %v14047_v37 = vld [vmem:[#allocation90_spill] sm:$0xff]  ;;  %v14048_v38 = vld [vmem:[#allocation91_spill] sm:$0xff] }
 0x5bd   :  { %2240 = vmatpush1.bf16.msra.mxu1 %v14007_v39  ;;  %2281 = vmatpush1.bf16.msra.mxu0 %v14008_v40  ;;  %v9724_v39 = vld [vmem:[%s13421_s4 + $0x204] ss:$16 sps:$4 sm:$0xff]   ;;  %v9729_v40 = vld [vmem:[%s13421_s4 + $0x20c] ss:$16 sps:$4 sm:$0xff]  }
 0x5be   :  { %2241 = vmatprep.subr.bf16.mxu1 %v14009_v41  ;;  %2282 = vmatprep.subr.bf16.mxu0 %v14010_v57 }
 0x5c1   :  { %2242 = vmatpush1.bf16.msra.mxu1 %v14011_v58  ;;  %2283 = vmatpush1.bf16.msra.mxu0 %v14012_v60  ;;  %v14049_v58 = vld [vmem:[#allocation94_spill] sm:$0xff] }
 0x5c2   :  { %2243 = vmatprep.subr.bf16.mxu1 %v14013_v61  ;;  %2284 = vmatprep.subr.bf16.mxu0 %v14014_v63 }
 0x5c5   :  { %2244 = vmatpush1.bf16.msra.mxu1 %v14015_v1  ;;  %2285 = vmatpush1.bf16.msra.mxu0 %v14016_v5 }
 0x5c6   :  { %2340 = vmatprep.subr.bf16.mxu1 %v14017_v6  ;;  %2381 = vmatprep.subr.bf16.mxu0 %v14018_v11 }
 0x5c8   :  { %2262 = vmatmul.mubr.bf16.vlgmr.msra.gmra.mrb[28].mxu1 %v9417_v10  ;;  %2303 = vmatmul.mubr.bf16.vlgmr.msra.gmra.mrb[36].mxu0 %v9417_v10  ;;  %v14027_v10 = vld [vmem:[#allocation70_spill] sm:$0xff] }
 0x5c9   :  { %2341 = vmatpush1.bf16.msra.mxu1 %v14019_v12  ;;  %2382 = vmatpush1.bf16.msra.mxu0 %v14020_v14 }
 0x5ca   :  { %2342 = vmatprep.subr.bf16.mxu1 %v14021_v15  ;;  %2383 = vmatprep.subr.bf16.mxu0 %v14022_v16 }
 0x5cb   :  { %2372 = vmatprep.mubr.bf16.mxu1 %v13884_v50  ;;  %2413 = vmatprep.mubr.bf16.mxu0 %v13884_v50 }
 0x5cd   :  { %2343 = vmatpush1.bf16.msra.mxu1 %v14023_v17  ;;  %2384 = vmatpush1.bf16.msra.mxu0 %v14024_v18 }
 0x5ce   :  { %2344 = vmatprep.subr.bf16.mxu1 %v14025_v19  ;;  %2385 = vmatprep.subr.bf16.mxu0 %v14026_v20 }
 0x5d1   :  { %2345 = vmatpush1.bf16.msra.mxu1 %v14027_v10  ;;  %2386 = vmatpush1.bf16.msra.mxu0 %v14028_v21 }
 0x5d2   :  { %2346 = vmatprep.subr.bf16.mxu1 %v14029_v22  ;;  %2387 = vmatprep.subr.bf16.mxu0 %v14030_v23 }
 0x5d5   :  { %2347 = vmatpush1.bf16.msra.mxu1 %v14031_v24  ;;  %2388 = vmatpush1.bf16.msra.mxu0 %v14032_v25 }
 0x5d6   :  { %2348 = vmatprep.subr.bf16.mxu1 %v14033_v27  ;;  %2389 = vmatprep.subr.bf16.mxu0 %v14034_v28 }
 0x5d9   :  { %2349 = vmatpush1.bf16.msra.mxu1 %v14035_v29  ;;  %2390 = vmatpush1.bf16.msra.mxu0 %v14036_v32 }
 0x5da   :  { %2350 = vmatprep.subr.bf16.mxu1 %v14037_v34  ;;  %2391 = vmatprep.subr.bf16.mxu0 %v14038_v56 }
 0x5dd   :  { %2351 = vmatpush1.bf16.msra.mxu1 %v14039_v55  ;;  %2392 = vmatpush1.bf16.msra.mxu0 %v14040_v13  ;;  %v9744_v13 = vld [vmem:[%s13421_s4 + $0x200] ss:$16 sps:$4 sm:$0xff]  }
 0x5de   :  { %2352 = vmatprep.subr.bf16.mxu1 %v14041_v52  ;;  %2393 = vmatprep.subr.bf16.mxu0 %v14042_v35  ;;  %v9749_v52 = vld [vmem:[%s13421_s4 + $0x208] ss:$16 sps:$4 sm:$0xff]  }
 0x5e1   :  { %2353 = vmatpush1.bf16.msra.mxu1 %v14043_v36  ;;  %2394 = vmatpush1.bf16.msra.mxu0 %v14044_v4  ;;  %v9761_v36 = vld [vmem:[%s13421_s4 + $0x22c] ss:$16 sps:$4 sm:$0xff]   ;;  %v9770_v4 = vld [vmem:[%s13421_s4 + $0x220] ss:$16 sps:$4 sm:$0xff]  }
 0x5e2   :  { %2354 = vmatprep.subr.bf16.mxu1 %v14045_v3  ;;  %2395 = vmatprep.subr.bf16.mxu0 %v14046_v46  ;;  %v9775_v3 = vld [vmem:[%s13421_s4 + $0x228] ss:$16 sps:$4 sm:$0xff]   ;;  %v9782_v46 = vld [vmem:[%s13421_s4 + $0x244] ss:$16 sps:$4 sm:$0xff]  }
 0x5e5   :  { %2355 = vmatpush1.bf16.msra.mxu1 %v14047_v37  ;;  %2396 = vmatpush1.bf16.msra.mxu0 %v14048_v38  ;;  %v9787_v37 = vld [vmem:[%s13421_s4 + $0x24c] ss:$16 sps:$4 sm:$0xff]   ;;  %v9796_v38 = vld [vmem:[%s13421_s4 + $0x240] ss:$16 sps:$4 sm:$0xff]  }
 0x5e6   :  { %2615 = vmatprep.subr.bf16.mxu1 %v9724_v39  ;;  %2656 = vmatprep.subr.bf16.mxu0 %v9729_v40 }
 0x69b   :  { %v2263_v41 = vpop.f32.mrb[28].mxu1  ;;  %v2304_v57 = vpop.f32.mrb[36].mxu0 }
 0x69c   :  { %v6811_v60 = vadd.f32 %v2263_v41, %v14049_v58  ;;  %v2265_v61 = vpop.f32.mrb[29].mxu1  ;;  %v2306_v63 = vpop.f32.mrb[37].mxu0  ;;  %v6813_v16 = vadd.f32 %v2304_v57, %v9407_v59  ;;  %v9801_v41 = vld [vmem:[%s13421_s4 + $0x248] ss:$16 sps:$4 sm:$0xff]   ;;  %v9808_v57 = vld [vmem:[%s13421_s4 + $0x264] ss:$16 sps:$4 sm:$0xff]  }
 0x69d   :  { %v6812_v1 = vadd.f32 %v2265_v61, %v9402_v33  ;;  %v2267_v5 = vpop.f32.mrb[30].mxu1  ;;  %v2308_v6 = vpop.f32.mrb[38].mxu0  ;;  %v6814_v17 = vadd.f32 %v2306_v63, %v9410_v62  ;;  %v9820_v61 = vld [vmem:[%s13421_s4 + $0x260] ss:$16 sps:$4 sm:$0xff]   ;;  %v9825_v63 = vld [vmem:[%s13421_s4 + $0x268] ss:$16 sps:$4 sm:$0xff]  }
 0x69e   :  { %v6378_v11 = vmul.f32 -1.442695, %v6811_v60  ;;  %v2268_v12 = vpop.f32.mrb[31].mxu1  ;;  %v2309_v14 = vpop.f32.mrb[39].mxu0  ;;  %v6380_v18 = vmul.f32 -1.442695, %v6813_v16 }
 0x69f   :  { %v6379_v15 = vmul.f32 -1.442695, %v6812_v1  ;;  %v9813_v60 = vld [vmem:[%s13421_s4 + $0x26c] ss:$16 sps:$4 sm:$0xff]   ;;  %v9832_v1 = vld [vmem:[%s13421_s4 + $0x284] ss:$16 sps:$4 sm:$0xff]  }
 0x6a0   :  { %7381 = vpow2.f32 %v6378_v11  ;;  %v9837_v5 = vld [vmem:[%s13421_s4 + $0x28c] ss:$16 sps:$4 sm:$0xff]   ;;  %v9844_v6 = vld [vmem:[%s13421_s4 + $0x280] ss:$16 sps:$4 sm:$0xff]   ;;  %v9849_v11 = vld [vmem:[%s13421_s4 + $0x288] ss:$16 sps:$4 sm:$0xff]  }
 0x6a1   :  { %7383 = vpow2.f32 %v6379_v15  ;;  %v9856_v12 = vld [vmem:[%s13421_s4 + $0x2a4] ss:$16 sps:$4 sm:$0xff]   ;;  %v9861_v14 = vld [vmem:[%s13421_s4 + $0x2ac] ss:$16 sps:$4 sm:$0xff]   ;;  %v9868_v15 = vld [vmem:[%s13421_s4 + $0x2a0] ss:$16 sps:$4 sm:$0xff]  }
 0x6a2   :  { %7385 = vtanh.f32 %v6814_v17  ;;  %v9873_v16 = vld [vmem:[%s13421_s4 + $0x2a8] ss:$16 sps:$4 sm:$0xff]   ;;  %v9880_v17 = vld [vmem:[%s13421_s4 + $0x2c4] ss:$16 sps:$4 sm:$0xff]  }
 0x6a3   :  { %7387 = vpow2.f32 %v6380_v18  ;;  %v9885_v18 = vld [vmem:[%s13421_s4 + $0x2cc] ss:$16 sps:$4 sm:$0xff]  }
 0x6aa   :  { %v7382_v19 = vpop.eup %7381 }
 0x6ab   :  { %v2324_v20 = vadd.f32 1.0, %v7382_v19  ;;  %v7384_v10 = vpop.eup %7383  ;;  %v9892_v19 = vld [vmem:[%s13421_s4 + $0x2c0] ss:$16 sps:$4 sm:$0xff]  }
 0x6ac   :  { %v2325_v21 = vadd.f32 1.0, %v7384_v10  ;;  %v7386_v22 = vpop.eup %7385  ;;  %v9904_v10 = vld [vmem:[%s13421_s4 + $0x2e4] ss:$16 sps:$4 sm:$0xff]  }
 0x6ad   :  { %7389 = vrcp.f32 %v2324_v20  ;;  %v7388_v23 = vpop.eup %7387  ;;  %v9897_v20 = vld [vmem:[%s13421_s4 + $0x2c8] ss:$16 sps:$4 sm:$0xff]  }
 0x6ae   :  { %7391 = vrcp.f32 %v2325_v21  ;;  %v2326_v28 = vadd.f32 1.0, %v7388_v23  ;;  %v9909_v21 = vld [vmem:[%s13421_s4 + $0x2ec] ss:$16 sps:$4 sm:$0xff]   ;;  %v9921_v23 = vld [vmem:[%s13421_s4 + $0x2e8] ss:$16 sps:$4 sm:$0xff]  }
 0x6b0   :  { %7393 = vrcp.f32 %v2326_v28  ;;  %v14064_v28 = vld [vmem:[#allocation107_spill] sm:$0xff] }
 0x6b7   :  { %v7390_v24 = vpop.eup %7389 }
 0x6b8   :  { %v2335_v25 = vmul.f32 %v7390_v24, %v7386_v22  ;;  %v7392_v27 = vpop.eup %7391  ;;  %v9916_v22 = vld [vmem:[%s13421_s4 + $0x2e0] ss:$16 sps:$4 sm:$0xff]   ;;  %v14050_v24 = vld [vmem:[#allocation92_spill] sm:$0xff] }
 0x6b9   :  { %v2334_v29 = vmul.f32 %v7392_v27, %v9414_v48  ;;  %v9756_v48 = vld [vmem:[%s13421_s4 + $0x224] ss:$16 sps:$4 sm:$0xff]   ;;  %v14063_v27 = vld [vmem:[#allocation106_spill] sm:$0xff] }
 0x6ba   :  { %v7394_v34 = vpop.eup %7393 }
 0x6bb   :  { %v9738_v32 = vadd.f32 %v2335_v25, %v2334_v29  ;;  %v14051_v25 = vld [vmem:[#allocation93_spill] sm:$0xff]  ;;  %v14065_v29 = vld [vmem:[#allocation108_spill] sm:$0xff] }
 0x6bd   :  { %7395 = vtanh.f32 %v9738_v32 }
 0x6c7   :  { %v7396_v56 = vpop.eup %7395 }
 0x6c8   :  { %v2338_v55 = vmul.f32 %v7396_v56, %v7394_v34  ;;  %v14066_v34 = vld [vmem:[#allocation109_spill] sm:$0xff] }
 0x6c9   :  { %v9966_v56 = vld [vmem:[%s13420_s3 + $0x104] ss:$16 sps:$4 sm:$0xff]  }
 0x6ca   :  { %v9751_v35 = vpack.c.bf16 %v2338_v55, %v2338_v55  ;;  %14067 = vst [vmem:[#allocation41_spill] sm:$0xff] %v9966_v56  ;;  %v9972_v55 = vld [vmem:[%s13420_s3 + $0x10c] ss:$16 sps:$4 sm:$0xff]  }
 0x6cb   :  { %14068 = vst [vmem:[#allocation42_spill] sm:$0xff] %v9972_v55 }
 0x6cc   :  { %2373 = vmatmul.mubr.bf16.vlgmr.msra.gmra.mrb[44].mxu1 %v9751_v35  ;;  %2414 = vmatmul.mubr.bf16.vlgmr.msra.gmra.mrb[52].mxu0 %v9751_v35 }
 0x6cd   :  { %2616 = vmatpush1.bf16.msra.mxu1 %v9744_v13  ;;  %2657 = vmatpush1.bf16.msra.mxu0 %v9749_v52 }
 0x6ce   :  { %2617 = vmatprep.subr.bf16.mxu1 %v9756_v48  ;;  %2658 = vmatprep.subr.bf16.mxu0 %v9761_v36 }
 0x6cf   :  { %2647 = vmatprep.mubr.bf16.mxu1 %v13884_v50  ;;  %2688 = vmatprep.mubr.bf16.mxu0 %v13884_v50 }
 0x6d1   :  { %2618 = vmatpush1.bf16.msra.mxu1 %v9770_v4  ;;  %2659 = vmatpush1.bf16.msra.mxu0 %v9775_v3 }
 0x6d2   :  { %2619 = vmatprep.subr.bf16.mxu1 %v9782_v46  ;;  %2660 = vmatprep.subr.bf16.mxu0 %v9787_v37 }
 0x6d5   :  { %2620 = vmatpush1.bf16.msra.mxu1 %v9796_v38  ;;  %2661 = vmatpush1.bf16.msra.mxu0 %v9801_v41 }
 0x6d6   :  { %2621 = vmatprep.subr.bf16.mxu1 %v9808_v57  ;;  %2662 = vmatprep.subr.bf16.mxu0 %v9813_v60 }
 0x6d9   :  { %2622 = vmatpush1.bf16.msra.mxu1 %v9820_v61  ;;  %2663 = vmatpush1.bf16.msra.mxu0 %v9825_v63 }
 0x6da   :  { %2623 = vmatprep.subr.bf16.mxu1 %v9832_v1  ;;  %2664 = vmatprep.subr.bf16.mxu0 %v9837_v5 }
 0x6dd   :  { %2624 = vmatpush1.bf16.msra.mxu1 %v9844_v6  ;;  %2665 = vmatpush1.bf16.msra.mxu0 %v9849_v11 }
 0x6de   :  { %2625 = vmatprep.subr.bf16.mxu1 %v9856_v12  ;;  %2666 = vmatprep.subr.bf16.mxu0 %v9861_v14 }
 0x6e1   :  { %2626 = vmatpush1.bf16.msra.mxu1 %v9868_v15  ;;  %2667 = vmatpush1.bf16.msra.mxu0 %v9873_v16 }
 0x6e2   :  { %2627 = vmatprep.subr.bf16.mxu1 %v9880_v17  ;;  %2668 = vmatprep.subr.bf16.mxu0 %v9885_v18 }
 0x6e5   :  { %2628 = vmatpush1.bf16.msra.mxu1 %v9892_v19  ;;  %2669 = vmatpush1.bf16.msra.mxu0 %v9897_v20 }
 0x6e6   :  { %2629 = vmatprep.subr.bf16.mxu1 %v9904_v10  ;;  %2670 = vmatprep.subr.bf16.mxu0 %v9909_v21 }
 0x6e9   :  { %2630 = vmatpush1.bf16.msra.mxu1 %v9916_v22  ;;  %2671 = vmatpush1.bf16.msra.mxu0 %v9921_v23 }
 0x6ea   :  { %2729 = vmatprep.subr.bf16.mxu1 %v14050_v24  ;;  %2770 = vmatprep.subr.bf16.mxu0 %v14051_v25  ;;  %v10012_v24 = vld [vmem:[%s13420_s3 + $0x128] ss:$16 sps:$4 sm:$0xff]   ;;  %v10018_v25 = vld [vmem:[%s13420_s3 + $0x144] ss:$16 sps:$4 sm:$0xff]  }
 0x6eb   :  { %14074 = vst [vmem:[#allocation12_spill] sm:$0xff] %v10012_v24  ;;  %14075 = vst [vmem:[#allocation13_spill] sm:$0xff] %v10018_v25 }
 0x6ec   :  { %2648 = vmatmul.mubr.bf16.vlgmr.msra.gmra.mrb[32].mxu1 %v13884_v50  ;;  %2689 = vmatmul.mubr.bf16.vlgmr.msra.gmra.mrb[40].mxu0 %v13884_v50 }
 0x6ed   :  { %2730 = vmatpush1.bf16.msra.mxu1 %v9424_v8  ;;  %2771 = vmatpush1.bf16.msra.mxu0 %v9430_v31  ;;  %v14052_v8 = vld [vmem:[#allocation95_spill] sm:$0xff]  ;;  %v14053_v31 = vld [vmem:[#allocation96_spill] sm:$0xff] }
 0x6ee   :  { %2731 = vmatprep.subr.bf16.mxu1 %v9436_v51  ;;  %2772 = vmatprep.subr.bf16.mxu0 %v9442_v43  ;;  %v14054_v51 = vld [vmem:[#allocation97_spill] sm:$0xff]  ;;  %v14055_v43 = vld [vmem:[#allocation98_spill] sm:$0xff] }
 0x6ef   :  { %2761 = vmatprep.mubr.bf16.mxu1 %v13884_v50  ;;  %2802 = vmatprep.mubr.bf16.mxu0 %v13884_v50 }
 0x6f1   :  { %2732 = vmatpush1.bf16.msra.mxu1 %v9450_v45  ;;  %2773 = vmatpush1.bf16.msra.mxu0 %v9456_v2  ;;  %v14056_v45 = vld [vmem:[#allocation99_spill] sm:$0xff]  ;;  %v14057_v2 = vld [vmem:[#allocation100_spill] sm:$0xff] }
 0x6f2   :  { %2733 = vmatprep.subr.bf16.mxu1 %v9462_v44  ;;  %2774 = vmatprep.subr.bf16.mxu0 %v9468_v54  ;;  %v14058_v44 = vld [vmem:[#allocation101_spill] sm:$0xff]  ;;  %v14059_v54 = vld [vmem:[#allocation102_spill] sm:$0xff] }
 0x6f5   :  { %2734 = vmatpush1.bf16.msra.mxu1 %v9474_v42  ;;  %2775 = vmatpush1.bf16.msra.mxu0 %v9480_v0  ;;  %v14060_v42 = vld [vmem:[#allocation103_spill] sm:$0xff]  ;;  %v14061_v0 = vld [vmem:[#allocation104_spill] sm:$0xff] }
 0x6f6   :  { %2735 = vmatprep.subr.bf16.mxu1 %v9486_v9  ;;  %2776 = vmatprep.subr.bf16.mxu0 %v14052_v8  ;;  %v14062_v9 = vld [vmem:[#allocation105_spill] sm:$0xff]  ;;  %v10024_v8 = vld [vmem:[%s13420_s3 + $0x14c] ss:$16 sps:$4 sm:$0xff]  }
 0x6f7   :  { %14076 = vst [vmem:[#allocation14_spill] sm:$0xff] %v10024_v8 }
 0x6f9   :  { %2736 = vmatpush1.bf16.msra.mxu1 %v14053_v31  ;;  %2777 = vmatpush1.bf16.msra.mxu0 %v14054_v51  ;;  %v10030_v31 = vld [vmem:[%s13420_s3 + $0x140] ss:$16 sps:$4 sm:$0xff]   ;;  %v10036_v51 = vld [vmem:[%s13420_s3 + $0x148] ss:$16 sps:$4 sm:$0xff]  }
 0x6fa   :  { %2737 = vmatprep.subr.bf16.mxu1 %v14055_v43  ;;  %2778 = vmatprep.subr.bf16.mxu0 %v14056_v45  ;;  %14077 = vst [vmem:[#allocation15_spill] sm:$0xff] %v10030_v31  ;;  %14078 = vst [vmem:[#allocation16_spill] sm:$0xff] %v10036_v51  ;;  %v10042_v43 = vld [vmem:[%s13420_s3 + $0x164] ss:$16 sps:$4 sm:$0xff]   ;;  %v10048_v45 = vld [vmem:[%s13420_s3 + $0x16c] ss:$16 sps:$4 sm:$0xff]  }
 0x6fb   :  { %14079 = vst [vmem:[#allocation17_spill] sm:$0xff] %v10042_v43  ;;  %14080 = vst [vmem:[#allocation18_spill] sm:$0xff] %v10048_v45 }
 0x6fd   :  { %2738 = vmatpush1.bf16.msra.mxu1 %v14057_v2  ;;  %2779 = vmatpush1.bf16.msra.mxu0 %v14058_v44  ;;  %v10054_v2 = vld [vmem:[%s13420_s3 + $0x160] ss:$16 sps:$4 sm:$0xff]   ;;  %v10060_v44 = vld [vmem:[%s13420_s3 + $0x168] ss:$16 sps:$4 sm:$0xff]  }
 0x6fe   :  { %2739 = vmatprep.subr.bf16.mxu1 %v14059_v54  ;;  %2780 = vmatprep.subr.bf16.mxu0 %v14060_v42  ;;  %14081 = vst [vmem:[#allocation19_spill] sm:$0xff] %v10054_v2  ;;  %14082 = vst [vmem:[#allocation20_spill] sm:$0xff] %v10060_v44  ;;  %v10066_v54 = vld [vmem:[%s13420_s3 + $0x184] ss:$16 sps:$4 sm:$0xff]   ;;  %v10072_v42 = vld [vmem:[%s13420_s3 + $0x18c] ss:$16 sps:$4 sm:$0xff]  }
 0x6ff   :  { %14083 = vst [vmem:[#allocation21_spill] sm:$0xff] %v10066_v54  ;;  %14084 = vst [vmem:[#allocation22_spill] sm:$0xff] %v10072_v42 }
 0x701   :  { %2740 = vmatpush1.bf16.msra.mxu1 %v14061_v0  ;;  %2781 = vmatpush1.bf16.msra.mxu0 %v14062_v9  ;;  %v10078_v0 = vld [vmem:[%s13420_s3 + $0x180] ss:$16 sps:$4 sm:$0xff]   ;;  %v10084_v9 = vld [vmem:[%s13420_s3 + $0x188] ss:$16 sps:$4 sm:$0xff]  }
 0x702   :  { %2741 = vmatprep.subr.bf16.mxu1 %v14063_v27  ;;  %2782 = vmatprep.subr.bf16.mxu0 %v14064_v28  ;;  %14085 = vst [vmem:[#allocation23_spill] sm:$0xff] %v10078_v0  ;;  %14086 = vst [vmem:[#allocation24_spill] sm:$0xff] %v10084_v9  ;;  %v10090_v27 = vld [vmem:[%s13420_s3 + $0x1a4] ss:$16 sps:$4 sm:$0xff]   ;;  %v10096_v28 = vld [vmem:[%s13420_s3 + $0x1ac] ss:$16 sps:$4 sm:$0xff]  }
 0x703   :  { %14087 = vst [vmem:[#allocation25_spill] sm:$0xff] %v10090_v27  ;;  %14088 = vst [vmem:[#allocation26_spill] sm:$0xff] %v10096_v28 }
 0x705   :  { %2742 = vmatpush1.bf16.msra.mxu1 %v14065_v29  ;;  %2783 = vmatpush1.bf16.msra.mxu0 %v14066_v34  ;;  %v10102_v29 = vld [vmem:[%s13420_s3 + $0x1a0] ss:$16 sps:$4 sm:$0xff]   ;;  %v10108_v34 = vld [vmem:[%s13420_s3 + $0x1a8] ss:$16 sps:$4 sm:$0xff]  }
 0x706   :  { %2743 = vmatprep.subr.bf16.mxu1 %v9582_v7  ;;  %2784 = vmatprep.subr.bf16.mxu0 %v9588_v30  ;;  %v9980_v30 = vld [vmem:[%s13420_s3 + $0x100] ss:$16 sps:$4 sm:$0xff]   ;;  %v9998_v7 = vld [vmem:[%s13420_s3 + $0x12c] ss:$16 sps:$4 sm:$0xff]   ;;  %14089 = vst [vmem:[#allocation27_spill] sm:$0xff] %v10102_v29  ;;  %14090 = vst [vmem:[#allocation28_spill] sm:$0xff] %v10108_v34 }
 0x707   :  { %14069 = vst [vmem:[#allocation43_spill] sm:$0xff] %v9980_v30  ;;  %14072 = vst [vmem:[#allocation10_spill] sm:$0xff] %v9998_v7 }
 0x709   :  { %2744 = vmatpush1.bf16.msra.mxu1 %v9594_v49  ;;  %2785 = vmatpush1.bf16.msra.mxu0 %v9600_v47  ;;  %v9986_v49 = vld [vmem:[%s13420_s3 + $0x108] ss:$16 sps:$4 sm:$0xff]   ;;  %v9992_v47 = vld [vmem:[%s13420_s3 + $0x124] ss:$16 sps:$4 sm:$0xff]  }
 0x70a   :  { %2840 = vmatprep.subr.bf16.mxu1 %v9966_v56  ;;  %2881 = vmatprep.subr.bf16.mxu0 %v9972_v55  ;;  %14070 = vst [vmem:[#allocation44_spill] sm:$0xff] %v9986_v49  ;;  %14071 = vst [vmem:[#allocation9_spill] sm:$0xff] %v9992_v47 }
 0x70c   :  { %2762 = vmatmul.mubr.bf16.vlgmr.msra.gmra.mrb[48].mxu1 %v9649_v53  ;;  %2803 = vmatmul.mubr.bf16.vlgmr.msra.gmra.mrb[56].mxu0 %v9649_v53  ;;  %v10006_v53 = vld [vmem:[%s13420_s3 + $0x120] ss:$16 sps:$4 sm:$0xff]  }
 0x70d   :  { %2841 = vmatpush1.bf16.msra.mxu1 %v9980_v30  ;;  %2882 = vmatpush1.bf16.msra.mxu0 %v9986_v49  ;;  %14073 = vst [vmem:[#allocation11_spill] sm:$0xff] %v10006_v53  ;;  %v14109_v49 = vld [vmem:[#allocation47_spill] sm:$0xff] }
 0x70e   :  { %2842 = vmatprep.subr.bf16.mxu1 %v9992_v47  ;;  %2883 = vmatprep.subr.bf16.mxu0 %v9998_v7  ;;  %v14108_v47 = vld [vmem:[#allocation46_spill] sm:$0xff] }
 0x70f   :  { %2872 = vmatprep.mubr.bf16.mxu1 %v13884_v50  ;;  %2913 = vmatprep.mubr.bf16.mxu0 %v13884_v50 }
 0x711   :  { %2843 = vmatpush1.bf16.msra.mxu1 %v10006_v53  ;;  %2884 = vmatpush1.bf16.msra.mxu0 %v10012_v24  ;;  %v14105_v24 = vld [vmem:[#allocation36_spill] sm:$0xff] }
 0x712   :  { %2844 = vmatprep.subr.bf16.mxu1 %v10018_v25  ;;  %2885 = vmatprep.subr.bf16.mxu0 %v10024_v8 }
 0x715   :  { %2845 = vmatpush1.bf16.msra.mxu1 %v10030_v31  ;;  %2886 = vmatpush1.bf16.msra.mxu0 %v10036_v51 }
 0x716   :  { %2846 = vmatprep.subr.bf16.mxu1 %v10042_v43  ;;  %2887 = vmatprep.subr.bf16.mxu0 %v10048_v45 }
 0x719   :  { %2847 = vmatpush1.bf16.msra.mxu1 %v10054_v2  ;;  %2888 = vmatpush1.bf16.msra.mxu0 %v10060_v44 }
 0x71a   :  { %2848 = vmatprep.subr.bf16.mxu1 %v10066_v54  ;;  %2889 = vmatprep.subr.bf16.mxu0 %v10072_v42 }
 0x71d   :  { %2849 = vmatpush1.bf16.msra.mxu1 %v10078_v0  ;;  %2890 = vmatpush1.bf16.msra.mxu0 %v10084_v9  ;;  %v14103_v0 = vld [vmem:[#allocation35_spill] sm:$0xff] }
 0x71e   :  { %2850 = vmatprep.subr.bf16.mxu1 %v10090_v27  ;;  %2891 = vmatprep.subr.bf16.mxu0 %v10096_v28  ;;  %v10114_v27 = vld [vmem:[%s13420_s3 + $0x1c4] ss:$16 sps:$4 sm:$0xff]   ;;  %v10120_v28 = vld [vmem:[%s13420_s3 + $0x1cc] ss:$16 sps:$4 sm:$0xff]  }
 0x71f   :  { %14091 = vst [vmem:[#allocation29_spill] sm:$0xff] %v10114_v27  ;;  %14092 = vst [vmem:[#allocation30_spill] sm:$0xff] %v10120_v28 }
 0x721   :  { %2851 = vmatpush1.bf16.msra.mxu1 %v10102_v29  ;;  %2892 = vmatpush1.bf16.msra.mxu0 %v10108_v34  ;;  %v10126_v29 = vld [vmem:[%s13420_s3 + $0x1c0] ss:$16 sps:$4 sm:$0xff]   ;;  %v10132_v34 = vld [vmem:[%s13420_s3 + $0x1c8] ss:$16 sps:$4 sm:$0xff]  }
 0x722   :  { %2852 = vmatprep.subr.bf16.mxu1 %v10114_v27  ;;  %2893 = vmatprep.subr.bf16.mxu0 %v10120_v28  ;;  %14093 = vst [vmem:[#allocation31_spill] sm:$0xff] %v10126_v29  ;;  %14094 = vst [vmem:[#allocation32_spill] sm:$0xff] %v10132_v34  ;;  %v10138_v27 = vld [vmem:[%s13420_s3 + $0x1e4] ss:$16 sps:$4 sm:$0xff]   ;;  %v10144_v28 = vld [vmem:[%s13420_s3 + $0x1ec] ss:$16 sps:$4 sm:$0xff]  }
 0x723   :  { %14095 = vst [vmem:[#allocation37_spill] sm:$0xff] %v10138_v27  ;;  %14096 = vst [vmem:[#allocation38_spill] sm:$0xff] %v10144_v28 }
 0x725   :  { %2853 = vmatpush1.bf16.msra.mxu1 %v10126_v29  ;;  %2894 = vmatpush1.bf16.msra.mxu0 %v10132_v34  ;;  %v10150_v29 = vld [vmem:[%s13420_s3 + $0x1e0] ss:$16 sps:$4 sm:$0xff]   ;;  %v10156_v34 = vld [vmem:[%s13420_s3 + $0x1e8] ss:$16 sps:$4 sm:$0xff]  }
 0x726   :  { %2854 = vmatprep.subr.bf16.mxu1 %v10138_v27  ;;  %2895 = vmatprep.subr.bf16.mxu0 %v10144_v28  ;;  %14097 = vst [vmem:[#allocation39_spill] sm:$0xff] %v10150_v29  ;;  %14098 = vst [vmem:[#allocation40_spill] sm:$0xff] %v10156_v34  ;;  %v10162_v27 = vld [vmem:[%s13421_s4 + $0x104] ss:$16 sps:$4 sm:$0xff]   ;;  %v10168_v28 = vld [vmem:[%s13421_s4 + $0x10c] ss:$16 sps:$4 sm:$0xff]  }
 0x727   :  { %14099 = vst [vmem:[#allocation65_spill] sm:$0xff] %v10162_v27  ;;  %14100 = vst [vmem:[#allocation66_spill] sm:$0xff] %v10168_v28 }
 0x729   :  { %2855 = vmatpush1.bf16.msra.mxu1 %v10150_v29  ;;  %2896 = vmatpush1.bf16.msra.mxu0 %v10156_v34  ;;  %v10174_v29 = vld [vmem:[%s13422_s5 + $0x8] sm:$0xf]  ;;  %v14101_v34 = vld [vmem:[#allocation33_spill] sm:$0xff] }
 0x72a   :  { %2922 = vmatprep.subr.bf16.mxu1 %v10162_v27  ;;  %2963 = vmatprep.subr.bf16.mxu0 %v10168_v28  ;;  %v10178_v9 = vrot.slane %v10174_v29, %v14101_v34  ;;  %v10182_v42 = vrot.slane %v10174_v29, %v14103_v0  ;;  %v10190_v0 = vrot.slane %v10174_v29, %v14105_v24  ;;  %v14107_v24 = vld [vmem:[#allocation45_spill] sm:$0xff] }
 0x72c   :  { %14102 = vst [vmem:[#allocation67_spill] sm:$0xff] %v10178_v9  ;;  %14104 = vst [vmem:[#allocation68_spill] sm:$0xff] %v10182_v42 }
 0x72d   :  { %14106 = vst [vmem:[#allocation69_spill] sm:$0xff] %v10190_v0 }
 0x7bf   :  { %v2649_v27 = vpop.f32.mrb[32].mxu1  ;;  %v10184_v54 = vpop.f32.mrb[40].mxu0 }
 0x7c0   :  { %v6815_v44 = vadd.f32 %v2649_v27, %v10178_v9  ;;  %v2651_v2 = vpop.f32.mrb[33].mxu1  ;;  %v2692_v28 = vpop.f32.mrb[41].mxu0 }
 0x7c1   :  { %v6816_v45 = vadd.f32 %v2651_v2, %v10182_v42  ;;  %v2653_v43 = vpop.f32.mrb[34].mxu1  ;;  %v2694_v51 = vpop.f32.mrb[42].mxu0  ;;  %v6818_v53 = vadd.f32 %v2692_v28, %v10190_v0 }
 0x7c2   :  { %v6445_v31 = vmul.f32 -1.442695, %v6815_v44  ;;  %v2654_v8 = vpop.f32.mrb[35].mxu1  ;;  %v2695_v25 = vpop.f32.mrb[43].mxu0 }
 0x7c3   :  { %v6446_v34 = vmul.f32 -1.442695, %v6816_v45 }
 0x7c4   :  { %7397 = vpow2.f32 %v6445_v31 }
 0x7c5   :  { %7399 = vpow2.f32 %v6446_v34 }
 0x7c6   :  { %7401 = vtanh.f32 %v6818_v53 }
 0x7ce   :  { %v7398_v7 = vpop.eup %7397 }
 0x7cf   :  { %v2710_v27 = vadd.f32 1.0, %v7398_v7  ;;  %v7400_v9 = vpop.eup %7399 }
 0x7d0   :  { %v2711_v2 = vadd.f32 1.0, %v7400_v9  ;;  %v7402_v51 = vpop.eup %7401 }
 0x7d1   :  { %7403 = vrcp.f32 %v2710_v27  ;;  %v14110_v27 = vld [vmem:[#allocation48_spill] sm:$0xff] }
 0x7d2   :  { %7405 = vrcp.f32 %v2711_v2 }
 0x7db   :  { %v7404_v43 = vpop.eup %7403 }
 0x7dc   :  { %v2721_v8 = vmul.f32 %v7404_v43, %v7402_v51  ;;  %v7406_v25 = vpop.eup %7405 }
 0x7dd   :  { %v2720_v45 = vmul.f32 0.0, %v7406_v25 }
 0x7df   :  { %v2763_v31 = vpop.f32.mrb[48].mxu1  ;;  %v2804_v44 = vpop.f32.mrb[56].mxu0  ;;  %v10193_v34 = vadd.f32 %v2721_v8, %v2720_v45 }
 0x7e0   :  { %v2811_v42 = vadd.f32 %v2763_v31, %v14107_v24  ;;  %v2813_v28 = vadd.f32 %v2804_v44, %v14108_v47  ;;  %v2765_v0 = vpop.f32.mrb[49].mxu1  ;;  %v2806_v7 = vpop.f32.mrb[57].mxu0 }
 0x7e1   :  { %v2812_v53 = vadd.f32 %v2765_v0, %v14109_v49  ;;  %v2814_v9 = vadd.f32 %v2806_v7, %v14110_v27  ;;  %v2767_v2 = vpop.f32.mrb[50].mxu1  ;;  %v2808_v30 = vpop.f32.mrb[58].mxu0 }
 0x7e2   :  { %v6448_v55 = vmul.f32 -1.442695, %v2811_v42  ;;  %v2768_v51 = vpop.f32.mrb[51].mxu1  ;;  %v2809_v43 = vpop.f32.mrb[59].mxu0  ;;  %v6450_v8 = vmul.f32 -1.442695, %v2813_v28 }
 0x7e3   :  { %v6449_v25 = vmul.f32 -1.442695, %v2812_v53  ;;  %v10222_v2 = vld [vmem:[%s13421_s4 + $0x124] ss:$16 sps:$4 sm:$0xff]   ;;  %v10228_v51 = vld [vmem:[%s13421_s4 + $0x12c] ss:$16 sps:$4 sm:$0xff]  }
 0x7e4   :  { %7407 = vpow2.f32 %v6448_v55  ;;  %v10236_v43 = vld [vmem:[%s13421_s4 + $0x120] ss:$16 sps:$4 sm:$0xff]  }
 0x7e5   :  { %7409 = vpow2.f32 %v6449_v25  ;;  %v10242_v25 = vld [vmem:[%s13421_s4 + $0x128] ss:$16 sps:$4 sm:$0xff]  }
 0x7e6   :  { %7411 = vtanh.f32 %v2814_v9 }
 0x7e7   :  { %7413 = vpow2.f32 %v6450_v8  ;;  %v10248_v8 = vld [vmem:[%s13421_s4 + $0x144] ss:$16 sps:$4 sm:$0xff]  }
 0x7e8   :  { %14111 = vst [vmem:[#allocation70_spill] sm:$0xff] %v10248_v8 }
 0x7ee   :  { %v7408_v45 = vpop.eup %7407 }
 0x7ef   :  { %v2824_v56 = vadd.f32 1.0, %v7408_v45  ;;  %v7410_v31 = vpop.eup %7409  ;;  %v10254_v45 = vld [vmem:[%s13421_s4 + $0x14c] ss:$16 sps:$4 sm:$0xff]  }
 0x7f0   :  { %v2825_v47 = vadd.f32 1.0, %v7410_v31  ;;  %v7412_v49 = vpop.eup %7411  ;;  %14112 = vst [vmem:[#allocation71_spill] sm:$0xff] %v10254_v45  ;;  %v10260_v31 = vld [vmem:[%s13421_s4 + $0x140] ss:$16 sps:$4 sm:$0xff]  }
 0x7f1   :  { %7415 = vrcp.f32 %v2824_v56  ;;  %v7414_v0 = vpop.eup %7413  ;;  %v10210_v56 = vld [vmem:[%s13421_s4 + $0x100] ss:$16 sps:$4 sm:$0xff]   ;;  %14113 = vst [vmem:[#allocation72_spill] sm:$0xff] %v10260_v31 }
 0x7f2   :  { %7417 = vrcp.f32 %v2825_v47  ;;  %v2826_v42 = vadd.f32 1.0, %v7414_v0  ;;  %v10266_v47 = vld [vmem:[%s13421_s4 + $0x148] ss:$16 sps:$4 sm:$0xff]   ;;  %v10278_v0 = vld [vmem:[%s13421_s4 + $0x16c] ss:$16 sps:$4 sm:$0xff]  }
 0x7f3   :  { %14114 = vst [vmem:[#allocation73_spill] sm:$0xff] %v10266_v47  ;;  %14116 = vst [vmem:[#allocation75_spill] sm:$0xff] %v10278_v0 }
 0x7f4   :  { %7419 = vrcp.f32 %v2826_v42  ;;  %v10302_v42 = vld [vmem:[%s13421_s4 + $0x18c] ss:$16 sps:$4 sm:$0xff]  }
 0x7f5   :  { %14120 = vst [vmem:[#allocation79_spill] sm:$0xff] %v10302_v42 }
 0x7fb   :  { %v7416_v44 = vpop.eup %7415 }
 0x7fc   :  { %v2835_v24 = vmul.f32 %v7416_v44, %v7412_v49  ;;  %v7418_v30 = vpop.eup %7417  ;;  %v10272_v49 = vld [vmem:[%s13421_s4 + $0x164] ss:$16 sps:$4 sm:$0xff]   ;;  %v10284_v44 = vld [vmem:[%s13421_s4 + $0x160] ss:$16 sps:$4 sm:$0xff]  }
 0x7fd   :  { %v2834_v7 = vmul.f32 %v7418_v30, %v9646_v26  ;;  %v10216_v26 = vld [vmem:[%s13421_s4 + $0x108] ss:$16 sps:$4 sm:$0xff]   ;;  %14115 = vst [vmem:[#allocation74_spill] sm:$0xff] %v10272_v49  ;;  %14117 = vst [vmem:[#allocation76_spill] sm:$0xff] %v10284_v44  ;;  %v10296_v30 = vld [vmem:[%s13421_s4 + $0x184] ss:$16 sps:$4 sm:$0xff]  }
 0x7fe   :  { %v7420_v55 = vpop.eup %7419  ;;  %14119 = vst [vmem:[#allocation78_spill] sm:$0xff] %v10296_v30 }
 0x7ff   :  { %v10200_v53 = vadd.f32 %v2835_v24, %v2834_v7  ;;  %v10290_v24 = vld [vmem:[%s13421_s4 + $0x168] ss:$16 sps:$4 sm:$0xff]   ;;  %v10308_v7 = vld [vmem:[%s13421_s4 + $0x180] ss:$16 sps:$4 sm:$0xff]  }
 0x800   :  { %14118 = vst [vmem:[#allocation77_spill] sm:$0xff] %v10290_v24  ;;  %14121 = vst [vmem:[#allocation80_spill] sm:$0xff] %v10308_v7 }
 0x801   :  { %7421 = vtanh.f32 %v10200_v53 }
 0x80b   :  { %v7422_v28 = vpop.eup %7421 }
 0x80c   :  { %v2838_v27 = vmul.f32 %v7422_v28, %v7420_v55  ;;  %v10314_v55 = vld [vmem:[%s13421_s4 + $0x188] ss:$16 sps:$4 sm:$0xff]   ;;  %v10320_v28 = vld [vmem:[%s13421_s4 + $0x1a4] ss:$16 sps:$4 sm:$0xff]  }
 0x80d   :  { %14122 = vst [vmem:[#allocation81_spill] sm:$0xff] %v10314_v55  ;;  %14123 = vst [vmem:[#allocation82_spill] sm:$0xff] %v10320_v28 }
 0x80e   :  { %v10203_v9 = vpack.c.bf16 %v2838_v27, %v2838_v27  ;;  %v10326_v27 = vld [vmem:[%s13421_s4 + $0x1ac] ss:$16 sps:$4 sm:$0xff]  }
 0x80f   :  { %14124 = vst [vmem:[#allocation83_spill] sm:$0xff] %v10326_v27 }
 0x810   :  { %2873 = vmatmul.mubr.bf16.vlgmr.msra.gmra.mrb[52].mxu1 %v10203_v9  ;;  %2914 = vmatmul.mubr.bf16.vlgmr.msra.gmra.mrb[60].mxu0 %v10203_v9 }
 0x811   :  { %2923 = vmatpush1.bf16.msra.mxu1 %v10210_v56  ;;  %2964 = vmatpush1.bf16.msra.mxu0 %v10216_v26 }
 0x812   :  { %2924 = vmatprep.subr.bf16.mxu1 %v10222_v2  ;;  %2965 = vmatprep.subr.bf16.mxu0 %v10228_v51 }
 0x813   :  { %2954 = vmatprep.mubr.bf16.mxu1 %v13884_v50  ;;  %2995 = vmatprep.mubr.bf16.mxu0 %v13884_v50 }
 0x815   :  { %2925 = vmatpush1.bf16.msra.mxu1 %v10236_v43  ;;  %2966 = vmatpush1.bf16.msra.mxu0 %v10242_v25 }
 0x816   :  { %2926 = vmatprep.subr.bf16.mxu1 %v10248_v8  ;;  %2967 = vmatprep.subr.bf16.mxu0 %v10254_v45 }
 0x819   :  { %2927 = vmatpush1.bf16.msra.mxu1 %v10260_v31  ;;  %2968 = vmatpush1.bf16.msra.mxu0 %v10266_v47 }
 0x81a   :  { %2928 = vmatprep.subr.bf16.mxu1 %v10272_v49  ;;  %2969 = vmatprep.subr.bf16.mxu0 %v10278_v0 }
 0x81d   :  { %2929 = vmatpush1.bf16.msra.mxu1 %v10284_v44  ;;  %2970 = vmatpush1.bf16.msra.mxu0 %v10290_v24 }
 0x81e   :  { %2930 = vmatprep.subr.bf16.mxu1 %v10296_v30  ;;  %2971 = vmatprep.subr.bf16.mxu0 %v10302_v42 }
 0x821   :  { %2931 = vmatpush1.bf16.msra.mxu1 %v10308_v7  ;;  %2972 = vmatpush1.bf16.msra.mxu0 %v10314_v55  ;;  %v10332_v7 = vld [vmem:[%s13421_s4 + $0x1a0] ss:$16 sps:$4 sm:$0xff]   ;;  %v10338_v55 = vld [vmem:[%s13421_s4 + $0x1a8] ss:$16 sps:$4 sm:$0xff]  }
 0x822   :  { %2932 = vmatprep.subr.bf16.mxu1 %v10320_v28  ;;  %2973 = vmatprep.subr.bf16.mxu0 %v10326_v27  ;;  %14125 = vst [vmem:[#allocation84_spill] sm:$0xff] %v10332_v7  ;;  %14126 = vst [vmem:[#allocation85_spill] sm:$0xff] %v10338_v55  ;;  %v10344_v28 = vld [vmem:[%s13421_s4 + $0x1c4] ss:$16 sps:$4 sm:$0xff]   ;;  %v10350_v27 = vld [vmem:[%s13421_s4 + $0x1cc] ss:$16 sps:$4 sm:$0xff]  }
 0x823   :  { %14127 = vst [vmem:[#allocation86_spill] sm:$0xff] %v10344_v28  ;;  %14128 = vst [vmem:[#allocation87_spill] sm:$0xff] %v10350_v27 }
 0x825   :  { %2933 = vmatpush1.bf16.msra.mxu1 %v10332_v7  ;;  %2974 = vmatpush1.bf16.msra.mxu0 %v10338_v55  ;;  %v10356_v7 = vld [vmem:[%s13421_s4 + $0x1c0] ss:$16 sps:$4 sm:$0xff]   ;;  %v10362_v55 = vld [vmem:[%s13421_s4 + $0x1c8] ss:$16 sps:$4 sm:$0xff]  }
 0x826   :  { %2934 = vmatprep.subr.bf16.mxu1 %v10344_v28  ;;  %2975 = vmatprep.subr.bf16.mxu0 %v10350_v27  ;;  %14129 = vst [vmem:[#allocation88_spill] sm:$0xff] %v10356_v7  ;;  %14130 = vst [vmem:[#allocation89_spill] sm:$0xff] %v10362_v55  ;;  %v10368_v28 = vld [vmem:[%s13421_s4 + $0x1e4] ss:$16 sps:$4 sm:$0xff]   ;;  %v10374_v27 = vld [vmem:[%s13421_s4 + $0x1ec] ss:$16 sps:$4 sm:$0xff]  }
 0x827   :  { %14131 = vst [vmem:[#allocation90_spill] sm:$0xff] %v10368_v28  ;;  %14132 = vst [vmem:[#allocation91_spill] sm:$0xff] %v10374_v27 }
 0x829   :  { %2935 = vmatpush1.bf16.msra.mxu1 %v10356_v7  ;;  %2976 = vmatpush1.bf16.msra.mxu0 %v10362_v55  ;;  %v10380_v7 = vld [vmem:[%s13421_s4 + $0x1e0] ss:$16 sps:$4 sm:$0xff]   ;;  %v10386_v55 = vld [vmem:[%s13421_s4 + $0x1e8] ss:$16 sps:$4 sm:$0xff]  }
 0x82a   :  { %2936 = vmatprep.subr.bf16.mxu1 %v10368_v28  ;;  %2977 = vmatprep.subr.bf16.mxu0 %v10374_v27  ;;  %14133 = vst [vmem:[#allocation94_spill] sm:$0xff] %v10380_v7  ;;  %14134 = vst [vmem:[#allocation92_spill] sm:$0xff] %v10386_v55  ;;  %v10392_v28 = vld [vmem:[%s13420_s3 + $0x204] ss:$16 sps:$4 sm:$0xff]   ;;  %v10398_v27 = vld [vmem:[%s13420_s3 + $0x20c] ss:$16 sps:$4 sm:$0xff]  }
 0x82b   :  { %14135 = vst [vmem:[#allocation93_spill] sm:$0xff] %v10392_v28  ;;  %14136 = vst [vmem:[#allocation95_spill] sm:$0xff] %v10398_v27 }
 0x82d   :  { %2937 = vmatpush1.bf16.msra.mxu1 %v10380_v7  ;;  %2978 = vmatpush1.bf16.msra.mxu0 %v10386_v55  ;;  %v10406_v55 = vld [vmem:[%s13420_s3 + $0x200] ss:$16 sps:$4 sm:$0xff]  }
 0x82e   :  { %3033 = vmatprep.subr.bf16.mxu1 %v10392_v28  ;;  %3074 = vmatprep.subr.bf16.mxu0 %v10398_v27  ;;  %14137 = vst [vmem:[#allocation96_spill] sm:$0xff] %v10406_v55  ;;  %v10412_v28 = vld [vmem:[%s13420_s3 + $0x208] ss:$16 sps:$4 sm:$0xff]   ;;  %v10418_v27 = vld [vmem:[%s13420_s3 + $0x224] ss:$16 sps:$4 sm:$0xff]  }
 0x82f   :  { %14138 = vst [vmem:[#allocation97_spill] sm:$0xff] %v10412_v28  ;;  %14139 = vst [vmem:[#allocation98_spill] sm:$0xff] %v10418_v27 }
 0x830   :  { %2955 = vmatmul.mubr.bf16.vlgmr.msra.gmra.mrb[40].mxu1 %v9751_v35  ;;  %2996 = vmatmul.mubr.bf16.vlgmr.msra.gmra.mrb[48].mxu0 %v9751_v35  ;;  %v10424_v35 = vld [vmem:[%s13420_s3 + $0x22c] ss:$16 sps:$4 sm:$0xff]  }
 0x831   :  { %3034 = vmatpush1.bf16.msra.mxu1 %v10406_v55  ;;  %3075 = vmatpush1.bf16.msra.mxu0 %v10412_v28  ;;  %14140 = vst [vmem:[#allocation99_spill] sm:$0xff] %v10424_v35  ;;  %v10432_v28 = vld [vmem:[%s13420_s3 + $0x220] ss:$16 sps:$4 sm:$0xff]   ;;  %v10450_v55 = vld [vmem:[%s13420_s3 + $0x24c] ss:$16 sps:$4 sm:$0xff]  }
 0x832   :  { %3035 = vmatprep.subr.bf16.mxu1 %v10418_v27  ;;  %3076 = vmatprep.subr.bf16.mxu0 %v10424_v35  ;;  %14141 = vst [vmem:[#allocation100_spill] sm:$0xff] %v10432_v28  ;;  %v10438_v27 = vld [vmem:[%s13420_s3 + $0x228] ss:$16 sps:$4 sm:$0xff]   ;;  %v10444_v35 = vld [vmem:[%s13420_s3 + $0x244] ss:$16 sps:$4 sm:$0xff]   ;;  %14144 = vst [vmem:[#allocation103_spill] sm:$0xff] %v10450_v55 }
 0x833   :  { %3065 = vmatprep.mubr.bf16.mxu1 %v13884_v50  ;;  %3106 = vmatprep.mubr.bf16.mxu0 %v13884_v50  ;;  %14142 = vst [vmem:[#allocation101_spill] sm:$0xff] %v10438_v27  ;;  %14143 = vst [vmem:[#allocation102_spill] sm:$0xff] %v10444_v35 }
 0x835   :  { %3036 = vmatpush1.bf16.msra.mxu1 %v10432_v28  ;;  %3077 = vmatpush1.bf16.msra.mxu0 %v10438_v27  ;;  %v10456_v28 = vld [vmem:[%s13420_s3 + $0x240] ss:$16 sps:$4 sm:$0xff]   ;;  %v10462_v27 = vld [vmem:[%s13420_s3 + $0x248] ss:$16 sps:$4 sm:$0xff]  }
 0x836   :  { %3037 = vmatprep.subr.bf16.mxu1 %v10444_v35  ;;  %3078 = vmatprep.subr.bf16.mxu0 %v10450_v55  ;;  %14145 = vst [vmem:[#allocation104_spill] sm:$0xff] %v10456_v28  ;;  %14146 = vst [vmem:[#allocation105_spill] sm:$0xff] %v10462_v27  ;;  %v10468_v35 = vld [vmem:[%s13420_s3 + $0x264] ss:$16 sps:$4 sm:$0xff]   ;;  %v10474_v55 = vld [vmem:[%s13420_s3 + $0x26c] ss:$16 sps:$4 sm:$0xff]  }
 0x837   :  { %14147 = vst [vmem:[#allocation106_spill] sm:$0xff] %v10468_v35  ;;  %14148 = vst [vmem:[#allocation107_spill] sm:$0xff] %v10474_v55 }
 0x839   :  { %3038 = vmatpush1.bf16.msra.mxu1 %v10456_v28  ;;  %3079 = vmatpush1.bf16.msra.mxu0 %v10462_v27  ;;  %v10480_v28 = vld [vmem:[%s13420_s3 + $0x260] ss:$16 sps:$4 sm:$0xff]   ;;  %v10486_v27 = vld [vmem:[%s13420_s3 + $0x268] ss:$16 sps:$4 sm:$0xff]  }
 0x83a   :  { %3039 = vmatprep.subr.bf16.mxu1 %v10468_v35  ;;  %3080 = vmatprep.subr.bf16.mxu0 %v10474_v55  ;;  %14149 = vst [vmem:[#allocation108_spill] sm:$0xff] %v10480_v28  ;;  %14150 = vst [vmem:[#allocation109_spill] sm:$0xff] %v10486_v27  ;;  %v10492_v35 = vld [vmem:[%s13420_s3 + $0x284] ss:$16 sps:$4 sm:$0xff]   ;;  %v10498_v55 = vld [vmem:[%s13420_s3 + $0x28c] ss:$16 sps:$4 sm:$0xff]  }
 0x83b   :  { %14151 = vst [vmem:[#allocation33_spill] sm:$0xff] %v10492_v35  ;;  %14152 = vst [vmem:[#allocation35_spill] sm:$0xff] %v10498_v55 }
 0x83d   :  { %3040 = vmatpush1.bf16.msra.mxu1 %v10480_v28  ;;  %3081 = vmatpush1.bf16.msra.mxu0 %v10486_v27  ;;  %v10504_v28 = vld [vmem:[%s13420_s3 + $0x280] ss:$16 sps:$4 sm:$0xff]   ;;  %v10510_v27 = vld [vmem:[%s13420_s3 + $0x288] ss:$16 sps:$4 sm:$0xff]  }
 0x83e   :  { %3041 = vmatprep.subr.bf16.mxu1 %v10492_v35  ;;  %3082 = vmatprep.subr.bf16.mxu0 %v10498_v55  ;;  %14153 = vst [vmem:[#allocation36_spill] sm:$0xff] %v10504_v28  ;;  %14154 = vst [vmem:[#allocation45_spill] sm:$0xff] %v10510_v27  ;;  %v10516_v35 = vld [vmem:[%s13420_s3 + $0x2a4] ss:$16 sps:$4 sm:$0xff]   ;;  %v10522_v55 = vld [vmem:[%s13420_s3 + $0x2ac] ss:$16 sps:$4 sm:$0xff]  }
 0x83f   :  { %14155 = vst [vmem:[#allocation46_spill] sm:$0xff] %v10516_v35  ;;  %14156 = vst [vmem:[#allocation47_spill] sm:$0xff] %v10522_v55 }
 0x841   :  { %3042 = vmatpush1.bf16.msra.mxu1 %v10504_v28  ;;  %3083 = vmatpush1.bf16.msra.mxu0 %v10510_v27  ;;  %v10528_v28 = vld [vmem:[%s13420_s3 + $0x2a0] ss:$16 sps:$4 sm:$0xff]   ;;  %v10534_v27 = vld [vmem:[%s13420_s3 + $0x2a8] ss:$16 sps:$4 sm:$0xff]  }
 0x842   :  { %3043 = vmatprep.subr.bf16.mxu1 %v10516_v35  ;;  %3084 = vmatprep.subr.bf16.mxu0 %v10522_v55  ;;  %14157 = vst [vmem:[#allocation48_spill] sm:$0xff] %v10528_v28  ;;  %14158 = vst [vmem:[#allocation110_spill] sm:$0xff] %v10534_v27  ;;  %v10540_v35 = vld [vmem:[%s13420_s3 + $0x2c4] ss:$16 sps:$4 sm:$0xff]   ;;  %v10546_v55 = vld [vmem:[%s13420_s3 + $0x2cc] ss:$16 sps:$4 sm:$0xff]  }
 0x843   :  { %14159 = vst [vmem:[#allocation111_spill] sm:$0xff] %v10540_v35  ;;  %14160 = vst [vmem:[#allocation112_spill] sm:$0xff] %v10546_v55 }
 0x845   :  { %3044 = vmatpush1.bf16.msra.mxu1 %v10528_v28  ;;  %3085 = vmatpush1.bf16.msra.mxu0 %v10534_v27  ;;  %v10552_v28 = vld [vmem:[%s13420_s3 + $0x2c0] ss:$16 sps:$4 sm:$0xff]   ;;  %v10558_v27 = vld [vmem:[%s13420_s3 + $0x2c8] ss:$16 sps:$4 sm:$0xff]  }
 0x846   :  { %3045 = vmatprep.subr.bf16.mxu1 %v10540_v35  ;;  %3086 = vmatprep.subr.bf16.mxu0 %v10546_v55  ;;  %14161 = vst [vmem:[#allocation113_spill] sm:$0xff] %v10552_v28  ;;  %14162 = vst [vmem:[#allocation114_spill] sm:$0xff] %v10558_v27  ;;  %v10564_v35 = vld [vmem:[%s13420_s3 + $0x2e4] ss:$16 sps:$4 sm:$0xff]   ;;  %v10570_v55 = vld [vmem:[%s13420_s3 + $0x2ec] ss:$16 sps:$4 sm:$0xff]  }
 0x847   :  { %14163 = vst [vmem:[#allocation115_spill] sm:$0xff] %v10564_v35  ;;  %14164 = vst [vmem:[#allocation116_spill] sm:$0xff] %v10570_v55 }
 0x849   :  { %3046 = vmatpush1.bf16.msra.mxu1 %v10552_v28  ;;  %3087 = vmatpush1.bf16.msra.mxu0 %v10558_v27  ;;  %v10576_v28 = vld [vmem:[%s13420_s3 + $0x2e0] ss:$16 sps:$4 sm:$0xff]   ;;  %v10582_v27 = vld [vmem:[%s13420_s3 + $0x2e8] ss:$16 sps:$4 sm:$0xff]  }
 0x84a   :  { %3047 = vmatprep.subr.bf16.mxu1 %v10564_v35  ;;  %3088 = vmatprep.subr.bf16.mxu0 %v10570_v55  ;;  %14165 = vst [vmem:[#allocation117_spill] sm:$0xff] %v10576_v28  ;;  %14166 = vst [vmem:[#allocation118_spill] sm:$0xff] %v10582_v27 }
 0x84d   :  { %3048 = vmatpush1.bf16.msra.mxu1 %v10576_v28  ;;  %3089 = vmatpush1.bf16.msra.mxu0 %v10582_v27 }
 0x84e   :  { %3116 = vmatprep.subr.bf16.mxu1 %v9724_v39  ;;  %3157 = vmatprep.subr.bf16.mxu0 %v9729_v40 }
 0x903   :  { %v2956_v35 = vpop.f32.mrb[40].mxu1  ;;  %v2997_v55 = vpop.f32.mrb[48].mxu0 }
 0x904   :  { %v6819_v7 = vadd.f32 %v2956_v35, %v14049_v58  ;;  %v2958_v42 = vpop.f32.mrb[41].mxu1  ;;  %v2999_v30 = vpop.f32.mrb[49].mxu0  ;;  %v6821_v39 = vadd.f32 %v2997_v55, %v9407_v59 }
 0x905   :  { %v6820_v24 = vadd.f32 %v2958_v42, %v9402_v33  ;;  %v2960_v28 = vpop.f32.mrb[42].mxu1  ;;  %v3001_v44 = vpop.f32.mrb[50].mxu0  ;;  %v6822_v40 = vadd.f32 %v2999_v30, %v9410_v62 }
 0x906   :  { %v6451_v0 = vmul.f32 -1.442695, %v6819_v7  ;;  %v2961_v49 = vpop.f32.mrb[43].mxu1  ;;  %v3002_v47 = vpop.f32.mrb[51].mxu0  ;;  %v6453_v27 = vmul.f32 -1.442695, %v6821_v39 }
 0x907   :  { %v6452_v31 = vmul.f32 -1.442695, %v6820_v24 }
 0x908   :  { %7423 = vpow2.f32 %v6451_v0 }
 0x909   :  { %7425 = vpow2.f32 %v6452_v31 }
 0x90a   :  { %7427 = vtanh.f32 %v6822_v40 }
 0x90b   :  { %7429 = vpow2.f32 %v6453_v27 }
 0x912   :  { %v7424_v45 = vpop.eup %7423 }
 0x913   :  { %v3017_v8 = vadd.f32 1.0, %v7424_v45  ;;  %v7426_v35 = vpop.eup %7425  ;;  %v14167_v45 = vld [vmem:[#allocation34_spill] sm:$0xff] }
 0x914   :  { %v3018_v42 = vadd.f32 1.0, %v7426_v35  ;;  %v7428_v44 = vpop.eup %7427  ;;  %v10597_v30 = vrot.slane %v10174_v29, %v14167_v45  ;;  %v10799_v29 = vld [vmem:[%s13421_s4 + $0xc0] ss:$16 sps:$4 sm:$0xff]   ;;  %v14177_v45 = vld [vmem:[#allocation44_spill] sm:$0xff] }
 0x915   :  { %7431 = vrcp.f32 %v3017_v8  ;;  %v7430_v7 = vpop.eup %7429  ;;  %14168 = vst [vmem:[#allocation34_spill] sm:$0xff] %v10799_v29 }
 0x916   :  { %7433 = vrcp.f32 %v3018_v42  ;;  %v3019_v0 = vadd.f32 1.0, %v7430_v7  ;;  %v6817_v8 = vadd.f32 %v10184_v54, %v10597_v30  ;;  %v10793_v54 = vld [vmem:[%s13421_s4 + $0xcc] ss:$16 sps:$4 sm:$0xff]   ;;  %v10805_v42 = vld [vmem:[%s13421_s4 + $0xc8] ss:$16 sps:$4 sm:$0xff]  }
 0x917   :  { %14169 = vst [vmem:[#allocation119_spill] sm:$0xff] %v10805_v42  ;;  %v10817_v7 = vld [vmem:[%s13421_s4 + $0xec] ss:$16 sps:$4 sm:$0xff]  }
 0x918   :  { %7435 = vrcp.f32 %v3019_v0  ;;  %v6447_v27 = vmul.f32 -1.442695, %v6817_v8  ;;  %14171 = vst [vmem:[#allocation121_spill] sm:$0xff] %v10817_v7  ;;  %v14175_v0 = vld [vmem:[#allocation42_spill] sm:$0xff]  ;;  %v14178_v8 = vld [vmem:[#allocation9_spill] sm:$0xff] }
 0x91f   :  { %v7432_v49 = vpop.eup %7431 }
 0x920   :  { %v3028_v47 = vmul.f32 %v7432_v49, %v7428_v44  ;;  %v7434_v24 = vpop.eup %7433  ;;  %v10811_v44 = vld [vmem:[%s13421_s4 + $0xe4] ss:$16 sps:$4 sm:$0xff]   ;;  %v10823_v49 = vld [vmem:[%s13421_s4 + $0xe0] ss:$16 sps:$4 sm:$0xff]  }
 0x921   :  { %v3027_v31 = vmul.f32 %v7434_v24, %v9738_v32  ;;  %14170 = vst [vmem:[#allocation120_spill] sm:$0xff] %v10811_v44  ;;  %14172 = vst [vmem:[#allocation122_spill] sm:$0xff] %v10823_v49  ;;  %v14174_v24 = vld [vmem:[#allocation41_spill] sm:$0xff] }
 0x922   :  { %v7436_v28 = vpop.eup %7435 }
 0x923   :  { %v10592_v55 = vadd.f32 %v3028_v47, %v3027_v31  ;;  %v10829_v47 = vld [vmem:[%s13421_s4 + $0xe8] ss:$16 sps:$4 sm:$0xff]   ;;  %v14176_v31 = vld [vmem:[#allocation43_spill] sm:$0xff] }
 0x924   :  { %14173 = vst [vmem:[#allocation123_spill] sm:$0xff] %v10829_v47 }
 0x925   :  { %7437 = vtanh.f32 %v10592_v55 }
 0x926   :  { %7439 = vpow2.f32 %v6447_v27  ;;  %v14180_v27 = vld [vmem:[#allocation11_spill] sm:$0xff] }
 0x927   :  { %7441 = vtanh.f32 %v10193_v34 }
 0x92f   :  { %v7438_v39 = vpop.eup %7437 }
 0x930   :  { %v3031_v40 = vmul.f32 %v7438_v39, %v7436_v28  ;;  %v7440_v32 = vpop.eup %7439  ;;  %v14179_v28 = vld [vmem:[#allocation10_spill] sm:$0xff]  ;;  %v14181_v39 = vld [vmem:[#allocation12_spill] sm:$0xff] }
 0x932   :  { %v10601_v35 = vpack.c.bf16 %v3031_v40, %v3031_v40  ;;  %v14182_v40 = vld [vmem:[#allocation13_spill] sm:$0xff] }
 0x934   :  { %3066 = vmatmul.mubr.bf16.vlgmr.msra.gmra.mrb[56].mxu1 %v10601_v35  ;;  %3107 = vmatmul.mubr.bf16.vlgmr.msra.gmra.mrb[64].mxu0 %v10601_v35 }
 0x935   :  { %3117 = vmatpush1.bf16.msra.mxu1 %v9744_v13  ;;  %3158 = vmatpush1.bf16.msra.mxu0 %v9749_v52  ;;  %v2712_v13 = vadd.f32 1.0, %v7440_v32  ;;  %v7442_v52 = vpop.eup %7441  ;;  %v14183_v32 = vld [vmem:[#allocation14_spill] sm:$0xff] }
 0x936   :  { %3118 = vmatprep.subr.bf16.mxu1 %v9756_v48  ;;  %3159 = vmatprep.subr.bf16.mxu0 %v9761_v36 }
 0x937   :  { %3148 = vmatprep.mubr.bf16.mxu1 %v13884_v50  ;;  %3189 = vmatprep.mubr.bf16.mxu0 %v13884_v50  ;;  %7443 = vrcp.f32 %v2712_v13  ;;  %v14185_v13 = vld [vmem:[#allocation16_spill] sm:$0xff] }
 0x939   :  { %3119 = vmatpush1.bf16.msra.mxu1 %v9770_v4  ;;  %3160 = vmatpush1.bf16.msra.mxu0 %v9775_v3  ;;  %v10641_v3 = vld [vmem:[%s13421_s4 + $0x4] ss:$16 sps:$4 sm:$0xff]  }
 0x93a   :  { %3120 = vmatprep.subr.bf16.mxu1 %v9782_v46  ;;  %3161 = vmatprep.subr.bf16.mxu0 %v9787_v37  ;;  %v10647_v46 = vld [vmem:[%s13421_s4 + $0xc] ss:$16 sps:$4 sm:$0xff]   ;;  %v10653_v37 = vld [vmem:[%s13421_s4] ss:$16 sps:$4 sm:$0xff]  }
 0x93d   :  { %3121 = vmatpush1.bf16.msra.mxu1 %v9796_v38  ;;  %3162 = vmatpush1.bf16.msra.mxu0 %v9801_v41  ;;  %v10659_v38 = vld [vmem:[%s13421_s4 + $0x8] ss:$16 sps:$4 sm:$0xff]   ;;  %v10665_v41 = vld [vmem:[%s13421_s4 + $0x24] ss:$16 sps:$4 sm:$0xff]  }
 0x93e   :  { %3122 = vmatprep.subr.bf16.mxu1 %v9808_v57  ;;  %3163 = vmatprep.subr.bf16.mxu0 %v9813_v60  ;;  %v10671_v57 = vld [vmem:[%s13421_s4 + $0x2c] ss:$16 sps:$4 sm:$0xff]   ;;  %v10679_v60 = vld [vmem:[%s13421_s4 + $0x20] ss:$16 sps:$4 sm:$0xff]  }
 0x941   :  { %3123 = vmatpush1.bf16.msra.mxu1 %v9820_v61  ;;  %3164 = vmatpush1.bf16.msra.mxu0 %v9825_v63  ;;  %v7444_v48 = vpop.eup %7443  ;;  %v10685_v61 = vld [vmem:[%s13421_s4 + $0x28] ss:$16 sps:$4 sm:$0xff]   ;;  %v10691_v63 = vld [vmem:[%s13421_s4 + $0x44] ss:$16 sps:$4 sm:$0xff]  }
 0x942   :  { %3124 = vmatprep.subr.bf16.mxu1 %v9832_v1  ;;  %3165 = vmatprep.subr.bf16.mxu0 %v9837_v5  ;;  %v2724_v36 = vmul.f32 %v7444_v48, %v7442_v52  ;;  %v10697_v1 = vld [vmem:[%s13421_s4 + $0x4c] ss:$16 sps:$4 sm:$0xff]   ;;  %v10703_v5 = vld [vmem:[%s13421_s4 + $0x40] ss:$16 sps:$4 sm:$0xff]  }
 0x943   :  { %v14186_v52 = vld [vmem:[#allocation17_spill] sm:$0xff]  ;;  %v14187_v48 = vld [vmem:[#allocation18_spill] sm:$0xff] }
 0x944   :  { %v3115_v4 = vpack.c.bf16 %v2724_v36, %v2724_v36  ;;  %v14188_v36 = vld [vmem:[#allocation19_spill] sm:$0xff] }
 0x945   :  { %3125 = vmatpush1.bf16.msra.mxu1 %v9844_v6  ;;  %3166 = vmatpush1.bf16.msra.mxu0 %v9849_v11  ;;  %v10709_v6 = vld [vmem:[%s13421_s4 + $0x48] ss:$16 sps:$4 sm:$0xff]   ;;  %v10715_v11 = vld [vmem:[%s13421_s4 + $0x64] ss:$16 sps:$4 sm:$0xff]  }
 0x946   :  { %3126 = vmatprep.subr.bf16.mxu1 %v9856_v12  ;;  %3167 = vmatprep.subr.bf16.mxu0 %v9861_v14  ;;  %v10721_v12 = vld [vmem:[%s13421_s4 + $0x6c] ss:$16 sps:$4 sm:$0xff]   ;;  %v10727_v14 = vld [vmem:[%s13421_s4 + $0x60] ss:$16 sps:$4 sm:$0xff]  }
 0x949   :  { %3127 = vmatpush1.bf16.msra.mxu1 %v9868_v15  ;;  %3168 = vmatpush1.bf16.msra.mxu0 %v9873_v16  ;;  %v10733_v15 = vld [vmem:[%s13421_s4 + $0x68] ss:$16 sps:$4 sm:$0xff]   ;;  %v10739_v16 = vld [vmem:[%s13421_s4 + $0x84] ss:$16 sps:$4 sm:$0xff]  }
 0x94a   :  { %3128 = vmatprep.subr.bf16.mxu1 %v9880_v17  ;;  %3169 = vmatprep.subr.bf16.mxu0 %v9885_v18  ;;  %v10745_v17 = vld [vmem:[%s13421_s4 + $0x8c] ss:$16 sps:$4 sm:$0xff]   ;;  %v10751_v18 = vld [vmem:[%s13421_s4 + $0x80] ss:$16 sps:$4 sm:$0xff]  }
 0x94d   :  { %3129 = vmatpush1.bf16.msra.mxu1 %v9892_v19  ;;  %3170 = vmatpush1.bf16.msra.mxu0 %v9897_v20  ;;  %v10757_v19 = vld [vmem:[%s13421_s4 + $0x88] ss:$16 sps:$4 sm:$0xff]   ;;  %v10763_v20 = vld [vmem:[%s13421_s4 + $0xa4] ss:$16 sps:$4 sm:$0xff]  }
 0x94e   :  { %3130 = vmatprep.subr.bf16.mxu1 %v9904_v10  ;;  %3171 = vmatprep.subr.bf16.mxu0 %v9909_v21  ;;  %v10769_v10 = vld [vmem:[%s13421_s4 + $0xac] ss:$16 sps:$4 sm:$0xff]   ;;  %v10775_v21 = vld [vmem:[%s13421_s4 + $0xa0] ss:$16 sps:$4 sm:$0xff]  }
 0x951   :  { %3131 = vmatpush1.bf16.msra.mxu1 %v9916_v22  ;;  %3172 = vmatpush1.bf16.msra.mxu0 %v9921_v23  ;;  %v10781_v22 = vld [vmem:[%s13421_s4 + $0xa8] ss:$16 sps:$4 sm:$0xff]   ;;  %v10787_v23 = vld [vmem:[%s13421_s4 + $0xc4] ss:$16 sps:$4 sm:$0xff]  }
 0x952   :  { %3230 = vmatprep.subr.bf16.mxu1 %v10641_v3  ;;  %3271 = vmatprep.subr.bf16.mxu0 %v10647_v46 }
 0x954   :  { %3149 = vmatmul.mubr.bf16.vlgmr.msra.gmra.mrb[44].mxu1 %v3115_v4  ;;  %3190 = vmatmul.mubr.bf16.vlgmr.msra.gmra.mrb[52].mxu0 %v3115_v4  ;;  %v14189_v4 = vld [vmem:[#allocation20_spill] sm:$0xff] }
 0x955   :  { %3231 = vmatpush1.bf16.msra.mxu1 %v10653_v37  ;;  %3272 = vmatpush1.bf16.msra.mxu0 %v10659_v38 }
 0x956   :  { %3232 = vmatprep.subr.bf16.mxu1 %v10665_v41  ;;  %3273 = vmatprep.subr.bf16.mxu0 %v10671_v57 }
 0x957   :  { %3262 = vmatprep.mubr.bf16.mxu1 %v13884_v50  ;;  %3303 = vmatprep.mubr.bf16.mxu0 %v13884_v50 }
 0x959   :  { %3233 = vmatpush1.bf16.msra.mxu1 %v10679_v60  ;;  %3274 = vmatpush1.bf16.msra.mxu0 %v10685_v61 }
 0x95a   :  { %3234 = vmatprep.subr.bf16.mxu1 %v10691_v63  ;;  %3275 = vmatprep.subr.bf16.mxu0 %v10697_v1 }
 0x95d   :  { %3235 = vmatpush1.bf16.msra.mxu1 %v10703_v5  ;;  %3276 = vmatpush1.bf16.msra.mxu0 %v10709_v6 }
 0x95e   :  { %3236 = vmatprep.subr.bf16.mxu1 %v10715_v11  ;;  %3277 = vmatprep.subr.bf16.mxu0 %v10721_v12 }
 0x961   :  { %3237 = vmatpush1.bf16.msra.mxu1 %v10727_v14  ;;  %3278 = vmatpush1.bf16.msra.mxu0 %v10733_v15 }
 0x962   :  { %3238 = vmatprep.subr.bf16.mxu1 %v10739_v16  ;;  %3279 = vmatprep.subr.bf16.mxu0 %v10745_v17 }
 0x965   :  { %3239 = vmatpush1.bf16.msra.mxu1 %v10751_v18  ;;  %3280 = vmatpush1.bf16.msra.mxu0 %v10757_v19 }
 0x966   :  { %3240 = vmatprep.subr.bf16.mxu1 %v10763_v20  ;;  %3281 = vmatprep.subr.bf16.mxu0 %v10769_v10 }
 0x969   :  { %3241 = vmatpush1.bf16.msra.mxu1 %v10775_v21  ;;  %3282 = vmatpush1.bf16.msra.mxu0 %v10781_v22 }
 0x96a   :  { %3242 = vmatprep.subr.bf16.mxu1 %v10787_v23  ;;  %3283 = vmatprep.subr.bf16.mxu0 %v10793_v54 }
 0x96d   :  { %3243 = vmatpush1.bf16.msra.mxu1 %v10799_v29  ;;  %3284 = vmatpush1.bf16.msra.mxu0 %v10805_v42 }
 0x96e   :  { %3244 = vmatprep.subr.bf16.mxu1 %v10811_v44  ;;  %3285 = vmatprep.subr.bf16.mxu0 %v10817_v7 }
 0x971   :  { %3245 = vmatpush1.bf16.msra.mxu1 %v10823_v49  ;;  %3286 = vmatpush1.bf16.msra.mxu0 %v10829_v47 }
 0x972   :  { %3341 = vmatprep.subr.bf16.mxu1 %v14174_v24  ;;  %3382 = vmatprep.subr.bf16.mxu0 %v14175_v0  ;;  %v14190_v24 = vld [vmem:[#allocation21_spill] sm:$0xff]  ;;  %v14191_v0 = vld [vmem:[#allocation22_spill] sm:$0xff] }
 0x974   :  { %3263 = vmatmul.mubr.bf16.vlgmr.msra.gmra.mrb[60].mxu1 %v10203_v9  ;;  %3304 = vmatmul.mubr.bf16.vlgmr.msra.gmra.mrb[68].mxu0 %v10203_v9  ;;  %v14184_v9 = vld [vmem:[#allocation15_spill] sm:$0xff] }
 0x975   :  { %3342 = vmatpush1.bf16.msra.mxu1 %v14176_v31  ;;  %3383 = vmatpush1.bf16.msra.mxu0 %v14177_v45  ;;  %v14192_v31 = vld [vmem:[#allocation23_spill] sm:$0xff]  ;;  %v14193_v45 = vld [vmem:[#allocation24_spill] sm:$0xff] }
 0x976   :  { %3343 = vmatprep.subr.bf16.mxu1 %v14178_v8  ;;  %3384 = vmatprep.subr.bf16.mxu0 %v14179_v28  ;;  %v14194_v8 = vld [vmem:[#allocation25_spill] sm:$0xff]  ;;  %v14195_v28 = vld [vmem:[#allocation26_spill] sm:$0xff] }
 0x977   :  { %3373 = vmatprep.mubr.bf16.mxu1 %v13884_v50  ;;  %3414 = vmatprep.mubr.bf16.mxu0 %v13884_v50 }
 0x979   :  { %3344 = vmatpush1.bf16.msra.mxu1 %v14180_v27  ;;  %3385 = vmatpush1.bf16.msra.mxu0 %v14181_v39  ;;  %v14196_v27 = vld [vmem:[#allocation27_spill] sm:$0xff]  ;;  %v14197_v39 = vld [vmem:[#allocation28_spill] sm:$0xff] }
 0x97a   :  { %3345 = vmatprep.subr.bf16.mxu1 %v14182_v40  ;;  %3386 = vmatprep.subr.bf16.mxu0 %v14183_v32  ;;  %v14198_v40 = vld [vmem:[#allocation29_spill] sm:$0xff]  ;;  %v14199_v32 = vld [vmem:[#allocation30_spill] sm:$0xff] }
 0x97d   :  { %3346 = vmatpush1.bf16.msra.mxu1 %v14184_v9  ;;  %3387 = vmatpush1.bf16.msra.mxu0 %v14185_v13  ;;  %v14200_v9 = vld [vmem:[#allocation31_spill] sm:$0xff]  ;;  %v14201_v13 = vld [vmem:[#allocation32_spill] sm:$0xff] }
 0x97e   :  { %3347 = vmatprep.subr.bf16.mxu1 %v14186_v52  ;;  %3388 = vmatprep.subr.bf16.mxu0 %v14187_v48  ;;  %v14202_v52 = vld [vmem:[#allocation37_spill] sm:$0xff]  ;;  %v14203_v48 = vld [vmem:[#allocation38_spill] sm:$0xff] }
 0x981   :  { %3348 = vmatpush1.bf16.msra.mxu1 %v14188_v36  ;;  %3389 = vmatpush1.bf16.msra.mxu0 %v14189_v4  ;;  %v14204_v36 = vld [vmem:[#allocation39_spill] sm:$0xff]  ;;  %v14205_v4 = vld [vmem:[#allocation40_spill] sm:$0xff] }
 0x982   :  { %3349 = vmatprep.subr.bf16.mxu1 %v14190_v24  ;;  %3390 = vmatprep.subr.bf16.mxu0 %v14191_v0  ;;  %v14206_v24 = vld [vmem:[#allocation65_spill] sm:$0xff]  ;;  %v14207_v0 = vld [vmem:[#allocation66_spill] sm:$0xff] }
 0x985   :  { %3350 = vmatpush1.bf16.msra.mxu1 %v14192_v31  ;;  %3391 = vmatpush1.bf16.msra.mxu0 %v14193_v45 }
 0x986   :  { %3351 = vmatprep.subr.bf16.mxu1 %v14194_v8  ;;  %3392 = vmatprep.subr.bf16.mxu0 %v14195_v28  ;;  %v14208_v8 = vld [vmem:[#allocation67_spill] sm:$0xff] }
 0x989   :  { %3352 = vmatpush1.bf16.msra.mxu1 %v14196_v27  ;;  %3393 = vmatpush1.bf16.msra.mxu0 %v14197_v39 }
 0x98a   :  { %3353 = vmatprep.subr.bf16.mxu1 %v14198_v40  ;;  %3394 = vmatprep.subr.bf16.mxu0 %v14199_v32  ;;  %v14209_v40 = vld [vmem:[#allocation68_spill] sm:$0xff] }
 0x98d   :  { %3354 = vmatpush1.bf16.msra.mxu1 %v14200_v9  ;;  %3395 = vmatpush1.bf16.msra.mxu0 %v14201_v13 }
 0x98e   :  { %3355 = vmatprep.subr.bf16.mxu1 %v14202_v52  ;;  %3396 = vmatprep.subr.bf16.mxu0 %v14203_v48 }
 0x991   :  { %3356 = vmatpush1.bf16.msra.mxu1 %v14204_v36  ;;  %3397 = vmatpush1.bf16.msra.mxu0 %v14205_v4  ;;  %v14210_v4 = vld [vmem:[#allocation69_spill] sm:$0xff] }
 0x992   :  { %3423 = vmatprep.subr.bf16.mxu1 %v14206_v24  ;;  %3464 = vmatprep.subr.bf16.mxu0 %v14207_v0 }
 0xa27   :  { %v3150_v31 = vpop.f32.mrb[44].mxu1  ;;  %v10870_v45 = vpop.f32.mrb[52].mxu0 }
 0xa28   :  { %v6823_v28 = vadd.f32 %v3150_v31, %v14208_v8  ;;  %v3152_v27 = vpop.f32.mrb[45].mxu1  ;;  %v3193_v39 = vpop.f32.mrb[53].mxu0 }
 0xa29   :  { %v6824_v32 = vadd.f32 %v3152_v27, %v14209_v40  ;;  %v3154_v9 = vpop.f32.mrb[46].mxu1  ;;  %v3195_v13 = vpop.f32.mrb[54].mxu0  ;;  %v6826_v24 = vadd.f32 %v3193_v39, %v14210_v4  ;;  %v14212_v39 = vld [vmem:[#allocation50_spill] sm:$0xff] }
 0xa2a   :  { %v6454_v52 = vmul.f32 -1.442695, %v6823_v28  ;;  %v3155_v48 = vpop.f32.mrb[47].mxu1  ;;  %v3196_v36 = vpop.f32.mrb[55].mxu0 }
 0xa2b   :  { %v6455_v47 = vmul.f32 -1.442695, %v6824_v32 }
 0xa2c   :  { %7445 = vpow2.f32 %v6454_v52 }
 0xa2d   :  { %7447 = vpow2.f32 %v6455_v47  ;;  %v14211_v47 = vld [vmem:[#allocation49_spill] sm:$0xff] }
 0xa2e   :  { %7449 = vtanh.f32 %v6826_v24  ;;  %v14213_v24 = vld [vmem:[#allocation51_spill] sm:$0xff] }
 0xa36   :  { %v7446_v0 = vpop.eup %7445 }
 0xa37   :  { %v3211_v49 = vadd.f32 1.0, %v7446_v0  ;;  %v7448_v7 = vpop.eup %7447 }
 0xa38   :  { %v3212_v31 = vadd.f32 1.0, %v7448_v7  ;;  %v7450_v8 = vpop.eup %7449  ;;  %v14214_v7 = vld [vmem:[#allocation52_spill] sm:$0xff] }
 0xa39   :  { %7451 = vrcp.f32 %v3211_v49 }
 0xa3a   :  { %7453 = vrcp.f32 %v3212_v31 }
 0xa43   :  { %v7452_v44 = vpop.eup %7451 }
 0xa44   :  { %v3222_v27 = vmul.f32 %v7452_v44, %v7450_v8  ;;  %v7454_v9 = vpop.eup %7453 }
 0xa45   :  { %v3221_v28 = vmul.f32 %v7454_v9, %v10193_v34 }
 0xa47   :  { %v3264_v13 = vpop.f32.mrb[60].mxu1  ;;  %v3305_v48 = vpop.f32.mrb[68].mxu0  ;;  %v10876_v32 = vadd.f32 %v3222_v27, %v3221_v28 }
 0xa48   :  { %v3312_v52 = vadd.f32 %v3264_v13, %v14211_v47  ;;  %v3314_v36 = vadd.f32 %v3305_v48, %v14212_v39  ;;  %v3266_v0 = vpop.f32.mrb[61].mxu1  ;;  %v3307_v4 = vpop.f32.mrb[69].mxu0 }
 0xa49   :  { %v3313_v49 = vadd.f32 %v3266_v0, %v14213_v24  ;;  %v3315_v31 = vadd.f32 %v3307_v4, %v14214_v7  ;;  %v3268_v40 = vpop.f32.mrb[62].mxu1  ;;  %v3309_v42 = vpop.f32.mrb[70].mxu0 }
 0xa4a   :  { %v6457_v44 = vmul.f32 -1.442695, %v3312_v52  ;;  %v3269_v8 = vpop.f32.mrb[63].mxu1  ;;  %v3310_v29 = vpop.f32.mrb[71].mxu0  ;;  %v6459_v27 = vmul.f32 -1.442695, %v3314_v36 }
 0xa4b   :  { %v6458_v34 = vmul.f32 -1.442695, %v3313_v49  ;;  %v14222_v8 = vld [vmem:[#allocation77_spill] sm:$0xff] }
 0xa4c   :  { %7455 = vpow2.f32 %v6457_v44  ;;  %v14217_v44 = vld [vmem:[#allocation72_spill] sm:$0xff] }
 0xa4d   :  { %7457 = vpow2.f32 %v6458_v34  ;;  %v14223_v34 = vld [vmem:[#allocation78_spill] sm:$0xff] }
 0xa4e   :  { %7459 = vtanh.f32 %v3315_v31  ;;  %v14216_v31 = vld [vmem:[#allocation71_spill] sm:$0xff] }
 0xa4f   :  { %7461 = vpow2.f32 %v6459_v27  ;;  %v14226_v27 = vld [vmem:[#allocation81_spill] sm:$0xff] }
 0xa56   :  { %v7456_v9 = vpop.eup %7455 }
 0xa57   :  { %v3325_v28 = vadd.f32 1.0, %v7456_v9  ;;  %v7458_v13 = vpop.eup %7457  ;;  %v14227_v9 = vld [vmem:[#allocation82_spill] sm:$0xff] }
 0xa58   :  { %v3326_v48 = vadd.f32 1.0, %v7458_v13  ;;  %v7460_v47 = vpop.eup %7459  ;;  %v14229_v13 = vld [vmem:[#allocation84_spill] sm:$0xff] }
 0xa59   :  { %7463 = vrcp.f32 %v3325_v28  ;;  %v7462_v39 = vpop.eup %7461  ;;  %v14228_v28 = vld [vmem:[#allocation83_spill] sm:$0xff] }
 0xa5a   :  { %7465 = vrcp.f32 %v3326_v48  ;;  %v3327_v52 = vadd.f32 1.0, %v7462_v39  ;;  %v14230_v48 = vld [vmem:[#allocation85_spill] sm:$0xff]  ;;  %v14232_v39 = vld [vmem:[#allocation87_spill] sm:$0xff] }
 0xa5c   :  { %7467 = vrcp.f32 %v3327_v52  ;;  %v14236_v52 = vld [vmem:[#allocation91_spill] sm:$0xff] }
 0xa63   :  { %v7464_v4 = vpop.eup %7463 }
 0xa64   :  { %v3336_v40 = vmul.f32 %v7464_v4, %v7460_v47  ;;  %v7466_v42 = vpop.eup %7465  ;;  %v14231_v47 = vld [vmem:[#allocation86_spill] sm:$0xff]  ;;  %v14233_v4 = vld [vmem:[#allocation88_spill] sm:$0xff] }
 0xa65   :  { %v3335_v29 = vmul.f32 %v7466_v42, %v10200_v53  ;;  %v14215_v53 = vld [vmem:[#allocation70_spill] sm:$0xff] }
 0xa66   :  { %v7468_v36 = vpop.eup %7467  ;;  %v14235_v42 = vld [vmem:[#allocation90_spill] sm:$0xff] }
 0xa67   :  { %v10883_v0 = vadd.f32 %v3336_v40, %v3335_v29  ;;  %v14234_v40 = vld [vmem:[#allocation89_spill] sm:$0xff]  ;;  %v14237_v29 = vld [vmem:[#allocation94_spill] sm:$0xff] }
 0xa69   :  { %7469 = vtanh.f32 %v10883_v0 }
 0xa73   :  { %v7470_v24 = vpop.eup %7469 }
 0xa74   :  { %v3339_v49 = vmul.f32 %v7470_v24, %v7468_v36  ;;  %v14238_v36 = vld [vmem:[#allocation92_spill] sm:$0xff]  ;;  %v14239_v24 = vld [vmem:[#allocation93_spill] sm:$0xff] }
 0xa76   :  { %v10886_v7 = vpack.c.bf16 %v3339_v49, %v3339_v49  ;;  %v14240_v49 = vld [vmem:[#allocation95_spill] sm:$0xff] }
 0xa78   :  { %3374 = vmatmul.mubr.bf16.vlgmr.msra.gmra.mrb[64].mxu1 %v10886_v7  ;;  %3415 = vmatmul.mubr.bf16.vlgmr.msra.gmra.mrb[72].mxu0 %v10886_v7 }
 0xa79   :  { %3424 = vmatpush1.bf16.msra.mxu1 %v10210_v56  ;;  %3465 = vmatpush1.bf16.msra.mxu0 %v10216_v26  ;;  %v14218_v56 = vld [vmem:[#allocation73_spill] sm:$0xff]  ;;  %v14219_v26 = vld [vmem:[#allocation74_spill] sm:$0xff] }
 0xa7a   :  { %3425 = vmatprep.subr.bf16.mxu1 %v10222_v2  ;;  %3466 = vmatprep.subr.bf16.mxu0 %v10228_v51  ;;  %v14220_v2 = vld [vmem:[#allocation75_spill] sm:$0xff]  ;;  %v14221_v51 = vld [vmem:[#allocation76_spill] sm:$0xff] }
 0xa7b   :  { %3455 = vmatprep.mubr.bf16.mxu1 %v13884_v50  ;;  %3496 = vmatprep.mubr.bf16.mxu0 %v13884_v50 }
 0xa7d   :  { %3426 = vmatpush1.bf16.msra.mxu1 %v10236_v43  ;;  %3467 = vmatpush1.bf16.msra.mxu0 %v10242_v25  ;;  %v14224_v43 = vld [vmem:[#allocation79_spill] sm:$0xff]  ;;  %v14225_v25 = vld [vmem:[#allocation80_spill] sm:$0xff] }
 0xa7e   :  { %3427 = vmatprep.subr.bf16.mxu1 %v14215_v53  ;;  %3468 = vmatprep.subr.bf16.mxu0 %v14216_v31  ;;  %v14241_v53 = vld [vmem:[#allocation96_spill] sm:$0xff]  ;;  %v14242_v31 = vld [vmem:[#allocation97_spill] sm:$0xff] }
 0xa81   :  { %3428 = vmatpush1.bf16.msra.mxu1 %v14217_v44  ;;  %3469 = vmatpush1.bf16.msra.mxu0 %v14218_v56  ;;  %v14243_v44 = vld [vmem:[#allocation98_spill] sm:$0xff]  ;;  %v14244_v56 = vld [vmem:[#allocation99_spill] sm:$0xff] }
 0xa82   :  { %3429 = vmatprep.subr.bf16.mxu1 %v14219_v26  ;;  %3470 = vmatprep.subr.bf16.mxu0 %v14220_v2  ;;  %v14245_v26 = vld [vmem:[#allocation100_spill] sm:$0xff]  ;;  %v14246_v2 = vld [vmem:[#allocation101_spill] sm:$0xff] }
 0xa85   :  { %3430 = vmatpush1.bf16.msra.mxu1 %v14221_v51  ;;  %3471 = vmatpush1.bf16.msra.mxu0 %v14222_v8  ;;  %v14247_v51 = vld [vmem:[#allocation102_spill] sm:$0xff]  ;;  %v14248_v8 = vld [vmem:[#allocation103_spill] sm:$0xff] }
 0xa86   :  { %3431 = vmatprep.subr.bf16.mxu1 %v14223_v34  ;;  %3472 = vmatprep.subr.bf16.mxu0 %v14224_v43  ;;  %v14250_v34 = vld [vmem:[#allocation105_spill] sm:$0xff]  ;;  %v14251_v43 = vld [vmem:[#allocation106_spill] sm:$0xff] }
 0xa89   :  { %3432 = vmatpush1.bf16.msra.mxu1 %v14225_v25  ;;  %3473 = vmatpush1.bf16.msra.mxu0 %v14226_v27  ;;  %v14252_v25 = vld [vmem:[#allocation107_spill] sm:$0xff]  ;;  %v14253_v27 = vld [vmem:[#allocation108_spill] sm:$0xff] }
 0xa8a   :  { %3433 = vmatprep.subr.bf16.mxu1 %v14227_v9  ;;  %3474 = vmatprep.subr.bf16.mxu0 %v14228_v28  ;;  %v14254_v9 = vld [vmem:[#allocation109_spill] sm:$0xff] }
 0xa8b   :  { %v14255_v28 = vld [vmem:[#allocation33_spill] sm:$0xff] }
 0xa8d   :  { %3434 = vmatpush1.bf16.msra.mxu1 %v14229_v13  ;;  %3475 = vmatpush1.bf16.msra.mxu0 %v14230_v48  ;;  %v14256_v13 = vld [vmem:[#allocation35_spill] sm:$0xff]  ;;  %v14257_v48 = vld [vmem:[#allocation36_spill] sm:$0xff] }
 0xa8e   :  { %3435 = vmatprep.subr.bf16.mxu1 %v14231_v47  ;;  %3476 = vmatprep.subr.bf16.mxu0 %v14232_v39  ;;  %v14258_v47 = vld [vmem:[#allocation45_spill] sm:$0xff]  ;;  %v14259_v39 = vld [vmem:[#allocation46_spill] sm:$0xff] }
 0xa91   :  { %3436 = vmatpush1.bf16.msra.mxu1 %v14233_v4  ;;  %3477 = vmatpush1.bf16.msra.mxu0 %v14234_v40  ;;  %v14260_v4 = vld [vmem:[#allocation47_spill] sm:$0xff]  ;;  %v14261_v40 = vld [vmem:[#allocation48_spill] sm:$0xff] }
 0xa92   :  { %3437 = vmatprep.subr.bf16.mxu1 %v14235_v42  ;;  %3478 = vmatprep.subr.bf16.mxu0 %v14236_v52  ;;  %v14262_v42 = vld [vmem:[#allocation110_spill] sm:$0xff]  ;;  %v14263_v52 = vld [vmem:[#allocation111_spill] sm:$0xff] }
 0xa95   :  { %3438 = vmatpush1.bf16.msra.mxu1 %v14237_v29  ;;  %3479 = vmatpush1.bf16.msra.mxu0 %v14238_v36  ;;  %v14264_v29 = vld [vmem:[#allocation112_spill] sm:$0xff]  ;;  %v14265_v36 = vld [vmem:[#allocation113_spill] sm:$0xff] }
 0xa96   :  { %3534 = vmatprep.subr.bf16.mxu1 %v14239_v24  ;;  %3575 = vmatprep.subr.bf16.mxu0 %v14240_v49  ;;  %v14266_v24 = vld [vmem:[#allocation114_spill] sm:$0xff]  ;;  %v14267_v49 = vld [vmem:[#allocation115_spill] sm:$0xff] }
 0xa98   :  { %3456 = vmatmul.mubr.bf16.vlgmr.msra.gmra.mrb[52].mxu1 %v10601_v35  ;;  %3497 = vmatmul.mubr.bf16.vlgmr.msra.gmra.mrb[60].mxu0 %v10601_v35  ;;  %v14249_v35 = vld [vmem:[#allocation104_spill] sm:$0xff] }
 0xa99   :  { %3535 = vmatpush1.bf16.msra.mxu1 %v14241_v53  ;;  %3576 = vmatpush1.bf16.msra.mxu0 %v14242_v31  ;;  %v14268_v53 = vld [vmem:[#allocation116_spill] sm:$0xff]  ;;  %v14269_v31 = vld [vmem:[#allocation117_spill] sm:$0xff] }
 0xa9a   :  { %3536 = vmatprep.subr.bf16.mxu1 %v14243_v44  ;;  %3577 = vmatprep.subr.bf16.mxu0 %v14244_v56  ;;  %v14270_v44 = vld [vmem:[#allocation118_spill] sm:$0xff]  ;;  %v10961_v56 = vld [vmem:[%s13421_s4 + $0x204] ss:$16 sps:$4 sm:$0xff]  }
 0xa9b   :  { %3566 = vmatprep.mubr.bf16.mxu1 %v13884_v50  ;;  %3607 = vmatprep.mubr.bf16.mxu0 %v13884_v50 }
 0xa9d   :  { %3537 = vmatpush1.bf16.msra.mxu1 %v14245_v26  ;;  %3578 = vmatpush1.bf16.msra.mxu0 %v14246_v2  ;;  %v10967_v26 = vld [vmem:[%s13421_s4 + $0x20c] ss:$16 sps:$4 sm:$0xff]  }
 0xa9e   :  { %3538 = vmatprep.subr.bf16.mxu1 %v14247_v51  ;;  %3579 = vmatprep.subr.bf16.mxu0 %v14248_v8 }
 0xaa1   :  { %3539 = vmatpush1.bf16.msra.mxu1 %v14249_v35  ;;  %3580 = vmatpush1.bf16.msra.mxu0 %v14250_v34 }
 0xaa2   :  { %3540 = vmatprep.subr.bf16.mxu1 %v14251_v43  ;;  %3581 = vmatprep.subr.bf16.mxu0 %v14252_v25 }
 0xaa5   :  { %3541 = vmatpush1.bf16.msra.mxu1 %v14253_v27  ;;  %3582 = vmatpush1.bf16.msra.mxu0 %v14254_v9 }
 0xaa6   :  { %3542 = vmatprep.subr.bf16.mxu1 %v14255_v28  ;;  %3583 = vmatprep.subr.bf16.mxu0 %v14256_v13 }
 0xaa9   :  { %3543 = vmatpush1.bf16.msra.mxu1 %v14257_v48  ;;  %3584 = vmatpush1.bf16.msra.mxu0 %v14258_v47 }
 0xaaa   :  { %3544 = vmatprep.subr.bf16.mxu1 %v14259_v39  ;;  %3585 = vmatprep.subr.bf16.mxu0 %v14260_v4 }
 0xaad   :  { %3545 = vmatpush1.bf16.msra.mxu1 %v14261_v40  ;;  %3586 = vmatpush1.bf16.msra.mxu0 %v14262_v42 }
 0xaae   :  { %3546 = vmatprep.subr.bf16.mxu1 %v14263_v52  ;;  %3587 = vmatprep.subr.bf16.mxu0 %v14264_v29 }
 0xab1   :  { %3547 = vmatpush1.bf16.msra.mxu1 %v14265_v36  ;;  %3588 = vmatpush1.bf16.msra.mxu0 %v14266_v24 }
 0xab2   :  { %3548 = vmatprep.subr.bf16.mxu1 %v14267_v49  ;;  %3589 = vmatprep.subr.bf16.mxu0 %v14268_v53 }
 0xab5   :  { %3549 = vmatpush1.bf16.msra.mxu1 %v14269_v31  ;;  %3590 = vmatpush1.bf16.msra.mxu0 %v14270_v44 }
 0xab6   :  { %3617 = vmatprep.subr.bf16.mxu1 %v10961_v56  ;;  %3658 = vmatprep.subr.bf16.mxu0 %v10967_v26 }
 0xb6b   :  { %v3457_v2 = vpop.f32.mrb[52].mxu1  ;;  %v3498_v51 = vpop.f32.mrb[60].mxu0 }
 0xb6c   :  { %v6827_v8 = vadd.f32 %v3457_v2, %v14049_v58  ;;  %v3459_v35 = vpop.f32.mrb[53].mxu1  ;;  %v3500_v34 = vpop.f32.mrb[61].mxu0  ;;  %v6829_v47 = vadd.f32 %v3498_v51, %v9407_v59 }
 0xb6d   :  { %v6828_v43 = vadd.f32 %v3459_v35, %v9402_v33  ;;  %v3461_v25 = vpop.f32.mrb[54].mxu1  ;;  %v3502_v27 = vpop.f32.mrb[62].mxu0  ;;  %v6830_v39 = vadd.f32 %v3500_v34, %v9410_v62 }
 0xb6e   :  { %v6460_v9 = vmul.f32 -1.442695, %v6827_v8  ;;  %v3462_v28 = vpop.f32.mrb[55].mxu1  ;;  %v3503_v13 = vpop.f32.mrb[63].mxu0  ;;  %v6462_v4 = vmul.f32 -1.442695, %v6829_v47  ;;  %v6825_v8 = vadd.f32 %v10870_v45, %v10597_v30 }
 0xb6f   :  { %v6461_v48 = vmul.f32 -1.442695, %v6828_v43  ;;  %v10993_v45 = vld [vmem:[%s13421_s4 + $0x208] ss:$16 sps:$4 sm:$0xff]   ;;  %v11005_v28 = vld [vmem:[%s13421_s4 + $0x22c] ss:$16 sps:$4 sm:$0xff]  }
 0xb70   :  { %7471 = vpow2.f32 %v6460_v9  ;;  %v6456_v34 = vmul.f32 -1.442695, %v6825_v8  ;;  %v10999_v9 = vld [vmem:[%s13421_s4 + $0x224] ss:$16 sps:$4 sm:$0xff]   ;;  %v11013_v13 = vld [vmem:[%s13421_s4 + $0x220] ss:$16 sps:$4 sm:$0xff]  }
 0xb71   :  { %7473 = vpow2.f32 %v6461_v48  ;;  %v11019_v48 = vld [vmem:[%s13421_s4 + $0x228] ss:$16 sps:$4 sm:$0xff]   ;;  %v11025_v47 = vld [vmem:[%s13421_s4 + $0x244] ss:$16 sps:$4 sm:$0xff]  }
 0xb72   :  { %7475 = vtanh.f32 %v6830_v39  ;;  %v11031_v39 = vld [vmem:[%s13421_s4 + $0x24c] ss:$16 sps:$4 sm:$0xff]   ;;  %v11098_v8 = vld [vmem:[%s13421_s4 + $0x2a4] ss:$16 sps:$4 sm:$0xff]  }
 0xb73   :  { %7477 = vpow2.f32 %v6462_v4  ;;  %14271 = vst [vmem:[#allocation41_spill] sm:$0xff] %v11098_v8 }
 0xb7a   :  { %v7472_v40 = vpop.eup %7471 }
 0xb7b   :  { %v3518_v42 = vadd.f32 1.0, %v7472_v40  ;;  %v7474_v52 = vpop.eup %7473  ;;  %v11037_v40 = vld [vmem:[%s13421_s4 + $0x240] ss:$16 sps:$4 sm:$0xff]  }
 0xb7c   :  { %v3519_v29 = vadd.f32 1.0, %v7474_v52  ;;  %v7476_v36 = vpop.eup %7475  ;;  %v11049_v52 = vld [vmem:[%s13421_s4 + $0x264] ss:$16 sps:$4 sm:$0xff]  }
 0xb7d   :  { %7479 = vrcp.f32 %v3518_v42  ;;  %v7478_v24 = vpop.eup %7477  ;;  %v11043_v42 = vld [vmem:[%s13421_s4 + $0x248] ss:$16 sps:$4 sm:$0xff]  }
 0xb7e   :  { %7481 = vrcp.f32 %v3519_v29  ;;  %v3520_v44 = vadd.f32 1.0, %v7478_v24  ;;  %v11055_v29 = vld [vmem:[%s13421_s4 + $0x26c] ss:$16 sps:$4 sm:$0xff]   ;;  %v11062_v24 = vld [vmem:[%s13421_s4 + $0x260] ss:$16 sps:$4 sm:$0xff]  }
 0xb80   :  { %7483 = vrcp.f32 %v3520_v44  ;;  %v11086_v44 = vld [vmem:[%s13421_s4 + $0x280] ss:$16 sps:$4 sm:$0xff]  }
 0xb87   :  { %v7480_v49 = vpop.eup %7479 }
 0xb88   :  { %v3529_v53 = vmul.f32 %v7480_v49, %v7476_v36  ;;  %v7482_v31 = vpop.eup %7481  ;;  %v11068_v49 = vld [vmem:[%s13421_s4 + $0x268] ss:$16 sps:$4 sm:$0xff]  }
 0xb89   :  { %v3528_v2 = vmul.f32 %v7482_v31, %v10592_v55  ;;  %v10987_v55 = vld [vmem:[%s13421_s4 + $0x200] ss:$16 sps:$4 sm:$0xff]   ;;  %v11080_v31 = vld [vmem:[%s13421_s4 + $0x28c] ss:$16 sps:$4 sm:$0xff]  }
 0xb8a   :  { %v7484_v35 = vpop.eup %7483 }
 0xb8b   :  { %v10975_v51 = vadd.f32 %v3529_v53, %v3528_v2  ;;  %v11074_v53 = vld [vmem:[%s13421_s4 + $0x284] ss:$16 sps:$4 sm:$0xff]   ;;  %v11092_v2 = vld [vmem:[%s13421_s4 + $0x288] ss:$16 sps:$4 sm:$0xff]  }
 0xb8d   :  { %7485 = vtanh.f32 %v10975_v51 }
 0xb8e   :  { %7487 = vpow2.f32 %v6456_v34  ;;  %v11110_v34 = vld [vmem:[%s13421_s4 + $0x2a0] ss:$16 sps:$4 sm:$0xff]  }
 0xb8f   :  { %7489 = vtanh.f32 %v10876_v32  ;;  %14273 = vst [vmem:[#allocation43_spill] sm:$0xff] %v11110_v34 }
 0xb97   :  { %v7486_v43 = vpop.eup %7485 }
 0xb98   :  { %v3532_v25 = vmul.f32 %v7486_v43, %v7484_v35  ;;  %v7488_v4 = vpop.eup %7487  ;;  %v11104_v35 = vld [vmem:[%s13421_s4 + $0x2ac] ss:$16 sps:$4 sm:$0xff]   ;;  %v11116_v43 = vld [vmem:[%s13421_s4 + $0x2a8] ss:$16 sps:$4 sm:$0xff]  }
 0xb99   :  { %v3213_v36 = vadd.f32 1.0, %v7488_v4  ;;  %14272 = vst [vmem:[#allocation42_spill] sm:$0xff] %v11104_v35  ;;  %14274 = vst [vmem:[#allocation44_spill] sm:$0xff] %v11116_v43  ;;  %v11128_v4 = vld [vmem:[%s13421_s4 + $0x2cc] ss:$16 sps:$4 sm:$0xff]  }
 0xb9a   :  { %v10980_v27 = vpack.c.bf16 %v3532_v25, %v3532_v25  ;;  %v11122_v25 = vld [vmem:[%s13421_s4 + $0x2c4] ss:$16 sps:$4 sm:$0xff]   ;;  %14276 = vst [vmem:[#allocation10_spill] sm:$0xff] %v11128_v4 }
 0xb9b   :  { %7491 = vrcp.f32 %v3213_v36  ;;  %14275 = vst [vmem:[#allocation9_spill] sm:$0xff] %v11122_v25  ;;  %v7490_v36 = vpop.eup %7489 }
 0xb9c   :  { %3567 = vmatmul.mubr.bf16.vlgmr.msra.gmra.mrb[68].mxu1 %v10980_v27  ;;  %3608 = vmatmul.mubr.bf16.vlgmr.msra.gmra.mrb[76].mxu0 %v10980_v27 }
 0xb9d   :  { %3618 = vmatpush1.bf16.msra.mxu1 %v10987_v55  ;;  %3659 = vmatpush1.bf16.msra.mxu0 %v10993_v45 }
 0xb9e   :  { %3619 = vmatprep.subr.bf16.mxu1 %v10999_v9  ;;  %3660 = vmatprep.subr.bf16.mxu0 %v11005_v28 }
 0xb9f   :  { %3649 = vmatprep.mubr.bf16.mxu1 %v13884_v50  ;;  %3690 = vmatprep.mubr.bf16.mxu0 %v13884_v50 }
 0xba1   :  { %3620 = vmatpush1.bf16.msra.mxu1 %v11013_v13  ;;  %3661 = vmatpush1.bf16.msra.mxu0 %v11019_v48 }
 0xba2   :  { %3621 = vmatprep.subr.bf16.mxu1 %v11025_v47  ;;  %3662 = vmatprep.subr.bf16.mxu0 %v11031_v39 }
 0xba5   :  { %3622 = vmatpush1.bf16.msra.mxu1 %v11037_v40  ;;  %3663 = vmatpush1.bf16.msra.mxu0 %v11043_v42 }
 0xba6   :  { %3623 = vmatprep.subr.bf16.mxu1 %v11049_v52  ;;  %3664 = vmatprep.subr.bf16.mxu0 %v11055_v29 }
 0xba9   :  { %3624 = vmatpush1.bf16.msra.mxu1 %v11062_v24  ;;  %3665 = vmatpush1.bf16.msra.mxu0 %v11068_v49 }
 0xbaa   :  { %3625 = vmatprep.subr.bf16.mxu1 %v11074_v53  ;;  %3666 = vmatprep.subr.bf16.mxu0 %v11080_v31 }
 0xbad   :  { %3626 = vmatpush1.bf16.msra.mxu1 %v11086_v44  ;;  %3667 = vmatpush1.bf16.msra.mxu0 %v11092_v2 }
 0xbae   :  { %3627 = vmatprep.subr.bf16.mxu1 %v11098_v8  ;;  %3668 = vmatprep.subr.bf16.mxu0 %v11104_v35  ;;  %v11152_v35 = vld [vmem:[%s13421_s4 + $0x2ec] ss:$16 sps:$4 sm:$0xff]   ;;  %v11158_v8 = vld [vmem:[%s13421_s4 + $0x2e0] ss:$16 sps:$4 sm:$0xff]  }
 0xbb1   :  { %3628 = vmatpush1.bf16.msra.mxu1 %v11110_v34  ;;  %3669 = vmatpush1.bf16.msra.mxu0 %v11116_v43  ;;  %v7492_v34 = vpop.eup %7491  ;;  %v11134_v43 = vld [vmem:[%s13421_s4 + $0x2c0] ss:$16 sps:$4 sm:$0xff]  }
 0xbb2   :  { %3629 = vmatprep.subr.bf16.mxu1 %v11122_v25  ;;  %3670 = vmatprep.subr.bf16.mxu0 %v11128_v4  ;;  %14277 = vst [vmem:[#allocation11_spill] sm:$0xff] %v11134_v43  ;;  %v11140_v25 = vld [vmem:[%s13421_s4 + $0x2c8] ss:$16 sps:$4 sm:$0xff]   ;;  %v11146_v4 = vld [vmem:[%s13421_s4 + $0x2e4] ss:$16 sps:$4 sm:$0xff]  }
 0xbb3   :  { %14278 = vst [vmem:[#allocation12_spill] sm:$0xff] %v11140_v25  ;;  %14279 = vst [vmem:[#allocation13_spill] sm:$0xff] %v11146_v4 }
 0xbb5   :  { %3630 = vmatpush1.bf16.msra.mxu1 %v11134_v43  ;;  %3671 = vmatpush1.bf16.msra.mxu0 %v11140_v25  ;;  %v3225_v43 = vmul.f32 %v7492_v34, %v7490_v36  ;;  %v11164_v25 = vld [vmem:[%s13421_s4 + $0x2e8] ss:$16 sps:$4 sm:$0xff]   ;;  %v11334_v34 = vld [vmem:[%s13420_s3 + $0x1ac] ss:$16 sps:$4 sm:$0xff]   ;;  %v11352_v36 = vld [vmem:[%s13420_s3 + $0x1c4] ss:$16 sps:$4 sm:$0xff]  }
 0xbb6   :  { %3631 = vmatprep.subr.bf16.mxu1 %v11146_v4  ;;  %3672 = vmatprep.subr.bf16.mxu0 %v11152_v35  ;;  %14298 = vst [vmem:[#allocation26_spill] sm:$0xff] %v11334_v34  ;;  %14301 = vst [vmem:[#allocation29_spill] sm:$0xff] %v11352_v36 }
 0xbb7   :  { %v3616_v4 = vpack.c.bf16 %v3225_v43, %v3225_v43  ;;  %v11340_v43 = vld [vmem:[%s13420_s3 + $0x1a0] ss:$16 sps:$4 sm:$0xff]  }
 0xbb8   :  { %14299 = vst [vmem:[#allocation27_spill] sm:$0xff] %v11340_v43 }
 0xbb9   :  { %3632 = vmatpush1.bf16.msra.mxu1 %v11158_v8  ;;  %3673 = vmatpush1.bf16.msra.mxu0 %v11164_v25 }
 0xbba   :  { %3731 = vmatprep.subr.bf16.mxu1 %v10641_v3  ;;  %3772 = vmatprep.subr.bf16.mxu0 %v10647_v46  ;;  %v14280_v3 = vld [vmem:[#allocation34_spill] sm:$0xff]  ;;  %v14281_v46 = vld [vmem:[#allocation119_spill] sm:$0xff] }
 0xbbc   :  { %3650 = vmatmul.mubr.bf16.vlgmr.msra.gmra.mrb[56].mxu1 %v3616_v4  ;;  %3691 = vmatmul.mubr.bf16.vlgmr.msra.gmra.mrb[64].mxu0 %v3616_v4  ;;  %v11346_v4 = vld [vmem:[%s13420_s3 + $0x1a8] ss:$16 sps:$4 sm:$0xff]  }
 0xbbd   :  { %3732 = vmatpush1.bf16.msra.mxu1 %v10653_v37  ;;  %3773 = vmatpush1.bf16.msra.mxu0 %v10659_v38  ;;  %v14282_v37 = vld [vmem:[#allocation120_spill] sm:$0xff]  ;;  %v14283_v38 = vld [vmem:[#allocation121_spill] sm:$0xff]  ;;  %14300 = vst [vmem:[#allocation28_spill] sm:$0xff] %v11346_v4 }
 0xbbe   :  { %3733 = vmatprep.subr.bf16.mxu1 %v10665_v41  ;;  %3774 = vmatprep.subr.bf16.mxu0 %v10671_v57  ;;  %v14284_v41 = vld [vmem:[#allocation122_spill] sm:$0xff]  ;;  %v14285_v57 = vld [vmem:[#allocation123_spill] sm:$0xff] }
 0xbbf   :  { %3763 = vmatprep.mubr.bf16.mxu1 %v13884_v50  ;;  %3804 = vmatprep.mubr.bf16.mxu0 %v13884_v50 }
 0xbc1   :  { %3734 = vmatpush1.bf16.msra.mxu1 %v10679_v60  ;;  %3775 = vmatpush1.bf16.msra.mxu0 %v10685_v61  ;;  %v11204_v60 = vld [vmem:[%s13420_s3 + $0x104] ss:$16 sps:$4 sm:$0xff]   ;;  %v11210_v61 = vld [vmem:[%s13420_s3 + $0x10c] ss:$16 sps:$4 sm:$0xff]  }
 0xbc2   :  { %3735 = vmatprep.subr.bf16.mxu1 %v10691_v63  ;;  %3776 = vmatprep.subr.bf16.mxu0 %v10697_v1  ;;  %v11218_v63 = vld [vmem:[%s13420_s3 + $0x100] ss:$16 sps:$4 sm:$0xff]   ;;  %v11224_v1 = vld [vmem:[%s13420_s3 + $0x108] ss:$16 sps:$4 sm:$0xff]  }
 0xbc5   :  { %3736 = vmatpush1.bf16.msra.mxu1 %v10703_v5  ;;  %3777 = vmatpush1.bf16.msra.mxu0 %v10709_v6  ;;  %v11230_v5 = vld [vmem:[%s13420_s3 + $0x124] ss:$16 sps:$4 sm:$0xff]   ;;  %v11236_v6 = vld [vmem:[%s13420_s3 + $0x12c] ss:$16 sps:$4 sm:$0xff]  }
 0xbc6   :  { %3737 = vmatprep.subr.bf16.mxu1 %v10715_v11  ;;  %3778 = vmatprep.subr.bf16.mxu0 %v10721_v12  ;;  %v11244_v11 = vld [vmem:[%s13420_s3 + $0x120] ss:$16 sps:$4 sm:$0xff]   ;;  %v11250_v12 = vld [vmem:[%s13420_s3 + $0x128] ss:$16 sps:$4 sm:$0xff]  }
 0xbc9   :  { %3738 = vmatpush1.bf16.msra.mxu1 %v10727_v14  ;;  %3779 = vmatpush1.bf16.msra.mxu0 %v10733_v15  ;;  %v11256_v14 = vld [vmem:[%s13420_s3 + $0x144] ss:$16 sps:$4 sm:$0xff]   ;;  %v11262_v15 = vld [vmem:[%s13420_s3 + $0x14c] ss:$16 sps:$4 sm:$0xff]  }
 0xbca   :  { %3739 = vmatprep.subr.bf16.mxu1 %v10739_v16  ;;  %3780 = vmatprep.subr.bf16.mxu0 %v10745_v17  ;;  %14286 = vst [vmem:[#allocation14_spill] sm:$0xff] %v11262_v15  ;;  %v11268_v16 = vld [vmem:[%s13420_s3 + $0x140] ss:$16 sps:$4 sm:$0xff]   ;;  %v11274_v17 = vld [vmem:[%s13420_s3 + $0x148] ss:$16 sps:$4 sm:$0xff]  }
 0xbcb   :  { %14287 = vst [vmem:[#allocation15_spill] sm:$0xff] %v11268_v16  ;;  %14288 = vst [vmem:[#allocation16_spill] sm:$0xff] %v11274_v17 }
 0xbcd   :  { %3740 = vmatpush1.bf16.msra.mxu1 %v10751_v18  ;;  %3781 = vmatpush1.bf16.msra.mxu0 %v10757_v19  ;;  %v11280_v18 = vld [vmem:[%s13420_s3 + $0x164] ss:$16 sps:$4 sm:$0xff]   ;;  %v11286_v19 = vld [vmem:[%s13420_s3 + $0x16c] ss:$16 sps:$4 sm:$0xff]  }
 0xbce   :  { %3741 = vmatprep.subr.bf16.mxu1 %v10763_v20  ;;  %3782 = vmatprep.subr.bf16.mxu0 %v10769_v10  ;;  %14289 = vst [vmem:[#allocation17_spill] sm:$0xff] %v11280_v18  ;;  %14290 = vst [vmem:[#allocation18_spill] sm:$0xff] %v11286_v19  ;;  %v11292_v20 = vld [vmem:[%s13420_s3 + $0x160] ss:$16 sps:$4 sm:$0xff]   ;;  %v11298_v10 = vld [vmem:[%s13420_s3 + $0x168] ss:$16 sps:$4 sm:$0xff]  }
 0xbcf   :  { %14291 = vst [vmem:[#allocation19_spill] sm:$0xff] %v11292_v20  ;;  %14292 = vst [vmem:[#allocation20_spill] sm:$0xff] %v11298_v10 }
 0xbd1   :  { %3742 = vmatpush1.bf16.msra.mxu1 %v10775_v21  ;;  %3783 = vmatpush1.bf16.msra.mxu0 %v10781_v22  ;;  %v11304_v21 = vld [vmem:[%s13420_s3 + $0x184] ss:$16 sps:$4 sm:$0xff]   ;;  %v11310_v22 = vld [vmem:[%s13420_s3 + $0x18c] ss:$16 sps:$4 sm:$0xff]  }
 0xbd2   :  { %3743 = vmatprep.subr.bf16.mxu1 %v10787_v23  ;;  %3784 = vmatprep.subr.bf16.mxu0 %v10793_v54  ;;  %14293 = vst [vmem:[#allocation21_spill] sm:$0xff] %v11304_v21  ;;  %14294 = vst [vmem:[#allocation22_spill] sm:$0xff] %v11310_v22  ;;  %v11316_v23 = vld [vmem:[%s13420_s3 + $0x180] ss:$16 sps:$4 sm:$0xff]   ;;  %v11322_v54 = vld [vmem:[%s13420_s3 + $0x188] ss:$16 sps:$4 sm:$0xff]  }
 0xbd3   :  { %14295 = vst [vmem:[#allocation23_spill] sm:$0xff] %v11316_v23  ;;  %14296 = vst [vmem:[#allocation24_spill] sm:$0xff] %v11322_v54 }
 0xbd5   :  { %3744 = vmatpush1.bf16.msra.mxu1 %v14280_v3  ;;  %3785 = vmatpush1.bf16.msra.mxu0 %v14281_v46  ;;  %v11358_v3 = vld [vmem:[%s13420_s3 + $0x1cc] ss:$16 sps:$4 sm:$0xff]   ;;  %v11364_v46 = vld [vmem:[%s13420_s3 + $0x1c0] ss:$16 sps:$4 sm:$0xff]  }
 0xbd6   :  { %3745 = vmatprep.subr.bf16.mxu1 %v14282_v37  ;;  %3786 = vmatprep.subr.bf16.mxu0 %v14283_v38  ;;  %14302 = vst [vmem:[#allocation30_spill] sm:$0xff] %v11358_v3  ;;  %14303 = vst [vmem:[#allocation31_spill] sm:$0xff] %v11364_v46  ;;  %v11370_v37 = vld [vmem:[%s13420_s3 + $0x1c8] ss:$16 sps:$4 sm:$0xff]   ;;  %v11376_v38 = vld [vmem:[%s13420_s3 + $0x1e4] ss:$16 sps:$4 sm:$0xff]  }
 0xbd7   :  { %14304 = vst [vmem:[#allocation32_spill] sm:$0xff] %v11370_v37  ;;  %14305 = vst [vmem:[#allocation37_spill] sm:$0xff] %v11376_v38 }
 0xbd9   :  { %3746 = vmatpush1.bf16.msra.mxu1 %v14284_v41  ;;  %3787 = vmatpush1.bf16.msra.mxu0 %v14285_v57  ;;  %v11382_v41 = vld [vmem:[%s13420_s3 + $0x1ec] ss:$16 sps:$4 sm:$0xff]   ;;  %v11388_v57 = vld [vmem:[%s13420_s3 + $0x1e0] ss:$16 sps:$4 sm:$0xff]  }
 0xbda   :  { %3842 = vmatprep.subr.bf16.mxu1 %v11204_v60  ;;  %3883 = vmatprep.subr.bf16.mxu0 %v11210_v61  ;;  %14306 = vst [vmem:[#allocation38_spill] sm:$0xff] %v11382_v41  ;;  %14307 = vst [vmem:[#allocation39_spill] sm:$0xff] %v11388_v57 }
 0xbdc   :  { %3764 = vmatmul.mubr.bf16.vlgmr.msra.gmra.mrb[72].mxu1 %v10886_v7  ;;  %3805 = vmatmul.mubr.bf16.vlgmr.msra.gmra.mrb[80].mxu0 %v10886_v7  ;;  %v11328_v7 = vld [vmem:[%s13420_s3 + $0x1a4] ss:$16 sps:$4 sm:$0xff]  }
 0xbdd   :  { %3843 = vmatpush1.bf16.msra.mxu1 %v11218_v63  ;;  %3884 = vmatpush1.bf16.msra.mxu0 %v11224_v1  ;;  %14297 = vst [vmem:[#allocation25_spill] sm:$0xff] %v11328_v7 }
 0xbde   :  { %3844 = vmatprep.subr.bf16.mxu1 %v11230_v5  ;;  %3885 = vmatprep.subr.bf16.mxu0 %v11236_v6 }
 0xbdf   :  { %3874 = vmatprep.mubr.bf16.mxu1 %v13884_v50  ;;  %3915 = vmatprep.mubr.bf16.mxu0 %v13884_v50 }
 0xbe1   :  { %3845 = vmatpush1.bf16.msra.mxu1 %v11244_v11  ;;  %3886 = vmatpush1.bf16.msra.mxu0 %v11250_v12 }
 0xbe2   :  { %3846 = vmatprep.subr.bf16.mxu1 %v11256_v14  ;;  %3887 = vmatprep.subr.bf16.mxu0 %v11262_v15 }
 0xbe5   :  { %3847 = vmatpush1.bf16.msra.mxu1 %v11268_v16  ;;  %3888 = vmatpush1.bf16.msra.mxu0 %v11274_v17 }
 0xbe6   :  { %3848 = vmatprep.subr.bf16.mxu1 %v11280_v18  ;;  %3889 = vmatprep.subr.bf16.mxu0 %v11286_v19 }
 0xbe9   :  { %3849 = vmatpush1.bf16.msra.mxu1 %v11292_v20  ;;  %3890 = vmatpush1.bf16.msra.mxu0 %v11298_v10  ;;  %v14313_v10 = vld [vmem:[#allocation69_spill] sm:$0xff] }
 0xbea   :  { %3850 = vmatprep.subr.bf16.mxu1 %v11304_v21  ;;  %3891 = vmatprep.subr.bf16.mxu0 %v11310_v22 }
 0xbed   :  { %3851 = vmatpush1.bf16.msra.mxu1 %v11316_v23  ;;  %3892 = vmatpush1.bf16.msra.mxu0 %v11322_v54 }
 0xbee   :  { %3852 = vmatprep.subr.bf16.mxu1 %v11328_v7  ;;  %3893 = vmatprep.subr.bf16.mxu0 %v11334_v34 }
 0xbf1   :  { %3853 = vmatpush1.bf16.msra.mxu1 %v11340_v43  ;;  %3894 = vmatpush1.bf16.msra.mxu0 %v11346_v4  ;;  %v14312_v43 = vld [vmem:[#allocation68_spill] sm:$0xff] }
 0xbf2   :  { %3854 = vmatprep.subr.bf16.mxu1 %v11352_v36  ;;  %3895 = vmatprep.subr.bf16.mxu0 %v11358_v3  ;;  %v14311_v3 = vld [vmem:[#allocation67_spill] sm:$0xff] }
 0xbf5   :  { %3855 = vmatpush1.bf16.msra.mxu1 %v11364_v46  ;;  %3896 = vmatpush1.bf16.msra.mxu0 %v11370_v37  ;;  %v11394_v37 = vld [vmem:[%s13420_s3 + $0x1e8] ss:$16 sps:$4 sm:$0xff]  }
 0xbf6   :  { %3856 = vmatprep.subr.bf16.mxu1 %v11376_v38  ;;  %3897 = vmatprep.subr.bf16.mxu0 %v11382_v41  ;;  %14308 = vst [vmem:[#allocation40_spill] sm:$0xff] %v11394_v37  ;;  %v11400_v38 = vld [vmem:[%s13421_s4 + $0x104] ss:$16 sps:$4 sm:$0xff]   ;;  %v11406_v41 = vld [vmem:[%s13421_s4 + $0x10c] ss:$16 sps:$4 sm:$0xff]  }
 0xbf7   :  { %14309 = vst [vmem:[#allocation65_spill] sm:$0xff] %v11400_v38  ;;  %14310 = vst [vmem:[#allocation66_spill] sm:$0xff] %v11406_v41 }
 0xbf9   :  { %3857 = vmatpush1.bf16.msra.mxu1 %v11388_v57  ;;  %3898 = vmatpush1.bf16.msra.mxu0 %v11394_v37 }
 0xbfa   :  { %3924 = vmatprep.subr.bf16.mxu1 %v11400_v38  ;;  %3965 = vmatprep.subr.bf16.mxu0 %v11406_v41 }
 0xc8f   :  { %v3651_v57 = vpop.f32.mrb[56].mxu1  ;;  %v11409_v46 = vpop.f32.mrb[64].mxu0 }
 0xc90   :  { %v6831_v36 = vadd.f32 %v3651_v57, %v14311_v3  ;;  %v3653_v37 = vpop.f32.mrb[57].mxu1  ;;  %v3694_v4 = vpop.f32.mrb[65].mxu0 }
 0xc91   :  { %v6832_v34 = vadd.f32 %v3653_v37, %v14312_v43  ;;  %v3655_v7 = vpop.f32.mrb[58].mxu1  ;;  %v3696_v54 = vpop.f32.mrb[66].mxu0  ;;  %v6834_v20 = vadd.f32 %v3694_v4, %v14313_v10  ;;  %v14315_v4 = vld [vmem:[#allocation54_spill] sm:$0xff] }
 0xc92   :  { %v6463_v23 = vmul.f32 -1.442695, %v6831_v36  ;;  %v3656_v38 = vpop.f32.mrb[59].mxu1  ;;  %v3697_v22 = vpop.f32.mrb[67].mxu0 }
 0xc93   :  { %v6464_v21 = vmul.f32 -1.442695, %v6832_v34 }
 0xc94   :  { %7493 = vpow2.f32 %v6463_v23 }
 0xc95   :  { %7495 = vpow2.f32 %v6464_v21  ;;  %v14314_v21 = vld [vmem:[#allocation53_spill] sm:$0xff] }
 0xc96   :  { %7497 = vtanh.f32 %v6834_v20  ;;  %v14316_v20 = vld [vmem:[#allocation55_spill] sm:$0xff] }
 0xc9e   :  { %v7494_v41 = vpop.eup %7493 }
 0xc9f   :  { %v3712_v19 = vadd.f32 1.0, %v7494_v41  ;;  %v7496_v18 = vpop.eup %7495 }
 0xca0   :  { %v3713_v57 = vadd.f32 1.0, %v7496_v18  ;;  %v7498_v3 = vpop.eup %7497  ;;  %v14317_v18 = vld [vmem:[#allocation56_spill] sm:$0xff] }
 0xca1   :  { %7499 = vrcp.f32 %v3712_v19 }
 0xca2   :  { %7501 = vrcp.f32 %v3713_v57 }
 0xcab   :  { %v7500_v17 = vpop.eup %7499 }
 0xcac   :  { %v3723_v37 = vmul.f32 %v7500_v17, %v7498_v3  ;;  %v7502_v7 = vpop.eup %7501 }
 0xcad   :  { %v3722_v54 = vmul.f32 %v7502_v7, %v10876_v32 }
 0xcaf   :  { %v3765_v36 = vpop.f32.mrb[72].mxu1  ;;  %v3806_v22 = vpop.f32.mrb[80].mxu0  ;;  %v11415_v34 = vadd.f32 %v3723_v37, %v3722_v54 }
 0xcb0   :  { %v3813_v23 = vadd.f32 %v3765_v36, %v14314_v21  ;;  %v3815_v38 = vadd.f32 %v3806_v22, %v14315_v4  ;;  %v3767_v41 = vpop.f32.mrb[73].mxu1  ;;  %v3808_v10 = vpop.f32.mrb[81].mxu0 }
 0xcb1   :  { %v3814_v19 = vadd.f32 %v3767_v41, %v14316_v20  ;;  %v3816_v57 = vadd.f32 %v3808_v10, %v14317_v18  ;;  %v3769_v43 = vpop.f32.mrb[74].mxu1  ;;  %v3810_v16 = vpop.f32.mrb[82].mxu0 }
 0xcb2   :  { %v6466_v17 = vmul.f32 -1.442695, %v3813_v23  ;;  %v3770_v3 = vpop.f32.mrb[75].mxu1  ;;  %v3811_v15 = vpop.f32.mrb[83].mxu0  ;;  %v6468_v37 = vmul.f32 -1.442695, %v3815_v38 }
 0xcb3   :  { %v6467_v32 = vmul.f32 -1.442695, %v3814_v19  ;;  %v11450_v3 = vld [vmem:[%s13421_s4 + $0x12c] ss:$16 sps:$4 sm:$0xff]  }
 0xcb4   :  { %7503 = vpow2.f32 %v6466_v17  ;;  %v11444_v17 = vld [vmem:[%s13421_s4 + $0x124] ss:$16 sps:$4 sm:$0xff]  }
 0xcb5   :  { %7505 = vpow2.f32 %v6467_v32  ;;  %v11458_v32 = vld [vmem:[%s13421_s4 + $0x120] ss:$16 sps:$4 sm:$0xff]  }
 0xcb6   :  { %7507 = vtanh.f32 %v3816_v57  ;;  %v11432_v57 = vld [vmem:[%s13421_s4 + $0x100] ss:$16 sps:$4 sm:$0xff]  }
 0xcb7   :  { %7509 = vpow2.f32 %v6468_v37  ;;  %v11464_v37 = vld [vmem:[%s13421_s4 + $0x128] ss:$16 sps:$4 sm:$0xff]  }
 0xcbe   :  { %v7504_v7 = vpop.eup %7503 }
 0xcbf   :  { %v3826_v54 = vadd.f32 1.0, %v7504_v7  ;;  %v7506_v36 = vpop.eup %7505  ;;  %v11470_v7 = vld [vmem:[%s13421_s4 + $0x144] ss:$16 sps:$4 sm:$0xff]  }
 0xcc0   :  { %v3827_v22 = vadd.f32 1.0, %v7506_v36  ;;  %v7508_v21 = vpop.eup %7507  ;;  %14318 = vst [vmem:[#allocation49_spill] sm:$0xff] %v11470_v7  ;;  %v11482_v36 = vld [vmem:[%s13421_s4 + $0x140] ss:$16 sps:$4 sm:$0xff]  }
 0xcc1   :  { %7511 = vrcp.f32 %v3826_v54  ;;  %v7510_v4 = vpop.eup %7509  ;;  %v11476_v54 = vld [vmem:[%s13421_s4 + $0x14c] ss:$16 sps:$4 sm:$0xff]   ;;  %14320 = vst [vmem:[#allocation51_spill] sm:$0xff] %v11482_v36 }
 0xcc2   :  { %7513 = vrcp.f32 %v3827_v22  ;;  %v3828_v23 = vadd.f32 1.0, %v7510_v4  ;;  %14319 = vst [vmem:[#allocation50_spill] sm:$0xff] %v11476_v54  ;;  %v11488_v22 = vld [vmem:[%s13421_s4 + $0x148] ss:$16 sps:$4 sm:$0xff]   ;;  %v11500_v4 = vld [vmem:[%s13421_s4 + $0x16c] ss:$16 sps:$4 sm:$0xff]  }
 0xcc3   :  { %14321 = vst [vmem:[#allocation52_spill] sm:$0xff] %v11488_v22  ;;  %14323 = vst [vmem:[#allocation71_spill] sm:$0xff] %v11500_v4 }
 0xcc4   :  { %7515 = vrcp.f32 %v3828_v23  ;;  %v11524_v23 = vld [vmem:[%s13421_s4 + $0x18c] ss:$16 sps:$4 sm:$0xff]  }
 0xcc5   :  { %14327 = vst [vmem:[#allocation75_spill] sm:$0xff] %v11524_v23 }
 0xccb   :  { %v7512_v10 = vpop.eup %7511 }
 0xccc   :  { %v3837_v43 = vmul.f32 %v7512_v10, %v7508_v21  ;;  %v7514_v16 = vpop.eup %7513  ;;  %v11494_v21 = vld [vmem:[%s13421_s4 + $0x164] ss:$16 sps:$4 sm:$0xff]   ;;  %v11506_v10 = vld [vmem:[%s13421_s4 + $0x160] ss:$16 sps:$4 sm:$0xff]  }
 0xccd   :  { %v3836_v15 = vmul.f32 %v7514_v16, %v10883_v0  ;;  %v11438_v0 = vld [vmem:[%s13421_s4 + $0x108] ss:$16 sps:$4 sm:$0xff]   ;;  %14322 = vst [vmem:[#allocation70_spill] sm:$0xff] %v11494_v21  ;;  %14324 = vst [vmem:[#allocation72_spill] sm:$0xff] %v11506_v10  ;;  %v11518_v16 = vld [vmem:[%s13421_s4 + $0x184] ss:$16 sps:$4 sm:$0xff]  }
 0xcce   :  { %v7516_v38 = vpop.eup %7515  ;;  %14326 = vst [vmem:[#allocation74_spill] sm:$0xff] %v11518_v16 }
 0xccf   :  { %v11422_v41 = vadd.f32 %v3837_v43, %v3836_v15  ;;  %v11512_v43 = vld [vmem:[%s13421_s4 + $0x168] ss:$16 sps:$4 sm:$0xff]   ;;  %v11530_v15 = vld [vmem:[%s13421_s4 + $0x180] ss:$16 sps:$4 sm:$0xff]  }
 0xcd0   :  { %14325 = vst [vmem:[#allocation73_spill] sm:$0xff] %v11512_v43  ;;  %14328 = vst [vmem:[#allocation76_spill] sm:$0xff] %v11530_v15 }
 0xcd1   :  { %7517 = vtanh.f32 %v11422_v41 }
 0xcdb   :  { %v7518_v20 = vpop.eup %7517 }
 0xcdc   :  { %v3840_v19 = vmul.f32 %v7518_v20, %v7516_v38  ;;  %v11536_v38 = vld [vmem:[%s13421_s4 + $0x188] ss:$16 sps:$4 sm:$0xff]   ;;  %v11542_v20 = vld [vmem:[%s13421_s4 + $0x1a4] ss:$16 sps:$4 sm:$0xff]  }
 0xcdd   :  { %14329 = vst [vmem:[#allocation77_spill] sm:$0xff] %v11536_v38  ;;  %14330 = vst [vmem:[#allocation78_spill] sm:$0xff] %v11542_v20 }
 0xcde   :  { %v11425_v18 = vpack.c.bf16 %v3840_v19, %v3840_v19  ;;  %v11548_v19 = vld [vmem:[%s13421_s4 + $0x1ac] ss:$16 sps:$4 sm:$0xff]  }
 0xcdf   :  { %14331 = vst [vmem:[#allocation79_spill] sm:$0xff] %v11548_v19 }
 0xce0   :  { %3875 = vmatmul.mubr.bf16.vlgmr.msra.gmra.mrb[76].mxu1 %v11425_v18  ;;  %3916 = vmatmul.mubr.bf16.vlgmr.msra.gmra.mrb[84].mxu0 %v11425_v18 }
 0xce1   :  { %3925 = vmatpush1.bf16.msra.mxu1 %v11432_v57  ;;  %3966 = vmatpush1.bf16.msra.mxu0 %v11438_v0 }
 0xce2   :  { %3926 = vmatprep.subr.bf16.mxu1 %v11444_v17  ;;  %3967 = vmatprep.subr.bf16.mxu0 %v11450_v3 }
 0xce3   :  { %3956 = vmatprep.mubr.bf16.mxu1 %v13884_v50  ;;  %3997 = vmatprep.mubr.bf16.mxu0 %v13884_v50 }
 0xce5   :  { %3927 = vmatpush1.bf16.msra.mxu1 %v11458_v32  ;;  %3968 = vmatpush1.bf16.msra.mxu0 %v11464_v37 }
 0xce6   :  { %3928 = vmatprep.subr.bf16.mxu1 %v11470_v7  ;;  %3969 = vmatprep.subr.bf16.mxu0 %v11476_v54 }
 0xce9   :  { %3929 = vmatpush1.bf16.msra.mxu1 %v11482_v36  ;;  %3970 = vmatpush1.bf16.msra.mxu0 %v11488_v22 }
 0xcea   :  { %3930 = vmatprep.subr.bf16.mxu1 %v11494_v21  ;;  %3971 = vmatprep.subr.bf16.mxu0 %v11500_v4 }
 0xced   :  { %3931 = vmatpush1.bf16.msra.mxu1 %v11506_v10  ;;  %3972 = vmatpush1.bf16.msra.mxu0 %v11512_v43 }
 0xcee   :  { %3932 = vmatprep.subr.bf16.mxu1 %v11518_v16  ;;  %3973 = vmatprep.subr.bf16.mxu0 %v11524_v23 }
 0xcf1   :  { %3933 = vmatpush1.bf16.msra.mxu1 %v11530_v15  ;;  %3974 = vmatpush1.bf16.msra.mxu0 %v11536_v38  ;;  %v11554_v15 = vld [vmem:[%s13421_s4 + $0x1a0] ss:$16 sps:$4 sm:$0xff]   ;;  %v11560_v38 = vld [vmem:[%s13421_s4 + $0x1a8] ss:$16 sps:$4 sm:$0xff]  }
 0xcf2   :  { %3934 = vmatprep.subr.bf16.mxu1 %v11542_v20  ;;  %3975 = vmatprep.subr.bf16.mxu0 %v11548_v19  ;;  %14332 = vst [vmem:[#allocation80_spill] sm:$0xff] %v11554_v15  ;;  %14333 = vst [vmem:[#allocation81_spill] sm:$0xff] %v11560_v38  ;;  %v11566_v20 = vld [vmem:[%s13421_s4 + $0x1c4] ss:$16 sps:$4 sm:$0xff]   ;;  %v11572_v19 = vld [vmem:[%s13421_s4 + $0x1cc] ss:$16 sps:$4 sm:$0xff]  }
 0xcf3   :  { %14334 = vst [vmem:[#allocation82_spill] sm:$0xff] %v11566_v20  ;;  %14335 = vst [vmem:[#allocation83_spill] sm:$0xff] %v11572_v19 }
 0xcf5   :  { %3935 = vmatpush1.bf16.msra.mxu1 %v11554_v15  ;;  %3976 = vmatpush1.bf16.msra.mxu0 %v11560_v38  ;;  %v11578_v15 = vld [vmem:[%s13421_s4 + $0x1c0] ss:$16 sps:$4 sm:$0xff]   ;;  %v11584_v38 = vld [vmem:[%s13421_s4 + $0x1c8] ss:$16 sps:$4 sm:$0xff]  }
 0xcf6   :  { %3936 = vmatprep.subr.bf16.mxu1 %v11566_v20  ;;  %3977 = vmatprep.subr.bf16.mxu0 %v11572_v19  ;;  %14336 = vst [vmem:[#allocation84_spill] sm:$0xff] %v11578_v15  ;;  %14337 = vst [vmem:[#allocation85_spill] sm:$0xff] %v11584_v38  ;;  %v11590_v20 = vld [vmem:[%s13421_s4 + $0x1e4] ss:$16 sps:$4 sm:$0xff]   ;;  %v11596_v19 = vld [vmem:[%s13421_s4 + $0x1ec] ss:$16 sps:$4 sm:$0xff]  }
 0xcf7   :  { %14338 = vst [vmem:[#allocation86_spill] sm:$0xff] %v11590_v20  ;;  %14339 = vst [vmem:[#allocation87_spill] sm:$0xff] %v11596_v19 }
 0xcf9   :  { %3937 = vmatpush1.bf16.msra.mxu1 %v11578_v15  ;;  %3978 = vmatpush1.bf16.msra.mxu0 %v11584_v38  ;;  %v11602_v15 = vld [vmem:[%s13421_s4 + $0x1e0] ss:$16 sps:$4 sm:$0xff]   ;;  %v11608_v38 = vld [vmem:[%s13421_s4 + $0x1e8] ss:$16 sps:$4 sm:$0xff]  }
 0xcfa   :  { %3938 = vmatprep.subr.bf16.mxu1 %v11590_v20  ;;  %3979 = vmatprep.subr.bf16.mxu0 %v11596_v19  ;;  %14340 = vst [vmem:[#allocation88_spill] sm:$0xff] %v11602_v15  ;;  %14341 = vst [vmem:[#allocation89_spill] sm:$0xff] %v11608_v38  ;;  %v11614_v20 = vld [vmem:[%s13420_s3 + $0x204] ss:$16 sps:$4 sm:$0xff]   ;;  %v11620_v19 = vld [vmem:[%s13420_s3 + $0x20c] ss:$16 sps:$4 sm:$0xff]  }
 0xcfb   :  { %14342 = vst [vmem:[#allocation90_spill] sm:$0xff] %v11614_v20  ;;  %14343 = vst [vmem:[#allocation91_spill] sm:$0xff] %v11620_v19 }
 0xcfd   :  { %3939 = vmatpush1.bf16.msra.mxu1 %v11602_v15  ;;  %3980 = vmatpush1.bf16.msra.mxu0 %v11608_v38  ;;  %v11628_v38 = vld [vmem:[%s13420_s3 + $0x200] ss:$16 sps:$4 sm:$0xff]  }
 0xcfe   :  { %4035 = vmatprep.subr.bf16.mxu1 %v11614_v20  ;;  %4076 = vmatprep.subr.bf16.mxu0 %v11620_v19  ;;  %14344 = vst [vmem:[#allocation94_spill] sm:$0xff] %v11628_v38  ;;  %v11634_v20 = vld [vmem:[%s13420_s3 + $0x208] ss:$16 sps:$4 sm:$0xff]   ;;  %v11640_v19 = vld [vmem:[%s13420_s3 + $0x224] ss:$16 sps:$4 sm:$0xff]  }
 0xcff   :  { %14345 = vst [vmem:[#allocation92_spill] sm:$0xff] %v11634_v20  ;;  %14346 = vst [vmem:[#allocation93_spill] sm:$0xff] %v11640_v19 }
 0xd00   :  { %3957 = vmatmul.mubr.bf16.vlgmr.msra.gmra.mrb[64].mxu1 %v10980_v27  ;;  %3998 = vmatmul.mubr.bf16.vlgmr.msra.gmra.mrb[72].mxu0 %v10980_v27  ;;  %v11646_v27 = vld [vmem:[%s13420_s3 + $0x22c] ss:$16 sps:$4 sm:$0xff]  }
 0xd01   :  { %4036 = vmatpush1.bf16.msra.mxu1 %v11628_v38  ;;  %4077 = vmatpush1.bf16.msra.mxu0 %v11634_v20  ;;  %14347 = vst [vmem:[#allocation95_spill] sm:$0xff] %v11646_v27  ;;  %v11654_v20 = vld [vmem:[%s13420_s3 + $0x220] ss:$16 sps:$4 sm:$0xff]   ;;  %v11672_v38 = vld [vmem:[%s13420_s3 + $0x24c] ss:$16 sps:$4 sm:$0xff]  }
 0xd02   :  { %4037 = vmatprep.subr.bf16.mxu1 %v11640_v19  ;;  %4078 = vmatprep.subr.bf16.mxu0 %v11646_v27  ;;  %14348 = vst [vmem:[#allocation96_spill] sm:$0xff] %v11654_v20  ;;  %v11660_v19 = vld [vmem:[%s13420_s3 + $0x228] ss:$16 sps:$4 sm:$0xff]   ;;  %v11666_v27 = vld [vmem:[%s13420_s3 + $0x244] ss:$16 sps:$4 sm:$0xff]   ;;  %14351 = vst [vmem:[#allocation99_spill] sm:$0xff] %v11672_v38 }
 0xd03   :  { %4067 = vmatprep.mubr.bf16.mxu1 %v13884_v50  ;;  %4108 = vmatprep.mubr.bf16.mxu0 %v13884_v50  ;;  %14349 = vst [vmem:[#allocation97_spill] sm:$0xff] %v11660_v19  ;;  %14350 = vst [vmem:[#allocation98_spill] sm:$0xff] %v11666_v27 }
 0xd05   :  { %4038 = vmatpush1.bf16.msra.mxu1 %v11654_v20  ;;  %4079 = vmatpush1.bf16.msra.mxu0 %v11660_v19  ;;  %v11678_v20 = vld [vmem:[%s13420_s3 + $0x240] ss:$16 sps:$4 sm:$0xff]   ;;  %v11684_v19 = vld [vmem:[%s13420_s3 + $0x248] ss:$16 sps:$4 sm:$0xff]  }
 0xd06   :  { %4039 = vmatprep.subr.bf16.mxu1 %v11666_v27  ;;  %4080 = vmatprep.subr.bf16.mxu0 %v11672_v38  ;;  %14352 = vst [vmem:[#allocation100_spill] sm:$0xff] %v11678_v20  ;;  %14353 = vst [vmem:[#allocation101_spill] sm:$0xff] %v11684_v19  ;;  %v11690_v27 = vld [vmem:[%s13420_s3 + $0x264] ss:$16 sps:$4 sm:$0xff]   ;;  %v11696_v38 = vld [vmem:[%s13420_s3 + $0x26c] ss:$16 sps:$4 sm:$0xff]  }
 0xd07   :  { %14354 = vst [vmem:[#allocation102_spill] sm:$0xff] %v11690_v27  ;;  %14355 = vst [vmem:[#allocation103_spill] sm:$0xff] %v11696_v38 }
 0xd09   :  { %4040 = vmatpush1.bf16.msra.mxu1 %v11678_v20  ;;  %4081 = vmatpush1.bf16.msra.mxu0 %v11684_v19  ;;  %v11702_v20 = vld [vmem:[%s13420_s3 + $0x260] ss:$16 sps:$4 sm:$0xff]   ;;  %v11708_v19 = vld [vmem:[%s13420_s3 + $0x268] ss:$16 sps:$4 sm:$0xff]  }
 0xd0a   :  { %4041 = vmatprep.subr.bf16.mxu1 %v11690_v27  ;;  %4082 = vmatprep.subr.bf16.mxu0 %v11696_v38  ;;  %14356 = vst [vmem:[#allocation104_spill] sm:$0xff] %v11702_v20  ;;  %14357 = vst [vmem:[#allocation105_spill] sm:$0xff] %v11708_v19  ;;  %v11714_v27 = vld [vmem:[%s13420_s3 + $0x284] ss:$16 sps:$4 sm:$0xff]   ;;  %v11720_v38 = vld [vmem:[%s13420_s3 + $0x28c] ss:$16 sps:$4 sm:$0xff]  }
 0xd0b   :  { %14358 = vst [vmem:[#allocation106_spill] sm:$0xff] %v11714_v27  ;;  %14359 = vst [vmem:[#allocation107_spill] sm:$0xff] %v11720_v38 }
 0xd0d   :  { %4042 = vmatpush1.bf16.msra.mxu1 %v11702_v20  ;;  %4083 = vmatpush1.bf16.msra.mxu0 %v11708_v19  ;;  %v11726_v20 = vld [vmem:[%s13420_s3 + $0x280] ss:$16 sps:$4 sm:$0xff]   ;;  %v11732_v19 = vld [vmem:[%s13420_s3 + $0x288] ss:$16 sps:$4 sm:$0xff]  }
 0xd0e   :  { %4043 = vmatprep.subr.bf16.mxu1 %v11714_v27  ;;  %4084 = vmatprep.subr.bf16.mxu0 %v11720_v38  ;;  %14360 = vst [vmem:[#allocation108_spill] sm:$0xff] %v11726_v20  ;;  %14361 = vst [vmem:[#allocation109_spill] sm:$0xff] %v11732_v19  ;;  %v11738_v27 = vld [vmem:[%s13420_s3 + $0x2a4] ss:$16 sps:$4 sm:$0xff]   ;;  %v11744_v38 = vld [vmem:[%s13420_s3 + $0x2ac] ss:$16 sps:$4 sm:$0xff]  }
 0xd0f   :  { %14362 = vst [vmem:[#allocation33_spill] sm:$0xff] %v11738_v27  ;;  %14363 = vst [vmem:[#allocation35_spill] sm:$0xff] %v11744_v38 }
 0xd11   :  { %4044 = vmatpush1.bf16.msra.mxu1 %v11726_v20  ;;  %4085 = vmatpush1.bf16.msra.mxu0 %v11732_v19  ;;  %v11750_v20 = vld [vmem:[%s13420_s3 + $0x2a0] ss:$16 sps:$4 sm:$0xff]   ;;  %v11756_v19 = vld [vmem:[%s13420_s3 + $0x2a8] ss:$16 sps:$4 sm:$0xff]  }
 0xd12   :  { %4045 = vmatprep.subr.bf16.mxu1 %v11738_v27  ;;  %4086 = vmatprep.subr.bf16.mxu0 %v11744_v38  ;;  %14364 = vst [vmem:[#allocation36_spill] sm:$0xff] %v11750_v20  ;;  %14365 = vst [vmem:[#allocation45_spill] sm:$0xff] %v11756_v19  ;;  %v11762_v27 = vld [vmem:[%s13420_s3 + $0x2c4] ss:$16 sps:$4 sm:$0xff]   ;;  %v11768_v38 = vld [vmem:[%s13420_s3 + $0x2cc] ss:$16 sps:$4 sm:$0xff]  }
 0xd13   :  { %14366 = vst [vmem:[#allocation46_spill] sm:$0xff] %v11762_v27  ;;  %14367 = vst [vmem:[#allocation47_spill] sm:$0xff] %v11768_v38 }
 0xd15   :  { %4046 = vmatpush1.bf16.msra.mxu1 %v11750_v20  ;;  %4087 = vmatpush1.bf16.msra.mxu0 %v11756_v19  ;;  %v11774_v20 = vld [vmem:[%s13420_s3 + $0x2c0] ss:$16 sps:$4 sm:$0xff]   ;;  %v11780_v19 = vld [vmem:[%s13420_s3 + $0x2c8] ss:$16 sps:$4 sm:$0xff]  }
 0xd16   :  { %4047 = vmatprep.subr.bf16.mxu1 %v11762_v27  ;;  %4088 = vmatprep.subr.bf16.mxu0 %v11768_v38  ;;  %14368 = vst [vmem:[#allocation48_spill] sm:$0xff] %v11774_v20  ;;  %14369 = vst [vmem:[#allocation110_spill] sm:$0xff] %v11780_v19  ;;  %v11786_v27 = vld [vmem:[%s13420_s3 + $0x2e4] ss:$16 sps:$4 sm:$0xff]   ;;  %v11792_v38 = vld [vmem:[%s13420_s3 + $0x2ec] ss:$16 sps:$4 sm:$0xff]  }
 0xd17   :  { %14370 = vst [vmem:[#allocation111_spill] sm:$0xff] %v11786_v27  ;;  %14371 = vst [vmem:[#allocation112_spill] sm:$0xff] %v11792_v38 }
 0xd19   :  { %4048 = vmatpush1.bf16.msra.mxu1 %v11774_v20  ;;  %4089 = vmatpush1.bf16.msra.mxu0 %v11780_v19  ;;  %v11798_v20 = vld [vmem:[%s13420_s3 + $0x2e0] ss:$16 sps:$4 sm:$0xff]   ;;  %v11804_v19 = vld [vmem:[%s13420_s3 + $0x2e8] ss:$16 sps:$4 sm:$0xff]  }
 0xd1a   :  { %4049 = vmatprep.subr.bf16.mxu1 %v11786_v27  ;;  %4090 = vmatprep.subr.bf16.mxu0 %v11792_v38  ;;  %14372 = vst [vmem:[#allocation113_spill] sm:$0xff] %v11798_v20  ;;  %14373 = vst [vmem:[#allocation114_spill] sm:$0xff] %v11804_v19 }
 0xd1d   :  { %4050 = vmatpush1.bf16.msra.mxu1 %v11798_v20  ;;  %4091 = vmatpush1.bf16.msra.mxu0 %v11804_v19 }
 0xd1e   :  { %4118 = vmatprep.subr.bf16.mxu1 %v10961_v56  ;;  %4159 = vmatprep.subr.bf16.mxu0 %v10967_v26 }
 0xdd3   :  { %v3958_v27 = vpop.f32.mrb[64].mxu1  ;;  %v3999_v38 = vpop.f32.mrb[72].mxu0 }
 0xdd4   :  { %v6835_v15 = vadd.f32 %v3958_v27, %v14049_v58  ;;  %v3960_v23 = vpop.f32.mrb[65].mxu1  ;;  %v4001_v16 = vpop.f32.mrb[73].mxu0  ;;  %v6837_v56 = vadd.f32 %v3999_v38, %v9407_v59 }
 0xdd5   :  { %v6836_v43 = vadd.f32 %v3960_v23, %v9402_v33  ;;  %v3962_v20 = vpop.f32.mrb[66].mxu1  ;;  %v4003_v10 = vpop.f32.mrb[74].mxu0  ;;  %v6838_v26 = vadd.f32 %v4001_v16, %v9410_v62 }
 0xdd6   :  { %v6469_v4 = vmul.f32 -1.442695, %v6835_v15  ;;  %v3963_v21 = vpop.f32.mrb[67].mxu1  ;;  %v4004_v22 = vpop.f32.mrb[75].mxu0  ;;  %v6471_v19 = vmul.f32 -1.442695, %v6837_v56 }
 0xdd7   :  { %v6470_v36 = vmul.f32 -1.442695, %v6836_v43 }
 0xdd8   :  { %7519 = vpow2.f32 %v6469_v4 }
 0xdd9   :  { %7521 = vpow2.f32 %v6470_v36 }
 0xdda   :  { %7523 = vtanh.f32 %v6838_v26  ;;  %v11909_v26 = vld [vmem:[%s13421_s4 + $0x44] ss:$16 sps:$4 sm:$0xff]  }
 0xddb   :  { %7525 = vpow2.f32 %v6471_v19 }
 0xde2   :  { %v7520_v54 = vpop.eup %7519 }
 0xde3   :  { %v4019_v7 = vadd.f32 1.0, %v7520_v54  ;;  %v7522_v27 = vpop.eup %7521  ;;  %v6833_v54 = vadd.f32 %v11409_v46, %v10597_v30  ;;  %v11903_v46 = vld [vmem:[%s13421_s4 + $0x28] ss:$16 sps:$4 sm:$0xff]  }
 0xde4   :  { %v4020_v23 = vadd.f32 1.0, %v7522_v27  ;;  %v7524_v10 = vpop.eup %7523  ;;  %v11915_v27 = vld [vmem:[%s13421_s4 + $0x4c] ss:$16 sps:$4 sm:$0xff]  }
 0xde5   :  { %7527 = vrcp.f32 %v4019_v7  ;;  %v7526_v15 = vpop.eup %7525  ;;  %v6465_v7 = vmul.f32 -1.442695, %v6833_v54  ;;  %v11969_v54 = vld [vmem:[%s13421_s4 + $0x80] ss:$16 sps:$4 sm:$0xff]  }
 0xde6   :  { %7529 = vrcp.f32 %v4020_v23  ;;  %v4021_v4 = vadd.f32 1.0, %v7526_v15  ;;  %v11921_v23 = vld [vmem:[%s13421_s4 + $0x40] ss:$16 sps:$4 sm:$0xff]   ;;  %v11933_v15 = vld [vmem:[%s13421_s4 + $0x64] ss:$16 sps:$4 sm:$0xff]  }
 0xde8   :  { %7531 = vrcp.f32 %v4021_v4  ;;  %v11957_v4 = vld [vmem:[%s13421_s4 + $0x84] ss:$16 sps:$4 sm:$0xff]  }
 0xdef   :  { %v7528_v21 = vpop.eup %7527 }
 0xdf0   :  { %v4030_v22 = vmul.f32 %v7528_v21, %v7524_v10  ;;  %v7530_v43 = vpop.eup %7529  ;;  %v11927_v10 = vld [vmem:[%s13421_s4 + $0x48] ss:$16 sps:$4 sm:$0xff]   ;;  %v11939_v21 = vld [vmem:[%s13421_s4 + $0x6c] ss:$16 sps:$4 sm:$0xff]  }
 0xdf1   :  { %v4029_v36 = vmul.f32 %v7530_v43, %v10975_v51  ;;  %v11951_v43 = vld [vmem:[%s13421_s4 + $0x68] ss:$16 sps:$4 sm:$0xff]  }
 0xdf2   :  { %v7532_v16 = vpop.eup %7531 }
 0xdf3   :  { %v11814_v38 = vadd.f32 %v4030_v22, %v4029_v36  ;;  %v11945_v22 = vld [vmem:[%s13421_s4 + $0x60] ss:$16 sps:$4 sm:$0xff]   ;;  %v11963_v36 = vld [vmem:[%s13421_s4 + $0x8c] ss:$16 sps:$4 sm:$0xff]  }
 0xdf5   :  { %7533 = vtanh.f32 %v11814_v38 }
 0xdf6   :  { %7535 = vpow2.f32 %v6465_v7  ;;  %v11981_v7 = vld [vmem:[%s13421_s4 + $0xa4] ss:$16 sps:$4 sm:$0xff]  }
 0xdf7   :  { %7537 = vtanh.f32 %v11415_v34 }
 0xdff   :  { %v7534_v20 = vpop.eup %7533 }
 0xe00   :  { %v4033_v19 = vmul.f32 %v7534_v20, %v7532_v16  ;;  %v7536_v51 = vpop.eup %7535  ;;  %v11975_v16 = vld [vmem:[%s13421_s4 + $0x88] ss:$16 sps:$4 sm:$0xff]   ;;  %v11987_v20 = vld [vmem:[%s13421_s4 + $0xac] ss:$16 sps:$4 sm:$0xff]  }
 0xe02   :  { %v11819_v56 = vpack.c.bf16 %v4033_v19, %v4033_v19  ;;  %v11993_v19 = vld [vmem:[%s13421_s4 + $0xa0] ss:$16 sps:$4 sm:$0xff]  }
 0xe04   :  { %4068 = vmatmul.mubr.bf16.vlgmr.msra.gmra.mrb[80].mxu1 %v11819_v56  ;;  %4109 = vmatmul.mubr.bf16.vlgmr.msra.gmra.mrb[88].mxu0 %v11819_v56 }
 0xe05   :  { %4119 = vmatpush1.bf16.msra.mxu1 %v10987_v55  ;;  %4160 = vmatpush1.bf16.msra.mxu0 %v10993_v45  ;;  %v3714_v55 = vadd.f32 1.0, %v7536_v51  ;;  %v14374_v45 = vld [vmem:[#allocation41_spill] sm:$0xff]  ;;  %v11999_v51 = vld [vmem:[%s13421_s4 + $0xa8] ss:$16 sps:$4 sm:$0xff]  }
 0xe06   :  { %4120 = vmatprep.subr.bf16.mxu1 %v10999_v9  ;;  %4161 = vmatprep.subr.bf16.mxu0 %v11005_v28  ;;  %v14375_v9 = vld [vmem:[#allocation42_spill] sm:$0xff]  ;;  %v14376_v28 = vld [vmem:[#allocation43_spill] sm:$0xff] }
 0xe07   :  { %4150 = vmatprep.mubr.bf16.mxu1 %v13884_v50  ;;  %4191 = vmatprep.mubr.bf16.mxu0 %v13884_v50  ;;  %7539 = vrcp.f32 %v3714_v55  ;;  %v12005_v55 = vld [vmem:[%s13421_s4 + $0xc4] ss:$16 sps:$4 sm:$0xff]  }
 0xe09   :  { %4121 = vmatpush1.bf16.msra.mxu1 %v11013_v13  ;;  %4162 = vmatpush1.bf16.msra.mxu0 %v11019_v48  ;;  %v14377_v13 = vld [vmem:[#allocation44_spill] sm:$0xff]  ;;  %v14378_v48 = vld [vmem:[#allocation9_spill] sm:$0xff] }
 0xe0a   :  { %4122 = vmatprep.subr.bf16.mxu1 %v11025_v47  ;;  %4163 = vmatprep.subr.bf16.mxu0 %v11031_v39  ;;  %v14379_v47 = vld [vmem:[#allocation10_spill] sm:$0xff]  ;;  %v7538_v39 = vpop.eup %7537 }
 0xe0d   :  { %4123 = vmatpush1.bf16.msra.mxu1 %v11037_v40  ;;  %4164 = vmatpush1.bf16.msra.mxu0 %v11043_v42  ;;  %v14380_v42 = vld [vmem:[#allocation11_spill] sm:$0xff] }
 0xe0e   :  { %4124 = vmatprep.subr.bf16.mxu1 %v11049_v52  ;;  %4165 = vmatprep.subr.bf16.mxu0 %v11055_v29  ;;  %v14381_v52 = vld [vmem:[#allocation12_spill] sm:$0xff]  ;;  %v14382_v29 = vld [vmem:[#allocation13_spill] sm:$0xff] }
 0xe11   :  { %4125 = vmatpush1.bf16.msra.mxu1 %v11062_v24  ;;  %4166 = vmatpush1.bf16.msra.mxu0 %v11068_v49  ;;  %v7540_v40 = vpop.eup %7539 }
 0xe12   :  { %4126 = vmatprep.subr.bf16.mxu1 %v11074_v53  ;;  %4167 = vmatprep.subr.bf16.mxu0 %v11080_v31  ;;  %v3726_v24 = vmul.f32 %v7540_v40, %v7538_v39  ;;  %v11859_v53 = vld [vmem:[%s13421_s4 + $0x4] ss:$16 sps:$4 sm:$0xff]   ;;  %v11865_v31 = vld [vmem:[%s13421_s4 + $0xc] ss:$16 sps:$4 sm:$0xff]   ;;  %v12047_v39 = vld [vmem:[%s13421_s4 + $0xe8] ss:$16 sps:$4 sm:$0xff]  }
 0xe13   :  { %14388 = vst [vmem:[#allocation119_spill] sm:$0xff] %v12047_v39  ;;  %v14396_v40 = vld [vmem:[#allocation21_spill] sm:$0xff] }
 0xe14   :  { %v4117_v49 = vpack.c.bf16 %v3726_v24, %v3726_v24  ;;  %v14403_v24 = vld [vmem:[#allocation28_spill] sm:$0xff] }
 0xe15   :  { %4127 = vmatpush1.bf16.msra.mxu1 %v11086_v44  ;;  %4168 = vmatpush1.bf16.msra.mxu0 %v11092_v2  ;;  %v11871_v44 = vld [vmem:[%s13421_s4] ss:$16 sps:$4 sm:$0xff]   ;;  %v11877_v2 = vld [vmem:[%s13421_s4 + $0x8] ss:$16 sps:$4 sm:$0xff]  }
 0xe16   :  { %4128 = vmatprep.subr.bf16.mxu1 %v14374_v45  ;;  %4169 = vmatprep.subr.bf16.mxu0 %v14375_v9  ;;  %v12011_v45 = vld [vmem:[%s13421_s4 + $0xcc] ss:$16 sps:$4 sm:$0xff]   ;;  %v12017_v9 = vld [vmem:[%s13421_s4 + $0xc0] ss:$16 sps:$4 sm:$0xff]  }
 0xe17   :  { %14383 = vst [vmem:[#allocation115_spill] sm:$0xff] %v12017_v9 }
 0xe19   :  { %4129 = vmatpush1.bf16.msra.mxu1 %v14376_v28  ;;  %4170 = vmatpush1.bf16.msra.mxu0 %v14377_v13  ;;  %v12023_v28 = vld [vmem:[%s13421_s4 + $0xc8] ss:$16 sps:$4 sm:$0xff]   ;;  %v12029_v13 = vld [vmem:[%s13421_s4 + $0xe4] ss:$16 sps:$4 sm:$0xff]  }
 0xe1a   :  { %4130 = vmatprep.subr.bf16.mxu1 %v14378_v48  ;;  %4171 = vmatprep.subr.bf16.mxu0 %v14379_v47  ;;  %14384 = vst [vmem:[#allocation116_spill] sm:$0xff] %v12023_v28  ;;  %14385 = vst [vmem:[#allocation117_spill] sm:$0xff] %v12029_v13  ;;  %v12035_v48 = vld [vmem:[%s13421_s4 + $0xec] ss:$16 sps:$4 sm:$0xff]   ;;  %v12041_v47 = vld [vmem:[%s13421_s4 + $0xe0] ss:$16 sps:$4 sm:$0xff]  }
 0xe1b   :  { %14386 = vst [vmem:[#allocation118_spill] sm:$0xff] %v12035_v48  ;;  %14387 = vst [vmem:[#allocation34_spill] sm:$0xff] %v12041_v47 }
 0xe1d   :  { %4131 = vmatpush1.bf16.msra.mxu1 %v14380_v42  ;;  %4172 = vmatpush1.bf16.msra.mxu0 %v14381_v52  ;;  %v14400_v42 = vld [vmem:[#allocation25_spill] sm:$0xff]  ;;  %v14401_v52 = vld [vmem:[#allocation26_spill] sm:$0xff] }
 0xe1e   :  { %4132 = vmatprep.subr.bf16.mxu1 %v14382_v29  ;;  %4173 = vmatprep.subr.bf16.mxu0 %v11152_v35  ;;  %v11889_v35 = vld [vmem:[%s13421_s4 + $0x2c] ss:$16 sps:$4 sm:$0xff]   ;;  %v14402_v29 = vld [vmem:[#allocation27_spill] sm:$0xff] }
 0xe21   :  { %4133 = vmatpush1.bf16.msra.mxu1 %v11158_v8  ;;  %4174 = vmatpush1.bf16.msra.mxu0 %v11164_v25  ;;  %v11883_v8 = vld [vmem:[%s13421_s4 + $0x24] ss:$16 sps:$4 sm:$0xff]   ;;  %v11897_v25 = vld [vmem:[%s13421_s4 + $0x20] ss:$16 sps:$4 sm:$0xff]  }
 0xe22   :  { %4232 = vmatprep.subr.bf16.mxu1 %v11859_v53  ;;  %4273 = vmatprep.subr.bf16.mxu0 %v11865_v31 }
 0xe24   :  { %4151 = vmatmul.mubr.bf16.vlgmr.msra.gmra.mrb[68].mxu1 %v4117_v49  ;;  %4192 = vmatmul.mubr.bf16.vlgmr.msra.gmra.mrb[76].mxu0 %v4117_v49  ;;  %v14404_v49 = vld [vmem:[#allocation29_spill] sm:$0xff] }
 0xe25   :  { %4233 = vmatpush1.bf16.msra.mxu1 %v11871_v44  ;;  %4274 = vmatpush1.bf16.msra.mxu0 %v11877_v2 }
 0xe26   :  { %4234 = vmatprep.subr.bf16.mxu1 %v11883_v8  ;;  %4275 = vmatprep.subr.bf16.mxu0 %v11889_v35 }
 0xe27   :  { %4264 = vmatprep.mubr.bf16.mxu1 %v13884_v50  ;;  %4305 = vmatprep.mubr.bf16.mxu0 %v13884_v50 }
 0xe29   :  { %4235 = vmatpush1.bf16.msra.mxu1 %v11897_v25  ;;  %4276 = vmatpush1.bf16.msra.mxu0 %v11903_v46 }
 0xe2a   :  { %4236 = vmatprep.subr.bf16.mxu1 %v11909_v26  ;;  %4277 = vmatprep.subr.bf16.mxu0 %v11915_v27 }
 0xe2d   :  { %4237 = vmatpush1.bf16.msra.mxu1 %v11921_v23  ;;  %4278 = vmatpush1.bf16.msra.mxu0 %v11927_v10 }
 0xe2e   :  { %4238 = vmatprep.subr.bf16.mxu1 %v11933_v15  ;;  %4279 = vmatprep.subr.bf16.mxu0 %v11939_v21 }
 0xe31   :  { %4239 = vmatpush1.bf16.msra.mxu1 %v11945_v22  ;;  %4280 = vmatpush1.bf16.msra.mxu0 %v11951_v43 }
 0xe32   :  { %4240 = vmatprep.subr.bf16.mxu1 %v11957_v4  ;;  %4281 = vmatprep.subr.bf16.mxu0 %v11963_v36 }
 0xe35   :  { %4241 = vmatpush1.bf16.msra.mxu1 %v11969_v54  ;;  %4282 = vmatpush1.bf16.msra.mxu0 %v11975_v16 }
 0xe36   :  { %4242 = vmatprep.subr.bf16.mxu1 %v11981_v7  ;;  %4283 = vmatprep.subr.bf16.mxu0 %v11987_v20 }
 0xe39   :  { %4243 = vmatpush1.bf16.msra.mxu1 %v11993_v19  ;;  %4284 = vmatpush1.bf16.msra.mxu0 %v11999_v51 }
 0xe3a   :  { %4244 = vmatprep.subr.bf16.mxu1 %v12005_v55  ;;  %4285 = vmatprep.subr.bf16.mxu0 %v12011_v45 }
 0xe3d   :  { %4245 = vmatpush1.bf16.msra.mxu1 %v12017_v9  ;;  %4286 = vmatpush1.bf16.msra.mxu0 %v12023_v28 }
 0xe3e   :  { %4246 = vmatprep.subr.bf16.mxu1 %v12029_v13  ;;  %4287 = vmatprep.subr.bf16.mxu0 %v12035_v48 }
 0xe41   :  { %4247 = vmatpush1.bf16.msra.mxu1 %v12041_v47  ;;  %4288 = vmatpush1.bf16.msra.mxu0 %v12047_v39 }
 0xe42   :  { %4343 = vmatprep.subr.bf16.mxu1 %v11204_v60  ;;  %4384 = vmatprep.subr.bf16.mxu0 %v11210_v61  ;;  %v14389_v60 = vld [vmem:[#allocation14_spill] sm:$0xff]  ;;  %v14390_v61 = vld [vmem:[#allocation15_spill] sm:$0xff] }
 0xe44   :  { %4265 = vmatmul.mubr.bf16.vlgmr.msra.gmra.mrb[84].mxu1 %v11425_v18  ;;  %4306 = vmatmul.mubr.bf16.vlgmr.msra.gmra.mrb[92].mxu0 %v11425_v18  ;;  %v14395_v18 = vld [vmem:[#allocation20_spill] sm:$0xff] }
 0xe45   :  { %4344 = vmatpush1.bf16.msra.mxu1 %v11218_v63  ;;  %4385 = vmatpush1.bf16.msra.mxu0 %v11224_v1  ;;  %v14391_v63 = vld [vmem:[#allocation16_spill] sm:$0xff]  ;;  %v14392_v1 = vld [vmem:[#allocation17_spill] sm:$0xff] }
 0xe46   :  { %4345 = vmatprep.subr.bf16.mxu1 %v11230_v5  ;;  %4386 = vmatprep.subr.bf16.mxu0 %v11236_v6  ;;  %v14393_v5 = vld [vmem:[#allocation18_spill] sm:$0xff]  ;;  %v14394_v6 = vld [vmem:[#allocation19_spill] sm:$0xff] }
 0xe47   :  { %4375 = vmatprep.mubr.bf16.mxu1 %v13884_v50  ;;  %4416 = vmatprep.mubr.bf16.mxu0 %v13884_v50 }
 0xe49   :  { %4346 = vmatpush1.bf16.msra.mxu1 %v11244_v11  ;;  %4387 = vmatpush1.bf16.msra.mxu0 %v11250_v12  ;;  %v14397_v11 = vld [vmem:[#allocation22_spill] sm:$0xff]  ;;  %v14398_v12 = vld [vmem:[#allocation23_spill] sm:$0xff] }
 0xe4a   :  { %4347 = vmatprep.subr.bf16.mxu1 %v11256_v14  ;;  %4388 = vmatprep.subr.bf16.mxu0 %v14389_v60  ;;  %v14399_v14 = vld [vmem:[#allocation24_spill] sm:$0xff]  ;;  %v14405_v60 = vld [vmem:[#allocation30_spill] sm:$0xff] }
 0xe4d   :  { %4348 = vmatpush1.bf16.msra.mxu1 %v14390_v61  ;;  %4389 = vmatpush1.bf16.msra.mxu0 %v14391_v63  ;;  %v14406_v61 = vld [vmem:[#allocation31_spill] sm:$0xff]  ;;  %v14407_v63 = vld [vmem:[#allocation32_spill] sm:$0xff] }
 0xe4e   :  { %4349 = vmatprep.subr.bf16.mxu1 %v14392_v1  ;;  %4390 = vmatprep.subr.bf16.mxu0 %v14393_v5  ;;  %v14408_v1 = vld [vmem:[#allocation37_spill] sm:$0xff]  ;;  %v14409_v5 = vld [vmem:[#allocation38_spill] sm:$0xff] }
 0xe51   :  { %4350 = vmatpush1.bf16.msra.mxu1 %v14394_v6  ;;  %4391 = vmatpush1.bf16.msra.mxu0 %v14395_v18  ;;  %v14410_v6 = vld [vmem:[#allocation39_spill] sm:$0xff]  ;;  %v14411_v18 = vld [vmem:[#allocation40_spill] sm:$0xff] }
 0xe52   :  { %4351 = vmatprep.subr.bf16.mxu1 %v14396_v40  ;;  %4392 = vmatprep.subr.bf16.mxu0 %v14397_v11  ;;  %v14412_v40 = vld [vmem:[#allocation65_spill] sm:$0xff]  ;;  %v14413_v11 = vld [vmem:[#allocation66_spill] sm:$0xff] }
 0xe55   :  { %4352 = vmatpush1.bf16.msra.mxu1 %v14398_v12  ;;  %4393 = vmatpush1.bf16.msra.mxu0 %v14399_v14 }
 0xe56   :  { %4353 = vmatprep.subr.bf16.mxu1 %v14400_v42  ;;  %4394 = vmatprep.subr.bf16.mxu0 %v14401_v52  ;;  %v14414_v42 = vld [vmem:[#allocation67_spill] sm:$0xff] }
 0xe59   :  { %4354 = vmatpush1.bf16.msra.mxu1 %v14402_v29  ;;  %4395 = vmatpush1.bf16.msra.mxu0 %v14403_v24 }
 0xe5a   :  { %4355 = vmatprep.subr.bf16.mxu1 %v14404_v49  ;;  %4396 = vmatprep.subr.bf16.mxu0 %v14405_v60  ;;  %v14415_v49 = vld [vmem:[#allocation68_spill] sm:$0xff] }
 0xe5d   :  { %4356 = vmatpush1.bf16.msra.mxu1 %v14406_v61  ;;  %4397 = vmatpush1.bf16.msra.mxu0 %v14407_v63 }
 0xe5e   :  { %4357 = vmatprep.subr.bf16.mxu1 %v14408_v1  ;;  %4398 = vmatprep.subr.bf16.mxu0 %v14409_v5 }
 0xe61   :  { %4358 = vmatpush1.bf16.msra.mxu1 %v14410_v6  ;;  %4399 = vmatpush1.bf16.msra.mxu0 %v14411_v18  ;;  %v14416_v18 = vld [vmem:[#allocation69_spill] sm:$0xff] }
 0xe62   :  { %4425 = vmatprep.subr.bf16.mxu1 %v14412_v40  ;;  %4466 = vmatprep.subr.bf16.mxu0 %v14413_v11 }
 0xef7   :  { %v4152_v12 = vpop.f32.mrb[68].mxu1  ;;  %v12088_v14 = vpop.f32.mrb[76].mxu0 }
 0xef8   :  { %v6839_v52 = vadd.f32 %v4152_v12, %v14414_v42  ;;  %v4154_v29 = vpop.f32.mrb[69].mxu1  ;;  %v4195_v24 = vpop.f32.mrb[77].mxu0 }
 0xef9   :  { %v6840_v60 = vadd.f32 %v4154_v29, %v14415_v49  ;;  %v4156_v61 = vpop.f32.mrb[70].mxu1  ;;  %v4197_v63 = vpop.f32.mrb[78].mxu0  ;;  %v6842_v40 = vadd.f32 %v4195_v24, %v14416_v18  ;;  %v14418_v24 = vld [vmem:[#allocation58_spill] sm:$0xff] }
 0xefa   :  { %v6472_v1 = vmul.f32 -1.442695, %v6839_v52  ;;  %v4157_v5 = vpop.f32.mrb[71].mxu1  ;;  %v4198_v6 = vpop.f32.mrb[79].mxu0 }
 0xefb   :  { %v6473_v39 = vmul.f32 -1.442695, %v6840_v60 }
 0xefc   :  { %7541 = vpow2.f32 %v6472_v1 }
 0xefd   :  { %7543 = vpow2.f32 %v6473_v39  ;;  %v14417_v39 = vld [vmem:[#allocation57_spill] sm:$0xff] }
 0xefe   :  { %7545 = vtanh.f32 %v6842_v40  ;;  %v14419_v40 = vld [vmem:[#allocation59_spill] sm:$0xff] }
 0xf06   :  { %v7542_v11 = vpop.eup %7541 }
 0xf07   :  { %v4213_v47 = vadd.f32 1.0, %v7542_v11  ;;  %v7544_v48 = vpop.eup %7543 }
 0xf08   :  { %v4214_v12 = vadd.f32 1.0, %v7544_v48  ;;  %v7546_v42 = vpop.eup %7545  ;;  %v14420_v48 = vld [vmem:[#allocation60_spill] sm:$0xff] }
 0xf09   :  { %7547 = vrcp.f32 %v4213_v47 }
 0xf0a   :  { %7549 = vrcp.f32 %v4214_v12 }
 0xf13   :  { %v7548_v13 = vpop.eup %7547 }
 0xf14   :  { %v4224_v29 = vmul.f32 %v7548_v13, %v7546_v42  ;;  %v7550_v61 = vpop.eup %7549 }
 0xf15   :  { %v4223_v52 = vmul.f32 %v7550_v61, %v11415_v34 }
 0xf17   :  { %v4266_v63 = vpop.f32.mrb[84].mxu1  ;;  %v4307_v5 = vpop.f32.mrb[92].mxu0  ;;  %v12094_v60 = vadd.f32 %v4224_v29, %v4223_v52 }
 0xf18   :  { %v4314_v1 = vadd.f32 %v4266_v63, %v14417_v39  ;;  %v4316_v6 = vadd.f32 %v4307_v5, %v14418_v24  ;;  %v4268_v11 = vpop.f32.mrb[85].mxu1  ;;  %v4309_v18 = vpop.f32.mrb[93].mxu0 }
 0xf19   :  { %v4315_v47 = vadd.f32 %v4268_v11, %v14419_v40  ;;  %v4317_v12 = vadd.f32 %v4309_v18, %v14420_v48  ;;  %v4270_v49 = vpop.f32.mrb[86].mxu1  ;;  %v4311_v28 = vpop.f32.mrb[94].mxu0 }
 0xf1a   :  { %v6475_v13 = vmul.f32 -1.442695, %v4314_v1  ;;  %v4271_v42 = vpop.f32.mrb[87].mxu1  ;;  %v4312_v9 = vpop.f32.mrb[95].mxu0  ;;  %v6477_v29 = vmul.f32 -1.442695, %v4316_v6 }
 0xf1b   :  { %v6476_v34 = vmul.f32 -1.442695, %v4315_v47  ;;  %v14428_v42 = vld [vmem:[#allocation73_spill] sm:$0xff] }
 0xf1c   :  { %7551 = vpow2.f32 %v6475_v13  ;;  %v14423_v13 = vld [vmem:[#allocation51_spill] sm:$0xff] }
 0xf1d   :  { %7553 = vpow2.f32 %v6476_v34  ;;  %v14429_v34 = vld [vmem:[#allocation74_spill] sm:$0xff] }
 0xf1e   :  { %7555 = vtanh.f32 %v4317_v12  ;;  %v14422_v12 = vld [vmem:[#allocation50_spill] sm:$0xff] }
 0xf1f   :  { %7557 = vpow2.f32 %v6477_v29  ;;  %v14432_v29 = vld [vmem:[#allocation77_spill] sm:$0xff] }
 0xf26   :  { %v7552_v61 = vpop.eup %7551 }
 0xf27   :  { %v4327_v52 = vadd.f32 1.0, %v7552_v61  ;;  %v7554_v63 = vpop.eup %7553  ;;  %v14433_v61 = vld [vmem:[#allocation78_spill] sm:$0xff] }
 0xf28   :  { %v4328_v5 = vadd.f32 1.0, %v7554_v63  ;;  %v7556_v39 = vpop.eup %7555  ;;  %v14435_v63 = vld [vmem:[#allocation80_spill] sm:$0xff] }
 0xf29   :  { %7559 = vrcp.f32 %v4327_v52  ;;  %v7558_v24 = vpop.eup %7557  ;;  %v14434_v52 = vld [vmem:[#allocation79_spill] sm:$0xff] }
 0xf2a   :  { %7561 = vrcp.f32 %v4328_v5  ;;  %v4329_v1 = vadd.f32 1.0, %v7558_v24  ;;  %v14436_v5 = vld [vmem:[#allocation81_spill] sm:$0xff]  ;;  %v14438_v24 = vld [vmem:[#allocation83_spill] sm:$0xff] }
 0xf2c   :  { %7563 = vrcp.f32 %v4329_v1  ;;  %v14442_v1 = vld [vmem:[#allocation87_spill] sm:$0xff] }
 0xf33   :  { %v7560_v18 = vpop.eup %7559 }
 0xf34   :  { %v4338_v49 = vmul.f32 %v7560_v18, %v7556_v39  ;;  %v7562_v28 = vpop.eup %7561  ;;  %v14437_v39 = vld [vmem:[#allocation82_spill] sm:$0xff]  ;;  %v14439_v18 = vld [vmem:[#allocation84_spill] sm:$0xff] }
 0xf35   :  { %v4337_v9 = vmul.f32 %v7562_v28, %v11422_v41  ;;  %v14421_v41 = vld [vmem:[#allocation49_spill] sm:$0xff]  ;;  %v14441_v28 = vld [vmem:[#allocation86_spill] sm:$0xff] }
 0xf36   :  { %v7564_v6 = vpop.eup %7563 }
 0xf37   :  { %v12101_v11 = vadd.f32 %v4338_v49, %v4337_v9  ;;  %v14440_v49 = vld [vmem:[#allocation85_spill] sm:$0xff]  ;;  %v14443_v9 = vld [vmem:[#allocation88_spill] sm:$0xff] }
 0xf39   :  { %7565 = vtanh.f32 %v12101_v11 }
 0xf43   :  { %v7566_v40 = vpop.eup %7565 }
 0xf44   :  { %v4341_v47 = vmul.f32 %v7566_v40, %v7564_v6  ;;  %v14444_v6 = vld [vmem:[#allocation89_spill] sm:$0xff]  ;;  %v14445_v40 = vld [vmem:[#allocation90_spill] sm:$0xff] }
 0xf46   :  { %v12104_v48 = vpack.c.bf16 %v4341_v47, %v4341_v47  ;;  %v14446_v47 = vld [vmem:[#allocation91_spill] sm:$0xff] }
 0xf48   :  { %4376 = vmatmul.mubr.bf16.vlgmr.msra.gmra.mrb[88].mxu1 %v12104_v48  ;;  %4417 = vmatmul.mubr.bf16.vlgmr.msra.gmra.mrb[96].mxu0 %v12104_v48 }
 0xf49   :  { %4426 = vmatpush1.bf16.msra.mxu1 %v11432_v57  ;;  %4467 = vmatpush1.bf16.msra.mxu0 %v11438_v0  ;;  %v14424_v57 = vld [vmem:[#allocation52_spill] sm:$0xff]  ;;  %v14425_v0 = vld [vmem:[#allocation70_spill] sm:$0xff] }
 0xf4a   :  { %4427 = vmatprep.subr.bf16.mxu1 %v11444_v17  ;;  %4468 = vmatprep.subr.bf16.mxu0 %v11450_v3  ;;  %v14426_v17 = vld [vmem:[#allocation71_spill] sm:$0xff]  ;;  %v14427_v3 = vld [vmem:[#allocation72_spill] sm:$0xff] }
 0xf4b   :  { %4457 = vmatprep.mubr.bf16.mxu1 %v13884_v50  ;;  %4498 = vmatprep.mubr.bf16.mxu0 %v13884_v50 }
 0xf4d   :  { %4428 = vmatpush1.bf16.msra.mxu1 %v11458_v32  ;;  %4469 = vmatpush1.bf16.msra.mxu0 %v11464_v37  ;;  %v14430_v32 = vld [vmem:[#allocation75_spill] sm:$0xff]  ;;  %v14431_v37 = vld [vmem:[#allocation76_spill] sm:$0xff] }
 0xf4e   :  { %4429 = vmatprep.subr.bf16.mxu1 %v14421_v41  ;;  %4470 = vmatprep.subr.bf16.mxu0 %v14422_v12  ;;  %v14447_v41 = vld [vmem:[#allocation94_spill] sm:$0xff]  ;;  %v14448_v12 = vld [vmem:[#allocation92_spill] sm:$0xff] }
 0xf51   :  { %4430 = vmatpush1.bf16.msra.mxu1 %v14423_v13  ;;  %4471 = vmatpush1.bf16.msra.mxu0 %v14424_v57  ;;  %v14449_v13 = vld [vmem:[#allocation93_spill] sm:$0xff]  ;;  %v14450_v57 = vld [vmem:[#allocation95_spill] sm:$0xff] }
 0xf52   :  { %4431 = vmatprep.subr.bf16.mxu1 %v14425_v0  ;;  %4472 = vmatprep.subr.bf16.mxu0 %v14426_v17  ;;  %v14451_v0 = vld [vmem:[#allocation96_spill] sm:$0xff]  ;;  %v14452_v17 = vld [vmem:[#allocation97_spill] sm:$0xff] }
 0xf55   :  { %4432 = vmatpush1.bf16.msra.mxu1 %v14427_v3  ;;  %4473 = vmatpush1.bf16.msra.mxu0 %v14428_v42  ;;  %v14453_v3 = vld [vmem:[#allocation98_spill] sm:$0xff]  ;;  %v14454_v42 = vld [vmem:[#allocation99_spill] sm:$0xff] }
 0xf56   :  { %4433 = vmatprep.subr.bf16.mxu1 %v14429_v34  ;;  %4474 = vmatprep.subr.bf16.mxu0 %v14430_v32  ;;  %v14456_v34 = vld [vmem:[#allocation101_spill] sm:$0xff]  ;;  %v14457_v32 = vld [vmem:[#allocation102_spill] sm:$0xff] }
 0xf59   :  { %4434 = vmatpush1.bf16.msra.mxu1 %v14431_v37  ;;  %4475 = vmatpush1.bf16.msra.mxu0 %v14432_v29  ;;  %v14458_v37 = vld [vmem:[#allocation103_spill] sm:$0xff]  ;;  %v14459_v29 = vld [vmem:[#allocation104_spill] sm:$0xff] }
 0xf5a   :  { %4435 = vmatprep.subr.bf16.mxu1 %v14433_v61  ;;  %4476 = vmatprep.subr.bf16.mxu0 %v14434_v52  ;;  %v14460_v61 = vld [vmem:[#allocation105_spill] sm:$0xff]  ;;  %v14461_v52 = vld [vmem:[#allocation106_spill] sm:$0xff] }
 0xf5d   :  { %4436 = vmatpush1.bf16.msra.mxu1 %v14435_v63  ;;  %4477 = vmatpush1.bf16.msra.mxu0 %v14436_v5  ;;  %v14462_v63 = vld [vmem:[#allocation107_spill] sm:$0xff]  ;;  %v14463_v5 = vld [vmem:[#allocation108_spill] sm:$0xff] }
 0xf5e   :  { %4437 = vmatprep.subr.bf16.mxu1 %v14437_v39  ;;  %4478 = vmatprep.subr.bf16.mxu0 %v14438_v24  ;;  %v14464_v39 = vld [vmem:[#allocation109_spill] sm:$0xff] }
 0xf5f   :  { %v14465_v24 = vld [vmem:[#allocation33_spill] sm:$0xff] }
 0xf61   :  { %4438 = vmatpush1.bf16.msra.mxu1 %v14439_v18  ;;  %4479 = vmatpush1.bf16.msra.mxu0 %v14440_v49  ;;  %v14466_v18 = vld [vmem:[#allocation35_spill] sm:$0xff]  ;;  %v14467_v49 = vld [vmem:[#allocation36_spill] sm:$0xff] }
 0xf62   :  { %4439 = vmatprep.subr.bf16.mxu1 %v14441_v28  ;;  %4480 = vmatprep.subr.bf16.mxu0 %v14442_v1  ;;  %v14468_v28 = vld [vmem:[#allocation45_spill] sm:$0xff]  ;;  %v14469_v1 = vld [vmem:[#allocation46_spill] sm:$0xff] }
 0xf65   :  { %4440 = vmatpush1.bf16.msra.mxu1 %v14443_v9  ;;  %4481 = vmatpush1.bf16.msra.mxu0 %v14444_v6  ;;  %v14470_v9 = vld [vmem:[#allocation47_spill] sm:$0xff]  ;;  %v14471_v6 = vld [vmem:[#allocation48_spill] sm:$0xff] }
 0xf66   :  { %4536 = vmatprep.subr.bf16.mxu1 %v14445_v40  ;;  %4577 = vmatprep.subr.bf16.mxu0 %v14446_v47  ;;  %v14472_v40 = vld [vmem:[#allocation110_spill] sm:$0xff]  ;;  %v14473_v47 = vld [vmem:[#allocation111_spill] sm:$0xff] }
 0xf68   :  { %4458 = vmatmul.mubr.bf16.vlgmr.msra.gmra.mrb[76].mxu1 %v11819_v56  ;;  %4499 = vmatmul.mubr.bf16.vlgmr.msra.gmra.mrb[84].mxu0 %v11819_v56  ;;  %v14455_v56 = vld [vmem:[#allocation100_spill] sm:$0xff] }
 0xf69   :  { %4537 = vmatpush1.bf16.msra.mxu1 %v14447_v41  ;;  %4578 = vmatpush1.bf16.msra.mxu0 %v14448_v12  ;;  %v14474_v41 = vld [vmem:[#allocation112_spill] sm:$0xff]  ;;  %v14475_v12 = vld [vmem:[#allocation113_spill] sm:$0xff] }
 0xf6a   :  { %4538 = vmatprep.subr.bf16.mxu1 %v14449_v13  ;;  %4579 = vmatprep.subr.bf16.mxu0 %v14450_v57  ;;  %v14476_v13 = vld [vmem:[#allocation114_spill] sm:$0xff]  ;;  %v12179_v57 = vld [vmem:[%s13421_s4 + $0x204] ss:$16 sps:$4 sm:$0xff]  }
 0xf6b   :  { %4568 = vmatprep.mubr.bf16.mxu1 %v13884_v50  ;;  %4609 = vmatprep.mubr.bf16.mxu0 %v13884_v50  ;;  %14477 = vst [vmem:[#allocation120_spill] sm:$0xff] %v12179_v57 }
 0xf6d   :  { %4539 = vmatpush1.bf16.msra.mxu1 %v14451_v0  ;;  %4580 = vmatpush1.bf16.msra.mxu0 %v14452_v17  ;;  %v12185_v0 = vld [vmem:[%s13421_s4 + $0x20c] ss:$16 sps:$4 sm:$0xff]  }
 0xf6e   :  { %4540 = vmatprep.subr.bf16.mxu1 %v14453_v3  ;;  %4581 = vmatprep.subr.bf16.mxu0 %v14454_v42  ;;  %14478 = vst [vmem:[#allocation121_spill] sm:$0xff] %v12185_v0 }
 0xf71   :  { %4541 = vmatpush1.bf16.msra.mxu1 %v14455_v56  ;;  %4582 = vmatpush1.bf16.msra.mxu0 %v14456_v34 }
 0xf72   :  { %4542 = vmatprep.subr.bf16.mxu1 %v14457_v32  ;;  %4583 = vmatprep.subr.bf16.mxu0 %v14458_v37 }
 0xf75   :  { %4543 = vmatpush1.bf16.msra.mxu1 %v14459_v29  ;;  %4584 = vmatpush1.bf16.msra.mxu0 %v14460_v61 }
 0xf76   :  { %4544 = vmatprep.subr.bf16.mxu1 %v14461_v52  ;;  %4585 = vmatprep.subr.bf16.mxu0 %v14462_v63 }
 0xf79   :  { %4545 = vmatpush1.bf16.msra.mxu1 %v14463_v5  ;;  %4586 = vmatpush1.bf16.msra.mxu0 %v14464_v39 }
 0xf7a   :  { %4546 = vmatprep.subr.bf16.mxu1 %v14465_v24  ;;  %4587 = vmatprep.subr.bf16.mxu0 %v14466_v18 }
 0xf7d   :  { %4547 = vmatpush1.bf16.msra.mxu1 %v14467_v49  ;;  %4588 = vmatpush1.bf16.msra.mxu0 %v14468_v28 }
 0xf7e   :  { %4548 = vmatprep.subr.bf16.mxu1 %v14469_v1  ;;  %4589 = vmatprep.subr.bf16.mxu0 %v14470_v9 }
 0xf81   :  { %4549 = vmatpush1.bf16.msra.mxu1 %v14471_v6  ;;  %4590 = vmatpush1.bf16.msra.mxu0 %v14472_v40 }
 0xf82   :  { %4550 = vmatprep.subr.bf16.mxu1 %v14473_v47  ;;  %4591 = vmatprep.subr.bf16.mxu0 %v14474_v41 }
 0xf85   :  { %4551 = vmatpush1.bf16.msra.mxu1 %v14475_v12  ;;  %4592 = vmatpush1.bf16.msra.mxu0 %v14476_v13 }
 0xf86   :  { %4619 = vmatprep.subr.bf16.mxu1 %v12179_v57  ;;  %4660 = vmatprep.subr.bf16.mxu0 %v12185_v0 }
0x103b   :  { %v4459_v17 = vpop.f32.mrb[76].mxu1  ;;  %v4500_v3 = vpop.f32.mrb[84].mxu0 }
0x103c   :  { %v6843_v42 = vadd.f32 %v4459_v17, %v14049_v58  ;;  %v4461_v56 = vpop.f32.mrb[77].mxu1  ;;  %v4502_v34 = vpop.f32.mrb[85].mxu0  ;;  %v6845_v39 = vadd.f32 %v4500_v3, %v9407_v59 }
0x103d   :  { %v6844_v32 = vadd.f32 %v4461_v56, %v9402_v33  ;;  %v4463_v37 = vpop.f32.mrb[78].mxu1  ;;  %v4504_v29 = vpop.f32.mrb[86].mxu0  ;;  %v6846_v24 = vadd.f32 %v4502_v34, %v9410_v62 }
0x103e   :  { %v6478_v61 = vmul.f32 -1.442695, %v6843_v42  ;;  %v4464_v52 = vpop.f32.mrb[79].mxu1  ;;  %v4505_v63 = vpop.f32.mrb[87].mxu0  ;;  %v6480_v18 = vmul.f32 -1.442695, %v6845_v39  ;;  %v6841_v42 = vadd.f32 %v12088_v14, %v10597_v30 }
0x103f   :  { %v6479_v5 = vmul.f32 -1.442695, %v6844_v32  ;;  %v12211_v14 = vld [vmem:[%s13421_s4 + $0x208] ss:$16 sps:$4 sm:$0xff]   ;;  %v12223_v52 = vld [vmem:[%s13421_s4 + $0x22c] ss:$16 sps:$4 sm:$0xff]  }
0x1040   :  { %7567 = vpow2.f32 %v6478_v61  ;;  %v6474_v34 = vmul.f32 -1.442695, %v6841_v42  ;;  %v12217_v61 = vld [vmem:[%s13421_s4 + $0x224] ss:$16 sps:$4 sm:$0xff]   ;;  %v12231_v63 = vld [vmem:[%s13421_s4 + $0x220] ss:$16 sps:$4 sm:$0xff]  }
0x1041   :  { %7569 = vpow2.f32 %v6479_v5  ;;  %v12237_v5 = vld [vmem:[%s13421_s4 + $0x228] ss:$16 sps:$4 sm:$0xff]   ;;  %v12243_v39 = vld [vmem:[%s13421_s4 + $0x244] ss:$16 sps:$4 sm:$0xff]  }
0x1042   :  { %7571 = vtanh.f32 %v6846_v24  ;;  %v12249_v24 = vld [vmem:[%s13421_s4 + $0x24c] ss:$16 sps:$4 sm:$0xff]   ;;  %v12316_v42 = vld [vmem:[%s13421_s4 + $0x2a4] ss:$16 sps:$4 sm:$0xff]  }
0x1043   :  { %7573 = vpow2.f32 %v6480_v18  ;;  %14479 = vst [vmem:[#allocation122_spill] sm:$0xff] %v12316_v42 }
0x104a   :  { %v7568_v49 = vpop.eup %7567 }
0x104b   :  { %v4520_v28 = vadd.f32 1.0, %v7568_v49  ;;  %v7570_v1 = vpop.eup %7569  ;;  %v12255_v49 = vld [vmem:[%s13421_s4 + $0x240] ss:$16 sps:$4 sm:$0xff]  }
0x104c   :  { %v4521_v9 = vadd.f32 1.0, %v7570_v1  ;;  %v7572_v6 = vpop.eup %7571  ;;  %v12267_v1 = vld [vmem:[%s13421_s4 + $0x264] ss:$16 sps:$4 sm:$0xff]  }
0x104d   :  { %7575 = vrcp.f32 %v4520_v28  ;;  %v7574_v40 = vpop.eup %7573  ;;  %v12261_v28 = vld [vmem:[%s13421_s4 + $0x248] ss:$16 sps:$4 sm:$0xff]  }
0x104e   :  { %7577 = vrcp.f32 %v4521_v9  ;;  %v4522_v13 = vadd.f32 1.0, %v7574_v40  ;;  %v12273_v9 = vld [vmem:[%s13421_s4 + $0x26c] ss:$16 sps:$4 sm:$0xff]   ;;  %v12280_v40 = vld [vmem:[%s13421_s4 + $0x260] ss:$16 sps:$4 sm:$0xff]  }
0x1050   :  { %7579 = vrcp.f32 %v4522_v13  ;;  %v12304_v13 = vld [vmem:[%s13421_s4 + $0x280] ss:$16 sps:$4 sm:$0xff]  }
0x1057   :  { %v7576_v47 = vpop.eup %7575 }
0x1058   :  { %v4531_v41 = vmul.f32 %v7576_v47, %v7572_v6  ;;  %v7578_v12 = vpop.eup %7577  ;;  %v12286_v47 = vld [vmem:[%s13421_s4 + $0x268] ss:$16 sps:$4 sm:$0xff]  }
0x1059   :  { %v4530_v17 = vmul.f32 %v7578_v12, %v11814_v38  ;;  %v12205_v38 = vld [vmem:[%s13421_s4 + $0x200] ss:$16 sps:$4 sm:$0xff]   ;;  %v12298_v12 = vld [vmem:[%s13421_s4 + $0x28c] ss:$16 sps:$4 sm:$0xff]  }
0x105a   :  { %v7580_v56 = vpop.eup %7579 }
0x105b   :  { %v12193_v3 = vadd.f32 %v4531_v41, %v4530_v17  ;;  %v12292_v41 = vld [vmem:[%s13421_s4 + $0x284] ss:$16 sps:$4 sm:$0xff]   ;;  %v12310_v17 = vld [vmem:[%s13421_s4 + $0x288] ss:$16 sps:$4 sm:$0xff]  }
0x105d   :  { %7581 = vtanh.f32 %v12193_v3 }
0x105e   :  { %7583 = vpow2.f32 %v6474_v34  ;;  %v12328_v34 = vld [vmem:[%s13421_s4 + $0x2a0] ss:$16 sps:$4 sm:$0xff]  }
0x105f   :  { %7585 = vtanh.f32 %v12094_v60  ;;  %14481 = vst [vmem:[#allocation53_spill] sm:$0xff] %v12328_v34 }
0x1067   :  { %v7582_v32 = vpop.eup %7581 }
0x1068   :  { %v4534_v37 = vmul.f32 %v7582_v32, %v7580_v56  ;;  %v7584_v18 = vpop.eup %7583  ;;  %v12322_v56 = vld [vmem:[%s13421_s4 + $0x2ac] ss:$16 sps:$4 sm:$0xff]   ;;  %v12334_v32 = vld [vmem:[%s13421_s4 + $0x2a8] ss:$16 sps:$4 sm:$0xff]  }
0x1069   :  { %v4215_v6 = vadd.f32 1.0, %v7584_v18  ;;  %14480 = vst [vmem:[#allocation123_spill] sm:$0xff] %v12322_v56  ;;  %14482 = vst [vmem:[#allocation54_spill] sm:$0xff] %v12334_v32  ;;  %v12346_v18 = vld [vmem:[%s13421_s4 + $0x2cc] ss:$16 sps:$4 sm:$0xff]  }
0x106a   :  { %v12198_v29 = vpack.c.bf16 %v4534_v37, %v4534_v37  ;;  %v12340_v37 = vld [vmem:[%s13421_s4 + $0x2c4] ss:$16 sps:$4 sm:$0xff]   ;;  %14484 = vst [vmem:[#allocation56_spill] sm:$0xff] %v12346_v18 }
0x106b   :  { %7587 = vrcp.f32 %v4215_v6  ;;  %14483 = vst [vmem:[#allocation55_spill] sm:$0xff] %v12340_v37  ;;  %v7586_v6 = vpop.eup %7585 }
0x106c   :  { %4569 = vmatmul.mubr.bf16.vlgmr.msra.gmra.mrb[92].mxu1 %v12198_v29  ;;  %4610 = vmatmul.mubr.bf16.vlgmr.msra.gmra.mrb[100].mxu0 %v12198_v29 }
0x106d   :  { %4620 = vmatpush1.bf16.msra.mxu1 %v12205_v38  ;;  %4661 = vmatpush1.bf16.msra.mxu0 %v12211_v14 }
0x106e   :  { %4621 = vmatprep.subr.bf16.mxu1 %v12217_v61  ;;  %4662 = vmatprep.subr.bf16.mxu0 %v12223_v52 }
0x106f   :  { %4651 = vmatprep.mubr.bf16.mxu1 %v13884_v50  ;;  %4692 = vmatprep.mubr.bf16.mxu0 %v13884_v50 }
0x1071   :  { %4622 = vmatpush1.bf16.msra.mxu1 %v12231_v63  ;;  %4663 = vmatpush1.bf16.msra.mxu0 %v12237_v5 }
0x1072   :  { %4623 = vmatprep.subr.bf16.mxu1 %v12243_v39  ;;  %4664 = vmatprep.subr.bf16.mxu0 %v12249_v24 }
0x1075   :  { %4624 = vmatpush1.bf16.msra.mxu1 %v12255_v49  ;;  %4665 = vmatpush1.bf16.msra.mxu0 %v12261_v28 }
0x1076   :  { %4625 = vmatprep.subr.bf16.mxu1 %v12267_v1  ;;  %4666 = vmatprep.subr.bf16.mxu0 %v12273_v9 }
0x1079   :  { %4626 = vmatpush1.bf16.msra.mxu1 %v12280_v40  ;;  %4667 = vmatpush1.bf16.msra.mxu0 %v12286_v47 }
0x107a   :  { %4627 = vmatprep.subr.bf16.mxu1 %v12292_v41  ;;  %4668 = vmatprep.subr.bf16.mxu0 %v12298_v12 }
0x107d   :  { %4628 = vmatpush1.bf16.msra.mxu1 %v12304_v13  ;;  %4669 = vmatpush1.bf16.msra.mxu0 %v12310_v17 }
0x107e   :  { %4629 = vmatprep.subr.bf16.mxu1 %v12316_v42  ;;  %4670 = vmatprep.subr.bf16.mxu0 %v12322_v56  ;;  %v12370_v56 = vld [vmem:[%s13421_s4 + $0x2ec] ss:$16 sps:$4 sm:$0xff]   ;;  %v12376_v42 = vld [vmem:[%s13421_s4 + $0x2e0] ss:$16 sps:$4 sm:$0xff]  }
0x1081   :  { %4630 = vmatpush1.bf16.msra.mxu1 %v12328_v34  ;;  %4671 = vmatpush1.bf16.msra.mxu0 %v12334_v32  ;;  %v7588_v34 = vpop.eup %7587  ;;  %v12352_v32 = vld [vmem:[%s13421_s4 + $0x2c0] ss:$16 sps:$4 sm:$0xff]  }
0x1082   :  { %4631 = vmatprep.subr.bf16.mxu1 %v12340_v37  ;;  %4672 = vmatprep.subr.bf16.mxu0 %v12346_v18  ;;  %14485 = vst [vmem:[#allocation41_spill] sm:$0xff] %v12352_v32  ;;  %v12358_v37 = vld [vmem:[%s13421_s4 + $0x2c8] ss:$16 sps:$4 sm:$0xff]   ;;  %v12364_v18 = vld [vmem:[%s13421_s4 + $0x2e4] ss:$16 sps:$4 sm:$0xff]  }
0x1083   :  { %14486 = vst [vmem:[#allocation42_spill] sm:$0xff] %v12358_v37  ;;  %14487 = vst [vmem:[#allocation43_spill] sm:$0xff] %v12364_v18 }
0x1085   :  { %4632 = vmatpush1.bf16.msra.mxu1 %v12352_v32  ;;  %4673 = vmatpush1.bf16.msra.mxu0 %v12358_v37  ;;  %v4227_v32 = vmul.f32 %v7588_v34, %v7586_v6  ;;  %v12382_v37 = vld [vmem:[%s13421_s4 + $0x2e8] ss:$16 sps:$4 sm:$0xff]   ;;  %v8092_v34 = vld [vmem:[%s13420_s3 + $0x1ac] ss:$16 sps:$4 sm:$0xff]   ;;  %v8095_v6 = vld [vmem:[%s13420_s3 + $0x1c4] ss:$16 sps:$4 sm:$0xff]  }
0x1086   :  { %4633 = vmatprep.subr.bf16.mxu1 %v12364_v18  ;;  %4674 = vmatprep.subr.bf16.mxu0 %v12370_v56 }
0x1087   :  { %v4618_v18 = vpack.c.bf16 %v4227_v32, %v4227_v32  ;;  %v8093_v32 = vld [vmem:[%s13420_s3 + $0x1a0] ss:$16 sps:$4 sm:$0xff]  }
0x1089   :  { %4634 = vmatpush1.bf16.msra.mxu1 %v12376_v42  ;;  %4675 = vmatpush1.bf16.msra.mxu0 %v12382_v37 }
0x108a   :  { %4733 = vmatprep.subr.bf16.mxu1 %v11859_v53  ;;  %4774 = vmatprep.subr.bf16.mxu0 %v11865_v31  ;;  %v14488_v53 = vld [vmem:[#allocation115_spill] sm:$0xff]  ;;  %v14489_v31 = vld [vmem:[#allocation116_spill] sm:$0xff] }
0x108c   :  { %4652 = vmatmul.mubr.bf16.vlgmr.msra.gmra.mrb[80].mxu1 %v4618_v18  ;;  %4693 = vmatmul.mubr.bf16.vlgmr.msra.gmra.mrb[88].mxu0 %v4618_v18  ;;  %v8094_v18 = vld [vmem:[%s13420_s3 + $0x1a8] ss:$16 sps:$4 sm:$0xff]  }
0x108d   :  { %4734 = vmatpush1.bf16.msra.mxu1 %v11871_v44  ;;  %4775 = vmatpush1.bf16.msra.mxu0 %v11877_v2  ;;  %v14490_v44 = vld [vmem:[#allocation117_spill] sm:$0xff]  ;;  %v14491_v2 = vld [vmem:[#allocation118_spill] sm:$0xff] }
0x108e   :  { %4735 = vmatprep.subr.bf16.mxu1 %v11883_v8  ;;  %4776 = vmatprep.subr.bf16.mxu0 %v11889_v35  ;;  %v14492_v8 = vld [vmem:[#allocation34_spill] sm:$0xff]  ;;  %v14493_v35 = vld [vmem:[#allocation119_spill] sm:$0xff] }
0x108f   :  { %4765 = vmatprep.mubr.bf16.mxu1 %v13884_v50  ;;  %4806 = vmatprep.mubr.bf16.mxu0 %v13884_v50 }
0x1091   :  { %4736 = vmatpush1.bf16.msra.mxu1 %v11897_v25  ;;  %4777 = vmatpush1.bf16.msra.mxu0 %v11903_v46  ;;  %v8071_v25 = vld [vmem:[%s13420_s3 + $0x104] ss:$16 sps:$4 sm:$0xff]   ;;  %v8072_v46 = vld [vmem:[%s13420_s3 + $0x10c] ss:$16 sps:$4 sm:$0xff]  }
0x1092   :  { %4737 = vmatprep.subr.bf16.mxu1 %v11909_v26  ;;  %4778 = vmatprep.subr.bf16.mxu0 %v11915_v27  ;;  %v8073_v26 = vld [vmem:[%s13420_s3 + $0x100] ss:$16 sps:$4 sm:$0xff]   ;;  %v8074_v27 = vld [vmem:[%s13420_s3 + $0x108] ss:$16 sps:$4 sm:$0xff]  }
0x1095   :  { %4738 = vmatpush1.bf16.msra.mxu1 %v11921_v23  ;;  %4779 = vmatpush1.bf16.msra.mxu0 %v11927_v10  ;;  %v8075_v23 = vld [vmem:[%s13420_s3 + $0x124] ss:$16 sps:$4 sm:$0xff]   ;;  %v8076_v10 = vld [vmem:[%s13420_s3 + $0x12c] ss:$16 sps:$4 sm:$0xff]  }
0x1096   :  { %4739 = vmatprep.subr.bf16.mxu1 %v11933_v15  ;;  %4780 = vmatprep.subr.bf16.mxu0 %v11939_v21  ;;  %v8077_v15 = vld [vmem:[%s13420_s3 + $0x120] ss:$16 sps:$4 sm:$0xff]   ;;  %v8078_v21 = vld [vmem:[%s13420_s3 + $0x128] ss:$16 sps:$4 sm:$0xff]  }
0x1099   :  { %4740 = vmatpush1.bf16.msra.mxu1 %v11945_v22  ;;  %4781 = vmatpush1.bf16.msra.mxu0 %v11951_v43  ;;  %v8079_v22 = vld [vmem:[%s13420_s3 + $0x144] ss:$16 sps:$4 sm:$0xff]   ;;  %v8080_v43 = vld [vmem:[%s13420_s3 + $0x14c] ss:$16 sps:$4 sm:$0xff]  }
0x109a   :  { %4741 = vmatprep.subr.bf16.mxu1 %v11957_v4  ;;  %4782 = vmatprep.subr.bf16.mxu0 %v11963_v36  ;;  %v8081_v4 = vld [vmem:[%s13420_s3 + $0x140] ss:$16 sps:$4 sm:$0xff]   ;;  %v8082_v36 = vld [vmem:[%s13420_s3 + $0x148] ss:$16 sps:$4 sm:$0xff]  }
0x109d   :  { %4742 = vmatpush1.bf16.msra.mxu1 %v11969_v54  ;;  %4783 = vmatpush1.bf16.msra.mxu0 %v11975_v16  ;;  %v8083_v54 = vld [vmem:[%s13420_s3 + $0x164] ss:$16 sps:$4 sm:$0xff]   ;;  %v8084_v16 = vld [vmem:[%s13420_s3 + $0x16c] ss:$16 sps:$4 sm:$0xff]  }
0x109e   :  { %4743 = vmatprep.subr.bf16.mxu1 %v11981_v7  ;;  %4784 = vmatprep.subr.bf16.mxu0 %v11987_v20  ;;  %v8085_v7 = vld [vmem:[%s13420_s3 + $0x160] ss:$16 sps:$4 sm:$0xff]   ;;  %v8086_v20 = vld [vmem:[%s13420_s3 + $0x168] ss:$16 sps:$4 sm:$0xff]  }
0x10a1   :  { %4744 = vmatpush1.bf16.msra.mxu1 %v11993_v19  ;;  %4785 = vmatpush1.bf16.msra.mxu0 %v11999_v51  ;;  %v8087_v19 = vld [vmem:[%s13420_s3 + $0x184] ss:$16 sps:$4 sm:$0xff]   ;;  %v8088_v51 = vld [vmem:[%s13420_s3 + $0x18c] ss:$16 sps:$4 sm:$0xff]  }
0x10a2   :  { %4745 = vmatprep.subr.bf16.mxu1 %v12005_v55  ;;  %4786 = vmatprep.subr.bf16.mxu0 %v12011_v45  ;;  %v8089_v55 = vld [vmem:[%s13420_s3 + $0x180] ss:$16 sps:$4 sm:$0xff]   ;;  %v8090_v45 = vld [vmem:[%s13420_s3 + $0x188] ss:$16 sps:$4 sm:$0xff]  }
0x10a5   :  { %4746 = vmatpush1.bf16.msra.mxu1 %v14488_v53  ;;  %4787 = vmatpush1.bf16.msra.mxu0 %v14489_v31  ;;  %v8096_v53 = vld [vmem:[%s13420_s3 + $0x1cc] ss:$16 sps:$4 sm:$0xff]   ;;  %v8097_v31 = vld [vmem:[%s13420_s3 + $0x1c0] ss:$16 sps:$4 sm:$0xff]  }
0x10a6   :  { %4747 = vmatprep.subr.bf16.mxu1 %v14490_v44  ;;  %4788 = vmatprep.subr.bf16.mxu0 %v14491_v2  ;;  %v8098_v44 = vld [vmem:[%s13420_s3 + $0x1c8] ss:$16 sps:$4 sm:$0xff]   ;;  %v8099_v2 = vld [vmem:[%s13420_s3 + $0x1e4] ss:$16 sps:$4 sm:$0xff]  }
0x10a9   :  { %4748 = vmatpush1.bf16.msra.mxu1 %v14492_v8  ;;  %4789 = vmatpush1.bf16.msra.mxu0 %v14493_v35  ;;  %v8100_v8 = vld [vmem:[%s13420_s3 + $0x1ec] ss:$16 sps:$4 sm:$0xff]   ;;  %v8101_v35 = vld [vmem:[%s13420_s3 + $0x1e0] ss:$16 sps:$4 sm:$0xff]  }
0x10aa   :  { %4844 = vmatprep.subr.bf16.mxu1 %v8071_v25  ;;  %4885 = vmatprep.subr.bf16.mxu0 %v8072_v46  ;;  %v8102_v25 = vld [vmem:[%s13420_s3 + $0x1e8] ss:$16 sps:$4 sm:$0xff]   ;;  %v12522_v46 = vld [vmem:[%s13421_s4 + $0x104] ss:$16 sps:$4 sm:$0xff]  }
0x10ac   :  { %4766 = vmatmul.mubr.bf16.vlgmr.msra.gmra.mrb[96].mxu1 %v12104_v48  ;;  %4807 = vmatmul.mubr.bf16.vlgmr.msra.gmra.mrb[104].mxu0 %v12104_v48  ;;  %v8091_v48 = vld [vmem:[%s13420_s3 + $0x1a4] ss:$16 sps:$4 sm:$0xff]  }
0x10ad   :  { %4845 = vmatpush1.bf16.msra.mxu1 %v8073_v26  ;;  %4886 = vmatpush1.bf16.msra.mxu0 %v8074_v27  ;;  %v12528_v26 = vld [vmem:[%s13421_s4 + $0x10c] ss:$16 sps:$4 sm:$0xff]  }
0x10ae   :  { %4846 = vmatprep.subr.bf16.mxu1 %v8075_v23  ;;  %4887 = vmatprep.subr.bf16.mxu0 %v8076_v10  ;;  %v14494_v10 = vld [vmem:[#allocation67_spill] sm:$0xff] }
0x10af   :  { %4876 = vmatprep.mubr.bf16.mxu1 %v13884_v50  ;;  %4917 = vmatprep.mubr.bf16.mxu0 %v13884_v50 }
0x10b1   :  { %4847 = vmatpush1.bf16.msra.mxu1 %v8077_v15  ;;  %4888 = vmatpush1.bf16.msra.mxu0 %v8078_v21 }
0x10b2   :  { %4848 = vmatprep.subr.bf16.mxu1 %v8079_v22  ;;  %4889 = vmatprep.subr.bf16.mxu0 %v8080_v43  ;;  %v14495_v43 = vld [vmem:[#allocation68_spill] sm:$0xff] }
0x10b5   :  { %4849 = vmatpush1.bf16.msra.mxu1 %v8081_v4  ;;  %4890 = vmatpush1.bf16.msra.mxu0 %v8082_v36 }
0x10b6   :  { %4850 = vmatprep.subr.bf16.mxu1 %v8083_v54  ;;  %4891 = vmatprep.subr.bf16.mxu0 %v8084_v16 }
0x10b9   :  { %4851 = vmatpush1.bf16.msra.mxu1 %v8085_v7  ;;  %4892 = vmatpush1.bf16.msra.mxu0 %v8086_v20 }
0x10ba   :  { %4852 = vmatprep.subr.bf16.mxu1 %v8087_v19  ;;  %4893 = vmatprep.subr.bf16.mxu0 %v8088_v51  ;;  %v14496_v51 = vld [vmem:[#allocation69_spill] sm:$0xff] }
0x10bd   :  { %4853 = vmatpush1.bf16.msra.mxu1 %v8089_v55  ;;  %4894 = vmatpush1.bf16.msra.mxu0 %v8090_v45 }
0x10be   :  { %4854 = vmatprep.subr.bf16.mxu1 %v8091_v48  ;;  %4895 = vmatprep.subr.bf16.mxu0 %v8092_v34 }
0x10c1   :  { %4855 = vmatpush1.bf16.msra.mxu1 %v8093_v32  ;;  %4896 = vmatpush1.bf16.msra.mxu0 %v8094_v18 }
0x10c2   :  { %4856 = vmatprep.subr.bf16.mxu1 %v8095_v6  ;;  %4897 = vmatprep.subr.bf16.mxu0 %v8096_v53 }
0x10c5   :  { %4857 = vmatpush1.bf16.msra.mxu1 %v8097_v31  ;;  %4898 = vmatpush1.bf16.msra.mxu0 %v8098_v44 }
0x10c6   :  { %4858 = vmatprep.subr.bf16.mxu1 %v8099_v2  ;;  %4899 = vmatprep.subr.bf16.mxu0 %v8100_v8 }
0x10c9   :  { %4859 = vmatpush1.bf16.msra.mxu1 %v8101_v35  ;;  %4900 = vmatpush1.bf16.msra.mxu0 %v8102_v25  ;;  %v14497_v25 = vld [vmem:[#allocation61_spill] sm:$0xff] }
0x10ca   :  { %4926 = vmatprep.subr.bf16.mxu1 %v12522_v46  ;;  %4967 = vmatprep.subr.bf16.mxu0 %v12528_v26 }
0x115f   :  { %v4653_v27 = vpop.f32.mrb[80].mxu1  ;;  %v12531_v23 = vpop.f32.mrb[88].mxu0 }
0x1160   :  { %v6847_v15 = vadd.f32 %v4653_v27, %v14494_v10  ;;  %v4655_v21 = vpop.f32.mrb[81].mxu1  ;;  %v4696_v22 = vpop.f32.mrb[89].mxu0  ;;  %v12721_v10 = vld [vmem:[%s13421_s4 + $0x1e0] ss:$16 sps:$4 sm:$0xff]  }
0x1161   :  { %v6848_v4 = vadd.f32 %v4655_v21, %v14495_v43  ;;  %v4657_v36 = vpop.f32.mrb[82].mxu1  ;;  %v4698_v54 = vpop.f32.mrb[90].mxu0  ;;  %v6850_v55 = vadd.f32 %v4696_v22, %v14496_v51  ;;  %v12709_v51 = vld [vmem:[%s13421_s4 + $0x1e4] ss:$16 sps:$4 sm:$0xff]   ;;  %v12715_v43 = vld [vmem:[%s13421_s4 + $0x1ec] ss:$16 sps:$4 sm:$0xff]  }
0x1162   :  { %v6481_v16 = vmul.f32 -1.442695, %v6847_v15  ;;  %v4658_v7 = vpop.f32.mrb[83].mxu1  ;;  %v4699_v20 = vpop.f32.mrb[91].mxu0  ;;  %v14498_v15 = vld [vmem:[#allocation62_spill] sm:$0xff]  ;;  %v14499_v36 = vld [vmem:[#allocation63_spill] sm:$0xff] }
0x1163   :  { %v6482_v19 = vmul.f32 -1.442695, %v6848_v4  ;;  %14513 = vst [vmem:[#allocation20_spill] sm:$0xff] %v12709_v51  ;;  %14514 = vst [vmem:[#allocation21_spill] sm:$0xff] %v12715_v43 }
0x1164   :  { %7589 = vpow2.f32 %v6481_v16  ;;  %v14500_v16 = vld [vmem:[#allocation64_spill] sm:$0xff]  ;;  %14515 = vst [vmem:[#allocation22_spill] sm:$0xff] %v12721_v10 }
0x1165   :  { %7591 = vpow2.f32 %v6482_v19 }
0x1166   :  { %7593 = vtanh.f32 %v6850_v55 }
0x116e   :  { %v7590_v45 = vpop.eup %7589 }
0x116f   :  { %v4714_v48 = vadd.f32 1.0, %v7590_v45  ;;  %v7592_v34 = vpop.eup %7591 }
0x1170   :  { %v4715_v32 = vadd.f32 1.0, %v7592_v34  ;;  %v7594_v18 = vpop.eup %7593 }
0x1171   :  { %7595 = vrcp.f32 %v4714_v48 }
0x1172   :  { %7597 = vrcp.f32 %v4715_v32 }
0x117b   :  { %v7596_v6 = vpop.eup %7595 }
0x117c   :  { %v4725_v53 = vmul.f32 %v7596_v6, %v7594_v18  ;;  %v7598_v31 = vpop.eup %7597 }
0x117d   :  { %v4724_v44 = vmul.f32 %v7598_v31, %v12094_v60 }
0x117f   :  { %v4767_v2 = vpop.f32.mrb[96].mxu1  ;;  %v4808_v8 = vpop.f32.mrb[104].mxu0  ;;  %v12537_v35 = vadd.f32 %v4725_v53, %v4724_v44 }
0x1180   :  { %v4815_v27 = vadd.f32 %v4767_v2, %v14497_v25  ;;  %v4817_v21 = vadd.f32 %v4808_v8, %v14498_v15  ;;  %v4769_v22 = vpop.f32.mrb[97].mxu1  ;;  %v4810_v4 = vpop.f32.mrb[105].mxu0 }
0x1181   :  { %v4816_v54 = vadd.f32 %v4769_v22, %v14499_v36  ;;  %v4818_v7 = vadd.f32 %v4810_v4, %v14500_v16  ;;  %v4771_v20 = vpop.f32.mrb[98].mxu1  ;;  %v4812_v19 = vpop.f32.mrb[106].mxu0  ;;  %v12551_v16 = vld [vmem:[%s13421_s4 + $0x100] ss:$16 sps:$4 sm:$0xff]  }
0x1182   :  { %v6484_v55 = vmul.f32 -1.442695, %v4815_v27  ;;  %v4772_v45 = vpop.f32.mrb[99].mxu1  ;;  %v4813_v48 = vpop.f32.mrb[107].mxu0  ;;  %v6486_v34 = vmul.f32 -1.442695, %v4817_v21 }
0x1183   :  { %v6485_v60 = vmul.f32 -1.442695, %v4816_v54  ;;  %v12569_v20 = vld [vmem:[%s13421_s4 + $0x12c] ss:$16 sps:$4 sm:$0xff]   ;;  %v12577_v19 = vld [vmem:[%s13421_s4 + $0x120] ss:$16 sps:$4 sm:$0xff]  }
0x1184   :  { %7599 = vpow2.f32 %v6484_v55  ;;  %v12583_v55 = vld [vmem:[%s13421_s4 + $0x128] ss:$16 sps:$4 sm:$0xff]   ;;  %v12589_v45 = vld [vmem:[%s13421_s4 + $0x144] ss:$16 sps:$4 sm:$0xff]   ;;  %v12595_v48 = vld [vmem:[%s13421_s4 + $0x14c] ss:$16 sps:$4 sm:$0xff]  }
0x1185   :  { %7601 = vpow2.f32 %v6485_v60  ;;  %v12601_v60 = vld [vmem:[%s13421_s4 + $0x140] ss:$16 sps:$4 sm:$0xff]  }
0x1186   :  { %7603 = vtanh.f32 %v4818_v7  ;;  %v12563_v7 = vld [vmem:[%s13421_s4 + $0x124] ss:$16 sps:$4 sm:$0xff]  }
0x1187   :  { %7605 = vpow2.f32 %v6486_v34  ;;  %v12607_v34 = vld [vmem:[%s13421_s4 + $0x148] ss:$16 sps:$4 sm:$0xff]  }
0x118e   :  { %v7600_v32 = vpop.eup %7599 }
0x118f   :  { %v4828_v18 = vadd.f32 1.0, %v7600_v32  ;;  %v7602_v6 = vpop.eup %7601  ;;  %v12613_v32 = vld [vmem:[%s13421_s4 + $0x164] ss:$16 sps:$4 sm:$0xff]  }
0x1190   :  { %v4829_v53 = vadd.f32 1.0, %v7602_v6  ;;  %v7604_v31 = vpop.eup %7603  ;;  %v12625_v6 = vld [vmem:[%s13421_s4 + $0x160] ss:$16 sps:$4 sm:$0xff]  }
0x1191   :  { %7607 = vrcp.f32 %v4828_v18  ;;  %v7606_v44 = vpop.eup %7605  ;;  %v12619_v18 = vld [vmem:[%s13421_s4 + $0x16c] ss:$16 sps:$4 sm:$0xff]  }
0x1192   :  { %7609 = vrcp.f32 %v4829_v53  ;;  %v4830_v27 = vadd.f32 1.0, %v7606_v44  ;;  %v12631_v53 = vld [vmem:[%s13421_s4 + $0x168] ss:$16 sps:$4 sm:$0xff]   ;;  %v12643_v44 = vld [vmem:[%s13421_s4 + $0x18c] ss:$16 sps:$4 sm:$0xff]  }
0x1193   :  { %14502 = vst [vmem:[#allocation9_spill] sm:$0xff] %v12643_v44 }
0x1194   :  { %7611 = vrcp.f32 %v4830_v27  ;;  %v12667_v27 = vld [vmem:[%s13421_s4 + $0x1ac] ss:$16 sps:$4 sm:$0xff]  }
0x1195   :  { %14506 = vst [vmem:[#allocation13_spill] sm:$0xff] %v12667_v27 }
0x119b   :  { %v7608_v2 = vpop.eup %7607 }
0x119c   :  { %v4839_v8 = vmul.f32 %v7608_v2, %v7604_v31  ;;  %v7610_v25 = vpop.eup %7609  ;;  %v12637_v31 = vld [vmem:[%s13421_s4 + $0x184] ss:$16 sps:$4 sm:$0xff]   ;;  %v12649_v2 = vld [vmem:[%s13421_s4 + $0x180] ss:$16 sps:$4 sm:$0xff]  }
0x119d   :  { %v4838_v15 = vmul.f32 %v7610_v25, %v12101_v11  ;;  %v12557_v11 = vld [vmem:[%s13421_s4 + $0x108] ss:$16 sps:$4 sm:$0xff]   ;;  %14503 = vst [vmem:[#allocation10_spill] sm:$0xff] %v12649_v2  ;;  %v12661_v25 = vld [vmem:[%s13421_s4 + $0x1a4] ss:$16 sps:$4 sm:$0xff]  }
0x119e   :  { %v7612_v21 = vpop.eup %7611  ;;  %14505 = vst [vmem:[#allocation12_spill] sm:$0xff] %v12661_v25 }
0x119f   :  { %v4840_v22 = vadd.f32 %v4839_v8, %v4838_v15  ;;  %v12655_v8 = vld [vmem:[%s13421_s4 + $0x188] ss:$16 sps:$4 sm:$0xff]   ;;  %v12673_v15 = vld [vmem:[%s13421_s4 + $0x1a0] ss:$16 sps:$4 sm:$0xff]  }
0x11a0   :  { %14504 = vst [vmem:[#allocation11_spill] sm:$0xff] %v12655_v8  ;;  %14507 = vst [vmem:[#allocation14_spill] sm:$0xff] %v12673_v15 }
0x11a1   :  { %7613 = vtanh.f32 %v4840_v22  ;;  %v12679_v22 = vld [vmem:[%s13421_s4 + $0x1a8] ss:$16 sps:$4 sm:$0xff]  }
0x11a2   :  { %14508 = vst [vmem:[#allocation15_spill] sm:$0xff] %v12679_v22 }
0x11ab   :  { %v7614_v4 = vpop.eup %7613 }
0x11ac   :  { %v12544_v36 = vmul.f32 %v7614_v4, %v7612_v21  ;;  %v12685_v21 = vld [vmem:[%s13421_s4 + $0x1c4] ss:$16 sps:$4 sm:$0xff]   ;;  %v12691_v4 = vld [vmem:[%s13421_s4 + $0x1cc] ss:$16 sps:$4 sm:$0xff]  }
0x11ad   :  { %14509 = vst [vmem:[#allocation16_spill] sm:$0xff] %v12685_v21  ;;  %14510 = vst [vmem:[#allocation17_spill] sm:$0xff] %v12691_v4 }
0x11ae   :  { %14501 = vst [vmem:[#allocation44_spill] sm:$0xff] %v12544_v36  ;;  %v4843_v54 = vpack.c.bf16 %v12544_v36, %v12544_v36  ;;  %v12703_v36 = vld [vmem:[%s13421_s4 + $0x1c8] ss:$16 sps:$4 sm:$0xff]  }
0x11af   :  { %14512 = vst [vmem:[#allocation19_spill] sm:$0xff] %v12703_v36 }
0x11b0   :  { %4877 = vmatmul.mubr.bf16.vlgmr.msra.gmra.mrb[100].mxu1 %v4843_v54  ;;  %4918 = vmatmul.mubr.bf16.vlgmr.msra.gmra.mrb[108].mxu0 %v4843_v54  ;;  %v12697_v54 = vld [vmem:[%s13421_s4 + $0x1c0] ss:$16 sps:$4 sm:$0xff]  }
0x11b1   :  { %4927 = vmatpush1.bf16.msra.mxu1 %v12551_v16  ;;  %4968 = vmatpush1.bf16.msra.mxu0 %v12557_v11  ;;  %14511 = vst [vmem:[#allocation18_spill] sm:$0xff] %v12697_v54 }
0x11b2   :  { %4928 = vmatprep.subr.bf16.mxu1 %v12563_v7  ;;  %4969 = vmatprep.subr.bf16.mxu0 %v12569_v20 }
0x11b3   :  { %4958 = vmatprep.mubr.bf16.mxu1 %v13884_v50  ;;  %4999 = vmatprep.mubr.bf16.mxu0 %v13884_v50 }
0x11b5   :  { %4929 = vmatpush1.bf16.msra.mxu1 %v12577_v19  ;;  %4970 = vmatpush1.bf16.msra.mxu0 %v12583_v55 }
0x11b6   :  { %4930 = vmatprep.subr.bf16.mxu1 %v12589_v45  ;;  %4971 = vmatprep.subr.bf16.mxu0 %v12595_v48 }
0x11b9   :  { %4931 = vmatpush1.bf16.msra.mxu1 %v12601_v60  ;;  %4972 = vmatpush1.bf16.msra.mxu0 %v12607_v34 }
0x11ba   :  { %4932 = vmatprep.subr.bf16.mxu1 %v12613_v32  ;;  %4973 = vmatprep.subr.bf16.mxu0 %v12619_v18 }
0x11bd   :  { %4933 = vmatpush1.bf16.msra.mxu1 %v12625_v6  ;;  %4974 = vmatpush1.bf16.msra.mxu0 %v12631_v53 }
0x11be   :  { %4934 = vmatprep.subr.bf16.mxu1 %v12637_v31  ;;  %4975 = vmatprep.subr.bf16.mxu0 %v12643_v44 }
0x11c1   :  { %4935 = vmatpush1.bf16.msra.mxu1 %v12649_v2  ;;  %4976 = vmatpush1.bf16.msra.mxu0 %v12655_v8 }
0x11c2   :  { %4936 = vmatprep.subr.bf16.mxu1 %v12661_v25  ;;  %4977 = vmatprep.subr.bf16.mxu0 %v12667_v27 }
0x11c5   :  { %4937 = vmatpush1.bf16.msra.mxu1 %v12673_v15  ;;  %4978 = vmatpush1.bf16.msra.mxu0 %v12679_v22 }
0x11c6   :  { %4938 = vmatprep.subr.bf16.mxu1 %v12685_v21  ;;  %4979 = vmatprep.subr.bf16.mxu0 %v12691_v4 }
0x11c9   :  { %4939 = vmatpush1.bf16.msra.mxu1 %v12697_v54  ;;  %4980 = vmatpush1.bf16.msra.mxu0 %v12703_v36  ;;  %v12727_v36 = vld [vmem:[%s13421_s4 + $0x1e8] ss:$16 sps:$4 sm:$0xff]  }
0x11ca   :  { %4940 = vmatprep.subr.bf16.mxu1 %v12709_v51  ;;  %4981 = vmatprep.subr.bf16.mxu0 %v12715_v43  ;;  %14516 = vst [vmem:[#allocation23_spill] sm:$0xff] %v12727_v36  ;;  %v12733_v51 = vld [vmem:[%s13420_s3 + $0x204] ss:$16 sps:$4 sm:$0xff]   ;;  %v12739_v43 = vld [vmem:[%s13420_s3 + $0x20c] ss:$16 sps:$4 sm:$0xff]  }
0x11cb   :  { %14517 = vst [vmem:[#allocation24_spill] sm:$0xff] %v12733_v51  ;;  %14518 = vst [vmem:[#allocation25_spill] sm:$0xff] %v12739_v43 }
0x11cd   :  { %4941 = vmatpush1.bf16.msra.mxu1 %v12721_v10  ;;  %4982 = vmatpush1.bf16.msra.mxu0 %v12727_v36  ;;  %v12747_v36 = vld [vmem:[%s13420_s3 + $0x200] ss:$16 sps:$4 sm:$0xff]  }
0x11ce   :  { %5037 = vmatprep.subr.bf16.mxu1 %v12733_v51  ;;  %5078 = vmatprep.subr.bf16.mxu0 %v12739_v43  ;;  %14519 = vst [vmem:[#allocation26_spill] sm:$0xff] %v12747_v36  ;;  %v12753_v51 = vld [vmem:[%s13420_s3 + $0x208] ss:$16 sps:$4 sm:$0xff]   ;;  %v12759_v43 = vld [vmem:[%s13420_s3 + $0x224] ss:$16 sps:$4 sm:$0xff]  }
0x11cf   :  { %14520 = vst [vmem:[#allocation27_spill] sm:$0xff] %v12753_v51  ;;  %14521 = vst [vmem:[#allocation28_spill] sm:$0xff] %v12759_v43 }
0x11d0   :  { %4959 = vmatmul.mubr.bf16.vlgmr.msra.gmra.mrb[88].mxu1 %v12198_v29  ;;  %5000 = vmatmul.mubr.bf16.vlgmr.msra.gmra.mrb[96].mxu0 %v12198_v29  ;;  %v12765_v29 = vld [vmem:[%s13420_s3 + $0x22c] ss:$16 sps:$4 sm:$0xff]  }
0x11d1   :  { %5038 = vmatpush1.bf16.msra.mxu1 %v12747_v36  ;;  %5079 = vmatpush1.bf16.msra.mxu0 %v12753_v51  ;;  %14522 = vst [vmem:[#allocation29_spill] sm:$0xff] %v12765_v29  ;;  %v12773_v51 = vld [vmem:[%s13420_s3 + $0x220] ss:$16 sps:$4 sm:$0xff]   ;;  %v12791_v36 = vld [vmem:[%s13420_s3 + $0x24c] ss:$16 sps:$4 sm:$0xff]  }
0x11d2   :  { %5039 = vmatprep.subr.bf16.mxu1 %v12759_v43  ;;  %5080 = vmatprep.subr.bf16.mxu0 %v12765_v29  ;;  %14523 = vst [vmem:[#allocation30_spill] sm:$0xff] %v12773_v51  ;;  %v12779_v43 = vld [vmem:[%s13420_s3 + $0x228] ss:$16 sps:$4 sm:$0xff]   ;;  %v12785_v29 = vld [vmem:[%s13420_s3 + $0x244] ss:$16 sps:$4 sm:$0xff]   ;;  %14526 = vst [vmem:[#allocation37_spill] sm:$0xff] %v12791_v36 }
0x11d3   :  { %5069 = vmatprep.mubr.bf16.mxu1 %v13884_v50  ;;  %5110 = vmatprep.mubr.bf16.mxu0 %v13884_v50  ;;  %14524 = vst [vmem:[#allocation31_spill] sm:$0xff] %v12779_v43  ;;  %14525 = vst [vmem:[#allocation32_spill] sm:$0xff] %v12785_v29 }
0x11d5   :  { %5040 = vmatpush1.bf16.msra.mxu1 %v12773_v51  ;;  %5081 = vmatpush1.bf16.msra.mxu0 %v12779_v43  ;;  %v12797_v51 = vld [vmem:[%s13420_s3 + $0x240] ss:$16 sps:$4 sm:$0xff]   ;;  %v12803_v43 = vld [vmem:[%s13420_s3 + $0x248] ss:$16 sps:$4 sm:$0xff]  }
0x11d6   :  { %5041 = vmatprep.subr.bf16.mxu1 %v12785_v29  ;;  %5082 = vmatprep.subr.bf16.mxu0 %v12791_v36  ;;  %14527 = vst [vmem:[#allocation38_spill] sm:$0xff] %v12797_v51  ;;  %14528 = vst [vmem:[#allocation39_spill] sm:$0xff] %v12803_v43  ;;  %v12809_v29 = vld [vmem:[%s13420_s3 + $0x264] ss:$16 sps:$4 sm:$0xff]   ;;  %v12815_v36 = vld [vmem:[%s13420_s3 + $0x26c] ss:$16 sps:$4 sm:$0xff]  }
0x11d7   :  { %14529 = vst [vmem:[#allocation40_spill] sm:$0xff] %v12809_v29  ;;  %14530 = vst [vmem:[#allocation65_spill] sm:$0xff] %v12815_v36 }
0x11d9   :  { %5042 = vmatpush1.bf16.msra.mxu1 %v12797_v51  ;;  %5083 = vmatpush1.bf16.msra.mxu0 %v12803_v43  ;;  %v12821_v51 = vld [vmem:[%s13420_s3 + $0x260] ss:$16 sps:$4 sm:$0xff]   ;;  %v12827_v43 = vld [vmem:[%s13420_s3 + $0x268] ss:$16 sps:$4 sm:$0xff]  }
0x11da   :  { %5043 = vmatprep.subr.bf16.mxu1 %v12809_v29  ;;  %5084 = vmatprep.subr.bf16.mxu0 %v12815_v36  ;;  %14531 = vst [vmem:[#allocation66_spill] sm:$0xff] %v12821_v51  ;;  %14532 = vst [vmem:[#allocation57_spill] sm:$0xff] %v12827_v43  ;;  %v12833_v29 = vld [vmem:[%s13420_s3 + $0x284] ss:$16 sps:$4 sm:$0xff]   ;;  %v12839_v36 = vld [vmem:[%s13420_s3 + $0x28c] ss:$16 sps:$4 sm:$0xff]  }
0x11db   :  { %14533 = vst [vmem:[#allocation58_spill] sm:$0xff] %v12833_v29  ;;  %14534 = vst [vmem:[#allocation59_spill] sm:$0xff] %v12839_v36 }
0x11dd   :  { %5044 = vmatpush1.bf16.msra.mxu1 %v12821_v51  ;;  %5085 = vmatpush1.bf16.msra.mxu0 %v12827_v43  ;;  %v12845_v51 = vld [vmem:[%s13420_s3 + $0x280] ss:$16 sps:$4 sm:$0xff]   ;;  %v12851_v43 = vld [vmem:[%s13420_s3 + $0x288] ss:$16 sps:$4 sm:$0xff]  }
0x11de   :  { %5045 = vmatprep.subr.bf16.mxu1 %v12833_v29  ;;  %5086 = vmatprep.subr.bf16.mxu0 %v12839_v36  ;;  %14535 = vst [vmem:[#allocation60_spill] sm:$0xff] %v12845_v51  ;;  %14536 = vst [vmem:[#allocation49_spill] sm:$0xff] %v12851_v43  ;;  %v12857_v29 = vld [vmem:[%s13420_s3 + $0x2a4] ss:$16 sps:$4 sm:$0xff]   ;;  %v12863_v36 = vld [vmem:[%s13420_s3 + $0x2ac] ss:$16 sps:$4 sm:$0xff]  }
0x11df   :  { %14537 = vst [vmem:[#allocation50_spill] sm:$0xff] %v12857_v29  ;;  %14538 = vst [vmem:[#allocation51_spill] sm:$0xff] %v12863_v36 }
0x11e1   :  { %5046 = vmatpush1.bf16.msra.mxu1 %v12845_v51  ;;  %5087 = vmatpush1.bf16.msra.mxu0 %v12851_v43  ;;  %v12869_v51 = vld [vmem:[%s13420_s3 + $0x2a0] ss:$16 sps:$4 sm:$0xff]   ;;  %v12875_v43 = vld [vmem:[%s13420_s3 + $0x2a8] ss:$16 sps:$4 sm:$0xff]  }
0x11e2   :  { %5047 = vmatprep.subr.bf16.mxu1 %v12857_v29  ;;  %5088 = vmatprep.subr.bf16.mxu0 %v12863_v36  ;;  %14539 = vst [vmem:[#allocation52_spill] sm:$0xff] %v12869_v51  ;;  %14540 = vst [vmem:[#allocation70_spill] sm:$0xff] %v12875_v43  ;;  %v12881_v29 = vld [vmem:[%s13420_s3 + $0x2c4] ss:$16 sps:$4 sm:$0xff]   ;;  %v12887_v36 = vld [vmem:[%s13420_s3 + $0x2cc] ss:$16 sps:$4 sm:$0xff]  }
0x11e3   :  { %14541 = vst [vmem:[#allocation71_spill] sm:$0xff] %v12881_v29  ;;  %14542 = vst [vmem:[#allocation72_spill] sm:$0xff] %v12887_v36 }
0x11e5   :  { %5048 = vmatpush1.bf16.msra.mxu1 %v12869_v51  ;;  %5089 = vmatpush1.bf16.msra.mxu0 %v12875_v43  ;;  %v12893_v51 = vld [vmem:[%s13420_s3 + $0x2c0] ss:$16 sps:$4 sm:$0xff]   ;;  %v12899_v43 = vld [vmem:[%s13420_s3 + $0x2c8] ss:$16 sps:$4 sm:$0xff]  }
0x11e6   :  { %5049 = vmatprep.subr.bf16.mxu1 %v12881_v29  ;;  %5090 = vmatprep.subr.bf16.mxu0 %v12887_v36  ;;  %14543 = vst [vmem:[#allocation73_spill] sm:$0xff] %v12893_v51  ;;  %14544 = vst [vmem:[#allocation74_spill] sm:$0xff] %v12899_v43  ;;  %v12905_v29 = vld [vmem:[%s13420_s3 + $0x2e4] ss:$16 sps:$4 sm:$0xff]   ;;  %v12911_v36 = vld [vmem:[%s13420_s3 + $0x2ec] ss:$16 sps:$4 sm:$0xff]  }
0x11e7   :  { %14545 = vst [vmem:[#allocation75_spill] sm:$0xff] %v12905_v29  ;;  %14546 = vst [vmem:[#allocation76_spill] sm:$0xff] %v12911_v36 }
0x11e9   :  { %5050 = vmatpush1.bf16.msra.mxu1 %v12893_v51  ;;  %5091 = vmatpush1.bf16.msra.mxu0 %v12899_v43  ;;  %v12917_v51 = vld [vmem:[%s13420_s3 + $0x2e0] ss:$16 sps:$4 sm:$0xff]   ;;  %v12923_v43 = vld [vmem:[%s13420_s3 + $0x2e8] ss:$16 sps:$4 sm:$0xff]  }
0x11ea   :  { %5051 = vmatprep.subr.bf16.mxu1 %v12905_v29  ;;  %5092 = vmatprep.subr.bf16.mxu0 %v12911_v36  ;;  %14547 = vst [vmem:[#allocation77_spill] sm:$0xff] %v12917_v51  ;;  %14548 = vst [vmem:[#allocation78_spill] sm:$0xff] %v12923_v43 }
0x11ed   :  { %5052 = vmatpush1.bf16.msra.mxu1 %v12917_v51  ;;  %5093 = vmatpush1.bf16.msra.mxu0 %v12923_v43 }
0x11ee   :  { %5120 = vmatprep.subr.bf16.mxu1 %v12179_v57  ;;  %5161 = vmatprep.subr.bf16.mxu0 %v12185_v0 }
0x12a3   :  { %v4960_v29 = vpop.f32.mrb[88].mxu1  ;;  %v5001_v36 = vpop.f32.mrb[96].mxu0 }
0x12a4   :  { %v6851_v10 = vadd.f32 %v4960_v29, %v14049_v58  ;;  %v4962_v54 = vpop.f32.mrb[89].mxu1  ;;  %v5003_v4 = vpop.f32.mrb[97].mxu0  ;;  %v6853_v57 = vadd.f32 %v5001_v36, %v9407_v59 }
0x12a5   :  { %v6852_v21 = vadd.f32 %v4962_v54, %v9402_v33  ;;  %v4964_v51 = vpop.f32.mrb[90].mxu1  ;;  %v5005_v22 = vpop.f32.mrb[98].mxu0  ;;  %v6854_v0 = vadd.f32 %v5003_v4, %v9410_v62  ;;  %v14549_v4 = vld [vmem:[#allocation122_spill] sm:$0xff] }
0x12a6   :  { %v6487_v15 = vmul.f32 -1.442695, %v6851_v10  ;;  %v4965_v27 = vpop.f32.mrb[91].mxu1  ;;  %v5006_v25 = vpop.f32.mrb[99].mxu0  ;;  %v6489_v43 = vmul.f32 -1.442695, %v6853_v57  ;;  %v6849_v57 = vadd.f32 %v12531_v23, %v10597_v30 }
0x12a7   :  { %v6488_v8 = vmul.f32 -1.442695, %v6852_v21 }
0x12a8   :  { %7615 = vpow2.f32 %v6487_v15 }
0x12a9   :  { %7617 = vpow2.f32 %v6488_v8 }
0x12aa   :  { %7619 = vtanh.f32 %v6854_v0 }
0x12ab   :  { %7621 = vpow2.f32 %v6489_v43  ;;  %v6483_v43 = vmul.f32 -1.442695, %v6849_v57  ;;  %v14557_v57 = vld [vmem:[#allocation43_spill] sm:$0xff] }
0x12b2   :  { %v7616_v2 = vpop.eup %7615 }
0x12b3   :  { %v5021_v44 = vadd.f32 1.0, %v7616_v2  ;;  %v7618_v29 = vpop.eup %7617 }
0x12b4   :  { %v5022_v54 = vadd.f32 1.0, %v7618_v29  ;;  %v7620_v51 = vpop.eup %7619  ;;  %v14550_v29 = vld [vmem:[#allocation123_spill] sm:$0xff] }
0x12b5   :  { %7623 = vrcp.f32 %v5021_v44  ;;  %v7622_v10 = vpop.eup %7621 }
0x12b6   :  { %7625 = vrcp.f32 %v5022_v54  ;;  %v5023_v15 = vadd.f32 1.0, %v7622_v10  ;;  %v14551_v54 = vld [vmem:[#allocation53_spill] sm:$0xff]  ;;  %v14553_v10 = vld [vmem:[#allocation55_spill] sm:$0xff] }
0x12b8   :  { %7627 = vrcp.f32 %v5023_v15  ;;  %v14555_v15 = vld [vmem:[#allocation41_spill] sm:$0xff] }
0x12bf   :  { %v7624_v27 = vpop.eup %7623 }
0x12c0   :  { %v5032_v25 = vmul.f32 %v7624_v27, %v7620_v51  ;;  %v7626_v22 = vpop.eup %7625  ;;  %v14552_v51 = vld [vmem:[#allocation54_spill] sm:$0xff]  ;;  %v14554_v27 = vld [vmem:[#allocation56_spill] sm:$0xff] }
0x12c1   :  { %v5031_v8 = vmul.f32 %v7626_v22, %v12193_v3 }
0x12c2   :  { %v7628_v0 = vpop.eup %7627 }
0x12c3   :  { %v12933_v36 = vadd.f32 %v5032_v25, %v5031_v8  ;;  %v14556_v8 = vld [vmem:[#allocation42_spill] sm:$0xff] }
0x12c5   :  { %7629 = vtanh.f32 %v12933_v36 }
0x12c6   :  { %7631 = vpow2.f32 %v6483_v43 }
0x12c7   :  { %7633 = vtanh.f32 %v12537_v35 }
0x12cf   :  { %v7630_v44 = vpop.eup %7629 }
0x12d0   :  { %v5035_v2 = vmul.f32 %v7630_v44, %v7628_v0  ;;  %v7632_v3 = vpop.eup %7631  ;;  %v14575_v44 = vld [vmem:[#allocation26_spill] sm:$0xff] }
0x12d1   :  { %v4716_v23 = vadd.f32 1.0, %v7632_v3  ;;  %v7634_v25 = vpop.eup %7633  ;;  %v14577_v3 = vld [vmem:[#allocation28_spill] sm:$0xff] }
0x12d2   :  { %v12938_v21 = vpack.c.bf16 %v5035_v2, %v5035_v2  ;;  %v14576_v2 = vld [vmem:[#allocation27_spill] sm:$0xff] }
0x12d3   :  { %7635 = vrcp.f32 %v4716_v23  ;;  %v14578_v23 = vld [vmem:[#allocation29_spill] sm:$0xff] }
0x12d4   :  { %5070 = vmatmul.mubr.bf16.vlgmr.msra.gmra.mrb[104].mxu1 %v12938_v21  ;;  %5111 = vmatmul.mubr.bf16.vlgmr.msra.gmra.mrb[112].mxu0 %v12938_v21 }
0x12d5   :  { %5121 = vmatpush1.bf16.msra.mxu1 %v12205_v38  ;;  %5162 = vmatpush1.bf16.msra.mxu0 %v12211_v14 }
0x12d6   :  { %5122 = vmatprep.subr.bf16.mxu1 %v12217_v61  ;;  %5163 = vmatprep.subr.bf16.mxu0 %v12223_v52 }
0x12d7   :  { %5152 = vmatprep.mubr.bf16.mxu1 %v13884_v50  ;;  %5193 = vmatprep.mubr.bf16.mxu0 %v13884_v50 }
0x12d9   :  { %5123 = vmatpush1.bf16.msra.mxu1 %v12231_v63  ;;  %5164 = vmatpush1.bf16.msra.mxu0 %v12237_v5 }
0x12da   :  { %5124 = vmatprep.subr.bf16.mxu1 %v12243_v39  ;;  %5165 = vmatprep.subr.bf16.mxu0 %v12249_v24 }
0x12dd   :  { %5125 = vmatpush1.bf16.msra.mxu1 %v12255_v49  ;;  %5166 = vmatpush1.bf16.msra.mxu0 %v12261_v28  ;;  %v7636_v22 = vpop.eup %7635 }
0x12de   :  { %5126 = vmatprep.subr.bf16.mxu1 %v12267_v1  ;;  %5167 = vmatprep.subr.bf16.mxu0 %v12273_v9  ;;  %v4728_v0 = vmul.f32 %v7636_v22, %v7634_v25  ;;  %v14579_v25 = vld [vmem:[#allocation30_spill] sm:$0xff]  ;;  %v14580_v22 = vld [vmem:[#allocation31_spill] sm:$0xff] }
0x12e0   :  { %v5119_v43 = vpack.c.bf16 %v4728_v0, %v4728_v0  ;;  %v14581_v0 = vld [vmem:[#allocation32_spill] sm:$0xff] }
0x12e1   :  { %5127 = vmatpush1.bf16.msra.mxu1 %v12280_v40  ;;  %5168 = vmatpush1.bf16.msra.mxu0 %v12286_v47 }
0x12e2   :  { %5128 = vmatprep.subr.bf16.mxu1 %v12292_v41  ;;  %5169 = vmatprep.subr.bf16.mxu0 %v12298_v12 }
0x12e5   :  { %5129 = vmatpush1.bf16.msra.mxu1 %v12304_v13  ;;  %5170 = vmatpush1.bf16.msra.mxu0 %v12310_v17 }
0x12e6   :  { %5130 = vmatprep.subr.bf16.mxu1 %v14549_v4  ;;  %5171 = vmatprep.subr.bf16.mxu0 %v14550_v29 }
0x12e9   :  { %5131 = vmatpush1.bf16.msra.mxu1 %v14551_v54  ;;  %5172 = vmatpush1.bf16.msra.mxu0 %v14552_v51 }
0x12ea   :  { %5132 = vmatprep.subr.bf16.mxu1 %v14553_v10  ;;  %5173 = vmatprep.subr.bf16.mxu0 %v14554_v27 }
0x12ed   :  { %5133 = vmatpush1.bf16.msra.mxu1 %v14555_v15  ;;  %5174 = vmatpush1.bf16.msra.mxu0 %v14556_v8 }
0x12ee   :  { %5134 = vmatprep.subr.bf16.mxu1 %v14557_v57  ;;  %5175 = vmatprep.subr.bf16.mxu0 %v12370_v56 }
0x12f1   :  { %5135 = vmatpush1.bf16.msra.mxu1 %v12376_v42  ;;  %5176 = vmatpush1.bf16.msra.mxu0 %v12382_v37 }
0x12f2   :  { %5230 = vmatprep.subr.bf16.mxu1 %v12522_v46  ;;  %5271 = vmatprep.subr.bf16.mxu0 %v12528_v26  ;;  %v14558_v46 = vld [vmem:[#allocation9_spill] sm:$0xff]  ;;  %v14559_v26 = vld [vmem:[#allocation10_spill] sm:$0xff] }
0x12f4   :  { %5153 = vmatmul.mubr.bf16.vlgmr.msra.gmra.mrb[92].mxu1 %v5119_v43  ;;  %5194 = vmatmul.mubr.bf16.vlgmr.msra.gmra.mrb[100].mxu0 %v5119_v43  ;;  %v14582_v43 = vld [vmem:[#allocation37_spill] sm:$0xff] }
0x12f5   :  { %5231 = vmatpush1.bf16.msra.mxu1 %v12551_v16  ;;  %5272 = vmatpush1.bf16.msra.mxu0 %v12557_v11  ;;  %v14560_v16 = vld [vmem:[#allocation11_spill] sm:$0xff]  ;;  %v14561_v11 = vld [vmem:[#allocation12_spill] sm:$0xff] }
0x12f6   :  { %5232 = vmatprep.subr.bf16.mxu1 %v12563_v7  ;;  %5273 = vmatprep.subr.bf16.mxu0 %v12569_v20  ;;  %v14562_v7 = vld [vmem:[#allocation13_spill] sm:$0xff]  ;;  %v14563_v20 = vld [vmem:[#allocation14_spill] sm:$0xff] }
0x12f7   :  { %5262 = vmatprep.mubr.bf16.mxu1 %v13884_v50  ;;  %5303 = vmatprep.mubr.bf16.mxu0 %v13884_v50 }
0x12f9   :  { %5233 = vmatpush1.bf16.msra.mxu1 %v12577_v19  ;;  %5274 = vmatpush1.bf16.msra.mxu0 %v12583_v55  ;;  %v14564_v19 = vld [vmem:[#allocation15_spill] sm:$0xff]  ;;  %v14565_v55 = vld [vmem:[#allocation16_spill] sm:$0xff] }
0x12fa   :  { %5234 = vmatprep.subr.bf16.mxu1 %v12589_v45  ;;  %5275 = vmatprep.subr.bf16.mxu0 %v12595_v48  ;;  %v14566_v45 = vld [vmem:[#allocation17_spill] sm:$0xff]  ;;  %v14567_v48 = vld [vmem:[#allocation18_spill] sm:$0xff] }
0x12fd   :  { %5235 = vmatpush1.bf16.msra.mxu1 %v12601_v60  ;;  %5276 = vmatpush1.bf16.msra.mxu0 %v12607_v34  ;;  %v14568_v60 = vld [vmem:[#allocation19_spill] sm:$0xff]  ;;  %v14569_v34 = vld [vmem:[#allocation20_spill] sm:$0xff] }
0x12fe   :  { %5236 = vmatprep.subr.bf16.mxu1 %v12613_v32  ;;  %5277 = vmatprep.subr.bf16.mxu0 %v12619_v18  ;;  %v14570_v32 = vld [vmem:[#allocation21_spill] sm:$0xff]  ;;  %v14571_v18 = vld [vmem:[#allocation22_spill] sm:$0xff] }
0x1301   :  { %5237 = vmatpush1.bf16.msra.mxu1 %v12625_v6  ;;  %5278 = vmatpush1.bf16.msra.mxu0 %v12631_v53  ;;  %v14572_v6 = vld [vmem:[#allocation23_spill] sm:$0xff]  ;;  %v14573_v53 = vld [vmem:[#allocation24_spill] sm:$0xff] }
0x1302   :  { %5238 = vmatprep.subr.bf16.mxu1 %v12637_v31  ;;  %5279 = vmatprep.subr.bf16.mxu0 %v14558_v46  ;;  %v14574_v31 = vld [vmem:[#allocation25_spill] sm:$0xff]  ;;  %v14584_v46 = vld [vmem:[#allocation39_spill] sm:$0xff] }
0x1305   :  { %5239 = vmatpush1.bf16.msra.mxu1 %v14559_v26  ;;  %5280 = vmatpush1.bf16.msra.mxu0 %v14560_v16  ;;  %v14585_v26 = vld [vmem:[#allocation40_spill] sm:$0xff]  ;;  %v14586_v16 = vld [vmem:[#allocation65_spill] sm:$0xff] }
0x1306   :  { %5240 = vmatprep.subr.bf16.mxu1 %v14561_v11  ;;  %5281 = vmatprep.subr.bf16.mxu0 %v14562_v7  ;;  %v14587_v11 = vld [vmem:[#allocation66_spill] sm:$0xff]  ;;  %v14588_v7 = vld [vmem:[#allocation57_spill] sm:$0xff] }
0x1309   :  { %5241 = vmatpush1.bf16.msra.mxu1 %v14563_v20  ;;  %5282 = vmatpush1.bf16.msra.mxu0 %v14564_v19  ;;  %v14589_v20 = vld [vmem:[#allocation58_spill] sm:$0xff]  ;;  %v14590_v19 = vld [vmem:[#allocation59_spill] sm:$0xff] }
0x130a   :  { %5242 = vmatprep.subr.bf16.mxu1 %v14565_v55  ;;  %5283 = vmatprep.subr.bf16.mxu0 %v14566_v45  ;;  %v14591_v55 = vld [vmem:[#allocation60_spill] sm:$0xff]  ;;  %v14592_v45 = vld [vmem:[#allocation49_spill] sm:$0xff] }
0x130d   :  { %5243 = vmatpush1.bf16.msra.mxu1 %v14567_v48  ;;  %5284 = vmatpush1.bf16.msra.mxu0 %v14568_v60  ;;  %v14593_v48 = vld [vmem:[#allocation50_spill] sm:$0xff]  ;;  %v14594_v60 = vld [vmem:[#allocation51_spill] sm:$0xff] }
0x130e   :  { %5244 = vmatprep.subr.bf16.mxu1 %v14569_v34  ;;  %5285 = vmatprep.subr.bf16.mxu0 %v14570_v32  ;;  %v14595_v34 = vld [vmem:[#allocation52_spill] sm:$0xff]  ;;  %v14596_v32 = vld [vmem:[#allocation70_spill] sm:$0xff] }
0x1311   :  { %5245 = vmatpush1.bf16.msra.mxu1 %v14571_v18  ;;  %5286 = vmatpush1.bf16.msra.mxu0 %v14572_v6  ;;  %v14597_v18 = vld [vmem:[#allocation71_spill] sm:$0xff]  ;;  %v14598_v6 = vld [vmem:[#allocation72_spill] sm:$0xff] }
0x1312   :  { %5341 = vmatprep.subr.bf16.mxu1 %v14573_v53  ;;  %5382 = vmatprep.subr.bf16.mxu0 %v14574_v31  ;;  %v14599_v53 = vld [vmem:[#allocation73_spill] sm:$0xff]  ;;  %v14600_v31 = vld [vmem:[#allocation74_spill] sm:$0xff] }
0x1314   :  { %5263 = vmatmul.mubr.bf16.vlgmr.msra.gmra.mrb[100].mxu1 %v12938_v21  ;;  %5304 = vmatmul.mubr.bf16.vlgmr.msra.gmra.mrb[108].mxu0 %v12938_v21  ;;  %v14583_v21 = vld [vmem:[#allocation38_spill] sm:$0xff] }
0x1315   :  { %5342 = vmatpush1.bf16.msra.mxu1 %v14575_v44  ;;  %5383 = vmatpush1.bf16.msra.mxu0 %v14576_v2  ;;  %v14601_v44 = vld [vmem:[#allocation75_spill] sm:$0xff]  ;;  %v14602_v2 = vld [vmem:[#allocation76_spill] sm:$0xff] }
0x1316   :  { %5343 = vmatprep.subr.bf16.mxu1 %v14577_v3  ;;  %5384 = vmatprep.subr.bf16.mxu0 %v14578_v23  ;;  %v14603_v3 = vld [vmem:[#allocation77_spill] sm:$0xff]  ;;  %v14604_v23 = vld [vmem:[#allocation78_spill] sm:$0xff] }
0x1317   :  { %5373 = vmatprep.mubr.bf16.mxu1 %v13884_v50  ;;  %5414 = vmatprep.mubr.bf16.mxu0 %v13884_v50 }
0x1319   :  { %5344 = vmatpush1.bf16.msra.mxu1 %v14579_v25  ;;  %5385 = vmatpush1.bf16.msra.mxu0 %v14580_v22  ;;  %v14605_v25 = vld [vmem:[#allocation120_spill] sm:$0xff]  ;;  %v14606_v22 = vld [vmem:[#allocation121_spill] sm:$0xff] }
0x131a   :  { %5345 = vmatprep.subr.bf16.mxu1 %v14581_v0  ;;  %5386 = vmatprep.subr.bf16.mxu0 %v14582_v43 }
0x131d   :  { %5346 = vmatpush1.bf16.msra.mxu1 %v14583_v21  ;;  %5387 = vmatpush1.bf16.msra.mxu0 %v14584_v46  ;;  %v14607_v21 = vld [vmem:[#allocation67_spill] sm:$0xff] }
0x131e   :  { %5347 = vmatprep.subr.bf16.mxu1 %v14585_v26  ;;  %5388 = vmatprep.subr.bf16.mxu0 %v14586_v16 }
0x1321   :  { %5348 = vmatpush1.bf16.msra.mxu1 %v14587_v11  ;;  %5389 = vmatpush1.bf16.msra.mxu0 %v14588_v7  ;;  %v14608_v11 = vld [vmem:[#allocation68_spill] sm:$0xff] }
0x1322   :  { %5349 = vmatprep.subr.bf16.mxu1 %v14589_v20  ;;  %5390 = vmatprep.subr.bf16.mxu0 %v14590_v19 }
0x1325   :  { %5350 = vmatpush1.bf16.msra.mxu1 %v14591_v55  ;;  %5391 = vmatpush1.bf16.msra.mxu0 %v14592_v45 }
0x1326   :  { %5351 = vmatprep.subr.bf16.mxu1 %v14593_v48  ;;  %5392 = vmatprep.subr.bf16.mxu0 %v14594_v60 }
0x1329   :  { %5352 = vmatpush1.bf16.msra.mxu1 %v14595_v34  ;;  %5393 = vmatpush1.bf16.msra.mxu0 %v14596_v32  ;;  %v14609_v34 = vld [vmem:[#allocation69_spill] sm:$0xff] }
0x132a   :  { %5353 = vmatprep.subr.bf16.mxu1 %v14597_v18  ;;  %5394 = vmatprep.subr.bf16.mxu0 %v14598_v6 }
0x132d   :  { %5354 = vmatpush1.bf16.msra.mxu1 %v14599_v53  ;;  %5395 = vmatpush1.bf16.msra.mxu0 %v14600_v31 }
0x132e   :  { %5355 = vmatprep.subr.bf16.mxu1 %v14601_v44  ;;  %5396 = vmatprep.subr.bf16.mxu0 %v14602_v2 }
0x1331   :  { %5356 = vmatpush1.bf16.msra.mxu1 %v14603_v3  ;;  %5397 = vmatpush1.bf16.msra.mxu0 %v14604_v23 }
0x1332   :  { %5424 = vmatprep.subr.bf16.mxu1 %v14605_v25  ;;  %5465 = vmatprep.subr.bf16.mxu0 %v14606_v22 }
0x13c7   :  { %v5154_v0 = vpop.f32.mrb[92].mxu1  ;;  %v5195_v43 = vpop.f32.mrb[100].mxu0 }
0x13c8   :  { %v6855_v46 = vadd.f32 %v5154_v0, %v14607_v21  ;;  %v5156_v26 = vpop.f32.mrb[93].mxu1  ;;  %v5197_v16 = vpop.f32.mrb[101].mxu0 }
0x13c9   :  { %v6856_v7 = vadd.f32 %v5156_v26, %v14608_v11  ;;  %v5158_v20 = vpop.f32.mrb[94].mxu1  ;;  %v5199_v19 = vpop.f32.mrb[102].mxu0  ;;  %v6858_v32 = vadd.f32 %v5197_v16, %v14609_v34 }
0x13ca   :  { %v6490_v55 = vmul.f32 -1.442695, %v6855_v46  ;;  %v5159_v45 = vpop.f32.mrb[95].mxu1  ;;  %v5200_v48 = vpop.f32.mrb[103].mxu0 }
0x13cb   :  { %v6491_v60 = vmul.f32 -1.442695, %v6856_v7 }
0x13cc   :  { %7637 = vpow2.f32 %v6490_v55 }
0x13cd   :  { %7639 = vpow2.f32 %v6491_v60 }
0x13ce   :  { %7641 = vtanh.f32 %v6858_v32 }
0x13d6   :  { %v7638_v18 = vpop.eup %7637 }
0x13d7   :  { %v5215_v6 = vadd.f32 1.0, %v7638_v18  ;;  %v7640_v53 = vpop.eup %7639 }
0x13d8   :  { %v5216_v31 = vadd.f32 1.0, %v7640_v53  ;;  %v7642_v44 = vpop.eup %7641 }
0x13d9   :  { %7643 = vrcp.f32 %v5215_v6 }
0x13da   :  { %7645 = vrcp.f32 %v5216_v31 }
0x13e3   :  { %v7644_v2 = vpop.eup %7643 }
0x13e4   :  { %v5226_v3 = vmul.f32 %v7644_v2, %v7642_v44  ;;  %v7646_v23 = vpop.eup %7645 }
0x13e5   :  { %v5225_v25 = vmul.f32 %v7646_v23, %v12537_v35 }
0x13e7   :  { %v5264_v22 = vpop.f32.mrb[100].mxu1  ;;  %v5305_v0 = vpop.f32.mrb[108].mxu0  ;;  %v13051_v46 = vadd.f32 %v5226_v3, %v5225_v25 }
0x13e8   :  { %v6859_v26 = vadd.f32 %v5264_v22, %v14049_v58  ;;  %v5266_v16 = vpop.f32.mrb[101].mxu1  ;;  %v5307_v7 = vpop.f32.mrb[109].mxu0  ;;  %v6861_v35 = vadd.f32 %v5305_v0, %v9407_v59 }
0x13e9   :  { %v6860_v20 = vadd.f32 %v5266_v16, %v9402_v33  ;;  %v5268_v19 = vpop.f32.mrb[102].mxu1  ;;  %v5309_v55 = vpop.f32.mrb[110].mxu0  ;;  %v6862_v18 = vadd.f32 %v5307_v7, %v9410_v62  ;;  %v6857_v62 = vadd.f32 %v5195_v43, %v10597_v30  ;;  %v8193_v43 = vld [vmem:[%s13421_s4 + $0x2c0] ss:$16 sps:$4 sm:$0xff]  }
0x13ea   :  { %v6493_v45 = vmul.f32 -1.442695, %v6859_v26  ;;  %v5269_v48 = vpop.f32.mrb[103].mxu1  ;;  %v5310_v60 = vpop.f32.mrb[111].mxu0  ;;  %v6495_v6 = vmul.f32 -1.442695, %v6861_v35 }
0x13eb   :  { %v6494_v32 = vmul.f32 -1.442695, %v6860_v20  ;;  %v6492_v16 = vmul.f32 -1.442695, %v6857_v62  ;;  %v8194_v55 = vld [vmem:[%s13421_s4 + $0x2c8] ss:$16 sps:$4 sm:$0xff]  }
0x13ec   :  { %7647 = vpow2.f32 %v6493_v45  ;;  %v8195_v45 = vld [vmem:[%s13421_s4 + $0x2e4] ss:$16 sps:$4 sm:$0xff]   ;;  %v8196_v48 = vld [vmem:[%s13421_s4 + $0x2ec] ss:$16 sps:$4 sm:$0xff]   ;;  %v8197_v60 = vld [vmem:[%s13421_s4 + $0x2e0] ss:$16 sps:$4 sm:$0xff]  }
0x13ed   :  { %7649 = vpow2.f32 %v6494_v32  ;;  %v8198_v32 = vld [vmem:[%s13421_s4 + $0x2e8] ss:$16 sps:$4 sm:$0xff]   ;;  %v8230_v35 = vmov 0.0|0.0  }
0x13ee   :  { %7651 = vtanh.f32 %v6862_v18 }
0x13ef   :  { %7653 = vpow2.f32 %v6495_v6 }
0x13f6   :  { %v7648_v53 = vpop.eup %7647 }
0x13f7   :  { %v5325_v31 = vadd.f32 1.0, %v7648_v53  ;;  %v7650_v58 = vpop.eup %7649 }
0x13f8   :  { %v5326_v33 = vadd.f32 1.0, %v7650_v58  ;;  %v7652_v44 = vpop.eup %7651 }
0x13f9   :  { %7655 = vrcp.f32 %v5325_v31  ;;  %v7654_v2 = vpop.eup %7653 }
0x13fa   :  { %7657 = vrcp.f32 %v5326_v33  ;;  %v5327_v22 = vadd.f32 1.0, %v7654_v2 }
0x13fc   :  { %7659 = vrcp.f32 %v5327_v22 }
0x1403   :  { %v7656_v3 = vpop.eup %7655 }
0x1404   :  { %v5336_v23 = vmul.f32 %v7656_v3, %v7652_v44  ;;  %v7658_v25 = vpop.eup %7657 }
0x1405   :  { %v5335_v26 = vmul.f32 %v7658_v25, %v12933_v36 }
0x1406   :  { %v7660_v0 = vpop.eup %7659 }
0x1407   :  { %v5337_v59 = vadd.f32 %v5336_v23, %v5335_v26 }
0x1409   :  { %7661 = vtanh.f32 %v5337_v59 }
0x140a   :  { %7663 = vpow2.f32 %v6492_v16 }
0x140b   :  { %7665 = vtanh.f32 %v13051_v46 }
0x1413   :  { %v7662_v7 = vpop.eup %7661 }
0x1414   :  { %v13059_v20 = vmul.f32 %v7662_v7, %v7660_v0  ;;  %v7664_v36 = vpop.eup %7663 }
0x1416   :  { %v5340_v19 = vpack.c.bf16 %v13059_v20, %v13059_v20 }
0x1418   :  { %5374 = vmatmul.mubr.bf16.vlgmr.msra.gmra.mrb[108].mxu1 %v5340_v19  ;;  %5415 = vmatmul.mubr.bf16.vlgmr.msra.gmra.mrb[116].mxu0 %v5340_v19 }
0x1419   :  { %5425 = vmatpush1.bf16.msra.mxu1 %v12205_v38  ;;  %5466 = vmatpush1.bf16.msra.mxu0 %v12211_v14  ;;  %v5217_v38 = vadd.f32 1.0, %v7664_v36  ;;  %v7666_v14 = vpop.eup %7665 }
0x141a   :  { %5426 = vmatprep.subr.bf16.mxu1 %v12217_v61  ;;  %5467 = vmatprep.subr.bf16.mxu0 %v12223_v52 }
0x141b   :  { %5456 = vmatprep.mubr.bf16.mxu1 %v13884_v50  ;;  %5497 = vmatprep.mubr.bf16.mxu0 %v13884_v50  ;;  %7667 = vrcp.f32 %v5217_v38 }
0x141d   :  { %5427 = vmatpush1.bf16.msra.mxu1 %v12231_v63  ;;  %5468 = vmatpush1.bf16.msra.mxu0 %v12237_v5  ;;  %v8167_v5 = vld [vmem:[%s13421_s4 + $0x204] ss:$16 sps:$4 sm:$0xff]  }
0x141e   :  { %5428 = vmatprep.subr.bf16.mxu1 %v12243_v39  ;;  %5469 = vmatprep.subr.bf16.mxu0 %v12249_v24  ;;  %v8168_v39 = vld [vmem:[%s13421_s4 + $0x20c] ss:$16 sps:$4 sm:$0xff]   ;;  %v8169_v24 = vld [vmem:[%s13421_s4 + $0x200] ss:$16 sps:$4 sm:$0xff]  }
0x1421   :  { %5429 = vmatpush1.bf16.msra.mxu1 %v12255_v49  ;;  %5470 = vmatpush1.bf16.msra.mxu0 %v12261_v28  ;;  %v8170_v49 = vld [vmem:[%s13421_s4 + $0x208] ss:$16 sps:$4 sm:$0xff]   ;;  %v8171_v28 = vld [vmem:[%s13421_s4 + $0x224] ss:$16 sps:$4 sm:$0xff]  }
0x1422   :  { %5430 = vmatprep.subr.bf16.mxu1 %v12267_v1  ;;  %5471 = vmatprep.subr.bf16.mxu0 %v12273_v9  ;;  %v8172_v1 = vld [vmem:[%s13421_s4 + $0x22c] ss:$16 sps:$4 sm:$0xff]   ;;  %v8173_v9 = vld [vmem:[%s13421_s4 + $0x220] ss:$16 sps:$4 sm:$0xff]  }
0x1425   :  { %5431 = vmatpush1.bf16.msra.mxu1 %v12280_v40  ;;  %5472 = vmatpush1.bf16.msra.mxu0 %v12286_v47  ;;  %v7668_v61 = vpop.eup %7667  ;;  %v8174_v40 = vld [vmem:[%s13421_s4 + $0x228] ss:$16 sps:$4 sm:$0xff]   ;;  %v8175_v47 = vld [vmem:[%s13421_s4 + $0x244] ss:$16 sps:$4 sm:$0xff]  }
0x1426   :  { %5432 = vmatprep.subr.bf16.mxu1 %v12292_v41  ;;  %5473 = vmatprep.subr.bf16.mxu0 %v12298_v12  ;;  %v5229_v52 = vmul.f32 %v7668_v61, %v7666_v14  ;;  %v8176_v41 = vld [vmem:[%s13421_s4 + $0x24c] ss:$16 sps:$4 sm:$0xff]   ;;  %v8178_v12 = vld [vmem:[%s13421_s4 + $0x248] ss:$16 sps:$4 sm:$0xff]  }
0x1428   :  { %v5423_v63 = vpack.c.bf16 %v5229_v52, %v5229_v52 }
0x1429   :  { %5433 = vmatpush1.bf16.msra.mxu1 %v12304_v13  ;;  %5474 = vmatpush1.bf16.msra.mxu0 %v12310_v17  ;;  %v8179_v13 = vld [vmem:[%s13421_s4 + $0x264] ss:$16 sps:$4 sm:$0xff]   ;;  %v8180_v17 = vld [vmem:[%s13421_s4 + $0x26c] ss:$16 sps:$4 sm:$0xff]  }
0x142a   :  { %5434 = vmatprep.subr.bf16.mxu1 %v14549_v4  ;;  %5475 = vmatprep.subr.bf16.mxu0 %v14550_v29  ;;  %v8184_v4 = vld [vmem:[%s13421_s4 + $0x28c] ss:$16 sps:$4 sm:$0xff]   ;;  %v8185_v29 = vld [vmem:[%s13421_s4 + $0x280] ss:$16 sps:$4 sm:$0xff]  }
0x142d   :  { %5435 = vmatpush1.bf16.msra.mxu1 %v14551_v54  ;;  %5476 = vmatpush1.bf16.msra.mxu0 %v14552_v51  ;;  %v8186_v54 = vld [vmem:[%s13421_s4 + $0x288] ss:$16 sps:$4 sm:$0xff]   ;;  %v8187_v51 = vld [vmem:[%s13421_s4 + $0x2a4] ss:$16 sps:$4 sm:$0xff]  }
0x142e   :  { %5436 = vmatprep.subr.bf16.mxu1 %v14553_v10  ;;  %5477 = vmatprep.subr.bf16.mxu0 %v14554_v27  ;;  %v8188_v10 = vld [vmem:[%s13421_s4 + $0x2ac] ss:$16 sps:$4 sm:$0xff]   ;;  %v8189_v27 = vld [vmem:[%s13421_s4 + $0x2a0] ss:$16 sps:$4 sm:$0xff]  }
0x1431   :  { %5437 = vmatpush1.bf16.msra.mxu1 %v14555_v15  ;;  %5478 = vmatpush1.bf16.msra.mxu0 %v14556_v8  ;;  %v8190_v15 = vld [vmem:[%s13421_s4 + $0x2a8] ss:$16 sps:$4 sm:$0xff]   ;;  %v8191_v8 = vld [vmem:[%s13421_s4 + $0x2c4] ss:$16 sps:$4 sm:$0xff]  }
0x1432   :  { %5438 = vmatprep.subr.bf16.mxu1 %v14557_v57  ;;  %5479 = vmatprep.subr.bf16.mxu0 %v12370_v56  ;;  %v8182_v56 = vld [vmem:[%s13421_s4 + $0x268] ss:$16 sps:$4 sm:$0xff]   ;;  %v8192_v57 = vld [vmem:[%s13421_s4 + $0x2cc] ss:$16 sps:$4 sm:$0xff]  }
0x1435   :  { %5439 = vmatpush1.bf16.msra.mxu1 %v12376_v42  ;;  %5480 = vmatpush1.bf16.msra.mxu0 %v12382_v37  ;;  %v8181_v42 = vld [vmem:[%s13421_s4 + $0x260] ss:$16 sps:$4 sm:$0xff]   ;;  %v8183_v37 = vld [vmem:[%s13421_s4 + $0x284] ss:$16 sps:$4 sm:$0xff]  }
0x1436   :  { %5535 = vmatprep.subr.bf16.mxu1 %v8167_v5  ;;  %5576 = vmatprep.subr.bf16.mxu0 %v8168_v39 }
0x1438   :  { %5457 = vmatmul.mubr.bf16.vlgmr.msra.gmra.mrb[104].mxu1 %v5423_v63  ;;  %5498 = vmatmul.mubr.bf16.vlgmr.msra.gmra.mrb[112].mxu0 %v5423_v63 }
0x1439   :  { %5536 = vmatpush1.bf16.msra.mxu1 %v8169_v24  ;;  %5577 = vmatpush1.bf16.msra.mxu0 %v8170_v49  ;;  %v5645_v24 = vld [vmem:[%s13423_s6] sm:$0xff] }
0x143a   :  { %5537 = vmatprep.subr.bf16.mxu1 %v8171_v28  ;;  %5578 = vmatprep.subr.bf16.mxu0 %v8172_v1  ;;  %v5646_v28 = vld [vmem:[%s13423_s6 + $0x8] sm:$0xff]  ;;  %v6503_v1 = vld [vmem:[%s13423_s6 + $0x80] sm:$0xff] }
0x143b   :  { %5567 = vmatprep.mubr.bf16.mxu1 %v13884_v50  ;;  %5608 = vmatprep.mubr.bf16.mxu0 %v13884_v50  ;;  %v8177_v50 = vld [vmem:[%s13421_s4 + $0x240] ss:$16 sps:$4 sm:$0xff]   ;;  %s6521_s4 = sld [smem:[#allocation3 + $0x1]] }
0x143d   :  { %5538 = vmatpush1.bf16.msra.mxu1 %v8173_v9  ;;  %5579 = vmatpush1.bf16.msra.mxu0 %v8174_v40 }
0x143e   :  { %5539 = vmatprep.subr.bf16.mxu1 %v8175_v47  ;;  %5580 = vmatprep.subr.bf16.mxu0 %v8176_v41  ;;  %v6736_v47 = vpack.c.bf16 %v5646_v28, %v5645_v24  ;;  %v6525_v24 = vld [vmem:[%s13423_s6 + $0x110] sm:$0xff]  ;;  %v6527_v28 = vld [vmem:[%s13423_s6 + $0x120] sm:$0xff] }
0x1441   :  { %5540 = vmatpush1.bf16.msra.mxu1 %v8177_v50  ;;  %5581 = vmatpush1.bf16.msra.mxu0 %v8178_v12  ;;  %v5647_v50 = vld [vmem:[%s13423_s6 + $0x10] sm:$0xff] }
0x1442   :  { %5541 = vmatprep.subr.bf16.mxu1 %v8179_v13  ;;  %5582 = vmatprep.subr.bf16.mxu0 %v8180_v17  ;;  %v5648_v13 = vld [vmem:[%s13423_s6 + $0x18] sm:$0xff]  ;;  %v6505_v17 = vld [vmem:[%s13423_s6 + $0x90] sm:$0xff] }
0x1445   :  { %5542 = vmatpush1.bf16.msra.mxu1 %v8181_v42  ;;  %5583 = vmatpush1.bf16.msra.mxu0 %v8182_v56  ;;  %v6506_v42 = vld [vmem:[%s13423_s6 + $0x98] sm:$0xff]  ;;  %v6739_v56 = vpack.c.bf16 %v5648_v13, %v5647_v50  ;;  %v6532_v50 = vld [vmem:[%s13423_s6 + $0x148] sm:$0xff]  ;;  %v6533_v13 = vld [vmem:[%s13423_s6 + $0x150] sm:$0xff] }
0x1446   :  { %5543 = vmatprep.subr.bf16.mxu1 %v8183_v37  ;;  %5584 = vmatprep.subr.bf16.mxu0 %v8184_v4  ;;  %v6763_v37 = vpack.c.bf16 %v6506_v42, %v6505_v17  ;;  %v5649_v4 = vld [vmem:[%s13423_s6 + $0x20] sm:$0xff]  ;;  %v6534_v17 = vld [vmem:[%s13423_s6 + $0x158] sm:$0xff] }
0x1447   :  { %v6799_v42 = vpack.c.bf16 %v6534_v17, %v6533_v13 }
0x1449   :  { %5544 = vmatpush1.bf16.msra.mxu1 %v8185_v29  ;;  %5585 = vmatpush1.bf16.msra.mxu0 %v8186_v54  ;;  %v5650_v29 = vld [vmem:[%s13423_s6 + $0x28] sm:$0xff]  ;;  %v6507_v54 = vld [vmem:[%s13423_s6 + $0xa0] sm:$0xff] }
0x144a   :  { %5545 = vmatprep.subr.bf16.mxu1 %v8187_v51  ;;  %5586 = vmatprep.subr.bf16.mxu0 %v8188_v10  ;;  %v6508_v51 = vld [vmem:[%s13423_s6 + $0xa8] sm:$0xff]  ;;  %v8232_v10 = vmov 0.0  }
0x144d   :  { %5546 = vmatpush1.bf16.msra.mxu1 %v8189_v27  ;;  %5587 = vmatpush1.bf16.msra.mxu0 %v8190_v15  ;;  %v6742_v27 = vpack.c.bf16 %v5650_v29, %v5649_v4  ;;  %v6766_v15 = vpack.c.bf16 %v6508_v51, %v6507_v54  ;;  %v6537_v29 = vld [vmem:[%s13423_s6 + $0x170] sm:$0xff]  ;;  %v6538_v54 = vld [vmem:[%s13423_s6 + $0x178] sm:$0xff] }
0x144e   :  { %5547 = vmatprep.subr.bf16.mxu1 %v8191_v8  ;;  %5588 = vmatprep.subr.bf16.mxu0 %v8192_v57  ;;  %v5651_v8 = vld [vmem:[%s13423_s6 + $0x30] sm:$0xff]  ;;  %v5652_v57 = vld [vmem:[%s13423_s6 + $0x38] sm:$0xff]  ;;  %v6805_v51 = vpack.c.bf16 %v6538_v54, %v6537_v29 }
0x1451   :  { %5548 = vmatpush1.bf16.msra.mxu1 %v8193_v43  ;;  %5589 = vmatpush1.bf16.msra.mxu0 %v8194_v55  ;;  %v6509_v43 = vld [vmem:[%s13423_s6 + $0xb0] sm:$0xff]  ;;  %v6510_v55 = vld [vmem:[%s13423_s6 + $0xb8] sm:$0xff] }
0x1452   :  { %5549 = vmatprep.subr.bf16.mxu1 %v8195_v45  ;;  %5590 = vmatprep.subr.bf16.mxu0 %v8196_v48  ;;  %v6745_v45 = vpack.c.bf16 %v5652_v57, %v5651_v8  ;;  %v6769_v48 = vpack.c.bf16 %v6510_v55, %v6509_v43 }
0x1455   :  { %5550 = vmatpush1.bf16.msra.mxu1 %v8197_v60  ;;  %5591 = vmatpush1.bf16.msra.mxu0 %v8198_v32  ;;  %v5653_v60 = vld [vmem:[%s13423_s6 + $0x40] sm:$0xff]  ;;  %v5654_v32 = vld [vmem:[%s13423_s6 + $0x48] sm:$0xff] }
0x1456   :  { %6735 = vmatprep.subr.bf16.mxu1 %v8230_v35  ;;  %6759 = vmatprep.subr.bf16.mxu0 %v8230_v35 }
0x150b   :  { %v5458_v18 = vpop.f32.mrb[104].mxu1  ;;  %v5499_v6 = vpop.f32.mrb[112].mxu0 }
0x150c   :  { %v6863_v53 = vadd.f32 %v5458_v18, %v14607_v21  ;;  %v5460_v31 = vpop.f32.mrb[105].mxu1  ;;  %v5501_v58 = vpop.f32.mrb[113].mxu0  ;;  %v6865_v26 = vadd.f32 %v5499_v6, %v10597_v30  ;;  %v6511_v18 = vld [vmem:[%s13423_s6 + $0xc0] sm:$0xff]  ;;  %v6512_v6 = vld [vmem:[%s13423_s6 + $0xc8] sm:$0xff] }
0x150d   :  { %v6864_v33 = vadd.f32 %v5460_v31, %v14608_v11  ;;  %v5462_v44 = vpop.f32.mrb[106].mxu1  ;;  %v5503_v2 = vpop.f32.mrb[114].mxu0  ;;  %v6866_v59 = vadd.f32 %v5501_v58, %v14609_v34  ;;  %v6772_v31 = vpack.c.bf16 %v6512_v6, %v6511_v18  ;;  %v5655_v58 = vld [vmem:[%s13423_s6 + $0x50] sm:$0xff] }
0x150e   :  { %v6496_v3 = vmul.f32 -1.442695, %v6863_v53  ;;  %v5463_v23 = vpop.f32.mrb[107].mxu1  ;;  %v5504_v25 = vpop.f32.mrb[115].mxu0  ;;  %v6498_v62 = vmul.f32 -1.442695, %v6865_v26  ;;  %v6748_v53 = vpack.c.bf16 %v5654_v32, %v5653_v60 }
0x150f   :  { %v6497_v22 = vmul.f32 -1.442695, %v6864_v33  ;;  %v5656_v33 = vld [vmem:[%s13423_s6 + $0x58] sm:$0xff]  ;;  %v6513_v44 = vld [vmem:[%s13423_s6 + $0xd0] sm:$0xff]  ;;  %v5657_v25 = vld [vmem:[%s13423_s6 + $0x60] sm:$0xff] }
0x1510   :  { %7669 = vpow2.f32 %v6496_v3  ;;  %v6514_v2 = vld [vmem:[%s13423_s6 + $0xd8] sm:$0xff]  ;;  %v6751_v3 = vpack.c.bf16 %v5656_v33, %v5655_v58  ;;  %v6515_v26 = vld [vmem:[%s13423_s6 + $0xe0] sm:$0xff] }
0x1511   :  { %7671 = vpow2.f32 %v6497_v22  ;;  %v6775_v23 = vpack.c.bf16 %v6514_v2, %v6513_v44  ;;  %v5658_v22 = vld [vmem:[%s13423_s6 + $0x68] sm:$0xff] }
0x1512   :  { %7673 = vtanh.f32 %v6866_v59  ;;  %v6516_v59 = vld [vmem:[%s13423_s6 + $0xe8] sm:$0xff] }
0x1513   :  { %7675 = vpow2.f32 %v6498_v62  ;;  %v6754_v62 = vpack.c.bf16 %v5658_v22, %v5657_v25 }
0x151a   :  { %v7670_v0 = vpop.eup %7669 }
0x151b   :  { %v5519_v16 = vadd.f32 1.0, %v7670_v0  ;;  %v7672_v7 = vpop.eup %7671  ;;  %v6778_v0 = vpack.c.bf16 %v6516_v59, %v6515_v26  ;;  %v6520_v26 = vld [vmem:[%s13424_s7 + $0x1] ss:$0 sm:$0xff] }
0x151c   :  { %v5520_v19 = vadd.f32 1.0, %v7672_v7  ;;  %v7674_v36 = vpop.eup %7673  ;;  %v5660_v7 = vld [vmem:[%s13423_s6 + $0x78] sm:$0xff] }
0x151d   :  { %7677 = vrcp.f32 %v5519_v16  ;;  %v7676_v38 = vpop.eup %7675  ;;  %v5659_v16 = vld [vmem:[%s13423_s6 + $0x70] sm:$0xff] }
0x151e   :  { %7679 = vrcp.f32 %v5520_v19  ;;  %v5521_v63 = vadd.f32 1.0, %v7676_v38  ;;  %v6517_v19 = vld [vmem:[%s13423_s6 + $0xf0] sm:$0xff]  ;;  %v6757_v38 = vpack.c.bf16 %v5660_v7, %v5659_v16 }
0x1520   :  { %7681 = vrcp.f32 %v5521_v63  ;;  %v6524_v63 = vld [vmem:[%s13423_s6 + $0x108] sm:$0xff] }
0x1527   :  { %v7678_v14 = vpop.eup %7677 }
0x1528   :  { %v5530_v61 = vmul.f32 %v7678_v14, %v7674_v36  ;;  %v7680_v52 = vpop.eup %7679  ;;  %v6518_v36 = vld [vmem:[%s13423_s6 + $0xf8] sm:$0xff] }
0x1529   :  { %v5529_v5 = vmul.f32 %v7680_v52, %v13051_v46  ;;  %v6504_v46 = vld [vmem:[%s13423_s6 + $0x88] sm:$0xff]  ;;  %v6781_v14 = vpack.c.bf16 %v6518_v36, %v6517_v19  ;;  %v6523_v52 = vld [vmem:[%s13423_s6 + $0x100] sm:$0xff] }
0x152a   :  { %v7682_v49 = vpop.eup %7681  ;;  %v6760_v41 = vpack.c.bf16 %v6504_v46, %v6503_v1  ;;  %v6528_v1 = vld [vmem:[%s13423_s6 + $0x128] sm:$0xff] }
0x152b   :  { %v13201_v39 = vadd.f32 %v5530_v61, %v5529_v5  ;;  %v14610_v61 = vld [vmem:[#allocation44_spill] sm:$0xff]  ;;  %v6784_v5 = vpack.c.bf16 %v6524_v63, %v6523_v52  ;;  %v6790_v46 = vpack.c.bf16 %v6528_v1, %v6527_v28 }
0x152d   :  { %7683 = vtanh.f32 %v13201_v39 }
0x1537   :  { %v7684_v9 = vpop.eup %7683 }
0x1538   :  { %v5533_v40 = vmul.f32 %v7684_v9, %v7682_v49  ;;  %v6529_v9 = vld [vmem:[%s13423_s6 + $0x130] sm:$0xff] }
0x153a   :  { %v5534_v12 = vpack.c.bf16 %v5533_v40, %v5533_v40  ;;  %v6530_v40 = vld [vmem:[%s13423_s6 + $0x138] sm:$0xff] }
0x153c   :  { %5568 = vmatmul.mubr.bf16.vlgmr.msra.gmra.mrb[108].mxu1 %v5534_v12  ;;  %5609 = vmatmul.mubr.bf16.vlgmr.msra.gmra.mrb[116].mxu0 %v5534_v12 }
0x153d   :  { %6737 = vmatpush3.bf16.msra.mxu1 %v6736_v47  ;;  %6761 = vmatpush3.bf16.msra.mxu0 %v6760_v41  ;;  %v6793_v47 = vpack.c.bf16 %v6530_v40, %v6529_v9  ;;  %v6531_v41 = vld [vmem:[%s13423_s6 + $0x140] sm:$0xff] }
0x153e   :  { %6738 = vmatprep.subr.bf16.mxu1 %v8230_v35  ;;  %6762 = vmatprep.subr.bf16.mxu0 %v8230_v35  ;;  %v6796_v12 = vpack.c.bf16 %v6532_v50, %v6531_v41 }
0x153f   :  { %6662 = vmatprep.mubr.msk.f32.mxu1 %vm8231_vm0, %v8232_v10  ;;  %6697 = vmatprep.mubr.msk.f32.mxu0 %vm8231_vm0, %v8232_v10 }
0x1541   :  { %6740 = vmatpush3.bf16.msra.mxu1 %v6739_v56  ;;  %6764 = vmatpush3.bf16.msra.mxu0 %v6763_v37  ;;  %v6535_v56 = vld [vmem:[%s13423_s6 + $0x160] sm:$0xff]  ;;  %v6536_v37 = vld [vmem:[%s13423_s6 + $0x168] sm:$0xff] }
0x1542   :  { %6741 = vmatprep.subr.bf16.mxu1 %v8230_v35  ;;  %6765 = vmatprep.subr.bf16.mxu0 %v8230_v35  ;;  %v6802_v4 = vpack.c.bf16 %v6536_v37, %v6535_v56 }
0x1545   :  { %6743 = vmatpush3.bf16.msra.mxu1 %v6742_v27  ;;  %6767 = vmatpush3.bf16.msra.mxu0 %v6766_v15 }
0x1546   :  { %6744 = vmatprep.subr.bf16.mxu1 %v8230_v35  ;;  %6768 = vmatprep.subr.bf16.mxu0 %v8230_v35 }
0x1549   :  { %6746 = vmatpush3.bf16.msra.mxu1 %v6745_v45  ;;  %6770 = vmatpush3.bf16.msra.mxu0 %v6769_v48 }
0x154a   :  { %6747 = vmatprep.subr.bf16.mxu1 %v8230_v35  ;;  %6771 = vmatprep.subr.bf16.mxu0 %v8230_v35 }
0x154d   :  { %6749 = vmatpush3.bf16.msra.mxu1 %v6748_v53  ;;  %6773 = vmatpush3.bf16.msra.mxu0 %v6772_v31 }
0x154e   :  { %6750 = vmatprep.subr.bf16.mxu1 %v8230_v35  ;;  %6774 = vmatprep.subr.bf16.mxu0 %v8230_v35 }
0x1551   :  { %6752 = vmatpush3.bf16.msra.mxu1 %v6751_v3  ;;  %6776 = vmatpush3.bf16.msra.mxu0 %v6775_v23 }
0x1552   :  { %6753 = vmatprep.subr.bf16.mxu1 %v8230_v35  ;;  %6777 = vmatprep.subr.bf16.mxu0 %v8230_v35 }
0x1555   :  { %6755 = vmatpush3.bf16.msra.mxu1 %v6754_v62  ;;  %6779 = vmatpush3.bf16.msra.mxu0 %v6778_v0 }
0x1556   :  { %6756 = vmatprep.subr.bf16.mxu1 %v8230_v35  ;;  %6780 = vmatprep.subr.bf16.mxu0 %v8230_v35 }
0x1559   :  { %6758 = vmatpush3.bf16.msra.mxu1 %v6757_v38  ;;  %6782 = vmatpush3.bf16.msra.mxu0 %v6781_v14 }
0x155a   :  { %6783 = vmatprep.subr.bf16.mxu1 %v8230_v35 }
0x155c   :  { %6663 = vmatmul.mubr.f32.vlgmr.msra.gmra.mrb[112].mxu1 %v14610_v61  ;;  %6698 = vmatmul.mubr.f32.vlgmr.msra.gmra.mrb[120].mxu0 %v13059_v20  ;;  %v6526_v20 = vld [vmem:[%s13423_s6 + $0x118] sm:$0xff] }
0x155d   :  { %6732 = vmatprep.mubr.msk.f32.mxu1 %vm8231_vm0, %v8232_v10  ;;  %6785 = vmatpush3.bf16.msra.mxu1 %v6784_v5  ;;  %v6787_v49 = vpack.c.bf16 %v6526_v20, %v6525_v24 }
0x155e   :  { %6786 = vmatprep.subr.bf16.mxu1 %v8230_v35 }
0x1561   :  { %6788 = vmatpush3.bf16.msra.mxu1 %v6787_v49 }
0x1562   :  { %6789 = vmatprep.subr.bf16.mxu1 %v8230_v35 }
0x1565   :  { %6791 = vmatpush3.bf16.msra.mxu1 %v6790_v46  ;;  %v6540_v46 = vld [vmem:[%s13424_s7 + $0x2] ss:$0 sm:$0xff] }
0x1566   :  { %6792 = vmatprep.subr.bf16.mxu1 %v8230_v35 }
0x1569   :  { %6794 = vmatpush3.bf16.msra.mxu1 %v6793_v47 }
0x156a   :  { %6795 = vmatprep.subr.bf16.mxu1 %v8230_v35 }
0x156d   :  { %6797 = vmatpush3.bf16.msra.mxu1 %v6796_v12 }
0x156e   :  { %6798 = vmatprep.subr.bf16.mxu1 %v8230_v35 }
0x1571   :  { %6800 = vmatpush3.bf16.msra.mxu1 %v6799_v42 }
0x1572   :  { %6801 = vmatprep.subr.bf16.mxu1 %v8230_v35 }
0x1575   :  { %6803 = vmatpush3.bf16.msra.mxu1 %v6802_v4 }
0x1576   :  { %6804 = vmatprep.subr.bf16.mxu1 %v8230_v35 }
0x1579   :  { %6806 = vmatpush3.bf16.msra.mxu1 %v6805_v51 }
0x160f   :  { %v5569_v10 = vpop.f32.mrb[108].mxu1  ;;  %v5610_v27 = vpop.f32.mrb[116].mxu0 }
0x1610   :  { %v6867_v15 = vadd.f32 %v5569_v10, %v14607_v21  ;;  %v5571_v8 = vpop.f32.mrb[109].mxu1  ;;  %v5612_v57 = vpop.f32.mrb[117].mxu0  ;;  %v6869_v6 = vadd.f32 %v5610_v27, %v10597_v30  ;;  %v6502_v30 = vld [vmem:[%s13424_s7] ss:$0 sm:$0xff] }
0x1611   :  { %v6868_v43 = vadd.f32 %v5571_v8, %v14608_v11  ;;  %v5573_v55 = vpop.f32.mrb[110].mxu1  ;;  %v5614_v45 = vpop.f32.mrb[118].mxu0  ;;  %v6870_v35 = vadd.f32 %v5612_v57, %v14609_v34 }
0x1612   :  { %v6499_v48 = vmul.f32 -1.442695, %v6867_v15  ;;  %v5574_v60 = vpop.f32.mrb[111].mxu1  ;;  %v5615_v32 = vpop.f32.mrb[119].mxu0  ;;  %v6501_v53 = vmul.f32 -1.442695, %v6869_v6 }
0x1613   :  { %v6500_v18 = vmul.f32 -1.442695, %v6868_v43  ;;  %v5767_v43 = vld [vmem:[%s13425_s8] sm:$0xff] }
0x1614   :  { %7685 = vpow2.f32 %v6499_v48 }
0x1615   :  { %7687 = vpow2.f32 %v6500_v18 }
0x1616   :  { %7689 = vtanh.f32 %v6870_v35 }
0x1617   :  { %7691 = vpow2.f32 %v6501_v53 }
0x161e   :  { %v7686_v31 = vpop.eup %7685 }
0x161f   :  { %v5630_v58 = vadd.f32 1.0, %v7686_v31  ;;  %v7688_v21 = vpop.eup %7687 }
0x1620   :  { %v5631_v11 = vadd.f32 1.0, %v7688_v21  ;;  %v7690_v33 = vpop.eup %7689 }
0x1621   :  { %7693 = vrcp.f32 %v5630_v58  ;;  %v7692_v44 = vpop.eup %7691 }
0x1622   :  { %7695 = vrcp.f32 %v5631_v11  ;;  %v5632_v25 = vadd.f32 1.0, %v7692_v44 }
0x1624   :  { %7697 = vrcp.f32 %v5632_v25 }
0x162b   :  { %v7694_v2 = vpop.eup %7693 }
0x162c   :  { %v5641_v3 = vmul.f32 %v7694_v2, %v7690_v33  ;;  %v7696_v23 = vpop.eup %7695 }
0x162d   :  { %v5640_v34 = vmul.f32 %v7696_v23, %v13201_v39 }
0x162e   :  { %v7698_v39 = vpop.eup %7697 }
0x162f   :  { %v5734_v22 = vpop.f32.mrb[112].mxu1  ;;  %v5879_v59 = vpop.f32.mrb[120].mxu0  ;;  %v5642_v62 = vadd.f32 %v5641_v3, %v5640_v34 }
0x1630   :  { %v5735_v0 = vadd.f32 %v6502_v30, %v5734_v22  ;;  %v6664_v16 = vpop.f32.mrb[113].mxu1  ;;  %v6699_v7 = vpop.f32.mrb[121].mxu0  ;;  %v5880_v19 = vadd.f32 %v6520_v26, %v5879_v59 }
0x1631   :  { %7699 = vtanh.f32 %v5642_v62 }
0x1632   :  { %v5739_v36 = vsel %vm5738_vm1, %v5735_v0, -inf  ;;  %v5883_v38 = vsel %vm5738_vm1, %v5880_v19, -inf }
0x1633   :  { %5740 = vmax.xlane.f32.xlu0 %v5739_v36 }
0x1637   :  { %5884 = vmax.xlane.f32.xlu0 %v5883_v38 }
0x163b   :  { %v7700_v14 = vpop.eup %7699 }
0x163c   :  { %v5644_v61 = vmul.f32 %v7700_v14, %v7698_v39 }
0x163e   :  { %6733 = vmatmul.mubr.f32.vlgmr.msra.gmra.mrb[114].mxu1 %v5644_v61 }
0x16c0   :  { %v5741_v52 = vpop.xlane.xlu0 %5740 }
0x16c1   :  { %v5742_v28 = vsub.f32 %v5735_v0, %v5741_v52 }
0x16c3   :  { %v5743_v1 = vmul.f32 1.442695, %v5742_v28 }
0x16c4   :  { %v5885_v63 = vpop.xlane.xlu0 %5884 }
0x16c5   :  { %v5886_v5 = vsub.f32 %v5880_v19, %v5885_v63 }
0x16c7   :  { %v5887_v24 = vmul.f32 1.442695, %v5886_v5 }
0x16c9   :  { %7701 = vpow2.f32 %v5887_v24 }
0x16ca   :  { %7703 = vpow2.f32 %v5743_v1 }
0x16d3   :  { %v7702_v20 = vpop.eup %7701 }
0x16d4   :  { %v5889_v49 = vsel %vm5738_vm1, %v7702_v20, 0.0  ;;  %v7704_v50 = vpop.eup %7703 }
0x16d5   :  { %5890 = vadd.xlane.f32.xlu0 %v5889_v49  ;;  %v5745_v12 = vsel %vm5738_vm1, %v7704_v50, 0.0 }
0x1711   :  { %v6022_v9 = vpop.f32.mrb[114].mxu1 }
0x1712   :  { %v6023_v40 = vadd.f32 %v6540_v46, %v6022_v9  ;;  %v6734_v47 = vpop.f32.mrb[115].mxu1 }
0x1714   :  { %v6026_v41 = vsel %vm5738_vm1, %v6023_v40, -inf }
0x1715   :  { %6027 = vmax.xlane.f32.xlu1 %v6026_v41 }
0x1719   :  { %5746 = vadd.xlane.f32.xlu1 %v5745_v12 }
0x1762   :  { %v5891_v13 = vpop.xlane.xlu0 %5890 }
0x1763   :  { %7705 = vlog2.f32 %v5891_v13 }
0x176d   :  { %v7706_v4 = vpop.eup %7705 }
0x176e   :  { %v5893_v29 = vmul.f32 0.6931472, %v7706_v4 }
0x1770   :  { %v5894_v54 = vsub.f32 %v5886_v5, %v5893_v29 }
0x1772   :  { %v5895_v8 = vmul.f32 1.442695, %v5894_v54  ;;  %v5911_v60 = vmul.f32 %v5894_v54, %v5767_v43 }
0x1774   :  { %v5912_v32 = vsel %vm5738_vm1, %v5911_v60, 0.0 }
0x17a2   :  { %v6028_v17 = vpop.xlane.xlu1 %6027 }
0x17a3   :  { %v6029_v42 = vsub.f32 %v6023_v40, %v6028_v17 }
0x17a5   :  { %v6030_v56 = vmul.f32 1.442695, %v6029_v42 }
0x17a6   :  { %v5747_v37 = vpop.xlane.xlu1 %5746 }
0x17a7   :  { %7707 = vpow2.f32 %v6030_v56 }
0x17a8   :  { %7709 = vlog2.f32 %v5747_v37 }
0x17a9   :  { %7711 = vpow2.f32 %v5895_v8 }
0x17b1   :  { %v7708_v51 = vpop.eup %7707 }
0x17b2   :  { %v7710_v10 = vpop.eup %7709  ;;  %v6032_v27 = vsel %vm5738_vm1, %v7708_v51, 0.0 }
0x17b3   :  { %v5749_v15 = vmul.f32 0.6931472, %v7710_v10  ;;  %6033 = vadd.xlane.f32.xlu1 %v6032_v27  ;;  %v7712_v18 = vpop.eup %7711 }
0x17b4   :  { %v5897_v31 = vmul.f32 %v7712_v18, %v5894_v54 }
0x17b5   :  { %v5750_v57 = vsub.f32 %v5742_v28, %v5749_v15 }
0x17b6   :  { %v5898_v58 = vsel %vm5738_vm1, %v5897_v31, 0.0 }
0x17b7   :  { %v5751_v55 = vmul.f32 1.442695, %v5750_v57  ;;  %v5768_v45 = vmul.f32 %v5767_v43, %v5750_v57 }
0x17b9   :  { %7713 = vpow2.f32 %v5751_v55  ;;  %v5769_v48 = vsel %vm5738_vm1, %v5768_v45, 0.0 }
0x17ba   :  { %5770 = vadd.xlane.f32.xlu1 %v5769_v48 }
0x17be   :  { %5913 = vadd.xlane.f32.xlu1 %v5912_v32 }
0x17c3   :  { %v7714_v6 = vpop.eup %7713 }
0x17c4   :  { %v5753_v35 = vmul.f32 %v7714_v6, %v5750_v57 }
0x17c6   :  { %v5754_v53 = vsel %vm5738_vm1, %v5753_v35, 0.0 }
0x17c7   :  { %5755 = vadd.xlane.f32.xlu0 %v5754_v53 }
0x17cb   :  { %5899 = vadd.xlane.f32.xlu0 %v5898_v58 }
0x1840   :  { %v6034_v21 = vpop.xlane.xlu1 %6033 }
0x1841   :  { %7715 = vlog2.f32 %v6034_v21 }
0x1847   :  { %v5771_v11 = vpop.xlane.xlu1 %5770 }
0x1848   :  { %v5772_v2 = vrot.slane %v5771_v11, 4 }
0x184a   :  { %v5773_v30 = vadd.f32 %v5772_v2, %v5771_v11 }
0x184b   :  { %v7716_v33 = vpop.eup %7715  ;;  %v5914_v3 = vpop.xlane.xlu1 %5913 }
0x184c   :  { %v6036_v44 = vmul.f32 0.6931472, %v7716_v33  ;;  %v5915_v34 = vrot.slane %v5914_v3, 4  ;;  %v5774_v59 = vrot.slane %v5773_v30, 2 }
0x184e   :  { %v6037_v23 = vsub.f32 %v6029_v42, %v6036_v44  ;;  %v5916_v62 = vadd.f32 %v5915_v34, %v5914_v3  ;;  %v5775_v38 = vadd.f32 %v5774_v59, %v5773_v30 }
0x1850   :  { %v6038_v25 = vmul.f32 1.442695, %v6037_v23  ;;  %v6054_v22 = vmul.f32 %v6037_v23, %v5767_v43  ;;  %v5917_v19 = vrot.slane %v5916_v62, 2  ;;  %v5776_v5 = vrot.slane %v5775_v38, 1 }
0x1851   :  { %v14611_v43 = vlaneseq }
0x1852   :  { %7717 = vpow2.f32 %v6038_v25  ;;  %v6055_v26 = vsel %vm5738_vm1, %v6054_v22, 0.0  ;;  %v5918_v24 = vadd.f32 %v5917_v19, %v5916_v62  ;;  %v5777_v40 = vadd.f32 %v5776_v5, %v5775_v38 }
0x1853   :  { %6056 = vadd.xlane.f32.xlu1 %v6055_v26  ;;  %v6075_v55 = vand.u32 127, %v14611_v43 }
0x1854   :  { %v5756_v0 = vpop.xlane.xlu0 %5755  ;;  %v5919_v47 = vrot.slane %v5918_v24, 1 }
0x1855   :  { %v5757_v16 = vrot.slane %v5756_v0, 4  ;;  %vm6076_vm2 = vcmp.eq.s32.totalorder %v6075_v55, 0  ;;  %vm6079_vm3 = vcmp.eq.s32.totalorder %v6075_v55, 1  ;;  %vm6082_vm4 = vcmp.eq.s32.totalorder %v6075_v55, 2 }
0x1856   :  { %v5920_v12 = vadd.f32 %v5919_v47, %v5918_v24  ;;  %vm6085_vm5 = vcmp.eq.s32.totalorder %v6075_v55, 3 }
0x1857   :  { %v5758_v7 = vadd.f32 %v5757_v16, %v5756_v0 }
0x1858   :  { %v5900_v36 = vpop.xlane.xlu0 %5899 }
0x1859   :  { %v5759_v39 = vrot.slane %v5758_v7, 2  ;;  %v5901_v14 = vrot.slane %v5900_v36, 4 }
0x185b   :  { %v5902_v61 = vadd.f32 %v5901_v14, %v5900_v36  ;;  %v5760_v52 = vadd.f32 %v5759_v39, %v5758_v7 }
0x185c   :  { %v7718_v63 = vpop.eup %7717 }
0x185d   :  { %v5903_v20 = vrot.slane %v5902_v61, 2  ;;  %v5761_v49 = vrot.slane %v5760_v52, 1  ;;  %v6040_v28 = vmul.f32 %v7718_v63, %v6037_v23 }
0x185f   :  { %v5762_v1 = vadd.f32 %v5761_v49, %v5760_v52  ;;  %v6041_v46 = vsel %vm5738_vm1, %v6040_v28, 0.0  ;;  %v5904_v9 = vadd.f32 %v5903_v20, %v5902_v61 }
0x1860   :  { %6042 = vadd.xlane.f32.xlu0 %v6041_v46 }
0x1861   :  { %6999 = vpush %v5762_v1  ;;  %v5905_v41 = vrot.slane %v5904_v9, 1 }
0x1862   :  { %7001 = vpush %v5777_v40 }
0x1863   :  { %v5906_v50 = vadd.f32 %v5905_v41, %v5904_v9 }
0x1865   :  { %7003 = vpush %v5906_v50 }
0x1866   :  { %7005 = vpush %v5920_v12 }
0x1892   :  { %s13407_s8 = spop %6999 }
0x1893   :  { %s7002_s25 = spop %7001  ;;  %s5766_s22 = smul.f32 0.125, %s13407_s8 }
0x1894   :  { %s5779_s26 = ssub.f32 0.0, %s7002_s25 }
0x1895   :  { %v6080_v48 = vstv %s5766_s22 }
0x1896   :  { %s13409_s9 = spop %7003  ;;  %s5782_s5 = smul.f32 0.125, %s5779_s26 }
0x1897   :  { %s7006_s10 = spop %7005  ;;  %s5910_s23 = smul.f32 0.125, %s13409_s9 }
0x1898   :  { %s5922_s27 = ssub.f32 0.0, %s7006_s10  ;;  %s5784_s30 = smul.f32 %s5783_s0, %s5782_s5 }
0x1899   :  { %v6083_v32 = vstv %s5910_s23 }
0x189a   :  { %s5925_s29 = smul.f32 0.125, %s5922_s27  ;;  %s5787_s2 = sadd.f32 %s5786_s28, %s5784_s30 }
0x189c   :  { %s5927_s12 = smul.f32 %s6521_s4, %s5925_s29 }
0x189e   :  { %s5928_s16 = sadd.f32 %s5927_s12, %s5787_s2 }
0x18a0   :  { %s5930_s6 = sadd.f32 %s6522_s13, %s5928_s16 }
0x18e0   :  { %v6057_v13 = vpop.xlane.xlu1 %6056 }
0x18e1   :  { %v6058_v17 = vrot.slane %v6057_v13, 4 }
0x18e3   :  { %v6059_v42 = vadd.f32 %v6058_v17, %v6057_v13 }
0x18e5   :  { %v6060_v56 = vrot.slane %v6059_v42, 2 }
0x18e7   :  { %v6061_v54 = vadd.f32 %v6060_v56, %v6059_v42 }
0x18e9   :  { %v6062_v27 = vrot.slane %v6061_v54, 1 }
0x18eb   :  { %v6063_v57 = vadd.f32 %v6062_v27, %v6061_v54 }
0x18ed   :  { %v6043_v37 = vpop.xlane.xlu0 %6042 }
0x18ee   :  { %v6044_v4 = vrot.slane %v6043_v37, 4 }
0x18f0   :  { %v6045_v29 = vadd.f32 %v6044_v4, %v6043_v37 }
0x18f2   :  { %v6046_v51 = vrot.slane %v6045_v29, 2 }
0x18f4   :  { %v6047_v10 = vadd.f32 %v6046_v51, %v6045_v29 }
0x18f6   :  { %v6048_v15 = vrot.slane %v6047_v10, 1 }
0x18f8   :  { %v6049_v8 = vadd.f32 %v6048_v15, %v6047_v10 }
0x18fa   :  { %7007 = vpush %v6049_v8 }
0x18fb   :  { %7009 = vpush %v6063_v57 }
0x192b   :  { %s7008_s15 = spop %7007 }
0x192c   :  { %s7010_s17 = spop %7009  ;;  %s6053_s7 = smul.f32 0.125, %s7008_s15 }
0x192d   :  { %s6065_s18 = ssub.f32 0.0, %s7010_s17 }
0x192e   :  { %v6086_v6 = vstv %s6053_s7 }
0x192f   :  { %s6068_s20 = smul.f32 0.125, %s6065_s18 }
0x1931   :  { %s6070_s3 = smul.f32 %s6541_s14, %s6068_s20 }
0x1933   :  { %s6071_s21 = sadd.f32 %s6070_s3, %s5930_s6 }
0x1935   :  { %s6073_s24 = sadd.f32 %s6542_s19, %s6071_s21 }
0x1937   :  { %v6077_v45 = vstv %s6073_s24 }
0x1938   :  { %v6078_v60 = vsel %vm6076_vm2, %v6077_v45, 0.0 }
0x1939   :  { %v6081_v18 = vsel %vm6079_vm3, %v6080_v48, %v6078_v60 }
0x193a   :  { %v6084_v35 = vsel %vm6082_vm4, %v6083_v32, %v6081_v18 }
0x193b   :  { %v6087_v53 = vsel %vm6085_vm5, %v6086_v6, %v6084_v35 }
0x193c   :  { %6088 = vst [vmem:[%s13428_s11] sm:$0x1] %v6087_v53 }
0x193d   :  { %6093 = vsyncpa [#allocation4], 1 }
0x193e   :  { %6094 = vsyncpa [#allocation6], 1 }

</bundles_post_ra>
